<compile_context>
chip_gen: v6e
topology: v6e:2x2x1
jax: 0.10.0
libtpu: 0.0.40
codegen_flags: <defaults>
</compile_context>

<pallas_src>
import jax
import jax.numpy as jnp
from jax.experimental import pallas as pl
from jax.experimental.pallas import tpu as pltpu

# --- problem sizes ---------------------------------------------------------
IN_FEATURES = 6137            # 17 * 19 * 19
IN_FEATURES_PAD = 6144        # 48 * 128 (zero-padded -> identical dot)
HIDDEN1 = 512
HIDDEN2 = 256
N_ACTIONS = 362               # 19*19 + 1 (Go pass move)
N_ACTIONS_PAD = 384           # 3 * 128 -> unmasked (lane-dense) output stores


def _round_up(x, m):
    return (x + m - 1) // m * m


def _next_pow2(x):
    p = 1
    while p < x:
        p *= 2
    return p


def _batch_tiling(B):
    """Bucketed batch tiling: one tile of 16/32/64/128 rows for small batches
    (so distinct B values share a compilation), 128-row tiles for big ones."""
    if B <= 128:
        b_pad = max(16, _next_pow2(B))
        return b_pad, b_pad            # bm == b_pad, n_b == 1
    return 128, _round_up(B, 128)


def qnet_kernel(x_ref, w1_ref, b1_ref, w2_ref, b2_ref, w3_ref, b3_ref, o_ref):
    """Grid = (batch_tiles,).  All weights resident in VMEM; three MXU matmuls
    with f32 accumulation, bf16 inter-layer activations."""
    h1 = jnp.dot(x_ref[...], w1_ref[...],
                 preferred_element_type=jnp.float32) + b1_ref[...]
    h1 = jnp.maximum(h1, 0.0).astype(jnp.bfloat16)

    h2 = jnp.dot(h1, w2_ref[...],
                 preferred_element_type=jnp.float32) + b2_ref[...]
    h2 = jnp.maximum(h2, 0.0).astype(jnp.bfloat16)

    o_ref[...] = jnp.dot(h2, w3_ref[...],
                         preferred_element_type=jnp.float32) + b3_ref[...]


@jax.jit
def qnetwork_forward(x_nchw, params):
    """x_nchw: [B, 17, 19, 19] float32 raw observations (0..255).
    Returns [B, 362] f32 Q-values.

    `params` must come from prep_params (padded, 1/255-folded bf16 weights,
    (1, N) f32 biases)."""
    w1, b1, w2, b2, w3, b3 = params
    B = x_nchw.shape[0]
    x_flat = x_nchw.reshape(B, -1)                       # nn.Flatten (C,H,W)

    bm, b_pad = _batch_tiling(B)
    # Pad batch + contracting dim and cast to bf16 in one fused pass.
    x_pad = jnp.pad(
        x_flat, ((0, b_pad - B), (0, IN_FEATURES_PAD - IN_FEATURES))
    ).astype(jnp.bfloat16)

    n_b = b_pad // bm

    out = pl.pallas_call(
        qnet_kernel,
        out_shape=jax.ShapeDtypeStruct((b_pad, N_ACTIONS_PAD), jnp.float32),
        grid_spec=pltpu.PrefetchScalarGridSpec(
            num_scalar_prefetch=0,
            grid=(n_b,),
            in_specs=[
                pl.BlockSpec((bm, IN_FEATURES_PAD), lambda b: (b, 0)),     # x (bf16)
                pl.BlockSpec((IN_FEATURES_PAD, HIDDEN1), lambda b: (0, 0)),  # w1 (bf16, /255 folded)
                pl.BlockSpec((1, HIDDEN1), lambda b: (0, 0)),              # b1
                pl.BlockSpec((HIDDEN1, HIDDEN2), lambda b: (0, 0)),        # w2 (bf16)
                pl.BlockSpec((1, HIDDEN2), lambda b: (0, 0)),              # b2
                pl.BlockSpec((HIDDEN2, N_ACTIONS_PAD), lambda b: (0, 0)),  # w3 (bf16)
                pl.BlockSpec((1, N_ACTIONS_PAD), lambda b: (0, 0)),        # b3
            ],
            out_specs=pl.BlockSpec((bm, N_ACTIONS_PAD), lambda b: (b, 0)),
        ),
        compiler_params=pltpu.CompilerParams(
            dimension_semantics=("parallel",),
            vmem_limit_bytes=32 * 1024 * 1024,
        ),
    )(x_pad, w1, b1, w2, b2, w3, b3)

    return out[:B, :N_ACTIONS]


def prep_params(w1, b1, w2, b2, w3, b3):
    """One-time prep: fold the 1/255 input scale into w1, zero-pad the
    contracting / action dims, cast weights to bf16, reshape biases to (1, N).
    Zero padding keeps the math exact; folding the scale is exact because
    (x/255) @ w1 == x @ (w1/255)."""
    w1s = w1 * jnp.float32(1.0 / 255.0)
    w1p = jnp.zeros((IN_FEATURES_PAD, HIDDEN1), jnp.float32).at[:IN_FEATURES].set(w1s)
    w3p = jnp.zeros((HIDDEN2, N_ACTIONS_PAD), jnp.float32).at[:, :N_ACTIONS].set(w3)
    b3p = jnp.zeros((N_ACTIONS_PAD,), jnp.float32).at[:N_ACTIONS].set(b3)
    return (
        w1p.astype(jnp.bfloat16),
        b1.reshape(1, HIDDEN1).astype(jnp.float32),
        w2.astype(jnp.bfloat16),
        b2.reshape(1, HIDDEN2).astype(jnp.float32),
        w3p.astype(jnp.bfloat16),
        b3p.reshape(1, N_ACTIONS_PAD).astype(jnp.float32),
    )


def init_params(key):
    """Synthetic parameters, stored as [in, out] so the kernel computes x @ W."""
    k1, k2, k3, k4, k5, k6 = jax.random.split(key, 6)
    w1 = jax.random.normal(k1, (IN_FEATURES, HIDDEN1), jnp.float32) * 0.02
    b1 = jax.random.normal(k2, (HIDDEN1,), jnp.float32) * 0.01
    w2 = jax.random.normal(k3, (HIDDEN1, HIDDEN2), jnp.float32) * 0.02
    b2 = jax.random.normal(k4, (HIDDEN2,), jnp.float32) * 0.01
    w3 = jax.random.normal(k5, (HIDDEN2, N_ACTIONS), jnp.float32) * 0.02
    b3 = jax.random.normal(k6, (N_ACTIONS,), jnp.float32) * 0.01
    return w1, b1, w2, b2, w3, b3


if __name__ == "__main__":
    key = jax.random.PRNGKey(0)
    k_params, k_x = jax.random.split(key)

    raw = init_params(k_params)
    params = prep_params(*raw)           # one-time: fold /255, pad, bf16 cast

    # Small module-consistent input: NCHW [2, 17, 19, 19].  Integer-valued
    # raw observations in [0, 255] (exactly representable in bf16, matching
    # real Go / pixel observation planes).
    B = 2
    x = jax.random.randint(k_x, (B, 17, 19, 19), 0, 256).astype(jnp.float32)

    q_values = qnetwork_forward(x, params)
    jax.block_until_ready(q_values)

    # Reference in plain JAX with the same bf16 weights / f32 accumulation and
    # the same folded-scale formulation the kernel uses.
    w1, b1, w2, b2, w3, b3 = raw
    w1s = (w1 * jnp.float32(1.0 / 255.0)).astype(jnp.bfloat16)
    xb = x.reshape(B, -1).astype(jnp.bfloat16)
    h1 = jnp.maximum(
        jnp.dot(xb, w1s, preferred_element_type=jnp.float32) + b1, 0.0
    )
    h2 = jnp.maximum(
        jnp.dot(h1.astype(jnp.bfloat16), w2.astype(jnp.bfloat16),
                preferred_element_type=jnp.float32) + b2,
        0.0,
    )
    ref = jnp.dot(h2.astype(jnp.bfloat16), w3.astype(jnp.bfloat16),
                  preferred_element_type=jnp.float32) + b3

    assert q_values.shape == (B, N_ACTIONS), q_values.shape
    assert jnp.allclose(q_values, ref, atol=1e-2, rtol=1e-2), (
        float(jnp.max(jnp.abs(q_values - ref)))
    )

    print("KERNEL_OK")
</pallas_src>

<mosaic_0001>
module attributes {stable_mosaic.version = 11 : i64} {
  func.func @qnet_kernel(%arg0: i32, %arg1: memref<16x6144xbf16, #tpu.memory_space<vmem>>, %arg2: memref<6144x512xbf16, #tpu.memory_space<vmem>>, %arg3: memref<1x512xf32, #tpu.memory_space<vmem>>, %arg4: memref<512x256xbf16, #tpu.memory_space<vmem>>, %arg5: memref<1x256xf32, #tpu.memory_space<vmem>>, %arg6: memref<256x384xbf16, #tpu.memory_space<vmem>>, %arg7: memref<1x384xf32, #tpu.memory_space<vmem>>, %arg8: memref<16x384xf32, #tpu.memory_space<vmem>>) attributes {dimension_semantics = [#tpu.dimension_semantics<parallel>], iteration_bounds = array<i64: 1>, scalar_prefetch = 0 : i64, scratch_operands = 0 : i64, tpu.core_type = #tpu.core_type<tc>, window_params = [{transform_indices = @transform_0, window_bounds = array<i64: 16, 6144>}, {pipeline_mode = #tpu.pipeline_mode<synchronous>, transform_indices = @transform_1, window_bounds = array<i64: 6144, 512>}, {pipeline_mode = #tpu.pipeline_mode<synchronous>, transform_indices = @transform_2, window_bounds = array<i64: 1, 512>}, {pipeline_mode = #tpu.pipeline_mode<synchronous>, transform_indices = @transform_3, window_bounds = array<i64: 512, 256>}, {pipeline_mode = #tpu.pipeline_mode<synchronous>, transform_indices = @transform_4, window_bounds = array<i64: 1, 256>}, {pipeline_mode = #tpu.pipeline_mode<synchronous>, transform_indices = @transform_5, window_bounds = array<i64: 256, 384>}, {pipeline_mode = #tpu.pipeline_mode<synchronous>, transform_indices = @transform_6, window_bounds = array<i64: 1, 384>}, {transform_indices = @transform_7, window_bounds = array<i64: 16, 384>}]} {
    %c0 = arith.constant 0 : index
    %c0_0 = arith.constant 0 : index
    %0 = vector.load %arg1[%c0, %c0_0] : memref<16x6144xbf16, #tpu.memory_space<vmem>>, vector<16x6144xbf16>
    %c0_1 = arith.constant 0 : index
    %c0_2 = arith.constant 0 : index
    %1 = vector.load %arg2[%c0_1, %c0_2] : memref<6144x512xbf16, #tpu.memory_space<vmem>>, vector<6144x512xbf16>
    %cst = arith.constant dense<0.000000e+00> : vector<16x512xf32>
    %2 = tpu.matmul %0, %1, %cst {dimension_numbers = #tpu.dot_dimension_numbers<[1], [0], [0], [1], [0, 0, 1, 1], [], []>} : vector<16x6144xbf16>, vector<6144x512xbf16>, vector<16x512xf32> -> vector<16x512xf32>
    %c0_3 = arith.constant 0 : index
    %c0_4 = arith.constant 0 : index
    %3 = vector.load %arg3[%c0_3, %c0_4] : memref<1x512xf32, #tpu.memory_space<vmem>>, vector<1x512xf32>
    %4 = vector.broadcast %3 : vector<1x512xf32> to vector<16x512xf32>
    %5 = arith.addf %2, %4 : vector<16x512xf32>
    %cst_5 = arith.constant 0.000000e+00 : f32
    %6 = vector.broadcast %cst_5 : f32 to vector<16x512xf32>
    %7 = arith.maximumf %5, %6 : vector<16x512xf32>
    %8 = arith.truncf %7 : vector<16x512xf32> to vector<16x512xbf16>
    %c0_6 = arith.constant 0 : index
    %c0_7 = arith.constant 0 : index
    %9 = vector.load %arg4[%c0_6, %c0_7] : memref<512x256xbf16, #tpu.memory_space<vmem>>, vector<512x256xbf16>
    %cst_8 = arith.constant dense<0.000000e+00> : vector<16x256xf32>
    %10 = tpu.matmul %8, %9, %cst_8 {dimension_numbers = #tpu.dot_dimension_numbers<[1], [0], [0], [1], [0, 0, 1, 1], [], []>} : vector<16x512xbf16>, vector<512x256xbf16>, vector<16x256xf32> -> vector<16x256xf32>
    %c0_9 = arith.constant 0 : index
    %c0_10 = arith.constant 0 : index
    %11 = vector.load %arg5[%c0_9, %c0_10] : memref<1x256xf32, #tpu.memory_space<vmem>>, vector<1x256xf32>
    %12 = vector.broadcast %11 : vector<1x256xf32> to vector<16x256xf32>
    %13 = arith.addf %10, %12 : vector<16x256xf32>
    %cst_11 = arith.constant 0.000000e+00 : f32
    %14 = vector.broadcast %cst_11 : f32 to vector<16x256xf32>
    %15 = arith.maximumf %13, %14 : vector<16x256xf32>
    %16 = arith.truncf %15 : vector<16x256xf32> to vector<16x256xbf16>
    %c0_12 = arith.constant 0 : index
    %c0_13 = arith.constant 0 : index
    %17 = vector.load %arg6[%c0_12, %c0_13] : memref<256x384xbf16, #tpu.memory_space<vmem>>, vector<256x384xbf16>
    %cst_14 = arith.constant dense<0.000000e+00> : vector<16x384xf32>
    %18 = tpu.matmul %16, %17, %cst_14 {dimension_numbers = #tpu.dot_dimension_numbers<[1], [0], [0], [1], [0, 0, 1, 1], [], []>} : vector<16x256xbf16>, vector<256x384xbf16>, vector<16x384xf32> -> vector<16x384xf32>
    %c0_15 = arith.constant 0 : index
    %c0_16 = arith.constant 0 : index
    %19 = vector.load %arg7[%c0_15, %c0_16] : memref<1x384xf32, #tpu.memory_space<vmem>>, vector<1x384xf32>
    %20 = vector.broadcast %19 : vector<1x384xf32> to vector<16x384xf32>
    %21 = arith.addf %18, %20 : vector<16x384xf32>
    %c0_17 = arith.constant 0 : index
    %c0_18 = arith.constant 0 : index
    %22 = vector.load %arg8[%c0_17, %c0_18] : memref<16x384xf32, #tpu.memory_space<vmem>>, vector<16x384xf32>
    tpu.vector_store %arg8[%c0_17, %c0_18], %21 {strides = array<i32>} : memref<16x384xf32, #tpu.memory_space<vmem>>, vector<16x384xf32>,
    return
  }
  func.func @transform_0(%arg0: i32) -> (i32, i32) {
    %c0_i32 = arith.constant 0 : i32
    %c0_i32_0 = arith.constant 0 : i32
    return %arg0, %c0_i32 : i32, i32
  }
  func.func @transform_1(%arg0: i32) -> (i32, i32) {
    %c0_i32 = arith.constant 0 : i32
    %c0_i32_0 = arith.constant 0 : i32
    %c0_i32_1 = arith.constant 0 : i32
    return %c0_i32, %c0_i32_0 : i32, i32
  }
  func.func @transform_2(%arg0: i32) -> (i32, i32) {
    %c0_i32 = arith.constant 0 : i32
    %c0_i32_0 = arith.constant 0 : i32
    %c0_i32_1 = arith.constant 0 : i32
    return %c0_i32, %c0_i32_0 : i32, i32
  }
  func.func @transform_3(%arg0: i32) -> (i32, i32) {
    %c0_i32 = arith.constant 0 : i32
    %c0_i32_0 = arith.constant 0 : i32
    %c0_i32_1 = arith.constant 0 : i32
    return %c0_i32, %c0_i32_0 : i32, i32
  }
  func.func @transform_4(%arg0: i32) -> (i32, i32) {
    %c0_i32 = arith.constant 0 : i32
    %c0_i32_0 = arith.constant 0 : i32
    %c0_i32_1 = arith.constant 0 : i32
    return %c0_i32, %c0_i32_0 : i32, i32
  }
  func.func @transform_5(%arg0: i32) -> (i32, i32) {
    %c0_i32 = arith.constant 0 : i32
    %c0_i32_0 = arith.constant 0 : i32
    %c0_i32_1 = arith.constant 0 : i32
    return %c0_i32, %c0_i32_0 : i32, i32
  }
  func.func @transform_6(%arg0: i32) -> (i32, i32) {
    %c0_i32 = arith.constant 0 : i32
    %c0_i32_0 = arith.constant 0 : i32
    %c0_i32_1 = arith.constant 0 : i32
    return %c0_i32, %c0_i32_0 : i32, i32
  }
  func.func @transform_7(%arg0: i32) -> (i32, i32) {
    %c0_i32 = arith.constant 0 : i32
    %c0_i32_0 = arith.constant 0 : i32
    return %arg0, %c0_i32 : i32, i32
  }
}

</mosaic_0001>

<bundles_post_ra>
// kernel: qnetwork_forward.1
= control target key start
LH: loop header
LB: loop body
LE: loop exit
PB: predicated region body
PF: predicated region fallthrough
CT: control target
= control target key end

     0   :  { %12 = vsyncpa [#allocation3], 0  ;;  %s17999_s0 = inlined_call_operand.vmem [shape: bf16[16,6144], index: 0, kind: input, shape index: {}]   ;;  %s18000_s1 = inlined_call_operand.hbm [shape: bf16[6144,512], index: 1, kind: input, shape index: {}]   ;;  %s18001_s2 = inlined_call_operand.hbm [shape: f32[1,512], index: 2, kind: input, shape index: {}]   ;;  %s18002_s3 = inlined_call_operand.hbm [shape: bf16[512,256], index: 3, kind: input, shape index: {}]   ;;  %s18003_s4 = inlined_call_operand.hbm [shape: f32[1,256], index: 4, kind: input, shape index: {}]   ;;  %s18004_s5 = inlined_call_operand.hbm [shape: bf16[256,384], index: 5, kind: input, shape index: {}]   ;;  %s18005_s6 = inlined_call_operand.hbm [shape: f32[1,384], index: 6, kind: input, shape index: {}]   ;;  %s18006_s7 = inlined_call_operand.vmem [shape: f32[16,384], index: 7, kind: output, shape index: {}]  }
   0x1   :  { %13 = vsyncpa [#allocation5], 0 }
   0x2   :  { %14 = vsyncpa [#allocation8], 0 }
   0x3   :  { %15 = vsyncpa [#allocation11], 0  ;;  %s16951_s24 = smov [#allocation4]   ;;  %s16952_s26 = smov [#allocation7]  }
   0x4   :  { %s36_s25 = sshll.u32 %s16951_s24, 4  ;;  %s58_s27 = sshll.u32 %s16952_s26, 4  ;;  %s37_s25 = int_to_ptr.vmem [resolvable:$true] %s36_s25  ;;  %s59_s27 = int_to_ptr.vmem [resolvable:$true] %s58_s27 }
   0x5   :  { %s16831_s28 = scalar_lea.vmem %s37_s25, 64  ;;  %p16836_p1 = scmp.lt.s32.totalorder %s37_s25, %s37_s25 }
   0x6   :  { %p16832_p0 = scmp.ne.s32.totalorder %s37_s25, %s16831_s28  ;;  %p16837_p2 = scmp.lt.s32.totalorder %s16831_s28, %s16831_s28 }
   0x8   :  { %p16838_p3 = por %p16837_p2, %p16836_p1 }
   0xa   :  { %p16839_p4 = pnand %p16838_p3, %p16832_p0 }
   0xc   :  { %16842 = shalt.err (!%p16839_p4)
}
   0xd   :  { %39 = dma.hbm_to_vmem [thread:$0]  %s18001_s2, 64, %s37_s25, [#allocation5]  }
   0xe   :  { %s16851_s8 = scalar_lea.vmem %s59_s27, 32  ;;  %p16856_p6 = scmp.lt.s32.totalorder %s59_s27, %s59_s27 }
   0xf   :  { %p16852_p5 = scmp.ne.s32.totalorder %s59_s27, %s16851_s8  ;;  %p16857_p7 = scmp.lt.s32.totalorder %s16851_s8, %s16851_s8 }
  0x11   :  { %p16858_p8 = por %p16857_p7, %p16856_p6 }
  0x13   :  { %p16859_p9 = pnand %p16858_p8, %p16852_p5 }
  0x15   :  { %16862 = shalt.err (!%p16859_p9)
}
  0x16   :  { %61 = dma.hbm_to_vmem [thread:$0]  %s18003_s4, 32, %s59_s27, [#allocation8]  }
  0x17   :  { %s16953_s11 = smov [#allocation2]  }
  0x18   :  { %s23_s12 = sshll.u32 %s16953_s11, 4  ;;  %s24_s12 = int_to_ptr.vmem [resolvable:$true] %s23_s12 }
  0x19   :  { %s16871_s13 = scalar_lea.vmem %s24_s12, 196608  ;;  %p16876_p11 = scmp.lt.s32.totalorder %s24_s12, %s24_s12 }
  0x1a   :  { %p16872_p10 = scmp.ne.s32.totalorder %s24_s12, %s16871_s13  ;;  %p16877_p12 = scmp.lt.s32.totalorder %s16871_s13, %s16871_s13 }
  0x1c   :  { %p16878_p13 = por %p16877_p12, %p16876_p11 }
  0x1e   :  { %p16879_p0 = pnand %p16878_p13, %p16872_p10 }
  0x20   :  { %16882 = shalt.err (!%p16879_p0)
}
  0x21   :  { %s16954_s2 = smov 256   ;;  %s16955_s14 = smov 16  }
  0x22   :  { %29 = dma.hbm_to_vmem [thread:$0]  %s18000_s1, 196608, %s24_s12, [#allocation3], %s16954_s2, %s16954_s2, %s16955_s14  }
  0x23   :  { %s16956_s17 = smov [#allocation6]  }
  0x24   :  { %s45_s18 = sshll.u32 %s16956_s17, 4  ;;  %s46_s18 = int_to_ptr.vmem [resolvable:$true] %s45_s18 }
  0x25   :  { %s16891_s4 = scalar_lea.vmem %s46_s18, 8192  ;;  %p16896_p2 = scmp.lt.s32.totalorder %s46_s18, %s46_s18 }
  0x26   :  { %p16892_p1 = scmp.ne.s32.totalorder %s46_s18, %s16891_s4  ;;  %p16897_p3 = scmp.lt.s32.totalorder %s16891_s4, %s16891_s4 }
  0x28   :  { %p16898_p4 = por %p16897_p3, %p16896_p2 }
  0x2a   :  { %p16899_p5 = pnand %p16898_p4, %p16892_p1 }
  0x2c   :  { %16902 = shalt.err (!%p16899_p5)
}
  0x2d   :  { %s16957_s19 = smov 128   ;;  %s16958_s20 = smov 8  }
  0x2e   :  { %51 = dma.hbm_to_vmem [thread:$0]  %s18002_s3, 8192, %s46_s18, [#allocation5], %s16957_s19, %s16957_s19, %s16958_s20  }
  0x2f   :  { %s16959_s23 = smov [#allocation9]  }
  0x30   :  { %s67_s24 = sshll.u32 %s16959_s23, 4  ;;  %s68_s24 = int_to_ptr.vmem [resolvable:$true] %s67_s24 }
  0x31   :  { %s16911_s1 = scalar_lea.vmem %s68_s24, 6144  ;;  %p16916_p7 = scmp.lt.s32.totalorder %s68_s24, %s68_s24 }
  0x32   :  { %p16912_p6 = scmp.ne.s32.totalorder %s68_s24, %s16911_s1  ;;  %p16917_p8 = scmp.lt.s32.totalorder %s16911_s1, %s16911_s1 }
  0x34   :  { %p16918_p9 = por %p16917_p8, %p16916_p7 }
  0x36   :  { %p16919_p10 = pnand %p16918_p9, %p16912_p6 }
  0x38   :  { %16922 = shalt.err (!%p16919_p10)
}
  0x39   :  { %s16960_s25 = smov 192   ;;  %s16961_s26 = smov 12  }
  0x3a   :  { %73 = dma.hbm_to_vmem [thread:$0]  %s18004_s5, 6144, %s68_s24, [#allocation8], %s16960_s25, %s16960_s25, %s16961_s26  }
  0x3b   :  { %s16962_s29 = smov [#allocation10]  }
  0x3c   :  { %s80_s30 = sshll.u32 %s16962_s29, 4  ;;  %s81_s30 = int_to_ptr.vmem [resolvable:$true] %s80_s30 }
  0x3d   :  { %s16931_s3 = scalar_lea.vmem %s81_s30, 48  ;;  %s16935_s8 = scalar_lea.vmem %s81_s30, 64 }
  0x3e   :  { %p16932_p11 = scmp.ne.s32.totalorder %s81_s30, %s16931_s3  ;;  %p16936_p12 = scmp.lt.s32.totalorder %s81_s30, %s81_s30 }
  0x3f   :  { %p16937_p13 = scmp.lt.s32.totalorder %s16935_s8, %s16931_s3 }
  0x41   :  { %p16938_p0 = por %p16937_p13, %p16936_p12 }
  0x43   :  { %p16939_p1 = pnand %p16938_p0, %p16932_p11 }
  0x45   :  { %16942 = shalt.err (!%p16939_p1)
}
  0x46   :  { %83 = dma.hbm_to_vmem [thread:$0]  %s18005_s6, 48, %s81_s30, [#allocation11]  }
  0x47   :  { %16943 = dma.done.wait [#allocation3], 196608  }
  0x48   :  { %16944 = vsyncadd [#allocation3], 4294770688 }
  0x49   :  { %16945 = dma.done.wait [#allocation5], 8256  }
  0x4a   :  { %16946 = vsyncadd [#allocation5], 4294959040 }
  0x4b   :  { %16947 = dma.done.wait [#allocation8], 6176  }
  0x4c   :  { %16948 = vsyncadd [#allocation8], 4294961120 }
  0x4d   :  { %16949 = dma.done.wait [#allocation11], 48  }
  0x4e   :  { %16950 = vsyncadd [#allocation11], 4294967248  ;;  %v14358_v0 = vld [vmem:[#allocation2 + $0xe4] ss:$16 sps:$4 sm:$0xff]   ;;  %v14362_v2 = vld [vmem:[#allocation2 + $0xe0] ss:$16 sps:$4 sm:$0xff]  }
  0x4f   :  { %v14360_v1 = vld [vmem:[#allocation2 + $0x2e4] ss:$16 sps:$4 sm:$0xff]   ;;  %9629 = vmatprep.subr.bf16.mxu0 %v14358_v0  ;;  %v14363_v3 = vld [vmem:[#allocation2 + $0x2e0] ss:$16 sps:$4 sm:$0xff]   ;;  %v104_v50 = vld [vmem:[%s17999_s0 + $0x8] sm:$0xff] }
  0x50   :  { %9672 = vmatprep.subr.bf16.mxu1 %v14360_v1  ;;  %v14364_v4 = vld [vmem:[#allocation2 + $0xc4] ss:$16 sps:$4 sm:$0xff]   ;;  %9630 = vmatpush1.bf16.msra.mxu0 %v14362_v2  ;;  %v14368_v6 = vld [vmem:[#allocation2 + $0xc0] ss:$16 sps:$4 sm:$0xff]   ;;  %v128_v51 = vld [vmem:[%s17999_s0 + $0xc8] sm:$0xff] }
  0x51   :  { %9673 = vmatpush1.bf16.msra.mxu1 %v14363_v3  ;;  %v14366_v5 = vld [vmem:[#allocation2 + $0x2c4] ss:$16 sps:$4 sm:$0xff]   ;;  %9631 = vmatprep.subr.bf16.mxu0 %v14364_v4  ;;  %v14369_v7 = vld [vmem:[#allocation2 + $0x2c0] ss:$16 sps:$4 sm:$0xff]   ;;  %v17035_v55 = vcombine.high %v104_v50, %v128_v51 }
  0x52   :  { %9674 = vmatprep.subr.bf16.mxu1 %v14366_v5  ;;  %v14370_v8 = vld [vmem:[#allocation2 + $0xa4] ss:$16 sps:$4 sm:$0xff]   ;;  %v14374_v10 = vld [vmem:[#allocation2 + $0xa0] ss:$16 sps:$4 sm:$0xff]  }
  0x53   :  { %v14372_v9 = vld [vmem:[#allocation2 + $0x2a4] ss:$16 sps:$4 sm:$0xff]   ;;  %v14375_v11 = vld [vmem:[#allocation2 + $0x2a0] ss:$16 sps:$4 sm:$0xff]   ;;  %9704 = vmatprep.mubr.bf16.mxu1 %v17035_v55 }
  0x54   :  { %9632 = vmatpush1.bf16.msra.mxu0 %v14368_v6  ;;  %v14376_v12 = vld [vmem:[#allocation2 + $0x84] ss:$16 sps:$4 sm:$0xff]   ;;  %v14380_v14 = vld [vmem:[#allocation2 + $0x80] ss:$16 sps:$4 sm:$0xff]  }
  0x55   :  { %9675 = vmatpush1.bf16.msra.mxu1 %v14369_v7  ;;  %9633 = vmatprep.subr.bf16.mxu0 %v14370_v8  ;;  %v14378_v13 = vld [vmem:[#allocation2 + $0x284] ss:$16 sps:$4 sm:$0xff]   ;;  %v14381_v15 = vld [vmem:[#allocation2 + $0x280] ss:$16 sps:$4 sm:$0xff]  }
  0x56   :  { %9676 = vmatprep.subr.bf16.mxu1 %v14372_v9  ;;  %v14382_v16 = vld [vmem:[#allocation2 + $0x64] ss:$16 sps:$4 sm:$0xff]   ;;  %v14386_v18 = vld [vmem:[#allocation2 + $0x60] ss:$16 sps:$4 sm:$0xff]   ;;  %v17041_v9 = vcombine.low %v104_v50, %v128_v51 }
  0x57   :  { %v14384_v17 = vld [vmem:[#allocation2 + $0x264] ss:$16 sps:$4 sm:$0xff]   ;;  %v14387_v19 = vld [vmem:[#allocation2 + $0x260] ss:$16 sps:$4 sm:$0xff]  }
  0x58   :  { %9634 = vmatpush1.bf16.msra.mxu0 %v14374_v10  ;;  %v14388_v20 = vld [vmem:[#allocation2 + $0x44] ss:$16 sps:$4 sm:$0xff]   ;;  %v14392_v22 = vld [vmem:[#allocation2 + $0x40] ss:$16 sps:$4 sm:$0xff]  }
  0x59   :  { %9677 = vmatpush1.bf16.msra.mxu1 %v14375_v11  ;;  %9635 = vmatprep.subr.bf16.mxu0 %v14376_v12  ;;  %v14390_v21 = vld [vmem:[#allocation2 + $0x244] ss:$16 sps:$4 sm:$0xff]   ;;  %v14393_v23 = vld [vmem:[#allocation2 + $0x240] ss:$16 sps:$4 sm:$0xff]  }
  0x5a   :  { %9678 = vmatprep.subr.bf16.mxu1 %v14378_v13  ;;  %v14394_v24 = vld [vmem:[#allocation2 + $0x24] ss:$16 sps:$4 sm:$0xff]   ;;  %v14398_v26 = vld [vmem:[#allocation2 + $0x20] ss:$16 sps:$4 sm:$0xff]  }
  0x5b   :  { %v14396_v25 = vld [vmem:[#allocation2 + $0x224] ss:$16 sps:$4 sm:$0xff]   ;;  %v14399_v27 = vld [vmem:[#allocation2 + $0x220] ss:$16 sps:$4 sm:$0xff]  }
  0x5c   :  { %9636 = vmatpush1.bf16.msra.mxu0 %v14380_v14  ;;  %v14400_v28 = vld [vmem:[#allocation2 + $0x4] ss:$16 sps:$4 sm:$0xff]   ;;  %v14404_v30 = vld [vmem:[#allocation2] ss:$16 sps:$4 sm:$0xff]  }
  0x5d   :  { %9679 = vmatpush1.bf16.msra.mxu1 %v14381_v15  ;;  %9637 = vmatprep.subr.bf16.mxu0 %v14382_v16  ;;  %v14402_v29 = vld [vmem:[#allocation2 + $0x204] ss:$16 sps:$4 sm:$0xff]   ;;  %v14405_v31 = vld [vmem:[#allocation2 + $0x200] ss:$16 sps:$4 sm:$0xff]  }
  0x5e   :  { %9680 = vmatprep.subr.bf16.mxu1 %v14384_v17  ;;  %v14406_v32 = vld [vmem:[#allocation2 + $0x1e4] ss:$16 sps:$4 sm:$0xff]   ;;  %v14410_v34 = vld [vmem:[#allocation2 + $0x1e0] ss:$16 sps:$4 sm:$0xff]  }
  0x5f   :  { %v14408_v33 = vld [vmem:[#allocation2 + $0x3e4] ss:$16 sps:$4 sm:$0xff]   ;;  %v14411_v35 = vld [vmem:[#allocation2 + $0x3e0] ss:$16 sps:$4 sm:$0xff]  }
  0x60   :  { %9638 = vmatpush1.bf16.msra.mxu0 %v14386_v18  ;;  %v14412_v36 = vld [vmem:[#allocation2 + $0x1c4] ss:$16 sps:$4 sm:$0xff]   ;;  %v14416_v38 = vld [vmem:[#allocation2 + $0x1c0] ss:$16 sps:$4 sm:$0xff]  }
  0x61   :  { %9681 = vmatpush1.bf16.msra.mxu1 %v14387_v19  ;;  %9639 = vmatprep.subr.bf16.mxu0 %v14388_v20  ;;  %v14414_v37 = vld [vmem:[#allocation2 + $0x3c4] ss:$16 sps:$4 sm:$0xff]   ;;  %v14417_v39 = vld [vmem:[#allocation2 + $0x3c0] ss:$16 sps:$4 sm:$0xff]  }
  0x62   :  { %9682 = vmatprep.subr.bf16.mxu1 %v14390_v21  ;;  %v14418_v40 = vld [vmem:[#allocation2 + $0x1a4] ss:$16 sps:$4 sm:$0xff]   ;;  %v14422_v42 = vld [vmem:[#allocation2 + $0x1a0] ss:$16 sps:$4 sm:$0xff]  }
  0x63   :  { %v14420_v41 = vld [vmem:[#allocation2 + $0x3a4] ss:$16 sps:$4 sm:$0xff]   ;;  %v14423_v43 = vld [vmem:[#allocation2 + $0x3a0] ss:$16 sps:$4 sm:$0xff]  }
  0x64   :  { %9640 = vmatpush1.bf16.msra.mxu0 %v14392_v22  ;;  %v14424_v44 = vld [vmem:[#allocation2 + $0x184] ss:$16 sps:$4 sm:$0xff]   ;;  %v14428_v46 = vld [vmem:[#allocation2 + $0x180] ss:$16 sps:$4 sm:$0xff]  }
  0x65   :  { %9683 = vmatpush1.bf16.msra.mxu1 %v14393_v23  ;;  %9641 = vmatprep.subr.bf16.mxu0 %v14394_v24  ;;  %v14426_v45 = vld [vmem:[#allocation2 + $0x384] ss:$16 sps:$4 sm:$0xff]   ;;  %v14429_v47 = vld [vmem:[#allocation2 + $0x380] ss:$16 sps:$4 sm:$0xff]  }
  0x66   :  { %9684 = vmatprep.subr.bf16.mxu1 %v14396_v25  ;;  %v103_v48 = vld [vmem:[%s17999_s0] sm:$0xff] }
  0x67   :  { %v127_v49 = vld [vmem:[%s17999_s0 + $0xc0] sm:$0xff] }
  0x68   :  { %9642 = vmatpush1.bf16.msra.mxu0 %v14398_v26  ;;  %v14430_v52 = vld [vmem:[#allocation2 + $0x164] ss:$16 sps:$4 sm:$0xff]   ;;  %v17033_v53 = vcombine.high %v103_v48, %v127_v49  ;;  %v14434_v56 = vld [vmem:[#allocation2 + $0x160] ss:$16 sps:$4 sm:$0xff]   ;;  %v17039_v8 = vcombine.low %v103_v48, %v127_v49 }
  0x69   :  { %9685 = vmatpush1.bf16.msra.mxu1 %v14399_v27  ;;  %9643 = vmatprep.subr.bf16.mxu0 %v14400_v28  ;;  %v14432_v54 = vld [vmem:[#allocation2 + $0x364] ss:$16 sps:$4 sm:$0xff]   ;;  %v14435_v57 = vld [vmem:[#allocation2 + $0x360] ss:$16 sps:$4 sm:$0xff]  }
  0x6a   :  { %9686 = vmatprep.subr.bf16.mxu1 %v14402_v29  ;;  %9661 = vmatprep.mubr.bf16.mxu0 %v17033_v53  ;;  %v14436_v58 = vld [vmem:[#allocation2 + $0x144] ss:$16 sps:$4 sm:$0xff]   ;;  %v14440_v60 = vld [vmem:[#allocation2 + $0x140] ss:$16 sps:$4 sm:$0xff]  }
  0x6b   :  { %v14438_v59 = vld [vmem:[#allocation2 + $0x344] ss:$16 sps:$4 sm:$0xff]   ;;  %v14441_v61 = vld [vmem:[#allocation2 + $0x340] ss:$16 sps:$4 sm:$0xff]  }
  0x6c   :  { %9644 = vmatpush1.bf16.msra.mxu0 %v14404_v30  ;;  %v14442_v62 = vld [vmem:[#allocation2 + $0x124] ss:$16 sps:$4 sm:$0xff]   ;;  %v14446_v0 = vld [vmem:[#allocation2 + $0x120] ss:$16 sps:$4 sm:$0xff]  }
  0x6d   :  { %9687 = vmatpush1.bf16.msra.mxu1 %v14405_v31  ;;  %9645 = vmatprep.subr.bf16.mxu0 %v14406_v32  ;;  %v14444_v63 = vld [vmem:[#allocation2 + $0x324] ss:$16 sps:$4 sm:$0xff]   ;;  %v14447_v1 = vld [vmem:[#allocation2 + $0x320] ss:$16 sps:$4 sm:$0xff]  }
  0x6e   :  { %9688 = vmatprep.subr.bf16.mxu1 %v14408_v33  ;;  %v14448_v2 = vld [vmem:[#allocation2 + $0x104] ss:$16 sps:$4 sm:$0xff]   ;;  %v14452_v4 = vld [vmem:[#allocation2 + $0x100] ss:$16 sps:$4 sm:$0xff]  }
  0x6f   :  { %v14450_v3 = vld [vmem:[#allocation2 + $0x304] ss:$16 sps:$4 sm:$0xff]   ;;  %v14453_v5 = vld [vmem:[#allocation2 + $0x300] ss:$16 sps:$4 sm:$0xff]  }
  0x70   :  { %9646 = vmatpush2.bf16.msra.mxu0 %v14410_v34  ;;  %v14456_v6 = vld [vmem:[#allocation2 + $0x4e4] ss:$16 sps:$4 sm:$0xff]   ;;  %v14454_v10 = vld [vmem:[#allocation2 + $0x4e0] ss:$16 sps:$4 sm:$0xff]  }
  0x71   :  { %9689 = vmatpush2.bf16.msra.mxu1 %v14411_v35  ;;  %9647 = vmatprep.subr.bf16.mxu0 %v14412_v36  ;;  %v14459_v7 = vld [vmem:[#allocation2 + $0x6e4] ss:$16 sps:$4 sm:$0xff]   ;;  %v14457_v11 = vld [vmem:[#allocation2 + $0x6e0] ss:$16 sps:$4 sm:$0xff]  }
  0x72   :  { %9690 = vmatprep.subr.bf16.mxu1 %v14414_v37  ;;  %v14462_v12 = vld [vmem:[#allocation2 + $0x4c4] ss:$16 sps:$4 sm:$0xff]   ;;  %v14460_v14 = vld [vmem:[#allocation2 + $0x4c0] ss:$16 sps:$4 sm:$0xff]  }
  0x73   :  { %v14465_v13 = vld [vmem:[#allocation2 + $0x6c4] ss:$16 sps:$4 sm:$0xff]   ;;  %v14463_v15 = vld [vmem:[#allocation2 + $0x6c0] ss:$16 sps:$4 sm:$0xff]  }
  0x74   :  { %9648 = vmatpush2.bf16.msra.mxu0 %v14416_v38  ;;  %v14468_v16 = vld [vmem:[#allocation2 + $0x4a4] ss:$16 sps:$4 sm:$0xff]   ;;  %v14466_v18 = vld [vmem:[#allocation2 + $0x4a0] ss:$16 sps:$4 sm:$0xff]   ;;  %v17058_v38 = vld [vmem:[%s17999_s0 + $0x18] sm:$0xff] }
  0x75   :  { %9691 = vmatpush2.bf16.msra.mxu1 %v14417_v39  ;;  %9649 = vmatprep.subr.bf16.mxu0 %v14418_v40  ;;  %v14471_v17 = vld [vmem:[#allocation2 + $0x6a4] ss:$16 sps:$4 sm:$0xff]   ;;  %v14469_v19 = vld [vmem:[#allocation2 + $0x6a0] ss:$16 sps:$4 sm:$0xff]   ;;  %v17063_v39 = vld [vmem:[%s17999_s0 + $0xd8] sm:$0xff] }
  0x76   :  { %9692 = vmatprep.subr.bf16.mxu1 %v14420_v41  ;;  %v14474_v20 = vld [vmem:[#allocation2 + $0x484] ss:$16 sps:$4 sm:$0xff]   ;;  %v14472_v22 = vld [vmem:[#allocation2 + $0x480] ss:$16 sps:$4 sm:$0xff]  }
  0x77   :  { %v14477_v21 = vld [vmem:[#allocation2 + $0x684] ss:$16 sps:$4 sm:$0xff]   ;;  %v14475_v23 = vld [vmem:[#allocation2 + $0x680] ss:$16 sps:$4 sm:$0xff]  }
  0x78   :  { %9650 = vmatpush2.bf16.msra.mxu0 %v14422_v42  ;;  %v14480_v24 = vld [vmem:[#allocation2 + $0x464] ss:$16 sps:$4 sm:$0xff]   ;;  %v14478_v26 = vld [vmem:[#allocation2 + $0x460] ss:$16 sps:$4 sm:$0xff]  }
  0x79   :  { %9693 = vmatpush2.bf16.msra.mxu1 %v14423_v43  ;;  %9651 = vmatprep.subr.bf16.mxu0 %v14424_v44  ;;  %v14483_v25 = vld [vmem:[#allocation2 + $0x664] ss:$16 sps:$4 sm:$0xff]   ;;  %v14481_v27 = vld [vmem:[#allocation2 + $0x660] ss:$16 sps:$4 sm:$0xff]   ;;  %v17071_v43 = vcombine.high %v17058_v38, %v17063_v39 }
  0x7a   :  { %9694 = vmatprep.subr.bf16.mxu1 %v14426_v45  ;;  %v14486_v28 = vld [vmem:[#allocation2 + $0x444] ss:$16 sps:$4 sm:$0xff]   ;;  %v14484_v30 = vld [vmem:[#allocation2 + $0x440] ss:$16 sps:$4 sm:$0xff]  }
  0x7b   :  { %v14489_v29 = vld [vmem:[#allocation2 + $0x644] ss:$16 sps:$4 sm:$0xff]   ;;  %v14487_v31 = vld [vmem:[#allocation2 + $0x640] ss:$16 sps:$4 sm:$0xff]  }
  0x7c   :  { %9652 = vmatpush2.bf16.msra.mxu0 %v14428_v46  ;;  %v14492_v32 = vld [vmem:[#allocation2 + $0x424] ss:$16 sps:$4 sm:$0xff]   ;;  %v14490_v34 = vld [vmem:[#allocation2 + $0x420] ss:$16 sps:$4 sm:$0xff]  }
  0x7d   :  { %9695 = vmatpush2.bf16.msra.mxu1 %v14429_v47  ;;  %9653 = vmatprep.subr.bf16.mxu0 %v14430_v52  ;;  %v14495_v33 = vld [vmem:[#allocation2 + $0x624] ss:$16 sps:$4 sm:$0xff]   ;;  %v14493_v35 = vld [vmem:[#allocation2 + $0x620] ss:$16 sps:$4 sm:$0xff]  }
  0x7e   :  { %9696 = vmatprep.subr.bf16.mxu1 %v14432_v54  ;;  %v17048_v36 = vld [vmem:[%s17999_s0 + $0x10] sm:$0xff] }
  0x7f   :  { %v17053_v37 = vld [vmem:[%s17999_s0 + $0xd0] sm:$0xff] }
  0x80   :  { %9654 = vmatpush2.bf16.msra.mxu0 %v14434_v56  ;;  %v14498_v40 = vld [vmem:[#allocation2 + $0x404] ss:$16 sps:$4 sm:$0xff]   ;;  %v17067_v41 = vcombine.high %v17048_v36, %v17053_v37  ;;  %v14496_v44 = vld [vmem:[#allocation2 + $0x400] ss:$16 sps:$4 sm:$0xff]  }
  0x81   :  { %9697 = vmatpush2.bf16.msra.mxu1 %v14435_v57  ;;  %9655 = vmatprep.subr.bf16.mxu0 %v14436_v58  ;;  %v14501_v42 = vld [vmem:[#allocation2 + $0x604] ss:$16 sps:$4 sm:$0xff]   ;;  %v14499_v45 = vld [vmem:[#allocation2 + $0x600] ss:$16 sps:$4 sm:$0xff]  }
  0x82   :  { %9698 = vmatprep.subr.bf16.mxu1 %v14438_v59  ;;  %v14504_v46 = vld [vmem:[#allocation2 + $0x5e4] ss:$16 sps:$4 sm:$0xff]   ;;  %v14502_v48 = vld [vmem:[#allocation2 + $0x5e0] ss:$16 sps:$4 sm:$0xff]  }
  0x83   :  { %v14507_v47 = vld [vmem:[#allocation2 + $0x7e4] ss:$16 sps:$4 sm:$0xff]   ;;  %v14505_v49 = vld [vmem:[#allocation2 + $0x7e0] ss:$16 sps:$4 sm:$0xff]  }
  0x84   :  { %9656 = vmatpush2.bf16.msra.mxu0 %v14440_v60  ;;  %v14510_v50 = vld [vmem:[#allocation2 + $0x5c4] ss:$16 sps:$4 sm:$0xff]   ;;  %v14508_v52 = vld [vmem:[#allocation2 + $0x5c0] ss:$16 sps:$4 sm:$0xff]  }
  0x85   :  { %9699 = vmatpush2.bf16.msra.mxu1 %v14441_v61  ;;  %9657 = vmatprep.subr.bf16.mxu0 %v14442_v62  ;;  %v14513_v51 = vld [vmem:[#allocation2 + $0x7c4] ss:$16 sps:$4 sm:$0xff]   ;;  %v14511_v54 = vld [vmem:[#allocation2 + $0x7c0] ss:$16 sps:$4 sm:$0xff]  }
  0x86   :  { %9700 = vmatprep.subr.bf16.mxu1 %v14444_v63  ;;  %v14516_v56 = vld [vmem:[#allocation2 + $0x5a4] ss:$16 sps:$4 sm:$0xff]   ;;  %v14514_v58 = vld [vmem:[#allocation2 + $0x5a0] ss:$16 sps:$4 sm:$0xff]  }
  0x87   :  { %v14519_v57 = vld [vmem:[#allocation2 + $0x7a4] ss:$16 sps:$4 sm:$0xff]   ;;  %v14517_v59 = vld [vmem:[#allocation2 + $0x7a0] ss:$16 sps:$4 sm:$0xff]  }
  0x88   :  { %9658 = vmatpush2.bf16.msra.mxu0 %v14446_v0  ;;  %v14522_v60 = vld [vmem:[#allocation2 + $0x584] ss:$16 sps:$4 sm:$0xff]   ;;  %v14520_v62 = vld [vmem:[#allocation2 + $0x580] ss:$16 sps:$4 sm:$0xff]  }
  0x89   :  { %9701 = vmatpush2.bf16.msra.mxu1 %v14447_v1  ;;  %9659 = vmatprep.subr.bf16.mxu0 %v14448_v2  ;;  %v14525_v61 = vld [vmem:[#allocation2 + $0x784] ss:$16 sps:$4 sm:$0xff]   ;;  %v14523_v63 = vld [vmem:[#allocation2 + $0x780] ss:$16 sps:$4 sm:$0xff]  }
  0x8a   :  { %9702 = vmatprep.subr.bf16.mxu1 %v14450_v3  ;;  %v14528_v0 = vld [vmem:[#allocation2 + $0x564] ss:$16 sps:$4 sm:$0xff]   ;;  %v14526_v2 = vld [vmem:[#allocation2 + $0x560] ss:$16 sps:$4 sm:$0xff]  }
  0x8b   :  { %v14531_v1 = vld [vmem:[#allocation2 + $0x764] ss:$16 sps:$4 sm:$0xff]   ;;  %v14529_v3 = vld [vmem:[#allocation2 + $0x760] ss:$16 sps:$4 sm:$0xff]  }
  0x8c   :  { %9660 = vmatpush2.bf16.msra.mxu0 %v14452_v4  ;;  %v14534_v4 = vld [vmem:[#allocation2 + $0x544] ss:$16 sps:$4 sm:$0xff]  }
  0x8d   :  { %9703 = vmatpush2.bf16.msra.mxu1 %v14453_v5  ;;  %9715 = vmatprep.subr.bf16.mxu0 %v14456_v6  ;;  %v14537_v5 = vld [vmem:[#allocation2 + $0x744] ss:$16 sps:$4 sm:$0xff]   ;;  %v14532_v6 = vld [vmem:[#allocation2 + $0x540] ss:$16 sps:$4 sm:$0xff]  }
  0x8e   :  { %9758 = vmatprep.subr.bf16.mxu1 %v14459_v7  ;;  %v14535_v7 = vld [vmem:[#allocation2 + $0x740] ss:$16 sps:$4 sm:$0xff]  }
  0x8f   :  { %9662 = vmatmul.mubr.bf16.vlgmr.msra.gmra.mxu0 %v17039_v8 }
  0x90   :  { %9705 = vmatmul.mubr.bf16.vlgmr.msra.gmra.mxu1 %v17041_v9  ;;  %9716 = vmatpush1.bf16.msra.mxu0 %v14454_v10  ;;  %v14540_v10 = vld [vmem:[#allocation2 + $0x524] ss:$16 sps:$4 sm:$0xff]  }
  0x91   :  { %9759 = vmatpush1.bf16.msra.mxu1 %v14457_v11  ;;  %9717 = vmatprep.subr.bf16.mxu0 %v14462_v12  ;;  %v14543_v11 = vld [vmem:[#allocation2 + $0x724] ss:$16 sps:$4 sm:$0xff]   ;;  %v14538_v12 = vld [vmem:[#allocation2 + $0x520] ss:$16 sps:$4 sm:$0xff]  }
  0x92   :  { %9760 = vmatprep.subr.bf16.mxu1 %v14465_v13  ;;  %9747 = vmatprep.mubr.bf16.mxu0 %v17067_v41  ;;  %v14541_v13 = vld [vmem:[#allocation2 + $0x720] ss:$16 sps:$4 sm:$0xff]  }
  0x93   :  { %9790 = vmatprep.mubr.bf16.mxu1 %v17071_v43 }
  0x94   :  { %9718 = vmatpush1.bf16.msra.mxu0 %v14460_v14  ;;  %v14546_v14 = vld [vmem:[#allocation2 + $0x504] ss:$16 sps:$4 sm:$0xff]  }
  0x95   :  { %9761 = vmatpush1.bf16.msra.mxu1 %v14463_v15  ;;  %9719 = vmatprep.subr.bf16.mxu0 %v14468_v16  ;;  %v14549_v15 = vld [vmem:[#allocation2 + $0x704] ss:$16 sps:$4 sm:$0xff]   ;;  %v14544_v16 = vld [vmem:[#allocation2 + $0x500] ss:$16 sps:$4 sm:$0xff]  }
  0x96   :  { %9762 = vmatprep.subr.bf16.mxu1 %v14471_v17  ;;  %v14547_v17 = vld [vmem:[#allocation2 + $0x700] ss:$16 sps:$4 sm:$0xff]  }
  0x98   :  { %9720 = vmatpush1.bf16.msra.mxu0 %v14466_v18  ;;  %v14552_v18 = vld [vmem:[#allocation2 + $0x8e4] ss:$16 sps:$4 sm:$0xff]  }
  0x99   :  { %9763 = vmatpush1.bf16.msra.mxu1 %v14469_v19  ;;  %9721 = vmatprep.subr.bf16.mxu0 %v14474_v20  ;;  %v14555_v19 = vld [vmem:[#allocation2 + $0xae4] ss:$16 sps:$4 sm:$0xff]   ;;  %v17077_v20 = vcombine.low %v17048_v36, %v17053_v37  ;;  %v14562_v36 = vld [vmem:[#allocation2 + $0x8a0] ss:$16 sps:$4 sm:$0xff]  }
  0x9a   :  { %9764 = vmatprep.subr.bf16.mxu1 %v14477_v21  ;;  %v17081_v21 = vcombine.low %v17058_v38, %v17063_v39  ;;  %v14565_v37 = vld [vmem:[#allocation2 + $0xaa0] ss:$16 sps:$4 sm:$0xff]   ;;  %v14570_v38 = vld [vmem:[#allocation2 + $0x884] ss:$16 sps:$4 sm:$0xff]  }
  0x9b   :  { %v14573_v39 = vld [vmem:[#allocation2 + $0xa84] ss:$16 sps:$4 sm:$0xff]  }
  0x9c   :  { %9722 = vmatpush1.bf16.msra.mxu0 %v14472_v22  ;;  %v14550_v22 = vld [vmem:[#allocation2 + $0x8e0] ss:$16 sps:$4 sm:$0xff]  }
  0x9d   :  { %9765 = vmatpush1.bf16.msra.mxu1 %v14475_v23  ;;  %9723 = vmatprep.subr.bf16.mxu0 %v14480_v24  ;;  %v14553_v23 = vld [vmem:[#allocation2 + $0xae0] ss:$16 sps:$4 sm:$0xff]   ;;  %v14558_v24 = vld [vmem:[#allocation2 + $0x8c4] ss:$16 sps:$4 sm:$0xff]  }
  0x9e   :  { %9766 = vmatprep.subr.bf16.mxu1 %v14483_v25  ;;  %v14561_v25 = vld [vmem:[#allocation2 + $0xac4] ss:$16 sps:$4 sm:$0xff]  }
  0xa0   :  { %9724 = vmatpush1.bf16.msra.mxu0 %v14478_v26  ;;  %v14556_v26 = vld [vmem:[#allocation2 + $0x8c0] ss:$16 sps:$4 sm:$0xff]  }
  0xa1   :  { %9767 = vmatpush1.bf16.msra.mxu1 %v14481_v27  ;;  %9725 = vmatprep.subr.bf16.mxu0 %v14486_v28  ;;  %v14559_v27 = vld [vmem:[#allocation2 + $0xac0] ss:$16 sps:$4 sm:$0xff]  }
  0xa2   :  { %9768 = vmatprep.subr.bf16.mxu1 %v14489_v29  ;;  %v17086_v28 = vld [vmem:[%s17999_s0 + $0x20] sm:$0xff] }
  0xa3   :  { %v17093_v29 = vld [vmem:[%s17999_s0 + $0xe0] sm:$0xff] }
  0xa4   :  { %9726 = vmatpush1.bf16.msra.mxu0 %v14484_v30  ;;  %v17098_v30 = vld [vmem:[%s17999_s0 + $0x28] sm:$0xff] }
  0xa5   :  { %9769 = vmatpush1.bf16.msra.mxu1 %v14487_v31  ;;  %9727 = vmatprep.subr.bf16.mxu0 %v14492_v32  ;;  %v17103_v31 = vld [vmem:[%s17999_s0 + $0xe8] sm:$0xff]  ;;  %v14564_v32 = vld [vmem:[#allocation2 + $0x8a4] ss:$16 sps:$4 sm:$0xff]  }
  0xa6   :  { %9770 = vmatprep.subr.bf16.mxu1 %v14495_v33  ;;  %v17107_v33 = vcombine.high %v17086_v28, %v17093_v29 }
  0xa8   :  { %9728 = vmatpush1.bf16.msra.mxu0 %v14490_v34  ;;  %v14567_v34 = vld [vmem:[#allocation2 + $0xaa4] ss:$16 sps:$4 sm:$0xff]  }
  0xa9   :  { %9771 = vmatpush1.bf16.msra.mxu1 %v14493_v35  ;;  %9729 = vmatprep.subr.bf16.mxu0 %v14498_v40  ;;  %v17111_v35 = vcombine.high %v17098_v30, %v17103_v31  ;;  %v14568_v40 = vld [vmem:[#allocation2 + $0x880] ss:$16 sps:$4 sm:$0xff]  }
  0xaa   :  { %9772 = vmatprep.subr.bf16.mxu1 %v14501_v42  ;;  %v14571_v42 = vld [vmem:[#allocation2 + $0xa80] ss:$16 sps:$4 sm:$0xff]  }
  0xac   :  { %9730 = vmatpush1.bf16.msra.mxu0 %v14496_v44  ;;  %v14576_v44 = vld [vmem:[#allocation2 + $0x864] ss:$16 sps:$4 sm:$0xff]  }
  0xad   :  { %9773 = vmatpush1.bf16.msra.mxu1 %v14499_v45  ;;  %9731 = vmatprep.subr.bf16.mxu0 %v14504_v46  ;;  %v14579_v45 = vld [vmem:[#allocation2 + $0xa64] ss:$16 sps:$4 sm:$0xff]   ;;  %v14574_v46 = vld [vmem:[#allocation2 + $0x860] ss:$16 sps:$4 sm:$0xff]  }
  0xae   :  { %9774 = vmatprep.subr.bf16.mxu1 %v14507_v47  ;;  %v14577_v47 = vld [vmem:[#allocation2 + $0xa60] ss:$16 sps:$4 sm:$0xff]  }
  0xb0   :  { %9732 = vmatpush2.bf16.msra.mxu0 %v14502_v48  ;;  %v14582_v48 = vld [vmem:[#allocation2 + $0x844] ss:$16 sps:$4 sm:$0xff]  }
  0xb1   :  { %9775 = vmatpush2.bf16.msra.mxu1 %v14505_v49  ;;  %9733 = vmatprep.subr.bf16.mxu0 %v14510_v50  ;;  %v14585_v49 = vld [vmem:[#allocation2 + $0xa44] ss:$16 sps:$4 sm:$0xff]   ;;  %v14580_v50 = vld [vmem:[#allocation2 + $0x840] ss:$16 sps:$4 sm:$0xff]  }
  0xb2   :  { %9776 = vmatprep.subr.bf16.mxu1 %v14513_v51  ;;  %v14583_v51 = vld [vmem:[#allocation2 + $0xa40] ss:$16 sps:$4 sm:$0xff]  }
  0xb4   :  { %9734 = vmatpush2.bf16.msra.mxu0 %v14508_v52  ;;  %v14588_v52 = vld [vmem:[#allocation2 + $0x824] ss:$16 sps:$4 sm:$0xff]  }
  0xb5   :  { %9777 = vmatpush2.bf16.msra.mxu1 %v14511_v54  ;;  %9735 = vmatprep.subr.bf16.mxu0 %v14516_v56  ;;  %v14591_v54 = vld [vmem:[#allocation2 + $0xa24] ss:$16 sps:$4 sm:$0xff]   ;;  %v14586_v56 = vld [vmem:[#allocation2 + $0x820] ss:$16 sps:$4 sm:$0xff]  }
  0xb6   :  { %9778 = vmatprep.subr.bf16.mxu1 %v14519_v57  ;;  %v14589_v57 = vld [vmem:[#allocation2 + $0xa20] ss:$16 sps:$4 sm:$0xff]  }
  0xb8   :  { %9736 = vmatpush2.bf16.msra.mxu0 %v14514_v58  ;;  %v14594_v58 = vld [vmem:[#allocation2 + $0x804] ss:$16 sps:$4 sm:$0xff]  }
  0xb9   :  { %9779 = vmatpush2.bf16.msra.mxu1 %v14517_v59  ;;  %9737 = vmatprep.subr.bf16.mxu0 %v14522_v60  ;;  %v14597_v59 = vld [vmem:[#allocation2 + $0xa04] ss:$16 sps:$4 sm:$0xff]   ;;  %v14592_v60 = vld [vmem:[#allocation2 + $0x800] ss:$16 sps:$4 sm:$0xff]  }
  0xba   :  { %9780 = vmatprep.subr.bf16.mxu1 %v14525_v61  ;;  %v14595_v61 = vld [vmem:[#allocation2 + $0xa00] ss:$16 sps:$4 sm:$0xff]  }
  0xbc   :  { %9738 = vmatpush2.bf16.msra.mxu0 %v14520_v62  ;;  %v14600_v62 = vld [vmem:[#allocation2 + $0x9e4] ss:$16 sps:$4 sm:$0xff]  }
  0xbd   :  { %9781 = vmatpush2.bf16.msra.mxu1 %v14523_v63  ;;  %9739 = vmatprep.subr.bf16.mxu0 %v14528_v0  ;;  %v14603_v63 = vld [vmem:[#allocation2 + $0xbe4] ss:$16 sps:$4 sm:$0xff]   ;;  %v14598_v0 = vld [vmem:[#allocation2 + $0x9e0] ss:$16 sps:$4 sm:$0xff]  }
  0xbe   :  { %9782 = vmatprep.subr.bf16.mxu1 %v14531_v1  ;;  %v14601_v1 = vld [vmem:[#allocation2 + $0xbe0] ss:$16 sps:$4 sm:$0xff]  }
  0xc0   :  { %9740 = vmatpush2.bf16.msra.mxu0 %v14526_v2  ;;  %v14606_v2 = vld [vmem:[#allocation2 + $0x9c4] ss:$16 sps:$4 sm:$0xff]  }
  0xc1   :  { %9783 = vmatpush2.bf16.msra.mxu1 %v14529_v3  ;;  %9741 = vmatprep.subr.bf16.mxu0 %v14534_v4  ;;  %v14609_v3 = vld [vmem:[#allocation2 + $0xbc4] ss:$16 sps:$4 sm:$0xff]   ;;  %v14604_v4 = vld [vmem:[#allocation2 + $0x9c0] ss:$16 sps:$4 sm:$0xff]  }
  0xc2   :  { %9784 = vmatprep.subr.bf16.mxu1 %v14537_v5  ;;  %v14607_v5 = vld [vmem:[#allocation2 + $0xbc0] ss:$16 sps:$4 sm:$0xff]  }
  0xc4   :  { %9742 = vmatpush2.bf16.msra.mxu0 %v14532_v6  ;;  %v14612_v6 = vld [vmem:[#allocation2 + $0x9a4] ss:$16 sps:$4 sm:$0xff]  }
  0xc5   :  { %9785 = vmatpush2.bf16.msra.mxu1 %v14535_v7  ;;  %9743 = vmatprep.subr.bf16.mxu0 %v14540_v10  ;;  %v14615_v7 = vld [vmem:[#allocation2 + $0xba4] ss:$16 sps:$4 sm:$0xff]   ;;  %v14610_v10 = vld [vmem:[#allocation2 + $0x9a0] ss:$16 sps:$4 sm:$0xff]  }
  0xc6   :  { %9786 = vmatprep.subr.bf16.mxu1 %v14543_v11  ;;  %v14613_v11 = vld [vmem:[#allocation2 + $0xba0] ss:$16 sps:$4 sm:$0xff]  }
  0xc8   :  { %9744 = vmatpush2.bf16.msra.mxu0 %v14538_v12  ;;  %v14618_v12 = vld [vmem:[#allocation2 + $0x984] ss:$16 sps:$4 sm:$0xff]  }
  0xc9   :  { %9787 = vmatpush2.bf16.msra.mxu1 %v14541_v13  ;;  %9745 = vmatprep.subr.bf16.mxu0 %v14546_v14  ;;  %v14621_v13 = vld [vmem:[#allocation2 + $0xb84] ss:$16 sps:$4 sm:$0xff]   ;;  %v14616_v14 = vld [vmem:[#allocation2 + $0x980] ss:$16 sps:$4 sm:$0xff]  }
  0xca   :  { %9788 = vmatprep.subr.bf16.mxu1 %v14549_v15  ;;  %v14619_v15 = vld [vmem:[#allocation2 + $0xb80] ss:$16 sps:$4 sm:$0xff]  }
  0xcc   :  { %9746 = vmatpush2.bf16.msra.mxu0 %v14544_v16  ;;  %v14624_v16 = vld [vmem:[#allocation2 + $0x964] ss:$16 sps:$4 sm:$0xff]  }
  0xcd   :  { %9789 = vmatpush2.bf16.msra.mxu1 %v14547_v17  ;;  %9801 = vmatprep.subr.bf16.mxu0 %v14552_v18  ;;  %v14627_v17 = vld [vmem:[#allocation2 + $0xb64] ss:$16 sps:$4 sm:$0xff]   ;;  %v14622_v18 = vld [vmem:[#allocation2 + $0x960] ss:$16 sps:$4 sm:$0xff]  }
  0xce   :  { %9844 = vmatprep.subr.bf16.mxu1 %v14555_v19  ;;  %v14625_v19 = vld [vmem:[#allocation2 + $0xb60] ss:$16 sps:$4 sm:$0xff]  }
  0xcf   :  { %9748 = vmatmul.mubr.bf16.vlgmr.msra.gmra.mxu0 %v17077_v20 }
  0xd0   :  { %9791 = vmatmul.mubr.bf16.vlgmr.msra.gmra.mxu1 %v17081_v21  ;;  %9802 = vmatpush1.bf16.msra.mxu0 %v14550_v22  ;;  %v14630_v22 = vld [vmem:[#allocation2 + $0x944] ss:$16 sps:$4 sm:$0xff]  }
  0xd1   :  { %9845 = vmatpush1.bf16.msra.mxu1 %v14553_v23  ;;  %9803 = vmatprep.subr.bf16.mxu0 %v14558_v24  ;;  %v14633_v23 = vld [vmem:[#allocation2 + $0xb44] ss:$16 sps:$4 sm:$0xff]   ;;  %v14628_v24 = vld [vmem:[#allocation2 + $0x940] ss:$16 sps:$4 sm:$0xff]  }
  0xd2   :  { %9846 = vmatprep.subr.bf16.mxu1 %v14561_v25  ;;  %9833 = vmatprep.mubr.bf16.mxu0 %v17107_v33  ;;  %v14631_v25 = vld [vmem:[#allocation2 + $0xb40] ss:$16 sps:$4 sm:$0xff]  }
  0xd3   :  { %9876 = vmatprep.mubr.bf16.mxu1 %v17111_v35 }
  0xd4   :  { %9804 = vmatpush1.bf16.msra.mxu0 %v14556_v26  ;;  %v14636_v26 = vld [vmem:[#allocation2 + $0x924] ss:$16 sps:$4 sm:$0xff]  }
  0xd5   :  { %9847 = vmatpush1.bf16.msra.mxu1 %v14559_v27  ;;  %9805 = vmatprep.subr.bf16.mxu0 %v14564_v32  ;;  %v14639_v27 = vld [vmem:[#allocation2 + $0xb24] ss:$16 sps:$4 sm:$0xff]   ;;  %v14634_v32 = vld [vmem:[#allocation2 + $0x920] ss:$16 sps:$4 sm:$0xff]  }
  0xd6   :  { %9848 = vmatprep.subr.bf16.mxu1 %v14567_v34  ;;  %v14637_v34 = vld [vmem:[#allocation2 + $0xb20] ss:$16 sps:$4 sm:$0xff]  }
  0xd8   :  { %9806 = vmatpush1.bf16.msra.mxu0 %v14562_v36  ;;  %v14642_v36 = vld [vmem:[#allocation2 + $0x904] ss:$16 sps:$4 sm:$0xff]  }
  0xd9   :  { %9849 = vmatpush1.bf16.msra.mxu1 %v14565_v37  ;;  %9807 = vmatprep.subr.bf16.mxu0 %v14570_v38  ;;  %v14645_v37 = vld [vmem:[#allocation2 + $0xb04] ss:$16 sps:$4 sm:$0xff]   ;;  %v14640_v38 = vld [vmem:[#allocation2 + $0x900] ss:$16 sps:$4 sm:$0xff]  }
  0xda   :  { %9850 = vmatprep.subr.bf16.mxu1 %v14573_v39  ;;  %v14643_v39 = vld [vmem:[#allocation2 + $0xb00] ss:$16 sps:$4 sm:$0xff]  }
  0xdc   :  { %9808 = vmatpush1.bf16.msra.mxu0 %v14568_v40  ;;  %v14648_v40 = vld [vmem:[#allocation2 + $0xce4] ss:$16 sps:$4 sm:$0xff]  }
  0xdd   :  { %9851 = vmatpush1.bf16.msra.mxu1 %v14571_v42  ;;  %9809 = vmatprep.subr.bf16.mxu0 %v14576_v44  ;;  %v14651_v42 = vld [vmem:[#allocation2 + $0xee4] ss:$16 sps:$4 sm:$0xff]  }
  0xde   :  { %9852 = vmatprep.subr.bf16.mxu1 %v14579_v45  ;;  %v17118_v44 = vld [vmem:[%s17999_s0 + $0x30] sm:$0xff] }
  0xdf   :  { %v14646_v45 = vld [vmem:[#allocation2 + $0xce0] ss:$16 sps:$4 sm:$0xff]  }
  0xe0   :  { %9810 = vmatpush1.bf16.msra.mxu0 %v14574_v46  ;;  %v17123_v46 = vld [vmem:[%s17999_s0 + $0xf0] sm:$0xff] }
  0xe1   :  { %9853 = vmatpush1.bf16.msra.mxu1 %v14577_v47  ;;  %9811 = vmatprep.subr.bf16.mxu0 %v14582_v48  ;;  %v17128_v47 = vld [vmem:[%s17999_s0 + $0x38] sm:$0xff]  ;;  %v17132_v48 = vcombine.low %v17086_v28, %v17093_v29  ;;  %v17145_v28 = vcombine.high %v17118_v44, %v17123_v46 }
  0xe2   :  { %9854 = vmatprep.subr.bf16.mxu1 %v14585_v49  ;;  %v17136_v49 = vcombine.low %v17098_v30, %v17103_v31  ;;  %v14652_v30 = vld [vmem:[#allocation2 + $0xcc0] ss:$16 sps:$4 sm:$0xff]  }
  0xe3   :  { %v14655_v31 = vld [vmem:[#allocation2 + $0xec0] ss:$16 sps:$4 sm:$0xff]  }
  0xe4   :  { %9812 = vmatpush1.bf16.msra.mxu0 %v14580_v50  ;;  %v17141_v50 = vld [vmem:[%s17999_s0 + $0xf8] sm:$0xff] }
  0xe5   :  { %9855 = vmatpush1.bf16.msra.mxu1 %v14583_v51  ;;  %9813 = vmatprep.subr.bf16.mxu0 %v14588_v52  ;;  %v14649_v51 = vld [vmem:[#allocation2 + $0xee0] ss:$16 sps:$4 sm:$0xff]   ;;  %v14654_v52 = vld [vmem:[#allocation2 + $0xcc4] ss:$16 sps:$4 sm:$0xff]   ;;  %v17149_v29 = vcombine.high %v17128_v47, %v17141_v50 }
  0xe6   :  { %9856 = vmatprep.subr.bf16.mxu1 %v14591_v54  ;;  %v14657_v54 = vld [vmem:[#allocation2 + $0xec4] ss:$16 sps:$4 sm:$0xff]  }
  0xe8   :  { %9814 = vmatpush1.bf16.msra.mxu0 %v14586_v56  ;;  %v14660_v56 = vld [vmem:[#allocation2 + $0xca4] ss:$16 sps:$4 sm:$0xff]  }
  0xe9   :  { %9857 = vmatpush1.bf16.msra.mxu1 %v14589_v57  ;;  %9815 = vmatprep.subr.bf16.mxu0 %v14594_v58  ;;  %v14663_v57 = vld [vmem:[#allocation2 + $0xea4] ss:$16 sps:$4 sm:$0xff]   ;;  %v14658_v58 = vld [vmem:[#allocation2 + $0xca0] ss:$16 sps:$4 sm:$0xff]  }
  0xea   :  { %9858 = vmatprep.subr.bf16.mxu1 %v14597_v59  ;;  %v14661_v59 = vld [vmem:[#allocation2 + $0xea0] ss:$16 sps:$4 sm:$0xff]  }
  0xec   :  { %9816 = vmatpush1.bf16.msra.mxu0 %v14592_v60  ;;  %v14666_v60 = vld [vmem:[#allocation2 + $0xc84] ss:$16 sps:$4 sm:$0xff]  }
  0xed   :  { %9859 = vmatpush1.bf16.msra.mxu1 %v14595_v61  ;;  %9817 = vmatprep.subr.bf16.mxu0 %v14600_v62  ;;  %v14669_v61 = vld [vmem:[#allocation2 + $0xe84] ss:$16 sps:$4 sm:$0xff]   ;;  %v14664_v62 = vld [vmem:[#allocation2 + $0xc80] ss:$16 sps:$4 sm:$0xff]  }
  0xee   :  { %9860 = vmatprep.subr.bf16.mxu1 %v14603_v63  ;;  %v14667_v63 = vld [vmem:[#allocation2 + $0xe80] ss:$16 sps:$4 sm:$0xff]  }
  0xf0   :  { %9818 = vmatpush2.bf16.msra.mxu0 %v14598_v0  ;;  %v14672_v0 = vld [vmem:[#allocation2 + $0xc64] ss:$16 sps:$4 sm:$0xff]  }
  0xf1   :  { %9861 = vmatpush2.bf16.msra.mxu1 %v14601_v1  ;;  %9819 = vmatprep.subr.bf16.mxu0 %v14606_v2  ;;  %v14675_v1 = vld [vmem:[#allocation2 + $0xe64] ss:$16 sps:$4 sm:$0xff]   ;;  %v14670_v2 = vld [vmem:[#allocation2 + $0xc60] ss:$16 sps:$4 sm:$0xff]  }
  0xf2   :  { %9862 = vmatprep.subr.bf16.mxu1 %v14609_v3  ;;  %v14673_v3 = vld [vmem:[#allocation2 + $0xe60] ss:$16 sps:$4 sm:$0xff]  }
  0xf4   :  { %9820 = vmatpush2.bf16.msra.mxu0 %v14604_v4  ;;  %v14678_v4 = vld [vmem:[#allocation2 + $0xc44] ss:$16 sps:$4 sm:$0xff]  }
  0xf5   :  { %9863 = vmatpush2.bf16.msra.mxu1 %v14607_v5  ;;  %9821 = vmatprep.subr.bf16.mxu0 %v14612_v6  ;;  %v14681_v5 = vld [vmem:[#allocation2 + $0xe44] ss:$16 sps:$4 sm:$0xff]   ;;  %v14676_v6 = vld [vmem:[#allocation2 + $0xc40] ss:$16 sps:$4 sm:$0xff]  }
  0xf6   :  { %9864 = vmatprep.subr.bf16.mxu1 %v14615_v7  ;;  %v14679_v7 = vld [vmem:[#allocation2 + $0xe40] ss:$16 sps:$4 sm:$0xff]  }
  0xf8   :  { %9822 = vmatpush2.bf16.msra.mxu0 %v14610_v10  ;;  %v14684_v10 = vld [vmem:[#allocation2 + $0xc24] ss:$16 sps:$4 sm:$0xff]  }
  0xf9   :  { %9865 = vmatpush2.bf16.msra.mxu1 %v14613_v11  ;;  %9823 = vmatprep.subr.bf16.mxu0 %v14618_v12  ;;  %v14687_v11 = vld [vmem:[#allocation2 + $0xe24] ss:$16 sps:$4 sm:$0xff]   ;;  %v14682_v12 = vld [vmem:[#allocation2 + $0xc20] ss:$16 sps:$4 sm:$0xff]  }
  0xfa   :  { %9866 = vmatprep.subr.bf16.mxu1 %v14621_v13  ;;  %v14685_v13 = vld [vmem:[#allocation2 + $0xe20] ss:$16 sps:$4 sm:$0xff]  }
  0xfc   :  { %9824 = vmatpush2.bf16.msra.mxu0 %v14616_v14  ;;  %v14690_v14 = vld [vmem:[#allocation2 + $0xc04] ss:$16 sps:$4 sm:$0xff]  }
  0xfd   :  { %9867 = vmatpush2.bf16.msra.mxu1 %v14619_v15  ;;  %9825 = vmatprep.subr.bf16.mxu0 %v14624_v16  ;;  %v14693_v15 = vld [vmem:[#allocation2 + $0xe04] ss:$16 sps:$4 sm:$0xff]   ;;  %v14688_v16 = vld [vmem:[#allocation2 + $0xc00] ss:$16 sps:$4 sm:$0xff]  }
  0xfe   :  { %9868 = vmatprep.subr.bf16.mxu1 %v14627_v17  ;;  %v14691_v17 = vld [vmem:[#allocation2 + $0xe00] ss:$16 sps:$4 sm:$0xff]  }
 0x100   :  { %9826 = vmatpush2.bf16.msra.mxu0 %v14622_v18  ;;  %v14696_v18 = vld [vmem:[#allocation2 + $0xde4] ss:$16 sps:$4 sm:$0xff]  }
 0x101   :  { %9869 = vmatpush2.bf16.msra.mxu1 %v14625_v19  ;;  %9827 = vmatprep.subr.bf16.mxu0 %v14630_v22  ;;  %v14699_v19 = vld [vmem:[#allocation2 + $0xfe4] ss:$16 sps:$4 sm:$0xff]   ;;  %v14694_v22 = vld [vmem:[#allocation2 + $0xde0] ss:$16 sps:$4 sm:$0xff]  }
 0x102   :  { %9870 = vmatprep.subr.bf16.mxu1 %v14633_v23  ;;  %v14697_v23 = vld [vmem:[#allocation2 + $0xfe0] ss:$16 sps:$4 sm:$0xff]  }
 0x104   :  { %9828 = vmatpush2.bf16.msra.mxu0 %v14628_v24  ;;  %v14702_v24 = vld [vmem:[#allocation2 + $0xdc4] ss:$16 sps:$4 sm:$0xff]  }
 0x105   :  { %9871 = vmatpush2.bf16.msra.mxu1 %v14631_v25  ;;  %9829 = vmatprep.subr.bf16.mxu0 %v14636_v26  ;;  %v14705_v25 = vld [vmem:[#allocation2 + $0xfc4] ss:$16 sps:$4 sm:$0xff]   ;;  %v14700_v26 = vld [vmem:[#allocation2 + $0xdc0] ss:$16 sps:$4 sm:$0xff]  }
 0x106   :  { %9872 = vmatprep.subr.bf16.mxu1 %v14639_v27  ;;  %v14703_v27 = vld [vmem:[#allocation2 + $0xfc0] ss:$16 sps:$4 sm:$0xff]  }
 0x108   :  { %9830 = vmatpush2.bf16.msra.mxu0 %v14634_v32  ;;  %v14708_v32 = vld [vmem:[#allocation2 + $0xda4] ss:$16 sps:$4 sm:$0xff]  }
 0x109   :  { %9873 = vmatpush2.bf16.msra.mxu1 %v14637_v34  ;;  %9831 = vmatprep.subr.bf16.mxu0 %v14642_v36  ;;  %v14711_v34 = vld [vmem:[#allocation2 + $0xfa4] ss:$16 sps:$4 sm:$0xff]   ;;  %v14706_v36 = vld [vmem:[#allocation2 + $0xda0] ss:$16 sps:$4 sm:$0xff]  }
 0x10a   :  { %9874 = vmatprep.subr.bf16.mxu1 %v14645_v37  ;;  %v14709_v37 = vld [vmem:[#allocation2 + $0xfa0] ss:$16 sps:$4 sm:$0xff]  }
 0x10c   :  { %9832 = vmatpush2.bf16.msra.mxu0 %v14640_v38  ;;  %v14714_v38 = vld [vmem:[#allocation2 + $0xd84] ss:$16 sps:$4 sm:$0xff]  }
 0x10d   :  { %9875 = vmatpush2.bf16.msra.mxu1 %v14643_v39  ;;  %9887 = vmatprep.subr.bf16.mxu0 %v14648_v40  ;;  %v14717_v39 = vld [vmem:[#allocation2 + $0xf84] ss:$16 sps:$4 sm:$0xff]   ;;  %v14712_v40 = vld [vmem:[#allocation2 + $0xd80] ss:$16 sps:$4 sm:$0xff]  }
 0x10e   :  { %9930 = vmatprep.subr.bf16.mxu1 %v14651_v42  ;;  %v14715_v42 = vld [vmem:[#allocation2 + $0xf80] ss:$16 sps:$4 sm:$0xff]  }
 0x10f   :  { %9834 = vmatmul.mubr.bf16.vlgmr.msra.gmra.mxu0 %v17132_v48 }
 0x110   :  { %9877 = vmatmul.mubr.bf16.vlgmr.msra.gmra.mxu1 %v17136_v49  ;;  %9888 = vmatpush1.bf16.msra.mxu0 %v14646_v45  ;;  %v14720_v45 = vld [vmem:[#allocation2 + $0xd64] ss:$16 sps:$4 sm:$0xff]  }
 0x111   :  { %9931 = vmatpush1.bf16.msra.mxu1 %v14649_v51  ;;  %9889 = vmatprep.subr.bf16.mxu0 %v14654_v52  ;;  %v14723_v51 = vld [vmem:[#allocation2 + $0xf64] ss:$16 sps:$4 sm:$0xff]   ;;  %v14718_v52 = vld [vmem:[#allocation2 + $0xd60] ss:$16 sps:$4 sm:$0xff]  }
 0x112   :  { %9932 = vmatprep.subr.bf16.mxu1 %v14657_v54  ;;  %9919 = vmatprep.mubr.bf16.mxu0 %v17145_v28  ;;  %v14721_v54 = vld [vmem:[#allocation2 + $0xf60] ss:$16 sps:$4 sm:$0xff]  }
 0x113   :  { %9962 = vmatprep.mubr.bf16.mxu1 %v17149_v29 }
 0x114   :  { %9890 = vmatpush1.bf16.msra.mxu0 %v14652_v30  ;;  %v14726_v30 = vld [vmem:[#allocation2 + $0xd44] ss:$16 sps:$4 sm:$0xff]  }
 0x115   :  { %9933 = vmatpush1.bf16.msra.mxu1 %v14655_v31  ;;  %9891 = vmatprep.subr.bf16.mxu0 %v14660_v56  ;;  %v14729_v31 = vld [vmem:[#allocation2 + $0xf44] ss:$16 sps:$4 sm:$0xff]   ;;  %v14724_v56 = vld [vmem:[#allocation2 + $0xd40] ss:$16 sps:$4 sm:$0xff]  }
 0x116   :  { %9934 = vmatprep.subr.bf16.mxu1 %v14663_v57  ;;  %v14727_v57 = vld [vmem:[#allocation2 + $0xf40] ss:$16 sps:$4 sm:$0xff]  }
 0x118   :  { %9892 = vmatpush1.bf16.msra.mxu0 %v14658_v58  ;;  %v1689_v58 = vlaneseq }
 0x119   :  { %9935 = vmatpush1.bf16.msra.mxu1 %v14661_v59  ;;  %9893 = vmatprep.subr.bf16.mxu0 %v14666_v60  ;;  %v14732_v59 = vld [vmem:[#allocation2 + $0xd24] ss:$16 sps:$4 sm:$0xff]  }
 0x11a   :  { %9936 = vmatprep.subr.bf16.mxu1 %v14669_v61  ;;  %v14735_v60 = vld [vmem:[#allocation2 + $0xf24] ss:$16 sps:$4 sm:$0xff]   ;;  %v14730_v61 = vld [vmem:[#allocation2 + $0xd20] ss:$16 sps:$4 sm:$0xff]  }
 0x11c   :  { %9894 = vmatpush1.bf16.msra.mxu0 %v14664_v62  ;;  %v14733_v62 = vld [vmem:[#allocation2 + $0xf20] ss:$16 sps:$4 sm:$0xff]  }
 0x11d   :  { %9937 = vmatpush1.bf16.msra.mxu1 %v14667_v63  ;;  %9895 = vmatprep.subr.bf16.mxu0 %v14672_v0  ;;  %v17155_v63 = vshrl.u32 %v1689_v58, 7  ;;  %v14738_v0 = vld [vmem:[#allocation2 + $0xd04] ss:$16 sps:$4 sm:$0xff]   ;;  %v14769_v58 = vld [vmem:[#allocation2 + $0x1260] ss:$16 sps:$4 sm:$0xff]  }
 0x11e   :  { %9938 = vmatprep.subr.bf16.mxu1 %v14675_v1  ;;  %v14741_v1 = vld [vmem:[#allocation2 + $0xf04] ss:$16 sps:$4 sm:$0xff]  }
 0x11f   :  { %18022 = vst [vmem:[#allocation16_spill] sm:$0xff] %v17155_v63 }
 0x120   :  { %9896 = vmatpush1.bf16.msra.mxu0 %v14670_v2  ;;  %v14736_v2 = vld [vmem:[#allocation2 + $0xd00] ss:$16 sps:$4 sm:$0xff]  }
 0x121   :  { %9939 = vmatpush1.bf16.msra.mxu1 %v14673_v3  ;;  %9897 = vmatprep.subr.bf16.mxu0 %v14678_v4  ;;  %v14739_v3 = vld [vmem:[#allocation2 + $0xf00] ss:$16 sps:$4 sm:$0xff]  }
 0x122   :  { %9940 = vmatprep.subr.bf16.mxu1 %v14681_v5  ;;  %v1687_v4 = vld [vmem:[#allocation4] sm:$0xf]  ;;  %v17158_v5 = vsub.s32 0, %v17155_v63 }
 0x123   :  { %v15333_v63 = vld [vmem:[#allocation2 + $0x2aa0] ss:$16 sps:$4 sm:$0xff]  }
 0x124   :  { %9898 = vmatpush1.bf16.msra.mxu0 %v14676_v6  ;;  %18023 = vst [vmem:[#allocation17_spill] sm:$0xff] %v17158_v5  ;;  %v14744_v6 = vld [vmem:[#allocation2 + $0x10e4] ss:$16 sps:$4 sm:$0xff]  }
 0x125   :  { %9941 = vmatpush1.bf16.msra.mxu1 %v14679_v7  ;;  %9899 = vmatprep.subr.bf16.mxu0 %v14684_v10  ;;  %v14747_v7 = vld [vmem:[#allocation2 + $0x12e4] ss:$16 sps:$4 sm:$0xff]  }
 0x126   :  { %9942 = vmatprep.subr.bf16.mxu1 %v14687_v11  ;;  %v17163_v10 = vld [vmem:[%s17999_s0 + $0x40] sm:$0xff] }
 0x127   :  { %v14742_v11 = vld [vmem:[#allocation2 + $0x10e0] ss:$16 sps:$4 sm:$0xff]  }
 0x128   :  { %9900 = vmatpush1.bf16.msra.mxu0 %v14682_v12  ;;  %v17168_v12 = vld [vmem:[%s17999_s0 + $0x100] sm:$0xff] }
 0x129   :  { %9943 = vmatpush1.bf16.msra.mxu1 %v14685_v13  ;;  %9901 = vmatprep.subr.bf16.mxu0 %v14690_v14  ;;  %v17173_v13 = vld [vmem:[%s17999_s0 + $0x48] sm:$0xff]  ;;  %v17177_v14 = vcombine.low %v17118_v44, %v17123_v46  ;;  %v17191_v44 = vcombine.high %v17163_v10, %v17168_v12 }
 0x12a   :  { %9944 = vmatprep.subr.bf16.mxu1 %v14693_v15  ;;  %v17181_v15 = vcombine.low %v17128_v47, %v17141_v50 }
 0x12c   :  { %9902 = vmatpush1.bf16.msra.mxu0 %v14688_v16  ;;  %v17186_v16 = vld [vmem:[%s17999_s0 + $0x108] sm:$0xff] }
 0x12d   :  { %9945 = vmatpush1.bf16.msra.mxu1 %v14691_v17  ;;  %9903 = vmatprep.subr.bf16.mxu0 %v14696_v18  ;;  %v1692_v17 = vrot.slane %v1687_v4, %v17158_v5  ;;  %v14745_v18 = vld [vmem:[#allocation2 + $0x12e0] ss:$16 sps:$4 sm:$0xff]   ;;  %v17195_v46 = vcombine.high %v17173_v13, %v17186_v16  ;;  %v14786_v4 = vld [vmem:[#allocation2 + $0x1004] ss:$16 sps:$4 sm:$0xff]  }
 0x12e   :  { %9946 = vmatprep.subr.bf16.mxu1 %v14699_v19  ;;  %v14750_v19 = vld [vmem:[#allocation2 + $0x10c4] ss:$16 sps:$4 sm:$0xff]   ;;  %v15042_v5 = vld [vmem:[#allocation2 + $0x1ca0] ss:$16 sps:$4 sm:$0xff]  }
 0x130   :  { %9904 = vmatpush2.bf16.msra.mxu0 %v14694_v22  ;;  %v14753_v22 = vld [vmem:[#allocation2 + $0x12c4] ss:$16 sps:$4 sm:$0xff]  }
 0x131   :  { %9947 = vmatpush2.bf16.msra.mxu1 %v14697_v23  ;;  %9905 = vmatprep.subr.bf16.mxu0 %v14702_v24  ;;  %v14748_v23 = vld [vmem:[#allocation2 + $0x10c0] ss:$16 sps:$4 sm:$0xff]  }
 0x132   :  { %9948 = vmatprep.subr.bf16.mxu1 %v14705_v25  ;;  %v14751_v25 = vld [vmem:[#allocation2 + $0x12c0] ss:$16 sps:$4 sm:$0xff]  }
 0x134   :  { %9906 = vmatpush2.bf16.msra.mxu0 %v14700_v26 }
 0x135   :  { %9949 = vmatpush2.bf16.msra.mxu1 %v14703_v27  ;;  %9907 = vmatprep.subr.bf16.mxu0 %v14708_v32  ;;  %v14756_v32 = vld [vmem:[#allocation2 + $0x10a4] ss:$16 sps:$4 sm:$0xff]  }
 0x136   :  { %9950 = vmatprep.subr.bf16.mxu1 %v14711_v34  ;;  %v14759_v34 = vld [vmem:[#allocation2 + $0x12a4] ss:$16 sps:$4 sm:$0xff]  }
 0x138   :  { %9908 = vmatpush2.bf16.msra.mxu0 %v14706_v36 }
 0x139   :  { %9951 = vmatpush2.bf16.msra.mxu1 %v14709_v37  ;;  %9909 = vmatprep.subr.bf16.mxu0 %v14714_v38  ;;  %v14754_v38 = vld [vmem:[#allocation2 + $0x10a0] ss:$16 sps:$4 sm:$0xff]  }
 0x13a   :  { %9952 = vmatprep.subr.bf16.mxu1 %v14717_v39 }
 0x13c   :  { %9910 = vmatpush2.bf16.msra.mxu0 %v14712_v40  ;;  %v14757_v40 = vld [vmem:[#allocation2 + $0x12a0] ss:$16 sps:$4 sm:$0xff]  }
 0x13d   :  { %9953 = vmatpush2.bf16.msra.mxu1 %v14715_v42  ;;  %9911 = vmatprep.subr.bf16.mxu0 %v14720_v45  ;;  %v14762_v45 = vld [vmem:[#allocation2 + $0x1084] ss:$16 sps:$4 sm:$0xff]  }
 0x13e   :  { %9954 = vmatprep.subr.bf16.mxu1 %v14723_v51  ;;  %v14765_v51 = vld [vmem:[#allocation2 + $0x1284] ss:$16 sps:$4 sm:$0xff]  }
 0x140   :  { %9912 = vmatpush2.bf16.msra.mxu0 %v14718_v52 }
 0x141   :  { %9955 = vmatpush2.bf16.msra.mxu1 %v14721_v54  ;;  %9913 = vmatprep.subr.bf16.mxu0 %v14726_v30  ;;  %v14760_v54 = vld [vmem:[#allocation2 + $0x1080] ss:$16 sps:$4 sm:$0xff]  }
 0x142   :  { %9956 = vmatprep.subr.bf16.mxu1 %v14729_v31  ;;  %v14763_v30 = vld [vmem:[#allocation2 + $0x1280] ss:$16 sps:$4 sm:$0xff]   ;;  %v14768_v31 = vld [vmem:[#allocation2 + $0x1064] ss:$16 sps:$4 sm:$0xff]  }
 0x144   :  { %9914 = vmatpush2.bf16.msra.mxu0 %v14724_v56  ;;  %v14771_v56 = vld [vmem:[#allocation2 + $0x1264] ss:$16 sps:$4 sm:$0xff]  }
 0x145   :  { %9957 = vmatpush2.bf16.msra.mxu1 %v14727_v57  ;;  %9915 = vmatprep.subr.bf16.mxu0 %v14732_v59  ;;  %v14766_v57 = vld [vmem:[#allocation2 + $0x1060] ss:$16 sps:$4 sm:$0xff]   ;;  %v14774_v59 = vld [vmem:[#allocation2 + $0x1044] ss:$16 sps:$4 sm:$0xff]  }
 0x146   :  { %9958 = vmatprep.subr.bf16.mxu1 %v14735_v60  ;;  %v14777_v60 = vld [vmem:[#allocation2 + $0x1244] ss:$16 sps:$4 sm:$0xff]  }
 0x148   :  { %9916 = vmatpush2.bf16.msra.mxu0 %v14730_v61  ;;  %v14772_v61 = vld [vmem:[#allocation2 + $0x1040] ss:$16 sps:$4 sm:$0xff]  }
 0x149   :  { %9959 = vmatpush2.bf16.msra.mxu1 %v14733_v62  ;;  %9917 = vmatprep.subr.bf16.mxu0 %v14738_v0  ;;  %v14775_v62 = vld [vmem:[#allocation2 + $0x1240] ss:$16 sps:$4 sm:$0xff]   ;;  %v14780_v0 = vld [vmem:[#allocation2 + $0x1024] ss:$16 sps:$4 sm:$0xff]  }
 0x14a   :  { %9960 = vmatprep.subr.bf16.mxu1 %v14741_v1  ;;  %v14783_v1 = vld [vmem:[#allocation2 + $0x1224] ss:$16 sps:$4 sm:$0xff]  }
 0x14c   :  { %9918 = vmatpush2.bf16.msra.mxu0 %v14736_v2  ;;  %v14778_v2 = vld [vmem:[#allocation2 + $0x1020] ss:$16 sps:$4 sm:$0xff]  }
 0x14d   :  { %9961 = vmatpush2.bf16.msra.mxu1 %v14739_v3  ;;  %9973 = vmatprep.subr.bf16.mxu0 %v14744_v6  ;;  %v14781_v3 = vld [vmem:[#allocation2 + $0x1220] ss:$16 sps:$4 sm:$0xff]   ;;  %v14789_v6 = vld [vmem:[#allocation2 + $0x1204] ss:$16 sps:$4 sm:$0xff]  }
 0x14e   :  { %10016 = vmatprep.subr.bf16.mxu1 %v14747_v7  ;;  %v14784_v7 = vld [vmem:[#allocation2 + $0x1000] ss:$16 sps:$4 sm:$0xff]  }
 0x14f   :  { %v9663_v47 = vpop.f32.mrf.mxu0  ;;  %9920 = vmatmul.mubr.bf16.vlgmr.msra.gmra.mxu0 %v17177_v14 }
 0x150   :  { %v9706_v50 = vpop.f32.mrf.mxu1  ;;  %9963 = vmatmul.mubr.bf16.vlgmr.msra.gmra.mxu1 %v17181_v15  ;;  %v9664_v24 = vadd.f32 %v9663_v47, %v1692_v17  ;;  %9974 = vmatpush1.bf16.msra.mxu0 %v14742_v11  ;;  %v14787_v11 = vld [vmem:[#allocation2 + $0x1200] ss:$16 sps:$4 sm:$0xff]   ;;  %v14798_v47 = vld [vmem:[#allocation2 + $0x11c4] ss:$16 sps:$4 sm:$0xff]  }
 0x151   :  { %10017 = vmatpush1.bf16.msra.mxu1 %v14745_v18  ;;  %v17199_v26 = vpop.f32.mrf.mxu0  ;;  %9975 = vmatprep.subr.bf16.mxu0 %v14750_v19  ;;  %v14795_v18 = vld [vmem:[#allocation2 + $0x13e4] ss:$16 sps:$4 sm:$0xff]   ;;  %v14790_v19 = vld [vmem:[#allocation2 + $0x11e0] ss:$16 sps:$4 sm:$0xff]  }
 0x152   :  { %18024 = vst [vmem:[#allocation18_spill] sm:$0xff] %v17199_v26  ;;  %v17201_v27 = vpop.f32.mrf.mxu1  ;;  %10018 = vmatprep.subr.bf16.mxu1 %v14753_v22  ;;  %v17203_v36 = vadd.f32 %v9706_v50, %v9664_v24  ;;  %10005 = vmatprep.mubr.bf16.mxu0 %v17191_v44  ;;  %v14793_v22 = vld [vmem:[#allocation2 + $0x13e0] ss:$16 sps:$4 sm:$0xff]   ;;  %v14801_v50 = vld [vmem:[#allocation2 + $0x13c4] ss:$16 sps:$4 sm:$0xff]  }
 0x153   :  { %18025 = vst [vmem:[#allocation19_spill] sm:$0xff] %v17201_v27  ;;  %10048 = vmatprep.mubr.bf16.mxu1 %v17195_v46  ;;  %v9667_v37 = vpop.f32.mrf.mxu0  ;;  %v14799_v24 = vld [vmem:[#allocation2 + $0x13c0] ss:$16 sps:$4 sm:$0xff]  }
 0x154   :  { %v9668_v39 = vadd.f32 %v9667_v37, %v1692_v17  ;;  %9976 = vmatpush1.bf16.msra.mxu0 %v14748_v23  ;;  %v9710_v42 = vpop.f32.mrf.mxu1  ;;  %v14792_v17 = vld [vmem:[#allocation2 + $0x11e4] ss:$16 sps:$4 sm:$0xff]   ;;  %v14796_v23 = vld [vmem:[#allocation2 + $0x11c0] ss:$16 sps:$4 sm:$0xff]  }
 0x155   :  { %10019 = vmatpush1.bf16.msra.mxu1 %v14751_v25  ;;  %9977 = vmatprep.subr.bf16.mxu0 %v14756_v32  ;;  %v14804_v25 = vld [vmem:[#allocation2 + $0x11a4] ss:$16 sps:$4 sm:$0xff]   ;;  %v14805_v37 = vld [vmem:[#allocation2 + $0x13a0] ss:$16 sps:$4 sm:$0xff]  }
 0x156   :  { %10020 = vmatprep.subr.bf16.mxu1 %v14759_v34  ;;  %v17207_v52 = vadd.f32 %v9710_v42, %v9668_v39  ;;  %v14807_v32 = vld [vmem:[#allocation2 + $0x13a4] ss:$16 sps:$4 sm:$0xff]   ;;  %v14802_v34 = vld [vmem:[#allocation2 + $0x11a0] ss:$16 sps:$4 sm:$0xff]  }
 0x157   :  { %v14813_v39 = vld [vmem:[#allocation2 + $0x1384] ss:$16 sps:$4 sm:$0xff]   ;;  %v14811_v42 = vld [vmem:[#allocation2 + $0x1380] ss:$16 sps:$4 sm:$0xff]  }
 0x158   :  { %9978 = vmatpush1.bf16.msra.mxu0 %v14754_v38  ;;  %v14810_v38 = vld [vmem:[#allocation2 + $0x1184] ss:$16 sps:$4 sm:$0xff]   ;;  %v15237_v27 = vld [vmem:[#allocation2 + $0x26a0] ss:$16 sps:$4 sm:$0xff]  }
 0x159   :  { %10021 = vmatpush1.bf16.msra.mxu1 %v14757_v40  ;;  %9979 = vmatprep.subr.bf16.mxu0 %v14762_v45  ;;  %v14808_v40 = vld [vmem:[#allocation2 + $0x1180] ss:$16 sps:$4 sm:$0xff]   ;;  %v14816_v45 = vld [vmem:[#allocation2 + $0x1164] ss:$16 sps:$4 sm:$0xff]  }
 0x15a   :  { %10022 = vmatprep.subr.bf16.mxu1 %v14765_v51  ;;  %v14819_v51 = vld [vmem:[#allocation2 + $0x1364] ss:$16 sps:$4 sm:$0xff]  }
 0x15c   :  { %9980 = vmatpush1.bf16.msra.mxu0 %v14760_v54  ;;  %v14814_v54 = vld [vmem:[#allocation2 + $0x1160] ss:$16 sps:$4 sm:$0xff]  }
 0x15d   :  { %10023 = vmatpush1.bf16.msra.mxu1 %v14763_v30  ;;  %9981 = vmatprep.subr.bf16.mxu0 %v14768_v31  ;;  %v14817_v30 = vld [vmem:[#allocation2 + $0x1360] ss:$16 sps:$4 sm:$0xff]   ;;  %v14822_v31 = vld [vmem:[#allocation2 + $0x1144] ss:$16 sps:$4 sm:$0xff]  }
 0x15e   :  { %10024 = vmatprep.subr.bf16.mxu1 %v14771_v56  ;;  %v14825_v56 = vld [vmem:[#allocation2 + $0x1344] ss:$16 sps:$4 sm:$0xff]  }
 0x160   :  { %9982 = vmatpush1.bf16.msra.mxu0 %v14766_v57  ;;  %v14820_v57 = vld [vmem:[#allocation2 + $0x1140] ss:$16 sps:$4 sm:$0xff]  }
 0x161   :  { %10025 = vmatpush1.bf16.msra.mxu1 %v14769_v58  ;;  %9983 = vmatprep.subr.bf16.mxu0 %v14774_v59  ;;  %v14823_v58 = vld [vmem:[#allocation2 + $0x1340] ss:$16 sps:$4 sm:$0xff]   ;;  %v14828_v59 = vld [vmem:[#allocation2 + $0x1124] ss:$16 sps:$4 sm:$0xff]  }
 0x162   :  { %10026 = vmatprep.subr.bf16.mxu1 %v14777_v60  ;;  %v14831_v60 = vld [vmem:[#allocation2 + $0x1324] ss:$16 sps:$4 sm:$0xff]  }
 0x164   :  { %9984 = vmatpush1.bf16.msra.mxu0 %v14772_v61  ;;  %v14826_v61 = vld [vmem:[#allocation2 + $0x1120] ss:$16 sps:$4 sm:$0xff]  }
 0x165   :  { %10027 = vmatpush1.bf16.msra.mxu1 %v14775_v62  ;;  %9985 = vmatprep.subr.bf16.mxu0 %v14780_v0  ;;  %v14829_v62 = vld [vmem:[#allocation2 + $0x1320] ss:$16 sps:$4 sm:$0xff]   ;;  %v14834_v0 = vld [vmem:[#allocation2 + $0x1104] ss:$16 sps:$4 sm:$0xff]  }
 0x166   :  { %10028 = vmatprep.subr.bf16.mxu1 %v14783_v1  ;;  %v14837_v1 = vld [vmem:[#allocation2 + $0x1304] ss:$16 sps:$4 sm:$0xff]  }
 0x168   :  { %9986 = vmatpush1.bf16.msra.mxu0 %v14778_v2  ;;  %v14832_v2 = vld [vmem:[#allocation2 + $0x1100] ss:$16 sps:$4 sm:$0xff]  }
 0x169   :  { %10029 = vmatpush1.bf16.msra.mxu1 %v14781_v3  ;;  %9987 = vmatprep.subr.bf16.mxu0 %v14786_v4  ;;  %v14835_v3 = vld [vmem:[#allocation2 + $0x1300] ss:$16 sps:$4 sm:$0xff]   ;;  %v14840_v4 = vld [vmem:[#allocation2 + $0x14e4] ss:$16 sps:$4 sm:$0xff]  }
 0x16a   :  { %10030 = vmatprep.subr.bf16.mxu1 %v14789_v6  ;;  %v14843_v6 = vld [vmem:[#allocation2 + $0x16e4] ss:$16 sps:$4 sm:$0xff]  }
 0x16c   :  { %9988 = vmatpush1.bf16.msra.mxu0 %v14784_v7  ;;  %v17212_v7 = vld [vmem:[%s17999_s0 + $0x50] sm:$0xff] }
 0x16d   :  { %10031 = vmatpush1.bf16.msra.mxu1 %v14787_v11  ;;  %9989 = vmatprep.subr.bf16.mxu0 %v14792_v17  ;;  %v14838_v11 = vld [vmem:[#allocation2 + $0x14e0] ss:$16 sps:$4 sm:$0xff]   ;;  %v17216_v17 = vcombine.low %v17163_v10, %v17168_v12  ;;  %v17237_v12 = vpop.f32.mrf.mxu0 }
 0x16e   :  { %10032 = vmatprep.subr.bf16.mxu1 %v14795_v18  ;;  %v17220_v18 = vcombine.low %v17173_v13, %v17186_v16  ;;  %v14841_v10 = vld [vmem:[#allocation2 + $0x16e0] ss:$16 sps:$4 sm:$0xff]   ;;  %18026 = vst [vmem:[#allocation20_spill] sm:$0xff] %v17237_v12  ;;  %v17239_v13 = vpop.f32.mrf.mxu1  ;;  %v14846_v16 = vld [vmem:[#allocation2 + $0x14c4] ss:$16 sps:$4 sm:$0xff]  }
 0x16f   :  { %18027 = vst [vmem:[#allocation21_spill] sm:$0xff] %v17239_v13  ;;  %v15330_v12 = vld [vmem:[#allocation2 + $0x28a0] ss:$16 sps:$4 sm:$0xff]  }
 0x170   :  { %9990 = vmatpush2.bf16.msra.mxu0 %v14790_v19  ;;  %v17225_v19 = vld [vmem:[%s17999_s0 + $0x110] sm:$0xff] }
 0x171   :  { %10033 = vmatpush2.bf16.msra.mxu1 %v14793_v22  ;;  %9991 = vmatprep.subr.bf16.mxu0 %v14798_v47  ;;  %v17230_v22 = vld [vmem:[%s17999_s0 + $0x58] sm:$0xff] }
 0x172   :  { %10034 = vmatprep.subr.bf16.mxu1 %v14801_v50  ;;  %v17235_v47 = vld [vmem:[%s17999_s0 + $0x118] sm:$0xff]  ;;  %v14849_v50 = vld [vmem:[#allocation2 + $0x16c4] ss:$16 sps:$4 sm:$0xff]  }
 0x174   :  { %9992 = vmatpush2.bf16.msra.mxu0 %v14796_v23  ;;  %v14844_v23 = vld [vmem:[#allocation2 + $0x14c0] ss:$16 sps:$4 sm:$0xff]  }
 0x175   :  { %10035 = vmatpush2.bf16.msra.mxu1 %v14799_v24  ;;  %9993 = vmatprep.subr.bf16.mxu0 %v14804_v25  ;;  %v14847_v24 = vld [vmem:[#allocation2 + $0x16c0] ss:$16 sps:$4 sm:$0xff]   ;;  %v17243_v25 = vcombine.high %v17212_v7, %v17225_v19 }
 0x176   :  { %10036 = vmatprep.subr.bf16.mxu1 %v14807_v32  ;;  %v17247_v32 = vcombine.high %v17230_v22, %v17235_v47 }
 0x178   :  { %9994 = vmatpush2.bf16.msra.mxu0 %v14802_v34 }
 0x179   :  { %10037 = vmatpush2.bf16.msra.mxu1 %v14805_v37  ;;  %9995 = vmatprep.subr.bf16.mxu0 %v14810_v38 }
 0x17a   :  { %10038 = vmatprep.subr.bf16.mxu1 %v14813_v39 }
 0x17c   :  { %9996 = vmatpush2.bf16.msra.mxu0 %v14808_v40 }
 0x17d   :  { %10039 = vmatpush2.bf16.msra.mxu1 %v14811_v42  ;;  %9997 = vmatprep.subr.bf16.mxu0 %v14816_v45  ;;  %v14852_v42 = vld [vmem:[#allocation2 + $0x14a4] ss:$16 sps:$4 sm:$0xff]  }
 0x17e   :  { %10040 = vmatprep.subr.bf16.mxu1 %v14819_v51  ;;  %v14855_v45 = vld [vmem:[#allocation2 + $0x16a4] ss:$16 sps:$4 sm:$0xff]  }
 0x180   :  { %9998 = vmatpush2.bf16.msra.mxu0 %v14814_v54  ;;  %v14850_v54 = vld [vmem:[#allocation2 + $0x14a0] ss:$16 sps:$4 sm:$0xff]  }
 0x181   :  { %10041 = vmatpush2.bf16.msra.mxu1 %v14817_v30  ;;  %9999 = vmatprep.subr.bf16.mxu0 %v14822_v31  ;;  %v14853_v30 = vld [vmem:[#allocation2 + $0x16a0] ss:$16 sps:$4 sm:$0xff]  }
 0x182   :  { %10042 = vmatprep.subr.bf16.mxu1 %v14825_v56 }
 0x184   :  { %10000 = vmatpush2.bf16.msra.mxu0 %v14820_v57  ;;  %v14858_v57 = vld [vmem:[#allocation2 + $0x1484] ss:$16 sps:$4 sm:$0xff]  }
 0x185   :  { %10043 = vmatpush2.bf16.msra.mxu1 %v14823_v58  ;;  %10001 = vmatprep.subr.bf16.mxu0 %v14828_v59  ;;  %v14861_v58 = vld [vmem:[#allocation2 + $0x1684] ss:$16 sps:$4 sm:$0xff]  }
 0x186   :  { %10044 = vmatprep.subr.bf16.mxu1 %v14831_v60  ;;  %v14856_v60 = vld [vmem:[#allocation2 + $0x1480] ss:$16 sps:$4 sm:$0xff]  }
 0x188   :  { %10002 = vmatpush2.bf16.msra.mxu0 %v14826_v61  ;;  %v14859_v61 = vld [vmem:[#allocation2 + $0x1680] ss:$16 sps:$4 sm:$0xff]  }
 0x189   :  { %10045 = vmatpush2.bf16.msra.mxu1 %v14829_v62  ;;  %10003 = vmatprep.subr.bf16.mxu0 %v14834_v0  ;;  %v14864_v62 = vld [vmem:[#allocation2 + $0x1464] ss:$16 sps:$4 sm:$0xff]  }
 0x18a   :  { %10046 = vmatprep.subr.bf16.mxu1 %v14837_v1  ;;  %v14867_v0 = vld [vmem:[#allocation2 + $0x1664] ss:$16 sps:$4 sm:$0xff]   ;;  %v14865_v1 = vld [vmem:[#allocation2 + $0x1660] ss:$16 sps:$4 sm:$0xff]  }
 0x18c   :  { %10004 = vmatpush2.bf16.msra.mxu0 %v14832_v2  ;;  %v14870_v2 = vld [vmem:[#allocation2 + $0x1444] ss:$16 sps:$4 sm:$0xff]  }
 0x18d   :  { %10047 = vmatpush2.bf16.msra.mxu1 %v14835_v3  ;;  %10059 = vmatprep.subr.bf16.mxu0 %v14840_v4  ;;  %v14873_v3 = vld [vmem:[#allocation2 + $0x1644] ss:$16 sps:$4 sm:$0xff]   ;;  %v14868_v4 = vld [vmem:[#allocation2 + $0x1440] ss:$16 sps:$4 sm:$0xff]  }
 0x18e   :  { %10102 = vmatprep.subr.bf16.mxu1 %v14843_v6  ;;  %v14871_v6 = vld [vmem:[#allocation2 + $0x1640] ss:$16 sps:$4 sm:$0xff]  }
 0x18f   :  { %v9749_v34 = vpop.f32.mrf.mxu0  ;;  %10006 = vmatmul.mubr.bf16.vlgmr.msra.gmra.mxu0 %v17216_v17 }
 0x190   :  { %v9792_v37 = vpop.f32.mrf.mxu1  ;;  %10049 = vmatmul.mubr.bf16.vlgmr.msra.gmra.mxu1 %v17220_v18  ;;  %v9750_v38 = vadd.f32 %v9749_v34, %v17203_v36  ;;  %10060 = vmatpush1.bf16.msra.mxu0 %v14838_v11  ;;  %v14876_v11 = vld [vmem:[#allocation2 + $0x1424] ss:$16 sps:$4 sm:$0xff]   ;;  %v14880_v34 = vld [vmem:[#allocation2 + $0x1400] ss:$16 sps:$4 sm:$0xff]  }
 0x191   :  { %10103 = vmatpush1.bf16.msra.mxu1 %v14841_v10  ;;  %v17252_v39 = vpop.f32.mrf.mxu0  ;;  %10061 = vmatprep.subr.bf16.mxu0 %v14846_v16  ;;  %v14879_v10 = vld [vmem:[#allocation2 + $0x1624] ss:$16 sps:$4 sm:$0xff]   ;;  %v14874_v16 = vld [vmem:[#allocation2 + $0x1420] ss:$16 sps:$4 sm:$0xff]  }
 0x192   :  { %18028 = vst [vmem:[#allocation22_spill] sm:$0xff] %v17252_v39  ;;  %v17254_v40 = vpop.f32.mrf.mxu1  ;;  %10104 = vmatprep.subr.bf16.mxu1 %v14849_v50  ;;  %v17256_v51 = vadd.f32 %v9792_v37, %v9750_v38  ;;  %10091 = vmatprep.mubr.bf16.mxu0 %v17243_v25  ;;  %v14877_v50 = vld [vmem:[#allocation2 + $0x1620] ss:$16 sps:$4 sm:$0xff]   ;;  %v14888_v38 = vld [vmem:[#allocation2 + $0x15e4] ss:$16 sps:$4 sm:$0xff]  }
 0x193   :  { %18029 = vst [vmem:[#allocation23_spill] sm:$0xff] %v17254_v40  ;;  %10134 = vmatprep.mubr.bf16.mxu1 %v17247_v32  ;;  %v9753_v31 = vpop.f32.mrf.mxu0  ;;  %v14883_v37 = vld [vmem:[#allocation2 + $0x1600] ss:$16 sps:$4 sm:$0xff]  }
 0x194   :  { %v9754_v36 = vadd.f32 %v9753_v31, %v17207_v52  ;;  %10062 = vmatpush1.bf16.msra.mxu0 %v14844_v23  ;;  %v9796_v56 = vpop.f32.mrf.mxu1  ;;  %v14862_v52 = vld [vmem:[#allocation2 + $0x1460] ss:$16 sps:$4 sm:$0xff]   ;;  %v14882_v23 = vld [vmem:[#allocation2 + $0x1404] ss:$16 sps:$4 sm:$0xff]  }
 0x195   :  { %10105 = vmatpush1.bf16.msra.mxu1 %v14847_v24  ;;  %10063 = vmatprep.subr.bf16.mxu0 %v14852_v42  ;;  %v14885_v24 = vld [vmem:[#allocation2 + $0x1604] ss:$16 sps:$4 sm:$0xff]   ;;  %v15141_v40 = vld [vmem:[#allocation2 + $0x22a0] ss:$16 sps:$4 sm:$0xff]  }
 0x196   :  { %10106 = vmatprep.subr.bf16.mxu1 %v14855_v45  ;;  %v17261_v59 = vadd.f32 %v9796_v56, %v9754_v36  ;;  %v14891_v42 = vld [vmem:[#allocation2 + $0x17e4] ss:$16 sps:$4 sm:$0xff]   ;;  %v14886_v45 = vld [vmem:[#allocation2 + $0x15e0] ss:$16 sps:$4 sm:$0xff]  }
 0x197   :  { %v14897_v31 = vld [vmem:[#allocation2 + $0x17c4] ss:$16 sps:$4 sm:$0xff]   ;;  %v14892_v36 = vld [vmem:[#allocation2 + $0x15c0] ss:$16 sps:$4 sm:$0xff]  }
 0x198   :  { %10064 = vmatpush1.bf16.msra.mxu0 %v14850_v54  ;;  %v14889_v54 = vld [vmem:[#allocation2 + $0x17e0] ss:$16 sps:$4 sm:$0xff]  }
 0x199   :  { %10107 = vmatpush1.bf16.msra.mxu1 %v14853_v30  ;;  %10065 = vmatprep.subr.bf16.mxu0 %v14858_v57  ;;  %v14894_v30 = vld [vmem:[#allocation2 + $0x15c4] ss:$16 sps:$4 sm:$0xff]   ;;  %v14895_v56 = vld [vmem:[#allocation2 + $0x17c0] ss:$16 sps:$4 sm:$0xff]  }
 0x19a   :  { %10108 = vmatprep.subr.bf16.mxu1 %v14861_v58  ;;  %v14900_v57 = vld [vmem:[#allocation2 + $0x15a4] ss:$16 sps:$4 sm:$0xff]  }
 0x19b   :  { %v14903_v58 = vld [vmem:[#allocation2 + $0x17a4] ss:$16 sps:$4 sm:$0xff]  }
 0x19c   :  { %10066 = vmatpush1.bf16.msra.mxu0 %v14856_v60  ;;  %v14898_v60 = vld [vmem:[#allocation2 + $0x15a0] ss:$16 sps:$4 sm:$0xff]  }
 0x19d   :  { %10109 = vmatpush1.bf16.msra.mxu1 %v14859_v61  ;;  %10067 = vmatprep.subr.bf16.mxu0 %v14864_v62  ;;  %v14901_v61 = vld [vmem:[#allocation2 + $0x17a0] ss:$16 sps:$4 sm:$0xff]   ;;  %v14906_v62 = vld [vmem:[#allocation2 + $0x1584] ss:$16 sps:$4 sm:$0xff]  }
 0x19e   :  { %10110 = vmatprep.subr.bf16.mxu1 %v14867_v0  ;;  %v14909_v0 = vld [vmem:[#allocation2 + $0x1784] ss:$16 sps:$4 sm:$0xff]  }
 0x1a0   :  { %10068 = vmatpush1.bf16.msra.mxu0 %v14862_v52  ;;  %v14904_v52 = vld [vmem:[#allocation2 + $0x1580] ss:$16 sps:$4 sm:$0xff]  }
 0x1a1   :  { %10111 = vmatpush1.bf16.msra.mxu1 %v14865_v1  ;;  %10069 = vmatprep.subr.bf16.mxu0 %v14870_v2  ;;  %v14907_v1 = vld [vmem:[#allocation2 + $0x1780] ss:$16 sps:$4 sm:$0xff]   ;;  %v14912_v2 = vld [vmem:[#allocation2 + $0x1564] ss:$16 sps:$4 sm:$0xff]  }
 0x1a2   :  { %10112 = vmatprep.subr.bf16.mxu1 %v14873_v3  ;;  %v14915_v3 = vld [vmem:[#allocation2 + $0x1764] ss:$16 sps:$4 sm:$0xff]  }
 0x1a4   :  { %10070 = vmatpush1.bf16.msra.mxu0 %v14868_v4  ;;  %v14910_v4 = vld [vmem:[#allocation2 + $0x1560] ss:$16 sps:$4 sm:$0xff]  }
 0x1a5   :  { %10113 = vmatpush1.bf16.msra.mxu1 %v14871_v6  ;;  %10071 = vmatprep.subr.bf16.mxu0 %v14876_v11  ;;  %v14913_v6 = vld [vmem:[#allocation2 + $0x1760] ss:$16 sps:$4 sm:$0xff]   ;;  %v14918_v11 = vld [vmem:[#allocation2 + $0x1544] ss:$16 sps:$4 sm:$0xff]  }
 0x1a6   :  { %10114 = vmatprep.subr.bf16.mxu1 %v14879_v10  ;;  %v14921_v10 = vld [vmem:[#allocation2 + $0x1744] ss:$16 sps:$4 sm:$0xff]  }
 0x1a8   :  { %10072 = vmatpush1.bf16.msra.mxu0 %v14874_v16  ;;  %v14916_v16 = vld [vmem:[#allocation2 + $0x1540] ss:$16 sps:$4 sm:$0xff]  }
 0x1a9   :  { %10115 = vmatpush1.bf16.msra.mxu1 %v14877_v50  ;;  %10073 = vmatprep.subr.bf16.mxu0 %v14882_v23  ;;  %v14919_v50 = vld [vmem:[#allocation2 + $0x1740] ss:$16 sps:$4 sm:$0xff]   ;;  %v14924_v23 = vld [vmem:[#allocation2 + $0x1524] ss:$16 sps:$4 sm:$0xff]  }
 0x1aa   :  { %10116 = vmatprep.subr.bf16.mxu1 %v14885_v24  ;;  %v14927_v24 = vld [vmem:[#allocation2 + $0x1724] ss:$16 sps:$4 sm:$0xff]  }
 0x1ac   :  { %10074 = vmatpush1.bf16.msra.mxu0 %v14880_v34  ;;  %v14922_v34 = vld [vmem:[#allocation2 + $0x1520] ss:$16 sps:$4 sm:$0xff]  }
 0x1ad   :  { %10117 = vmatpush1.bf16.msra.mxu1 %v14883_v37  ;;  %10075 = vmatprep.subr.bf16.mxu0 %v14888_v38  ;;  %v14925_v37 = vld [vmem:[#allocation2 + $0x1720] ss:$16 sps:$4 sm:$0xff]   ;;  %v14930_v38 = vld [vmem:[#allocation2 + $0x1504] ss:$16 sps:$4 sm:$0xff]  }
 0x1ae   :  { %10118 = vmatprep.subr.bf16.mxu1 %v14891_v42  ;;  %v14933_v42 = vld [vmem:[#allocation2 + $0x1704] ss:$16 sps:$4 sm:$0xff]  }
 0x1b0   :  { %10076 = vmatpush2.bf16.msra.mxu0 %v14886_v45  ;;  %v14928_v45 = vld [vmem:[#allocation2 + $0x1500] ss:$16 sps:$4 sm:$0xff]  }
 0x1b1   :  { %10119 = vmatpush2.bf16.msra.mxu1 %v14889_v54  ;;  %10077 = vmatprep.subr.bf16.mxu0 %v14894_v30  ;;  %v14931_v54 = vld [vmem:[#allocation2 + $0x1700] ss:$16 sps:$4 sm:$0xff]   ;;  %v14936_v30 = vld [vmem:[#allocation2 + $0x18e4] ss:$16 sps:$4 sm:$0xff]  }
 0x1b2   :  { %10120 = vmatprep.subr.bf16.mxu1 %v14897_v31  ;;  %v14939_v31 = vld [vmem:[#allocation2 + $0x1ae4] ss:$16 sps:$4 sm:$0xff]  }
 0x1b4   :  { %10078 = vmatpush2.bf16.msra.mxu0 %v14892_v36  ;;  %v17266_v36 = vld [vmem:[%s17999_s0 + $0x60] sm:$0xff] }
 0x1b5   :  { %10121 = vmatpush2.bf16.msra.mxu1 %v14895_v56  ;;  %10079 = vmatprep.subr.bf16.mxu0 %v14900_v57  ;;  %v14934_v56 = vld [vmem:[#allocation2 + $0x18e0] ss:$16 sps:$4 sm:$0xff]   ;;  %v17270_v57 = vcombine.low %v17212_v7, %v17225_v19  ;;  %v17291_v19 = vpop.f32.mrf.mxu0 }
 0x1b6   :  { %10122 = vmatprep.subr.bf16.mxu1 %v14903_v58  ;;  %v17274_v58 = vcombine.low %v17230_v22, %v17235_v47  ;;  %v14937_v7 = vld [vmem:[#allocation2 + $0x1ae0] ss:$16 sps:$4 sm:$0xff]   ;;  %18030 = vst [vmem:[#allocation24_spill] sm:$0xff] %v17291_v19  ;;  %v17293_v22 = vpop.f32.mrf.mxu1  ;;  %v14942_v47 = vld [vmem:[#allocation2 + $0x18c4] ss:$16 sps:$4 sm:$0xff]  }
 0x1b7   :  { %18031 = vst [vmem:[#allocation25_spill] sm:$0xff] %v17293_v22  ;;  %v15234_v19 = vld [vmem:[#allocation2 + $0x24a0] ss:$16 sps:$4 sm:$0xff]  }
 0x1b8   :  { %10080 = vmatpush2.bf16.msra.mxu0 %v14898_v60  ;;  %v17279_v60 = vld [vmem:[%s17999_s0 + $0x120] sm:$0xff] }
 0x1b9   :  { %10123 = vmatpush2.bf16.msra.mxu1 %v14901_v61  ;;  %10081 = vmatprep.subr.bf16.mxu0 %v14906_v62  ;;  %v17284_v61 = vld [vmem:[%s17999_s0 + $0x68] sm:$0xff] }
 0x1ba   :  { %10124 = vmatprep.subr.bf16.mxu1 %v14909_v0  ;;  %v17289_v62 = vld [vmem:[%s17999_s0 + $0x128] sm:$0xff]  ;;  %v14945_v0 = vld [vmem:[#allocation2 + $0x1ac4] ss:$16 sps:$4 sm:$0xff]  }
 0x1bc   :  { %10082 = vmatpush2.bf16.msra.mxu0 %v14904_v52  ;;  %v14940_v52 = vld [vmem:[#allocation2 + $0x18c0] ss:$16 sps:$4 sm:$0xff]  }
 0x1bd   :  { %10125 = vmatpush2.bf16.msra.mxu1 %v14907_v1  ;;  %10083 = vmatprep.subr.bf16.mxu0 %v14912_v2  ;;  %v14943_v1 = vld [vmem:[#allocation2 + $0x1ac0] ss:$16 sps:$4 sm:$0xff]   ;;  %v17297_v2 = vcombine.high %v17266_v36, %v17279_v60 }
 0x1be   :  { %10126 = vmatprep.subr.bf16.mxu1 %v14915_v3  ;;  %v17301_v3 = vcombine.high %v17284_v61, %v17289_v62 }
 0x1c0   :  { %10084 = vmatpush2.bf16.msra.mxu0 %v14910_v4 }
 0x1c1   :  { %10127 = vmatpush2.bf16.msra.mxu1 %v14913_v6  ;;  %10085 = vmatprep.subr.bf16.mxu0 %v14918_v11 }
 0x1c2   :  { %10128 = vmatprep.subr.bf16.mxu1 %v14921_v10 }
 0x1c4   :  { %10086 = vmatpush2.bf16.msra.mxu0 %v14916_v16 }
 0x1c5   :  { %10129 = vmatpush2.bf16.msra.mxu1 %v14919_v50  ;;  %10087 = vmatprep.subr.bf16.mxu0 %v14924_v23  ;;  %v14948_v50 = vld [vmem:[#allocation2 + $0x18a4] ss:$16 sps:$4 sm:$0xff]  }
 0x1c6   :  { %10130 = vmatprep.subr.bf16.mxu1 %v14927_v24  ;;  %v14951_v23 = vld [vmem:[#allocation2 + $0x1aa4] ss:$16 sps:$4 sm:$0xff]  }
 0x1c8   :  { %10088 = vmatpush2.bf16.msra.mxu0 %v14922_v34  ;;  %v14946_v34 = vld [vmem:[#allocation2 + $0x18a0] ss:$16 sps:$4 sm:$0xff]  }
 0x1c9   :  { %10131 = vmatpush2.bf16.msra.mxu1 %v14925_v37  ;;  %10089 = vmatprep.subr.bf16.mxu0 %v14930_v38  ;;  %v14949_v37 = vld [vmem:[#allocation2 + $0x1aa0] ss:$16 sps:$4 sm:$0xff]  }
 0x1ca   :  { %10132 = vmatprep.subr.bf16.mxu1 %v14933_v42 }
 0x1cc   :  { %10090 = vmatpush2.bf16.msra.mxu0 %v14928_v45  ;;  %v14954_v45 = vld [vmem:[#allocation2 + $0x1884] ss:$16 sps:$4 sm:$0xff]  }
 0x1cd   :  { %10133 = vmatpush2.bf16.msra.mxu1 %v14931_v54  ;;  %10145 = vmatprep.subr.bf16.mxu0 %v14936_v30  ;;  %v14957_v54 = vld [vmem:[#allocation2 + $0x1a84] ss:$16 sps:$4 sm:$0xff]  }
 0x1ce   :  { %10188 = vmatprep.subr.bf16.mxu1 %v14939_v31  ;;  %v14952_v31 = vld [vmem:[#allocation2 + $0x1880] ss:$16 sps:$4 sm:$0xff]  }
 0x1cf   :  { %v9835_v4 = vpop.f32.mrf.mxu0  ;;  %10092 = vmatmul.mubr.bf16.vlgmr.msra.gmra.mxu0 %v17270_v57 }
 0x1d0   :  { %v9878_v6 = vpop.f32.mrf.mxu1  ;;  %10135 = vmatmul.mubr.bf16.vlgmr.msra.gmra.mxu1 %v17274_v58  ;;  %v9836_v11 = vadd.f32 %v9835_v4, %v17256_v51  ;;  %10146 = vmatpush1.bf16.msra.mxu0 %v14934_v56  ;;  %v14955_v56 = vld [vmem:[#allocation2 + $0x1a80] ss:$16 sps:$4 sm:$0xff]  }
 0x1d1   :  { %10189 = vmatpush1.bf16.msra.mxu1 %v14937_v7  ;;  %v17306_v10 = vpop.f32.mrf.mxu0  ;;  %10147 = vmatprep.subr.bf16.mxu0 %v14942_v47  ;;  %v14960_v7 = vld [vmem:[#allocation2 + $0x1864] ss:$16 sps:$4 sm:$0xff]   ;;  %v14964_v4 = vld [vmem:[#allocation2 + $0x1840] ss:$16 sps:$4 sm:$0xff]  }
 0x1d2   :  { %18032 = vst [vmem:[#allocation26_spill] sm:$0xff] %v17306_v10  ;;  %v17308_v16 = vpop.f32.mrf.mxu1  ;;  %10190 = vmatprep.subr.bf16.mxu1 %v14945_v0  ;;  %v17310_v24 = vadd.f32 %v9878_v6, %v9836_v11  ;;  %10177 = vmatprep.mubr.bf16.mxu0 %v17297_v2  ;;  %v14963_v47 = vld [vmem:[#allocation2 + $0x1a64] ss:$16 sps:$4 sm:$0xff]   ;;  %v14961_v0 = vld [vmem:[#allocation2 + $0x1a60] ss:$16 sps:$4 sm:$0xff]  }
 0x1d3   :  { %18033 = vst [vmem:[#allocation27_spill] sm:$0xff] %v17308_v16  ;;  %10220 = vmatprep.mubr.bf16.mxu1 %v17301_v3  ;;  %v9839_v38 = vpop.f32.mrf.mxu0  ;;  %v14967_v6 = vld [vmem:[#allocation2 + $0x1a40] ss:$16 sps:$4 sm:$0xff]   ;;  %v14972_v11 = vld [vmem:[#allocation2 + $0x1824] ss:$16 sps:$4 sm:$0xff]  }
 0x1d4   :  { %v9840_v51 = vadd.f32 %v9839_v38, %v17261_v59  ;;  %10148 = vmatpush1.bf16.msra.mxu0 %v14940_v52  ;;  %v9882_v42 = vpop.f32.mrf.mxu1  ;;  %v14958_v59 = vld [vmem:[#allocation2 + $0x1860] ss:$16 sps:$4 sm:$0xff]   ;;  %v14966_v52 = vld [vmem:[#allocation2 + $0x1844] ss:$16 sps:$4 sm:$0xff]  }
 0x1d5   :  { %10191 = vmatpush1.bf16.msra.mxu1 %v14943_v1  ;;  %10149 = vmatprep.subr.bf16.mxu0 %v14948_v50  ;;  %v14969_v1 = vld [vmem:[#allocation2 + $0x1a44] ss:$16 sps:$4 sm:$0xff]   ;;  %v15045_v16 = vld [vmem:[#allocation2 + $0x1ea0] ss:$16 sps:$4 sm:$0xff]  }
 0x1d6   :  { %10192 = vmatprep.subr.bf16.mxu1 %v14951_v23  ;;  %v17315_v30 = vadd.f32 %v9882_v42, %v9840_v51  ;;  %v14975_v50 = vld [vmem:[#allocation2 + $0x1a24] ss:$16 sps:$4 sm:$0xff]   ;;  %v14970_v23 = vld [vmem:[#allocation2 + $0x1820] ss:$16 sps:$4 sm:$0xff]  }
 0x1d7   :  { %v14981_v38 = vld [vmem:[#allocation2 + $0x1a04] ss:$16 sps:$4 sm:$0xff]   ;;  %v14976_v51 = vld [vmem:[#allocation2 + $0x1800] ss:$16 sps:$4 sm:$0xff]  }
 0x1d8   :  { %10150 = vmatpush1.bf16.msra.mxu0 %v14946_v34  ;;  %v14973_v34 = vld [vmem:[#allocation2 + $0x1a20] ss:$16 sps:$4 sm:$0xff]  }
 0x1d9   :  { %10193 = vmatpush1.bf16.msra.mxu1 %v14949_v37  ;;  %10151 = vmatprep.subr.bf16.mxu0 %v14954_v45  ;;  %v14978_v37 = vld [vmem:[#allocation2 + $0x1804] ss:$16 sps:$4 sm:$0xff]   ;;  %v14979_v42 = vld [vmem:[#allocation2 + $0x1a00] ss:$16 sps:$4 sm:$0xff]  }
 0x1da   :  { %10194 = vmatprep.subr.bf16.mxu1 %v14957_v54  ;;  %v14984_v45 = vld [vmem:[#allocation2 + $0x19e4] ss:$16 sps:$4 sm:$0xff]  }
 0x1db   :  { %v14987_v54 = vld [vmem:[#allocation2 + $0x1be4] ss:$16 sps:$4 sm:$0xff]  }
 0x1dc   :  { %10152 = vmatpush1.bf16.msra.mxu0 %v14952_v31  ;;  %v14982_v31 = vld [vmem:[#allocation2 + $0x19e0] ss:$16 sps:$4 sm:$0xff]  }
 0x1dd   :  { %10195 = vmatpush1.bf16.msra.mxu1 %v14955_v56  ;;  %10153 = vmatprep.subr.bf16.mxu0 %v14960_v7  ;;  %v14985_v56 = vld [vmem:[#allocation2 + $0x1be0] ss:$16 sps:$4 sm:$0xff]   ;;  %v14990_v7 = vld [vmem:[#allocation2 + $0x19c4] ss:$16 sps:$4 sm:$0xff]  }
 0x1de   :  { %10196 = vmatprep.subr.bf16.mxu1 %v14963_v47  ;;  %v14993_v47 = vld [vmem:[#allocation2 + $0x1bc4] ss:$16 sps:$4 sm:$0xff]  }
 0x1e0   :  { %10154 = vmatpush1.bf16.msra.mxu0 %v14958_v59  ;;  %v14988_v59 = vld [vmem:[#allocation2 + $0x19c0] ss:$16 sps:$4 sm:$0xff]  }
 0x1e1   :  { %10197 = vmatpush1.bf16.msra.mxu1 %v14961_v0  ;;  %10155 = vmatprep.subr.bf16.mxu0 %v14966_v52  ;;  %v14991_v0 = vld [vmem:[#allocation2 + $0x1bc0] ss:$16 sps:$4 sm:$0xff]   ;;  %v14996_v52 = vld [vmem:[#allocation2 + $0x19a4] ss:$16 sps:$4 sm:$0xff]  }
 0x1e2   :  { %10198 = vmatprep.subr.bf16.mxu1 %v14969_v1  ;;  %v14999_v1 = vld [vmem:[#allocation2 + $0x1ba4] ss:$16 sps:$4 sm:$0xff]  }
 0x1e4   :  { %10156 = vmatpush1.bf16.msra.mxu0 %v14964_v4  ;;  %v14994_v4 = vld [vmem:[#allocation2 + $0x19a0] ss:$16 sps:$4 sm:$0xff]  }
 0x1e5   :  { %10199 = vmatpush1.bf16.msra.mxu1 %v14967_v6  ;;  %10157 = vmatprep.subr.bf16.mxu0 %v14972_v11  ;;  %v14997_v6 = vld [vmem:[#allocation2 + $0x1ba0] ss:$16 sps:$4 sm:$0xff]   ;;  %v15002_v11 = vld [vmem:[#allocation2 + $0x1984] ss:$16 sps:$4 sm:$0xff]  }
 0x1e6   :  { %10200 = vmatprep.subr.bf16.mxu1 %v14975_v50  ;;  %v15005_v50 = vld [vmem:[#allocation2 + $0x1b84] ss:$16 sps:$4 sm:$0xff]  }
 0x1e8   :  { %10158 = vmatpush1.bf16.msra.mxu0 %v14970_v23  ;;  %v15000_v23 = vld [vmem:[#allocation2 + $0x1980] ss:$16 sps:$4 sm:$0xff]  }
 0x1e9   :  { %10201 = vmatpush1.bf16.msra.mxu1 %v14973_v34  ;;  %10159 = vmatprep.subr.bf16.mxu0 %v14978_v37  ;;  %v15003_v34 = vld [vmem:[#allocation2 + $0x1b80] ss:$16 sps:$4 sm:$0xff]   ;;  %v15008_v37 = vld [vmem:[#allocation2 + $0x1964] ss:$16 sps:$4 sm:$0xff]  }
 0x1ea   :  { %10202 = vmatprep.subr.bf16.mxu1 %v14981_v38  ;;  %v15011_v38 = vld [vmem:[#allocation2 + $0x1b64] ss:$16 sps:$4 sm:$0xff]  }
 0x1ec   :  { %10160 = vmatpush1.bf16.msra.mxu0 %v14976_v51  ;;  %v15006_v51 = vld [vmem:[#allocation2 + $0x1960] ss:$16 sps:$4 sm:$0xff]  }
 0x1ed   :  { %10203 = vmatpush1.bf16.msra.mxu1 %v14979_v42  ;;  %10161 = vmatprep.subr.bf16.mxu0 %v14984_v45  ;;  %v15009_v42 = vld [vmem:[#allocation2 + $0x1b60] ss:$16 sps:$4 sm:$0xff]   ;;  %v15014_v45 = vld [vmem:[#allocation2 + $0x1944] ss:$16 sps:$4 sm:$0xff]  }
 0x1ee   :  { %10204 = vmatprep.subr.bf16.mxu1 %v14987_v54  ;;  %v15017_v54 = vld [vmem:[#allocation2 + $0x1b44] ss:$16 sps:$4 sm:$0xff]  }
 0x1f0   :  { %10162 = vmatpush2.bf16.msra.mxu0 %v14982_v31  ;;  %v15012_v31 = vld [vmem:[#allocation2 + $0x1940] ss:$16 sps:$4 sm:$0xff]  }
 0x1f1   :  { %10205 = vmatpush2.bf16.msra.mxu1 %v14985_v56  ;;  %10163 = vmatprep.subr.bf16.mxu0 %v14990_v7  ;;  %v15015_v56 = vld [vmem:[#allocation2 + $0x1b40] ss:$16 sps:$4 sm:$0xff]   ;;  %v15020_v7 = vld [vmem:[#allocation2 + $0x1924] ss:$16 sps:$4 sm:$0xff]  }
 0x1f2   :  { %10206 = vmatprep.subr.bf16.mxu1 %v14993_v47  ;;  %v15023_v47 = vld [vmem:[#allocation2 + $0x1b24] ss:$16 sps:$4 sm:$0xff]  }
 0x1f4   :  { %10164 = vmatpush2.bf16.msra.mxu0 %v14988_v59  ;;  %v15018_v59 = vld [vmem:[#allocation2 + $0x1920] ss:$16 sps:$4 sm:$0xff]  }
 0x1f5   :  { %10207 = vmatpush2.bf16.msra.mxu1 %v14991_v0  ;;  %10165 = vmatprep.subr.bf16.mxu0 %v14996_v52  ;;  %v15021_v0 = vld [vmem:[#allocation2 + $0x1b20] ss:$16 sps:$4 sm:$0xff]   ;;  %v15026_v52 = vld [vmem:[#allocation2 + $0x1904] ss:$16 sps:$4 sm:$0xff]  }
 0x1f6   :  { %10208 = vmatprep.subr.bf16.mxu1 %v14999_v1  ;;  %v15029_v1 = vld [vmem:[#allocation2 + $0x1b04] ss:$16 sps:$4 sm:$0xff]  }
 0x1f8   :  { %10166 = vmatpush2.bf16.msra.mxu0 %v14994_v4  ;;  %v15024_v4 = vld [vmem:[#allocation2 + $0x1900] ss:$16 sps:$4 sm:$0xff]  }
 0x1f9   :  { %10209 = vmatpush2.bf16.msra.mxu1 %v14997_v6  ;;  %10167 = vmatprep.subr.bf16.mxu0 %v15002_v11  ;;  %v15027_v6 = vld [vmem:[#allocation2 + $0x1b00] ss:$16 sps:$4 sm:$0xff]   ;;  %v15032_v11 = vld [vmem:[#allocation2 + $0x1ce4] ss:$16 sps:$4 sm:$0xff]  }
 0x1fa   :  { %10210 = vmatprep.subr.bf16.mxu1 %v15005_v50  ;;  %v15035_v50 = vld [vmem:[#allocation2 + $0x1ee4] ss:$16 sps:$4 sm:$0xff]  }
 0x1fc   :  { %10168 = vmatpush2.bf16.msra.mxu0 %v15000_v23  ;;  %v17320_v23 = vld [vmem:[%s17999_s0 + $0x70] sm:$0xff] }
 0x1fd   :  { %10211 = vmatpush2.bf16.msra.mxu1 %v15003_v34  ;;  %10169 = vmatprep.subr.bf16.mxu0 %v15008_v37  ;;  %v15030_v34 = vld [vmem:[#allocation2 + $0x1ce0] ss:$16 sps:$4 sm:$0xff]   ;;  %v17324_v37 = vcombine.low %v17266_v36, %v17279_v60  ;;  %v17345_v60 = vpop.f32.mrf.mxu0 }
 0x1fe   :  { %10212 = vmatprep.subr.bf16.mxu1 %v15011_v38  ;;  %v17328_v38 = vcombine.low %v17284_v61, %v17289_v62  ;;  %v15033_v36 = vld [vmem:[#allocation2 + $0x1ee0] ss:$16 sps:$4 sm:$0xff]   ;;  %18034 = vst [vmem:[#allocation28_spill] sm:$0xff] %v17345_v60  ;;  %v17347_v61 = vpop.f32.mrf.mxu1  ;;  %v15038_v62 = vld [vmem:[#allocation2 + $0x1cc4] ss:$16 sps:$4 sm:$0xff]  }
 0x1ff   :  { %18035 = vst [vmem:[#allocation29_spill] sm:$0xff] %v17347_v61  ;;  %v15138_v60 = vld [vmem:[#allocation2 + $0x20a0] ss:$16 sps:$4 sm:$0xff]  }
 0x200   :  { %10170 = vmatpush2.bf16.msra.mxu0 %v15006_v51  ;;  %v17333_v51 = vld [vmem:[%s17999_s0 + $0x130] sm:$0xff] }
 0x201   :  { %10213 = vmatpush2.bf16.msra.mxu1 %v15009_v42  ;;  %10171 = vmatprep.subr.bf16.mxu0 %v15014_v45  ;;  %v17338_v42 = vld [vmem:[%s17999_s0 + $0x78] sm:$0xff] }
 0x202   :  { %10214 = vmatprep.subr.bf16.mxu1 %v15017_v54  ;;  %v17343_v45 = vld [vmem:[%s17999_s0 + $0x138] sm:$0xff]  ;;  %v15041_v54 = vld [vmem:[#allocation2 + $0x1ec4] ss:$16 sps:$4 sm:$0xff]  }
 0x204   :  { %10172 = vmatpush2.bf16.msra.mxu0 %v15012_v31  ;;  %v15036_v31 = vld [vmem:[#allocation2 + $0x1cc0] ss:$16 sps:$4 sm:$0xff]  }
 0x205   :  { %10215 = vmatpush2.bf16.msra.mxu1 %v15015_v56  ;;  %10173 = vmatprep.subr.bf16.mxu0 %v15020_v7  ;;  %v15039_v56 = vld [vmem:[#allocation2 + $0x1ec0] ss:$16 sps:$4 sm:$0xff]   ;;  %v17351_v7 = vcombine.high %v17320_v23, %v17333_v51 }
 0x206   :  { %10216 = vmatprep.subr.bf16.mxu1 %v15023_v47  ;;  %v17355_v47 = vcombine.high %v17338_v42, %v17343_v45 }
 0x208   :  { %10174 = vmatpush2.bf16.msra.mxu0 %v15018_v59 }
 0x209   :  { %10217 = vmatpush2.bf16.msra.mxu1 %v15021_v0  ;;  %10175 = vmatprep.subr.bf16.mxu0 %v15026_v52 }
 0x20a   :  { %10218 = vmatprep.subr.bf16.mxu1 %v15029_v1 }
 0x20c   :  { %10176 = vmatpush2.bf16.msra.mxu0 %v15024_v4 }
 0x20d   :  { %10219 = vmatpush2.bf16.msra.mxu1 %v15027_v6  ;;  %10231 = vmatprep.subr.bf16.mxu0 %v15032_v11  ;;  %v15044_v6 = vld [vmem:[#allocation2 + $0x1ca4] ss:$16 sps:$4 sm:$0xff]  }
 0x20e   :  { %10274 = vmatprep.subr.bf16.mxu1 %v15035_v50  ;;  %v15047_v11 = vld [vmem:[#allocation2 + $0x1ea4] ss:$16 sps:$4 sm:$0xff]  }
 0x20f   :  { %v9921_v59 = vpop.f32.mrf.mxu0  ;;  %10178 = vmatmul.mubr.bf16.vlgmr.msra.gmra.mxu0 %v17324_v37 }
 0x210   :  { %v9964_v0 = vpop.f32.mrf.mxu1  ;;  %10221 = vmatmul.mubr.bf16.vlgmr.msra.gmra.mxu1 %v17328_v38  ;;  %v9922_v52 = vadd.f32 %v9921_v59, %v17310_v24  ;;  %10232 = vmatpush1.bf16.msra.mxu0 %v15030_v34  ;;  %v15048_v59 = vld [vmem:[#allocation2 + $0x1c80] ss:$16 sps:$4 sm:$0xff]  }
 0x211   :  { %10275 = vmatpush1.bf16.msra.mxu1 %v15033_v36  ;;  %v17360_v1 = vpop.f32.mrf.mxu0  ;;  %10233 = vmatprep.subr.bf16.mxu0 %v15038_v62  ;;  %v15050_v36 = vld [vmem:[#allocation2 + $0x1c84] ss:$16 sps:$4 sm:$0xff]  }
 0x212   :  { %18036 = vst [vmem:[#allocation30_spill] sm:$0xff] %v17360_v1  ;;  %v17362_v4 = vpop.f32.mrf.mxu1  ;;  %10276 = vmatprep.subr.bf16.mxu1 %v15041_v54  ;;  %v17364_v50 = vadd.f32 %v9964_v0, %v9922_v52  ;;  %10263 = vmatprep.mubr.bf16.mxu0 %v17351_v7  ;;  %v15053_v62 = vld [vmem:[#allocation2 + $0x1e84] ss:$16 sps:$4 sm:$0xff]   ;;  %v15051_v0 = vld [vmem:[#allocation2 + $0x1e80] ss:$16 sps:$4 sm:$0xff]  }
 0x213   :  { %18037 = vst [vmem:[#allocation31_spill] sm:$0xff] %v17362_v4  ;;  %10306 = vmatprep.mubr.bf16.mxu1 %v17355_v47  ;;  %v9925_v61 = vpop.f32.mrf.mxu0  ;;  %v15056_v52 = vld [vmem:[#allocation2 + $0x1c64] ss:$16 sps:$4 sm:$0xff]  }
 0x214   :  { %v9926_v24 = vadd.f32 %v9925_v61, %v17315_v30  ;;  %10234 = vmatpush1.bf16.msra.mxu0 %v15036_v31  ;;  %v9968_v34 = vpop.f32.mrf.mxu1  ;;  %v15059_v4 = vld [vmem:[#allocation2 + $0x1e64] ss:$16 sps:$4 sm:$0xff]   ;;  %v15054_v30 = vld [vmem:[#allocation2 + $0x1c60] ss:$16 sps:$4 sm:$0xff]  }
 0x215   :  { %10277 = vmatpush1.bf16.msra.mxu1 %v15039_v56  ;;  %10235 = vmatprep.subr.bf16.mxu0 %v15044_v6  ;;  %v15057_v61 = vld [vmem:[#allocation2 + $0x1e60] ss:$16 sps:$4 sm:$0xff]   ;;  %v15062_v31 = vld [vmem:[#allocation2 + $0x1c44] ss:$16 sps:$4 sm:$0xff]  }
 0x216   :  { %10278 = vmatprep.subr.bf16.mxu1 %v15047_v11  ;;  %v17369_v54 = vadd.f32 %v9968_v34, %v9926_v24  ;;  %v15065_v56 = vld [vmem:[#allocation2 + $0x1e44] ss:$16 sps:$4 sm:$0xff]   ;;  %v15060_v6 = vld [vmem:[#allocation2 + $0x1c40] ss:$16 sps:$4 sm:$0xff]  }
 0x217   :  { %v15063_v11 = vld [vmem:[#allocation2 + $0x1e40] ss:$16 sps:$4 sm:$0xff]   ;;  %v15140_v1 = vld [vmem:[#allocation2 + $0x20a4] ss:$16 sps:$4 sm:$0xff]  }
 0x218   :  { %10236 = vmatpush1.bf16.msra.mxu0 %v15042_v5  ;;  %v15068_v5 = vld [vmem:[#allocation2 + $0x1c24] ss:$16 sps:$4 sm:$0xff]   ;;  %v15066_v24 = vld [vmem:[#allocation2 + $0x1c20] ss:$16 sps:$4 sm:$0xff]  }
 0x219   :  { %10279 = vmatpush1.bf16.msra.mxu1 %v15045_v16  ;;  %10237 = vmatprep.subr.bf16.mxu0 %v15050_v36  ;;  %v15071_v16 = vld [vmem:[#allocation2 + $0x1e24] ss:$16 sps:$4 sm:$0xff]   ;;  %v15069_v34 = vld [vmem:[#allocation2 + $0x1e20] ss:$16 sps:$4 sm:$0xff]  }
 0x21a   :  { %10280 = vmatprep.subr.bf16.mxu1 %v15053_v62  ;;  %v15074_v36 = vld [vmem:[#allocation2 + $0x1c04] ss:$16 sps:$4 sm:$0xff]  }
 0x21b   :  { %v15077_v62 = vld [vmem:[#allocation2 + $0x1e04] ss:$16 sps:$4 sm:$0xff]  }
 0x21c   :  { %10238 = vmatpush1.bf16.msra.mxu0 %v15048_v59  ;;  %v15075_v59 = vld [vmem:[#allocation2 + $0x1e00] ss:$16 sps:$4 sm:$0xff]  }
 0x21d   :  { %10281 = vmatpush1.bf16.msra.mxu1 %v15051_v0  ;;  %10239 = vmatprep.subr.bf16.mxu0 %v15056_v52  ;;  %v15080_v0 = vld [vmem:[#allocation2 + $0x1de4] ss:$16 sps:$4 sm:$0xff]  }
 0x21e   :  { %10282 = vmatprep.subr.bf16.mxu1 %v15059_v4  ;;  %v15072_v4 = vld [vmem:[#allocation2 + $0x1c00] ss:$16 sps:$4 sm:$0xff]   ;;  %v15083_v52 = vld [vmem:[#allocation2 + $0x1fe4] ss:$16 sps:$4 sm:$0xff]  }
 0x220   :  { %10240 = vmatpush1.bf16.msra.mxu0 %v15054_v30  ;;  %v15078_v30 = vld [vmem:[#allocation2 + $0x1de0] ss:$16 sps:$4 sm:$0xff]  }
 0x221   :  { %10283 = vmatpush1.bf16.msra.mxu1 %v15057_v61  ;;  %10241 = vmatprep.subr.bf16.mxu0 %v15062_v31  ;;  %v15081_v61 = vld [vmem:[#allocation2 + $0x1fe0] ss:$16 sps:$4 sm:$0xff]   ;;  %v15086_v31 = vld [vmem:[#allocation2 + $0x1dc4] ss:$16 sps:$4 sm:$0xff]  }
 0x222   :  { %10284 = vmatprep.subr.bf16.mxu1 %v15065_v56  ;;  %v15089_v56 = vld [vmem:[#allocation2 + $0x1fc4] ss:$16 sps:$4 sm:$0xff]  }
 0x224   :  { %10242 = vmatpush1.bf16.msra.mxu0 %v15060_v6  ;;  %v15084_v6 = vld [vmem:[#allocation2 + $0x1dc0] ss:$16 sps:$4 sm:$0xff]  }
 0x225   :  { %10285 = vmatpush1.bf16.msra.mxu1 %v15063_v11  ;;  %10243 = vmatprep.subr.bf16.mxu0 %v15068_v5  ;;  %v15087_v11 = vld [vmem:[#allocation2 + $0x1fc0] ss:$16 sps:$4 sm:$0xff]   ;;  %v15092_v5 = vld [vmem:[#allocation2 + $0x1da4] ss:$16 sps:$4 sm:$0xff]  }
 0x226   :  { %10286 = vmatprep.subr.bf16.mxu1 %v15071_v16  ;;  %v15095_v16 = vld [vmem:[#allocation2 + $0x1fa4] ss:$16 sps:$4 sm:$0xff]  }
 0x228   :  { %10244 = vmatpush1.bf16.msra.mxu0 %v15066_v24  ;;  %v15090_v24 = vld [vmem:[#allocation2 + $0x1da0] ss:$16 sps:$4 sm:$0xff]  }
 0x229   :  { %10287 = vmatpush1.bf16.msra.mxu1 %v15069_v34  ;;  %10245 = vmatprep.subr.bf16.mxu0 %v15074_v36  ;;  %v15093_v34 = vld [vmem:[#allocation2 + $0x1fa0] ss:$16 sps:$4 sm:$0xff]   ;;  %v15098_v36 = vld [vmem:[#allocation2 + $0x1d84] ss:$16 sps:$4 sm:$0xff]  }
 0x22a   :  { %10288 = vmatprep.subr.bf16.mxu1 %v15077_v62  ;;  %v15101_v62 = vld [vmem:[#allocation2 + $0x1f84] ss:$16 sps:$4 sm:$0xff]  }
 0x22c   :  { %10246 = vmatpush1.bf16.msra.mxu0 %v15072_v4  ;;  %v15096_v4 = vld [vmem:[#allocation2 + $0x1d80] ss:$16 sps:$4 sm:$0xff]  }
 0x22d   :  { %10289 = vmatpush1.bf16.msra.mxu1 %v15075_v59  ;;  %10247 = vmatprep.subr.bf16.mxu0 %v15080_v0  ;;  %v15099_v59 = vld [vmem:[#allocation2 + $0x1f80] ss:$16 sps:$4 sm:$0xff]   ;;  %v15104_v0 = vld [vmem:[#allocation2 + $0x1d64] ss:$16 sps:$4 sm:$0xff]  }
 0x22e   :  { %10290 = vmatprep.subr.bf16.mxu1 %v15083_v52  ;;  %v15107_v52 = vld [vmem:[#allocation2 + $0x1f64] ss:$16 sps:$4 sm:$0xff]  }
 0x230   :  { %10248 = vmatpush2.bf16.msra.mxu0 %v15078_v30  ;;  %v15102_v30 = vld [vmem:[#allocation2 + $0x1d60] ss:$16 sps:$4 sm:$0xff]  }
 0x231   :  { %10291 = vmatpush2.bf16.msra.mxu1 %v15081_v61  ;;  %10249 = vmatprep.subr.bf16.mxu0 %v15086_v31  ;;  %v15105_v61 = vld [vmem:[#allocation2 + $0x1f60] ss:$16 sps:$4 sm:$0xff]   ;;  %v15110_v31 = vld [vmem:[#allocation2 + $0x1d44] ss:$16 sps:$4 sm:$0xff]  }
 0x232   :  { %10292 = vmatprep.subr.bf16.mxu1 %v15089_v56  ;;  %v15113_v56 = vld [vmem:[#allocation2 + $0x1f44] ss:$16 sps:$4 sm:$0xff]  }
 0x234   :  { %10250 = vmatpush2.bf16.msra.mxu0 %v15084_v6  ;;  %v15108_v6 = vld [vmem:[#allocation2 + $0x1d40] ss:$16 sps:$4 sm:$0xff]  }
 0x235   :  { %10293 = vmatpush2.bf16.msra.mxu1 %v15087_v11  ;;  %10251 = vmatprep.subr.bf16.mxu0 %v15092_v5  ;;  %v15111_v11 = vld [vmem:[#allocation2 + $0x1f40] ss:$16 sps:$4 sm:$0xff]   ;;  %v15116_v5 = vld [vmem:[#allocation2 + $0x1d24] ss:$16 sps:$4 sm:$0xff]  }
 0x236   :  { %10294 = vmatprep.subr.bf16.mxu1 %v15095_v16  ;;  %v15119_v16 = vld [vmem:[#allocation2 + $0x1f24] ss:$16 sps:$4 sm:$0xff]  }
 0x238   :  { %10252 = vmatpush2.bf16.msra.mxu0 %v15090_v24  ;;  %v15114_v24 = vld [vmem:[#allocation2 + $0x1d20] ss:$16 sps:$4 sm:$0xff]  }
 0x239   :  { %10295 = vmatpush2.bf16.msra.mxu1 %v15093_v34  ;;  %10253 = vmatprep.subr.bf16.mxu0 %v15098_v36  ;;  %v15117_v34 = vld [vmem:[#allocation2 + $0x1f20] ss:$16 sps:$4 sm:$0xff]   ;;  %v15122_v36 = vld [vmem:[#allocation2 + $0x1d04] ss:$16 sps:$4 sm:$0xff]  }
 0x23a   :  { %10296 = vmatprep.subr.bf16.mxu1 %v15101_v62  ;;  %v15125_v62 = vld [vmem:[#allocation2 + $0x1f04] ss:$16 sps:$4 sm:$0xff]  }
 0x23c   :  { %10254 = vmatpush2.bf16.msra.mxu0 %v15096_v4  ;;  %v15120_v4 = vld [vmem:[#allocation2 + $0x1d00] ss:$16 sps:$4 sm:$0xff]  }
 0x23d   :  { %10297 = vmatpush2.bf16.msra.mxu1 %v15099_v59  ;;  %10255 = vmatprep.subr.bf16.mxu0 %v15104_v0  ;;  %v15123_v59 = vld [vmem:[#allocation2 + $0x1f00] ss:$16 sps:$4 sm:$0xff]   ;;  %v15128_v0 = vld [vmem:[#allocation2 + $0x20e4] ss:$16 sps:$4 sm:$0xff]  }
 0x23e   :  { %10298 = vmatprep.subr.bf16.mxu1 %v15107_v52  ;;  %v15131_v52 = vld [vmem:[#allocation2 + $0x22e4] ss:$16 sps:$4 sm:$0xff]  }
 0x240   :  { %10256 = vmatpush2.bf16.msra.mxu0 %v15102_v30  ;;  %v17374_v30 = vld [vmem:[%s17999_s0 + $0x80] sm:$0xff] }
 0x241   :  { %10299 = vmatpush2.bf16.msra.mxu1 %v15105_v61  ;;  %10257 = vmatprep.subr.bf16.mxu0 %v15110_v31  ;;  %v15126_v61 = vld [vmem:[#allocation2 + $0x20e0] ss:$16 sps:$4 sm:$0xff]   ;;  %v17378_v31 = vcombine.low %v17320_v23, %v17333_v51  ;;  %v17399_v51 = vpop.f32.mrf.mxu0 }
 0x242   :  { %10300 = vmatprep.subr.bf16.mxu1 %v15113_v56  ;;  %v17382_v56 = vcombine.low %v17338_v42, %v17343_v45  ;;  %v15129_v23 = vld [vmem:[#allocation2 + $0x22e0] ss:$16 sps:$4 sm:$0xff]   ;;  %18038 = vst [vmem:[#allocation32_spill] sm:$0xff] %v17399_v51  ;;  %v17401_v42 = vpop.f32.mrf.mxu1  ;;  %v15134_v45 = vld [vmem:[#allocation2 + $0x20c4] ss:$16 sps:$4 sm:$0xff]  }
 0x243   :  { %18039 = vst [vmem:[#allocation33_spill] sm:$0xff] %v17401_v42  ;;  %v15143_v51 = vld [vmem:[#allocation2 + $0x22a4] ss:$16 sps:$4 sm:$0xff]  }
 0x244   :  { %10258 = vmatpush2.bf16.msra.mxu0 %v15108_v6  ;;  %v17387_v6 = vld [vmem:[%s17999_s0 + $0x140] sm:$0xff] }
 0x245   :  { %10301 = vmatpush2.bf16.msra.mxu1 %v15111_v11  ;;  %10259 = vmatprep.subr.bf16.mxu0 %v15116_v5  ;;  %v17392_v11 = vld [vmem:[%s17999_s0 + $0x88] sm:$0xff] }
 0x246   :  { %10302 = vmatprep.subr.bf16.mxu1 %v15119_v16  ;;  %v17397_v5 = vld [vmem:[%s17999_s0 + $0x148] sm:$0xff]  ;;  %v15137_v16 = vld [vmem:[#allocation2 + $0x22c4] ss:$16 sps:$4 sm:$0xff]  }
 0x248   :  { %10260 = vmatpush2.bf16.msra.mxu0 %v15114_v24  ;;  %v15132_v24 = vld [vmem:[#allocation2 + $0x20c0] ss:$16 sps:$4 sm:$0xff]  }
 0x249   :  { %10303 = vmatpush2.bf16.msra.mxu1 %v15117_v34  ;;  %10261 = vmatprep.subr.bf16.mxu0 %v15122_v36  ;;  %v15135_v34 = vld [vmem:[#allocation2 + $0x22c0] ss:$16 sps:$4 sm:$0xff]   ;;  %v17405_v36 = vcombine.high %v17374_v30, %v17387_v6 }
 0x24a   :  { %10304 = vmatprep.subr.bf16.mxu1 %v15125_v62  ;;  %v17409_v62 = vcombine.high %v17392_v11, %v17397_v5 }
 0x24c   :  { %10262 = vmatpush2.bf16.msra.mxu0 %v15120_v4 }
 0x24d   :  { %10305 = vmatpush2.bf16.msra.mxu1 %v15123_v59  ;;  %10317 = vmatprep.subr.bf16.mxu0 %v15128_v0 }
 0x24e   :  { %10360 = vmatprep.subr.bf16.mxu1 %v15131_v52 }
 0x24f   :  { %v10007_v4 = vpop.f32.mrf.mxu0  ;;  %10264 = vmatmul.mubr.bf16.vlgmr.msra.gmra.mxu0 %v17378_v31 }
 0x250   :  { %v10050_v59 = vpop.f32.mrf.mxu1  ;;  %10307 = vmatmul.mubr.bf16.vlgmr.msra.gmra.mxu1 %v17382_v56  ;;  %v10008_v0 = vadd.f32 %v10007_v4, %v17364_v50  ;;  %10318 = vmatpush1.bf16.msra.mxu0 %v15126_v61  ;;  %v15144_v4 = vld [vmem:[#allocation2 + $0x2080] ss:$16 sps:$4 sm:$0xff]  }
 0x251   :  { %10361 = vmatpush1.bf16.msra.mxu1 %v15129_v23  ;;  %v17414_v52 = vpop.f32.mrf.mxu0  ;;  %10319 = vmatprep.subr.bf16.mxu0 %v15134_v45  ;;  %v15146_v23 = vld [vmem:[#allocation2 + $0x2084] ss:$16 sps:$4 sm:$0xff]  }
 0x252   :  { %18040 = vst [vmem:[#allocation34_spill] sm:$0xff] %v17414_v52  ;;  %v17416_v42 = vpop.f32.mrf.mxu1  ;;  %10362 = vmatprep.subr.bf16.mxu1 %v15137_v16  ;;  %v17418_v10 = vadd.f32 %v10050_v59, %v10008_v0  ;;  %10349 = vmatprep.mubr.bf16.mxu0 %v17405_v36  ;;  %v15149_v45 = vld [vmem:[#allocation2 + $0x2284] ss:$16 sps:$4 sm:$0xff]   ;;  %v15147_v59 = vld [vmem:[#allocation2 + $0x2280] ss:$16 sps:$4 sm:$0xff]  }
 0x253   :  { %18041 = vst [vmem:[#allocation35_spill] sm:$0xff] %v17416_v42  ;;  %10392 = vmatprep.mubr.bf16.mxu1 %v17409_v62  ;;  %v10011_v22 = vpop.f32.mrf.mxu0  ;;  %v15152_v0 = vld [vmem:[#allocation2 + $0x2064] ss:$16 sps:$4 sm:$0xff]  }
 0x254   :  { %v10012_v50 = vadd.f32 %v10011_v22, %v17369_v54  ;;  %10320 = vmatpush1.bf16.msra.mxu0 %v15132_v24  ;;  %v10054_v61 = vpop.f32.mrf.mxu1  ;;  %v15155_v42 = vld [vmem:[#allocation2 + $0x2264] ss:$16 sps:$4 sm:$0xff]   ;;  %v15150_v22 = vld [vmem:[#allocation2 + $0x2060] ss:$16 sps:$4 sm:$0xff]  }
 0x255   :  { %10363 = vmatpush1.bf16.msra.mxu1 %v15135_v34  ;;  %10321 = vmatprep.subr.bf16.mxu0 %v15140_v1  ;;  %v15153_v54 = vld [vmem:[#allocation2 + $0x2260] ss:$16 sps:$4 sm:$0xff]   ;;  %v15158_v1 = vld [vmem:[#allocation2 + $0x2044] ss:$16 sps:$4 sm:$0xff]  }
 0x256   :  { %10364 = vmatprep.subr.bf16.mxu1 %v15143_v51  ;;  %v17423_v16 = vadd.f32 %v10054_v61, %v10012_v50  ;;  %v15161_v51 = vld [vmem:[#allocation2 + $0x2244] ss:$16 sps:$4 sm:$0xff]   ;;  %v15156_v24 = vld [vmem:[#allocation2 + $0x2040] ss:$16 sps:$4 sm:$0xff]  }
 0x257   :  { %v15159_v34 = vld [vmem:[#allocation2 + $0x2240] ss:$16 sps:$4 sm:$0xff]   ;;  %v15236_v52 = vld [vmem:[#allocation2 + $0x24a4] ss:$16 sps:$4 sm:$0xff]  }
 0x258   :  { %10322 = vmatpush1.bf16.msra.mxu0 %v15138_v60  ;;  %v15167_v60 = vld [vmem:[#allocation2 + $0x2224] ss:$16 sps:$4 sm:$0xff]   ;;  %v15162_v50 = vld [vmem:[#allocation2 + $0x2020] ss:$16 sps:$4 sm:$0xff]  }
 0x259   :  { %10365 = vmatpush1.bf16.msra.mxu1 %v15141_v40  ;;  %10323 = vmatprep.subr.bf16.mxu0 %v15146_v23  ;;  %v15164_v40 = vld [vmem:[#allocation2 + $0x2024] ss:$16 sps:$4 sm:$0xff]   ;;  %v15165_v61 = vld [vmem:[#allocation2 + $0x2220] ss:$16 sps:$4 sm:$0xff]  }
 0x25a   :  { %10366 = vmatprep.subr.bf16.mxu1 %v15149_v45  ;;  %v15170_v23 = vld [vmem:[#allocation2 + $0x2004] ss:$16 sps:$4 sm:$0xff]  }
 0x25b   :  { %v15173_v45 = vld [vmem:[#allocation2 + $0x2204] ss:$16 sps:$4 sm:$0xff]  }
 0x25c   :  { %10324 = vmatpush1.bf16.msra.mxu0 %v15144_v4  ;;  %v15171_v4 = vld [vmem:[#allocation2 + $0x2200] ss:$16 sps:$4 sm:$0xff]  }
 0x25d   :  { %10367 = vmatpush1.bf16.msra.mxu1 %v15147_v59  ;;  %10325 = vmatprep.subr.bf16.mxu0 %v15152_v0  ;;  %v15176_v59 = vld [vmem:[#allocation2 + $0x21e4] ss:$16 sps:$4 sm:$0xff]  }
 0x25e   :  { %10368 = vmatprep.subr.bf16.mxu1 %v15155_v42  ;;  %v15168_v42 = vld [vmem:[#allocation2 + $0x2000] ss:$16 sps:$4 sm:$0xff]   ;;  %v15179_v0 = vld [vmem:[#allocation2 + $0x23e4] ss:$16 sps:$4 sm:$0xff]  }
 0x260   :  { %10326 = vmatpush1.bf16.msra.mxu0 %v15150_v22  ;;  %v15174_v22 = vld [vmem:[#allocation2 + $0x21e0] ss:$16 sps:$4 sm:$0xff]  }
 0x261   :  { %10369 = vmatpush1.bf16.msra.mxu1 %v15153_v54  ;;  %10327 = vmatprep.subr.bf16.mxu0 %v15158_v1  ;;  %v15177_v54 = vld [vmem:[#allocation2 + $0x23e0] ss:$16 sps:$4 sm:$0xff]   ;;  %v15182_v1 = vld [vmem:[#allocation2 + $0x21c4] ss:$16 sps:$4 sm:$0xff]  }
 0x262   :  { %10370 = vmatprep.subr.bf16.mxu1 %v15161_v51  ;;  %v15185_v51 = vld [vmem:[#allocation2 + $0x23c4] ss:$16 sps:$4 sm:$0xff]  }
 0x264   :  { %10328 = vmatpush1.bf16.msra.mxu0 %v15156_v24  ;;  %v15180_v24 = vld [vmem:[#allocation2 + $0x21c0] ss:$16 sps:$4 sm:$0xff]  }
 0x265   :  { %10371 = vmatpush1.bf16.msra.mxu1 %v15159_v34  ;;  %10329 = vmatprep.subr.bf16.mxu0 %v15164_v40  ;;  %v15183_v34 = vld [vmem:[#allocation2 + $0x23c0] ss:$16 sps:$4 sm:$0xff]   ;;  %v15188_v40 = vld [vmem:[#allocation2 + $0x21a4] ss:$16 sps:$4 sm:$0xff]  }
 0x266   :  { %10372 = vmatprep.subr.bf16.mxu1 %v15167_v60  ;;  %v15191_v60 = vld [vmem:[#allocation2 + $0x23a4] ss:$16 sps:$4 sm:$0xff]  }
 0x268   :  { %10330 = vmatpush1.bf16.msra.mxu0 %v15162_v50  ;;  %v15186_v50 = vld [vmem:[#allocation2 + $0x21a0] ss:$16 sps:$4 sm:$0xff]  }
 0x269   :  { %10373 = vmatpush1.bf16.msra.mxu1 %v15165_v61  ;;  %10331 = vmatprep.subr.bf16.mxu0 %v15170_v23  ;;  %v15189_v61 = vld [vmem:[#allocation2 + $0x23a0] ss:$16 sps:$4 sm:$0xff]   ;;  %v15194_v23 = vld [vmem:[#allocation2 + $0x2184] ss:$16 sps:$4 sm:$0xff]  }
 0x26a   :  { %10374 = vmatprep.subr.bf16.mxu1 %v15173_v45  ;;  %v15197_v45 = vld [vmem:[#allocation2 + $0x2384] ss:$16 sps:$4 sm:$0xff]  }
 0x26c   :  { %10332 = vmatpush1.bf16.msra.mxu0 %v15168_v42  ;;  %v15192_v42 = vld [vmem:[#allocation2 + $0x2180] ss:$16 sps:$4 sm:$0xff]  }
 0x26d   :  { %10375 = vmatpush1.bf16.msra.mxu1 %v15171_v4  ;;  %10333 = vmatprep.subr.bf16.mxu0 %v15176_v59  ;;  %v15195_v4 = vld [vmem:[#allocation2 + $0x2380] ss:$16 sps:$4 sm:$0xff]   ;;  %v15200_v59 = vld [vmem:[#allocation2 + $0x2164] ss:$16 sps:$4 sm:$0xff]  }
 0x26e   :  { %10376 = vmatprep.subr.bf16.mxu1 %v15179_v0  ;;  %v15203_v0 = vld [vmem:[#allocation2 + $0x2364] ss:$16 sps:$4 sm:$0xff]  }
 0x270   :  { %10334 = vmatpush2.bf16.msra.mxu0 %v15174_v22  ;;  %v15198_v22 = vld [vmem:[#allocation2 + $0x2160] ss:$16 sps:$4 sm:$0xff]  }
 0x271   :  { %10377 = vmatpush2.bf16.msra.mxu1 %v15177_v54  ;;  %10335 = vmatprep.subr.bf16.mxu0 %v15182_v1  ;;  %v15201_v54 = vld [vmem:[#allocation2 + $0x2360] ss:$16 sps:$4 sm:$0xff]   ;;  %v15206_v1 = vld [vmem:[#allocation2 + $0x2144] ss:$16 sps:$4 sm:$0xff]  }
 0x272   :  { %10378 = vmatprep.subr.bf16.mxu1 %v15185_v51  ;;  %v15209_v51 = vld [vmem:[#allocation2 + $0x2344] ss:$16 sps:$4 sm:$0xff]  }
 0x274   :  { %10336 = vmatpush2.bf16.msra.mxu0 %v15180_v24  ;;  %v15204_v24 = vld [vmem:[#allocation2 + $0x2140] ss:$16 sps:$4 sm:$0xff]  }
 0x275   :  { %10379 = vmatpush2.bf16.msra.mxu1 %v15183_v34  ;;  %10337 = vmatprep.subr.bf16.mxu0 %v15188_v40  ;;  %v15207_v34 = vld [vmem:[#allocation2 + $0x2340] ss:$16 sps:$4 sm:$0xff]   ;;  %v15212_v40 = vld [vmem:[#allocation2 + $0x2124] ss:$16 sps:$4 sm:$0xff]  }
 0x276   :  { %10380 = vmatprep.subr.bf16.mxu1 %v15191_v60  ;;  %v15215_v60 = vld [vmem:[#allocation2 + $0x2324] ss:$16 sps:$4 sm:$0xff]  }
 0x278   :  { %10338 = vmatpush2.bf16.msra.mxu0 %v15186_v50  ;;  %v15210_v50 = vld [vmem:[#allocation2 + $0x2120] ss:$16 sps:$4 sm:$0xff]  }
 0x279   :  { %10381 = vmatpush2.bf16.msra.mxu1 %v15189_v61  ;;  %10339 = vmatprep.subr.bf16.mxu0 %v15194_v23  ;;  %v15213_v61 = vld [vmem:[#allocation2 + $0x2320] ss:$16 sps:$4 sm:$0xff]   ;;  %v15218_v23 = vld [vmem:[#allocation2 + $0x2104] ss:$16 sps:$4 sm:$0xff]  }
 0x27a   :  { %10382 = vmatprep.subr.bf16.mxu1 %v15197_v45  ;;  %v15221_v45 = vld [vmem:[#allocation2 + $0x2304] ss:$16 sps:$4 sm:$0xff]  }
 0x27c   :  { %10340 = vmatpush2.bf16.msra.mxu0 %v15192_v42  ;;  %v15216_v42 = vld [vmem:[#allocation2 + $0x2100] ss:$16 sps:$4 sm:$0xff]  }
 0x27d   :  { %10383 = vmatpush2.bf16.msra.mxu1 %v15195_v4  ;;  %10341 = vmatprep.subr.bf16.mxu0 %v15200_v59  ;;  %v15219_v4 = vld [vmem:[#allocation2 + $0x2300] ss:$16 sps:$4 sm:$0xff]   ;;  %v15224_v59 = vld [vmem:[#allocation2 + $0x24e4] ss:$16 sps:$4 sm:$0xff]  }
 0x27e   :  { %10384 = vmatprep.subr.bf16.mxu1 %v15203_v0  ;;  %v15227_v0 = vld [vmem:[#allocation2 + $0x26e4] ss:$16 sps:$4 sm:$0xff]  }
 0x280   :  { %10342 = vmatpush2.bf16.msra.mxu0 %v15198_v22  ;;  %v17428_v22 = vld [vmem:[%s17999_s0 + $0x90] sm:$0xff] }
 0x281   :  { %10385 = vmatpush2.bf16.msra.mxu1 %v15201_v54  ;;  %10343 = vmatprep.subr.bf16.mxu0 %v15206_v1  ;;  %v15222_v54 = vld [vmem:[#allocation2 + $0x24e0] ss:$16 sps:$4 sm:$0xff]   ;;  %v17432_v1 = vcombine.low %v17374_v30, %v17387_v6  ;;  %v17453_v6 = vpop.f32.mrf.mxu0 }
 0x282   :  { %10386 = vmatprep.subr.bf16.mxu1 %v15209_v51  ;;  %v17436_v51 = vcombine.low %v17392_v11, %v17397_v5  ;;  %v15225_v30 = vld [vmem:[#allocation2 + $0x26e0] ss:$16 sps:$4 sm:$0xff]   ;;  %18042 = vst [vmem:[#allocation36_spill] sm:$0xff] %v17453_v6  ;;  %v17455_v11 = vpop.f32.mrf.mxu1  ;;  %v15230_v5 = vld [vmem:[#allocation2 + $0x24c4] ss:$16 sps:$4 sm:$0xff]  }
 0x283   :  { %18043 = vst [vmem:[#allocation37_spill] sm:$0xff] %v17455_v11  ;;  %v15239_v6 = vld [vmem:[#allocation2 + $0x26a4] ss:$16 sps:$4 sm:$0xff]  }
 0x284   :  { %10344 = vmatpush2.bf16.msra.mxu0 %v15204_v24  ;;  %v17441_v24 = vld [vmem:[%s17999_s0 + $0x150] sm:$0xff] }
 0x285   :  { %10387 = vmatpush2.bf16.msra.mxu1 %v15207_v34  ;;  %10345 = vmatprep.subr.bf16.mxu0 %v15212_v40  ;;  %v17446_v34 = vld [vmem:[%s17999_s0 + $0x98] sm:$0xff] }
 0x286   :  { %10388 = vmatprep.subr.bf16.mxu1 %v15215_v60  ;;  %v17451_v40 = vld [vmem:[%s17999_s0 + $0x158] sm:$0xff]  ;;  %v15233_v60 = vld [vmem:[#allocation2 + $0x26c4] ss:$16 sps:$4 sm:$0xff]  }
 0x288   :  { %10346 = vmatpush2.bf16.msra.mxu0 %v15210_v50  ;;  %v15228_v50 = vld [vmem:[#allocation2 + $0x24c0] ss:$16 sps:$4 sm:$0xff]  }
 0x289   :  { %10389 = vmatpush2.bf16.msra.mxu1 %v15213_v61  ;;  %10347 = vmatprep.subr.bf16.mxu0 %v15218_v23  ;;  %v15231_v61 = vld [vmem:[#allocation2 + $0x26c0] ss:$16 sps:$4 sm:$0xff]   ;;  %v17459_v23 = vcombine.high %v17428_v22, %v17441_v24 }
 0x28a   :  { %10390 = vmatprep.subr.bf16.mxu1 %v15221_v45  ;;  %v17463_v45 = vcombine.high %v17446_v34, %v17451_v40 }
 0x28c   :  { %10348 = vmatpush2.bf16.msra.mxu0 %v15216_v42 }
 0x28d   :  { %10391 = vmatpush2.bf16.msra.mxu1 %v15219_v4  ;;  %10403 = vmatprep.subr.bf16.mxu0 %v15224_v59 }
 0x28e   :  { %10446 = vmatprep.subr.bf16.mxu1 %v15227_v0 }
 0x28f   :  { %v10093_v42 = vpop.f32.mrf.mxu0  ;;  %10350 = vmatmul.mubr.bf16.vlgmr.msra.gmra.mxu0 %v17432_v1 }
 0x290   :  { %v10136_v4 = vpop.f32.mrf.mxu1  ;;  %10393 = vmatmul.mubr.bf16.vlgmr.msra.gmra.mxu1 %v17436_v51  ;;  %v10094_v59 = vadd.f32 %v10093_v42, %v17418_v10  ;;  %10404 = vmatpush1.bf16.msra.mxu0 %v15222_v54  ;;  %v15240_v42 = vld [vmem:[#allocation2 + $0x2480] ss:$16 sps:$4 sm:$0xff]  }
 0x291   :  { %10447 = vmatpush1.bf16.msra.mxu1 %v15225_v30  ;;  %v17468_v0 = vpop.f32.mrf.mxu0  ;;  %10405 = vmatprep.subr.bf16.mxu0 %v15230_v5  ;;  %v15242_v30 = vld [vmem:[#allocation2 + $0x2484] ss:$16 sps:$4 sm:$0xff]  }
 0x292   :  { %18044 = vst [vmem:[#allocation38_spill] sm:$0xff] %v17468_v0  ;;  %v17470_v11 = vpop.f32.mrf.mxu1  ;;  %10448 = vmatprep.subr.bf16.mxu1 %v15233_v60  ;;  %v17472_v39 = vadd.f32 %v10136_v4, %v10094_v59  ;;  %10435 = vmatprep.mubr.bf16.mxu0 %v17459_v23  ;;  %v15245_v5 = vld [vmem:[#allocation2 + $0x2684] ss:$16 sps:$4 sm:$0xff]   ;;  %v15243_v4 = vld [vmem:[#allocation2 + $0x2680] ss:$16 sps:$4 sm:$0xff]  }
 0x293   :  { %18045 = vst [vmem:[#allocation39_spill] sm:$0xff] %v17470_v11  ;;  %10478 = vmatprep.mubr.bf16.mxu1 %v17463_v45  ;;  %v10097_v13 = vpop.f32.mrf.mxu0  ;;  %v15248_v59 = vld [vmem:[#allocation2 + $0x2464] ss:$16 sps:$4 sm:$0xff]  }
 0x294   :  { %v10098_v10 = vadd.f32 %v10097_v13, %v17423_v16  ;;  %10406 = vmatpush1.bf16.msra.mxu0 %v15228_v50  ;;  %v10140_v54 = vpop.f32.mrf.mxu1  ;;  %v15251_v11 = vld [vmem:[#allocation2 + $0x2664] ss:$16 sps:$4 sm:$0xff]   ;;  %v15246_v13 = vld [vmem:[#allocation2 + $0x2460] ss:$16 sps:$4 sm:$0xff]  }
 0x295   :  { %10449 = vmatpush1.bf16.msra.mxu1 %v15231_v61  ;;  %10407 = vmatprep.subr.bf16.mxu0 %v15236_v52  ;;  %v15249_v16 = vld [vmem:[#allocation2 + $0x2660] ss:$16 sps:$4 sm:$0xff]   ;;  %v15254_v52 = vld [vmem:[#allocation2 + $0x2444] ss:$16 sps:$4 sm:$0xff]  }
 0x296   :  { %10450 = vmatprep.subr.bf16.mxu1 %v15239_v6  ;;  %v17477_v60 = vadd.f32 %v10140_v54, %v10098_v10  ;;  %v15257_v6 = vld [vmem:[#allocation2 + $0x2644] ss:$16 sps:$4 sm:$0xff]   ;;  %v15252_v50 = vld [vmem:[#allocation2 + $0x2440] ss:$16 sps:$4 sm:$0xff]  }
 0x297   :  { %v15255_v61 = vld [vmem:[#allocation2 + $0x2640] ss:$16 sps:$4 sm:$0xff]   ;;  %v15332_v0 = vld [vmem:[#allocation2 + $0x28a4] ss:$16 sps:$4 sm:$0xff]  }
 0x298   :  { %10408 = vmatpush1.bf16.msra.mxu0 %v15234_v19  ;;  %v15263_v19 = vld [vmem:[#allocation2 + $0x2624] ss:$16 sps:$4 sm:$0xff]   ;;  %v15258_v10 = vld [vmem:[#allocation2 + $0x2420] ss:$16 sps:$4 sm:$0xff]  }
 0x299   :  { %10451 = vmatpush1.bf16.msra.mxu1 %v15237_v27  ;;  %10409 = vmatprep.subr.bf16.mxu0 %v15242_v30  ;;  %v15260_v27 = vld [vmem:[#allocation2 + $0x2424] ss:$16 sps:$4 sm:$0xff]   ;;  %v15261_v54 = vld [vmem:[#allocation2 + $0x2620] ss:$16 sps:$4 sm:$0xff]  }
 0x29a   :  { %10452 = vmatprep.subr.bf16.mxu1 %v15245_v5  ;;  %v15266_v30 = vld [vmem:[#allocation2 + $0x2404] ss:$16 sps:$4 sm:$0xff]  }
 0x29b   :  { %v15269_v5 = vld [vmem:[#allocation2 + $0x2604] ss:$16 sps:$4 sm:$0xff]  }
 0x29c   :  { %10410 = vmatpush1.bf16.msra.mxu0 %v15240_v42  ;;  %v15267_v42 = vld [vmem:[#allocation2 + $0x2600] ss:$16 sps:$4 sm:$0xff]  }
 0x29d   :  { %10453 = vmatpush1.bf16.msra.mxu1 %v15243_v4  ;;  %10411 = vmatprep.subr.bf16.mxu0 %v15248_v59  ;;  %v15272_v4 = vld [vmem:[#allocation2 + $0x25e4] ss:$16 sps:$4 sm:$0xff]  }
 0x29e   :  { %10454 = vmatprep.subr.bf16.mxu1 %v15251_v11  ;;  %v15264_v11 = vld [vmem:[#allocation2 + $0x2400] ss:$16 sps:$4 sm:$0xff]   ;;  %v15275_v59 = vld [vmem:[#allocation2 + $0x27e4] ss:$16 sps:$4 sm:$0xff]  }
 0x2a0   :  { %10412 = vmatpush1.bf16.msra.mxu0 %v15246_v13  ;;  %v15270_v13 = vld [vmem:[#allocation2 + $0x25e0] ss:$16 sps:$4 sm:$0xff]  }
 0x2a1   :  { %10455 = vmatpush1.bf16.msra.mxu1 %v15249_v16  ;;  %10413 = vmatprep.subr.bf16.mxu0 %v15254_v52  ;;  %v15273_v16 = vld [vmem:[#allocation2 + $0x27e0] ss:$16 sps:$4 sm:$0xff]   ;;  %v15278_v52 = vld [vmem:[#allocation2 + $0x25c4] ss:$16 sps:$4 sm:$0xff]  }
 0x2a2   :  { %10456 = vmatprep.subr.bf16.mxu1 %v15257_v6  ;;  %v15281_v6 = vld [vmem:[#allocation2 + $0x27c4] ss:$16 sps:$4 sm:$0xff]  }
 0x2a4   :  { %10414 = vmatpush1.bf16.msra.mxu0 %v15252_v50  ;;  %v15276_v50 = vld [vmem:[#allocation2 + $0x25c0] ss:$16 sps:$4 sm:$0xff]  }
 0x2a5   :  { %10457 = vmatpush1.bf16.msra.mxu1 %v15255_v61  ;;  %10415 = vmatprep.subr.bf16.mxu0 %v15260_v27  ;;  %v15279_v61 = vld [vmem:[#allocation2 + $0x27c0] ss:$16 sps:$4 sm:$0xff]   ;;  %v15284_v27 = vld [vmem:[#allocation2 + $0x25a4] ss:$16 sps:$4 sm:$0xff]  }
 0x2a6   :  { %10458 = vmatprep.subr.bf16.mxu1 %v15263_v19  ;;  %v15287_v19 = vld [vmem:[#allocation2 + $0x27a4] ss:$16 sps:$4 sm:$0xff]  }
 0x2a8   :  { %10416 = vmatpush1.bf16.msra.mxu0 %v15258_v10  ;;  %v15282_v10 = vld [vmem:[#allocation2 + $0x25a0] ss:$16 sps:$4 sm:$0xff]  }
 0x2a9   :  { %10459 = vmatpush1.bf16.msra.mxu1 %v15261_v54  ;;  %10417 = vmatprep.subr.bf16.mxu0 %v15266_v30  ;;  %v15285_v54 = vld [vmem:[#allocation2 + $0x27a0] ss:$16 sps:$4 sm:$0xff]   ;;  %v15290_v30 = vld [vmem:[#allocation2 + $0x2584] ss:$16 sps:$4 sm:$0xff]  }
 0x2aa   :  { %10460 = vmatprep.subr.bf16.mxu1 %v15269_v5  ;;  %v15293_v5 = vld [vmem:[#allocation2 + $0x2784] ss:$16 sps:$4 sm:$0xff]  }
 0x2ac   :  { %10418 = vmatpush1.bf16.msra.mxu0 %v15264_v11  ;;  %v15288_v11 = vld [vmem:[#allocation2 + $0x2580] ss:$16 sps:$4 sm:$0xff]  }
 0x2ad   :  { %10461 = vmatpush1.bf16.msra.mxu1 %v15267_v42  ;;  %10419 = vmatprep.subr.bf16.mxu0 %v15272_v4  ;;  %v15291_v42 = vld [vmem:[#allocation2 + $0x2780] ss:$16 sps:$4 sm:$0xff]   ;;  %v15296_v4 = vld [vmem:[#allocation2 + $0x2564] ss:$16 sps:$4 sm:$0xff]  }
 0x2ae   :  { %10462 = vmatprep.subr.bf16.mxu1 %v15275_v59  ;;  %v15299_v59 = vld [vmem:[#allocation2 + $0x2764] ss:$16 sps:$4 sm:$0xff]  }
 0x2b0   :  { %10420 = vmatpush2.bf16.msra.mxu0 %v15270_v13  ;;  %v15294_v13 = vld [vmem:[#allocation2 + $0x2560] ss:$16 sps:$4 sm:$0xff]  }
 0x2b1   :  { %10463 = vmatpush2.bf16.msra.mxu1 %v15273_v16  ;;  %10421 = vmatprep.subr.bf16.mxu0 %v15278_v52  ;;  %v15297_v16 = vld [vmem:[#allocation2 + $0x2760] ss:$16 sps:$4 sm:$0xff]   ;;  %v15302_v52 = vld [vmem:[#allocation2 + $0x2544] ss:$16 sps:$4 sm:$0xff]  }
 0x2b2   :  { %10464 = vmatprep.subr.bf16.mxu1 %v15281_v6  ;;  %v15305_v6 = vld [vmem:[#allocation2 + $0x2744] ss:$16 sps:$4 sm:$0xff]  }
 0x2b4   :  { %10422 = vmatpush2.bf16.msra.mxu0 %v15276_v50  ;;  %v15300_v50 = vld [vmem:[#allocation2 + $0x2540] ss:$16 sps:$4 sm:$0xff]  }
 0x2b5   :  { %10465 = vmatpush2.bf16.msra.mxu1 %v15279_v61  ;;  %10423 = vmatprep.subr.bf16.mxu0 %v15284_v27  ;;  %v15303_v61 = vld [vmem:[#allocation2 + $0x2740] ss:$16 sps:$4 sm:$0xff]   ;;  %v15308_v27 = vld [vmem:[#allocation2 + $0x2524] ss:$16 sps:$4 sm:$0xff]  }
 0x2b6   :  { %10466 = vmatprep.subr.bf16.mxu1 %v15287_v19  ;;  %v15311_v19 = vld [vmem:[#allocation2 + $0x2724] ss:$16 sps:$4 sm:$0xff]  }
 0x2b8   :  { %10424 = vmatpush2.bf16.msra.mxu0 %v15282_v10  ;;  %v15306_v10 = vld [vmem:[#allocation2 + $0x2520] ss:$16 sps:$4 sm:$0xff]  }
 0x2b9   :  { %10467 = vmatpush2.bf16.msra.mxu1 %v15285_v54  ;;  %10425 = vmatprep.subr.bf16.mxu0 %v15290_v30  ;;  %v15309_v54 = vld [vmem:[#allocation2 + $0x2720] ss:$16 sps:$4 sm:$0xff]   ;;  %v15314_v30 = vld [vmem:[#allocation2 + $0x2504] ss:$16 sps:$4 sm:$0xff]  }
 0x2ba   :  { %10468 = vmatprep.subr.bf16.mxu1 %v15293_v5  ;;  %v15317_v5 = vld [vmem:[#allocation2 + $0x2704] ss:$16 sps:$4 sm:$0xff]  }
 0x2bc   :  { %10426 = vmatpush2.bf16.msra.mxu0 %v15288_v11  ;;  %v15312_v11 = vld [vmem:[#allocation2 + $0x2500] ss:$16 sps:$4 sm:$0xff]  }
 0x2bd   :  { %10469 = vmatpush2.bf16.msra.mxu1 %v15291_v42  ;;  %10427 = vmatprep.subr.bf16.mxu0 %v15296_v4  ;;  %v15315_v42 = vld [vmem:[#allocation2 + $0x2700] ss:$16 sps:$4 sm:$0xff]   ;;  %v15320_v4 = vld [vmem:[#allocation2 + $0x28e4] ss:$16 sps:$4 sm:$0xff]  }
 0x2be   :  { %10470 = vmatprep.subr.bf16.mxu1 %v15299_v59  ;;  %v15323_v59 = vld [vmem:[#allocation2 + $0x2ae4] ss:$16 sps:$4 sm:$0xff]  }
 0x2c0   :  { %10428 = vmatpush2.bf16.msra.mxu0 %v15294_v13  ;;  %v17482_v13 = vld [vmem:[%s17999_s0 + $0xa0] sm:$0xff] }
 0x2c1   :  { %10471 = vmatpush2.bf16.msra.mxu1 %v15297_v16  ;;  %10429 = vmatprep.subr.bf16.mxu0 %v15302_v52  ;;  %v15318_v16 = vld [vmem:[#allocation2 + $0x28e0] ss:$16 sps:$4 sm:$0xff]   ;;  %v17486_v52 = vcombine.low %v17428_v22, %v17441_v24  ;;  %v17507_v24 = vpop.f32.mrf.mxu0 }
 0x2c2   :  { %10472 = vmatprep.subr.bf16.mxu1 %v15305_v6  ;;  %v17490_v6 = vcombine.low %v17446_v34, %v17451_v40  ;;  %v15321_v22 = vld [vmem:[#allocation2 + $0x2ae0] ss:$16 sps:$4 sm:$0xff]   ;;  %18048 = vst [vmem:[#allocation42_spill] sm:$0xff] %v17507_v24  ;;  %v17509_v34 = vpop.f32.mrf.mxu1  ;;  %v15326_v40 = vld [vmem:[#allocation2 + $0x28c4] ss:$16 sps:$4 sm:$0xff]  }
 0x2c3   :  { %18046 = vst [vmem:[#allocation40_spill] sm:$0xff] %v17486_v52  ;;  %18049 = vst [vmem:[#allocation43_spill] sm:$0xff] %v17509_v34  ;;  %v15335_v24 = vld [vmem:[#allocation2 + $0x2aa4] ss:$16 sps:$4 sm:$0xff]  }
 0x2c4   :  { %10430 = vmatpush2.bf16.msra.mxu0 %v15300_v50  ;;  %18047 = vst [vmem:[#allocation41_spill] sm:$0xff] %v17490_v6  ;;  %v17495_v50 = vld [vmem:[%s17999_s0 + $0x160] sm:$0xff] }
 0x2c5   :  { %10473 = vmatpush2.bf16.msra.mxu1 %v15303_v61  ;;  %10431 = vmatprep.subr.bf16.mxu0 %v15308_v27  ;;  %v17500_v61 = vld [vmem:[%s17999_s0 + $0xa8] sm:$0xff] }
 0x2c6   :  { %10474 = vmatprep.subr.bf16.mxu1 %v15311_v19  ;;  %v17505_v27 = vld [vmem:[%s17999_s0 + $0x168] sm:$0xff]  ;;  %v15329_v19 = vld [vmem:[#allocation2 + $0x2ac4] ss:$16 sps:$4 sm:$0xff]  }
 0x2c8   :  { %10432 = vmatpush2.bf16.msra.mxu0 %v15306_v10  ;;  %v15324_v10 = vld [vmem:[#allocation2 + $0x28c0] ss:$16 sps:$4 sm:$0xff]  }
 0x2c9   :  { %10475 = vmatpush2.bf16.msra.mxu1 %v15309_v54  ;;  %10433 = vmatprep.subr.bf16.mxu0 %v15314_v30  ;;  %v15327_v54 = vld [vmem:[#allocation2 + $0x2ac0] ss:$16 sps:$4 sm:$0xff]   ;;  %v17513_v30 = vcombine.high %v17482_v13, %v17495_v50 }
 0x2ca   :  { %10476 = vmatprep.subr.bf16.mxu1 %v15317_v5  ;;  %v17517_v5 = vcombine.high %v17500_v61, %v17505_v27 }
 0x2cb   :  { %18050 = vst [vmem:[#allocation44_spill] sm:$0xff] %v17513_v30 }
 0x2cc   :  { %10434 = vmatpush2.bf16.msra.mxu0 %v15312_v11  ;;  %18051 = vst [vmem:[#allocation45_spill] sm:$0xff] %v17517_v5 }
 0x2cd   :  { %10477 = vmatpush2.bf16.msra.mxu1 %v15315_v42  ;;  %10489 = vmatprep.subr.bf16.mxu0 %v15320_v4 }
 0x2ce   :  { %10532 = vmatprep.subr.bf16.mxu1 %v15323_v59 }
 0x2cf   :  { %v10179_v11 = vpop.f32.mrf.mxu0  ;;  %10436 = vmatmul.mubr.bf16.vlgmr.msra.gmra.mxu0 %v17486_v52  ;;  %v15429_v52 = vld [vmem:[#allocation2 + $0x2ea0] ss:$16 sps:$4 sm:$0xff]  }
 0x2d0   :  { %v10222_v42 = vpop.f32.mrf.mxu1  ;;  %10479 = vmatmul.mubr.bf16.vlgmr.msra.gmra.mxu1 %v17490_v6  ;;  %v10180_v4 = vadd.f32 %v10179_v11, %v17472_v39  ;;  %10490 = vmatpush1.bf16.msra.mxu0 %v15318_v16  ;;  %v15336_v11 = vld [vmem:[#allocation2 + $0x2880] ss:$16 sps:$4 sm:$0xff]  }
 0x2d1   :  { %10533 = vmatpush1.bf16.msra.mxu1 %v15321_v22  ;;  %v17522_v59 = vpop.f32.mrf.mxu0  ;;  %10491 = vmatprep.subr.bf16.mxu0 %v15326_v40  ;;  %v15338_v22 = vld [vmem:[#allocation2 + $0x2884] ss:$16 sps:$4 sm:$0xff]  }
 0x2d2   :  { %18052 = vst [vmem:[#allocation46_spill] sm:$0xff] %v17522_v59  ;;  %v17524_v34 = vpop.f32.mrf.mxu1  ;;  %10534 = vmatprep.subr.bf16.mxu1 %v15329_v19  ;;  %v17526_v26 = vadd.f32 %v10222_v42, %v10180_v4  ;;  %10521 = vmatprep.mubr.bf16.mxu0 %v17513_v30  ;;  %v15341_v40 = vld [vmem:[#allocation2 + $0x2a84] ss:$16 sps:$4 sm:$0xff]   ;;  %v15339_v42 = vld [vmem:[#allocation2 + $0x2a80] ss:$16 sps:$4 sm:$0xff]  }
 0x2d3   :  { %18053 = vst [vmem:[#allocation47_spill] sm:$0xff] %v17524_v34  ;;  %10564 = vmatprep.mubr.bf16.mxu1 %v17517_v5  ;;  %v10183_v6 = vpop.f32.mrf.mxu0  ;;  %v15344_v4 = vld [vmem:[#allocation2 + $0x2864] ss:$16 sps:$4 sm:$0xff]   ;;  %v15420_v59 = vld [vmem:[#allocation2 + $0x2cc0] ss:$16 sps:$4 sm:$0xff]  }
 0x2d4   :  { %v10184_v39 = vadd.f32 %v10183_v6, %v17477_v60  ;;  %10492 = vmatpush1.bf16.msra.mxu0 %v15324_v10  ;;  %v10226_v16 = vpop.f32.mrf.mxu1  ;;  %v15347_v34 = vld [vmem:[#allocation2 + $0x2a64] ss:$16 sps:$4 sm:$0xff]   ;;  %v15342_v60 = vld [vmem:[#allocation2 + $0x2860] ss:$16 sps:$4 sm:$0xff]  }
 0x2d5   :  { %10535 = vmatpush1.bf16.msra.mxu1 %v15327_v54  ;;  %10493 = vmatprep.subr.bf16.mxu0 %v15332_v0  ;;  %v15345_v6 = vld [vmem:[#allocation2 + $0x2a60] ss:$16 sps:$4 sm:$0xff]   ;;  %v15350_v0 = vld [vmem:[#allocation2 + $0x2844] ss:$16 sps:$4 sm:$0xff]  }
 0x2d6   :  { %10536 = vmatprep.subr.bf16.mxu1 %v15335_v24  ;;  %v17531_v19 = vadd.f32 %v10226_v16, %v10184_v39  ;;  %v15353_v24 = vld [vmem:[#allocation2 + $0x2a44] ss:$16 sps:$4 sm:$0xff]   ;;  %v15348_v10 = vld [vmem:[#allocation2 + $0x2840] ss:$16 sps:$4 sm:$0xff]  }
 0x2d7   :  { %v15351_v54 = vld [vmem:[#allocation2 + $0x2a40] ss:$16 sps:$4 sm:$0xff]  }
 0x2d8   :  { %10494 = vmatpush1.bf16.msra.mxu0 %v15330_v12  ;;  %v15359_v12 = vld [vmem:[#allocation2 + $0x2a24] ss:$16 sps:$4 sm:$0xff]   ;;  %v15354_v39 = vld [vmem:[#allocation2 + $0x2820] ss:$16 sps:$4 sm:$0xff]  }
 0x2d9   :  { %10537 = vmatpush1.bf16.msra.mxu1 %v15333_v63  ;;  %10495 = vmatprep.subr.bf16.mxu0 %v15338_v22  ;;  %v15356_v63 = vld [vmem:[#allocation2 + $0x2824] ss:$16 sps:$4 sm:$0xff]   ;;  %v15357_v16 = vld [vmem:[#allocation2 + $0x2a20] ss:$16 sps:$4 sm:$0xff]  }
 0x2da   :  { %10538 = vmatprep.subr.bf16.mxu1 %v15341_v40  ;;  %v15362_v22 = vld [vmem:[#allocation2 + $0x2804] ss:$16 sps:$4 sm:$0xff]   ;;  %v15423_v5 = vld [vmem:[#allocation2 + $0x2ec0] ss:$16 sps:$4 sm:$0xff]  }
 0x2db   :  { %v15365_v40 = vld [vmem:[#allocation2 + $0x2a04] ss:$16 sps:$4 sm:$0xff]   ;;  %v15426_v30 = vld [vmem:[#allocation2 + $0x2ca0] ss:$16 sps:$4 sm:$0xff]  }
 0x2dc   :  { %10496 = vmatpush1.bf16.msra.mxu0 %v15336_v11  ;;  %v15363_v11 = vld [vmem:[#allocation2 + $0x2a00] ss:$16 sps:$4 sm:$0xff]  }
 0x2dd   :  { %10539 = vmatpush1.bf16.msra.mxu1 %v15339_v42  ;;  %10497 = vmatprep.subr.bf16.mxu0 %v15344_v4  ;;  %v15368_v42 = vld [vmem:[#allocation2 + $0x29e4] ss:$16 sps:$4 sm:$0xff]  }
 0x2de   :  { %10540 = vmatprep.subr.bf16.mxu1 %v15347_v34  ;;  %v15360_v34 = vld [vmem:[#allocation2 + $0x2800] ss:$16 sps:$4 sm:$0xff]   ;;  %v15371_v4 = vld [vmem:[#allocation2 + $0x2be4] ss:$16 sps:$4 sm:$0xff]  }
 0x2e0   :  { %10498 = vmatpush1.bf16.msra.mxu0 %v15342_v60  ;;  %v15366_v60 = vld [vmem:[#allocation2 + $0x29e0] ss:$16 sps:$4 sm:$0xff]  }
 0x2e1   :  { %10541 = vmatpush1.bf16.msra.mxu1 %v15345_v6  ;;  %10499 = vmatprep.subr.bf16.mxu0 %v15350_v0  ;;  %v15369_v6 = vld [vmem:[#allocation2 + $0x2be0] ss:$16 sps:$4 sm:$0xff]   ;;  %v15374_v0 = vld [vmem:[#allocation2 + $0x29c4] ss:$16 sps:$4 sm:$0xff]  }
 0x2e2   :  { %10542 = vmatprep.subr.bf16.mxu1 %v15353_v24  ;;  %v15377_v24 = vld [vmem:[#allocation2 + $0x2bc4] ss:$16 sps:$4 sm:$0xff]  }
 0x2e4   :  { %10500 = vmatpush1.bf16.msra.mxu0 %v15348_v10  ;;  %v15372_v10 = vld [vmem:[#allocation2 + $0x29c0] ss:$16 sps:$4 sm:$0xff]  }
 0x2e5   :  { %10543 = vmatpush1.bf16.msra.mxu1 %v15351_v54  ;;  %10501 = vmatprep.subr.bf16.mxu0 %v15356_v63  ;;  %v15375_v54 = vld [vmem:[#allocation2 + $0x2bc0] ss:$16 sps:$4 sm:$0xff]   ;;  %v15380_v63 = vld [vmem:[#allocation2 + $0x29a4] ss:$16 sps:$4 sm:$0xff]  }
 0x2e6   :  { %10544 = vmatprep.subr.bf16.mxu1 %v15359_v12  ;;  %v15383_v12 = vld [vmem:[#allocation2 + $0x2ba4] ss:$16 sps:$4 sm:$0xff]  }
 0x2e8   :  { %10502 = vmatpush1.bf16.msra.mxu0 %v15354_v39  ;;  %v15378_v39 = vld [vmem:[#allocation2 + $0x29a0] ss:$16 sps:$4 sm:$0xff]  }
 0x2e9   :  { %10545 = vmatpush1.bf16.msra.mxu1 %v15357_v16  ;;  %10503 = vmatprep.subr.bf16.mxu0 %v15362_v22  ;;  %v15381_v16 = vld [vmem:[#allocation2 + $0x2ba0] ss:$16 sps:$4 sm:$0xff]   ;;  %v15386_v22 = vld [vmem:[#allocation2 + $0x2984] ss:$16 sps:$4 sm:$0xff]  }
 0x2ea   :  { %10546 = vmatprep.subr.bf16.mxu1 %v15365_v40  ;;  %v15389_v40 = vld [vmem:[#allocation2 + $0x2b84] ss:$16 sps:$4 sm:$0xff]  }
 0x2ec   :  { %10504 = vmatpush1.bf16.msra.mxu0 %v15360_v34  ;;  %v15384_v34 = vld [vmem:[#allocation2 + $0x2980] ss:$16 sps:$4 sm:$0xff]  }
 0x2ed   :  { %10547 = vmatpush1.bf16.msra.mxu1 %v15363_v11  ;;  %10505 = vmatprep.subr.bf16.mxu0 %v15368_v42  ;;  %v15387_v11 = vld [vmem:[#allocation2 + $0x2b80] ss:$16 sps:$4 sm:$0xff]   ;;  %v15392_v42 = vld [vmem:[#allocation2 + $0x2964] ss:$16 sps:$4 sm:$0xff]  }
 0x2ee   :  { %10548 = vmatprep.subr.bf16.mxu1 %v15371_v4  ;;  %v15395_v4 = vld [vmem:[#allocation2 + $0x2b64] ss:$16 sps:$4 sm:$0xff]  }
 0x2f0   :  { %10506 = vmatpush2.bf16.msra.mxu0 %v15366_v60  ;;  %v15390_v60 = vld [vmem:[#allocation2 + $0x2960] ss:$16 sps:$4 sm:$0xff]  }
 0x2f1   :  { %10549 = vmatpush2.bf16.msra.mxu1 %v15369_v6  ;;  %10507 = vmatprep.subr.bf16.mxu0 %v15374_v0  ;;  %v15393_v6 = vld [vmem:[#allocation2 + $0x2b60] ss:$16 sps:$4 sm:$0xff]   ;;  %v15398_v0 = vld [vmem:[#allocation2 + $0x2944] ss:$16 sps:$4 sm:$0xff]  }
 0x2f2   :  { %10550 = vmatprep.subr.bf16.mxu1 %v15377_v24  ;;  %v15401_v24 = vld [vmem:[#allocation2 + $0x2b44] ss:$16 sps:$4 sm:$0xff]  }
 0x2f4   :  { %10508 = vmatpush2.bf16.msra.mxu0 %v15372_v10  ;;  %v15396_v10 = vld [vmem:[#allocation2 + $0x2940] ss:$16 sps:$4 sm:$0xff]  }
 0x2f5   :  { %10551 = vmatpush2.bf16.msra.mxu1 %v15375_v54  ;;  %10509 = vmatprep.subr.bf16.mxu0 %v15380_v63  ;;  %v15399_v54 = vld [vmem:[#allocation2 + $0x2b40] ss:$16 sps:$4 sm:$0xff]   ;;  %v15404_v63 = vld [vmem:[#allocation2 + $0x2924] ss:$16 sps:$4 sm:$0xff]  }
 0x2f6   :  { %10552 = vmatprep.subr.bf16.mxu1 %v15383_v12  ;;  %v15407_v12 = vld [vmem:[#allocation2 + $0x2b24] ss:$16 sps:$4 sm:$0xff]  }
 0x2f8   :  { %10510 = vmatpush2.bf16.msra.mxu0 %v15378_v39  ;;  %v15402_v39 = vld [vmem:[#allocation2 + $0x2920] ss:$16 sps:$4 sm:$0xff]  }
 0x2f9   :  { %10553 = vmatpush2.bf16.msra.mxu1 %v15381_v16  ;;  %10511 = vmatprep.subr.bf16.mxu0 %v15386_v22  ;;  %v15405_v16 = vld [vmem:[#allocation2 + $0x2b20] ss:$16 sps:$4 sm:$0xff]   ;;  %v15410_v22 = vld [vmem:[#allocation2 + $0x2904] ss:$16 sps:$4 sm:$0xff]  }
 0x2fa   :  { %10554 = vmatprep.subr.bf16.mxu1 %v15389_v40  ;;  %v15413_v40 = vld [vmem:[#allocation2 + $0x2b04] ss:$16 sps:$4 sm:$0xff]  }
 0x2fc   :  { %10512 = vmatpush2.bf16.msra.mxu0 %v15384_v34  ;;  %v15408_v34 = vld [vmem:[#allocation2 + $0x2900] ss:$16 sps:$4 sm:$0xff]  }
 0x2fd   :  { %10555 = vmatpush2.bf16.msra.mxu1 %v15387_v11  ;;  %10513 = vmatprep.subr.bf16.mxu0 %v15392_v42  ;;  %v15411_v11 = vld [vmem:[#allocation2 + $0x2b00] ss:$16 sps:$4 sm:$0xff]   ;;  %v15416_v42 = vld [vmem:[#allocation2 + $0x2ce4] ss:$16 sps:$4 sm:$0xff]  }
 0x2fe   :  { %10556 = vmatprep.subr.bf16.mxu1 %v15395_v4  ;;  %v15419_v4 = vld [vmem:[#allocation2 + $0x2ee4] ss:$16 sps:$4 sm:$0xff]  }
 0x300   :  { %10514 = vmatpush2.bf16.msra.mxu0 %v15390_v60  ;;  %v17536_v60 = vld [vmem:[%s17999_s0 + $0xb0] sm:$0xff] }
 0x301   :  { %10557 = vmatpush2.bf16.msra.mxu1 %v15393_v6  ;;  %10515 = vmatprep.subr.bf16.mxu0 %v15398_v0  ;;  %v17541_v6 = vld [vmem:[%s17999_s0 + $0x170] sm:$0xff]  ;;  %v17546_v0 = vld [vmem:[%s17999_s0 + $0xb8] sm:$0xff] }
 0x302   :  { %10558 = vmatprep.subr.bf16.mxu1 %v15401_v24  ;;  %v17551_v24 = vld [vmem:[%s17999_s0 + $0x178] sm:$0xff] }
 0x304   :  { %10516 = vmatpush2.bf16.msra.mxu0 %v15396_v10  ;;  %v15414_v10 = vld [vmem:[#allocation2 + $0x2ce0] ss:$16 sps:$4 sm:$0xff]  }
 0x305   :  { %10559 = vmatpush2.bf16.msra.mxu1 %v15399_v54  ;;  %10517 = vmatprep.subr.bf16.mxu0 %v15404_v63  ;;  %v15417_v54 = vld [vmem:[#allocation2 + $0x2ee0] ss:$16 sps:$4 sm:$0xff]   ;;  %v17555_v63 = vcombine.low %v17482_v13, %v17495_v50  ;;  %v17567_v13 = vcombine.high %v17536_v60, %v17541_v6  ;;  %v17571_v50 = vcombine.high %v17546_v0, %v17551_v24 }
 0x306   :  { %10560 = vmatprep.subr.bf16.mxu1 %v15407_v12  ;;  %v17559_v12 = vcombine.low %v17500_v61, %v17505_v27 }
 0x308   :  { %10518 = vmatpush2.bf16.msra.mxu0 %v15402_v39  ;;  %18054 = vst [vmem:[#allocation48_spill] sm:$0xff] %v17559_v12  ;;  %v17561_v39 = vpop.f32.mrf.mxu0 }
 0x309   :  { %10561 = vmatpush2.bf16.msra.mxu1 %v15405_v16  ;;  %10519 = vmatprep.subr.bf16.mxu0 %v15410_v22  ;;  %18055 = vst [vmem:[#allocation49_spill] sm:$0xff] %v17561_v39  ;;  %v17563_v16 = vpop.f32.mrf.mxu1  ;;  %v15422_v22 = vld [vmem:[#allocation2 + $0x2cc4] ss:$16 sps:$4 sm:$0xff]  }
 0x30a   :  { %10562 = vmatprep.subr.bf16.mxu1 %v15413_v40  ;;  %18056 = vst [vmem:[#allocation50_spill] sm:$0xff] %v17563_v16  ;;  %v15425_v40 = vld [vmem:[#allocation2 + $0x2ec4] ss:$16 sps:$4 sm:$0xff]  }
 0x30b   :  { %v15431_v16 = vld [vmem:[#allocation2 + $0x2ea4] ss:$16 sps:$4 sm:$0xff]  }
 0x30c   :  { %10520 = vmatpush2.bf16.msra.mxu0 %v15408_v34 }
 0x30d   :  { %10563 = vmatpush2.bf16.msra.mxu1 %v15411_v11  ;;  %10575 = vmatprep.subr.bf16.mxu0 %v15416_v42 }
 0x30e   :  { %10618 = vmatprep.subr.bf16.mxu1 %v15419_v4  ;;  %v15428_v4 = vld [vmem:[#allocation2 + $0x2ca4] ss:$16 sps:$4 sm:$0xff]  }
 0x30f   :  { %v10265_v61 = vpop.f32.mrf.mxu0  ;;  %10522 = vmatmul.mubr.bf16.vlgmr.msra.gmra.mxu0 %v17555_v63 }
 0x310   :  { %v10308_v27 = vpop.f32.mrf.mxu1  ;;  %10565 = vmatmul.mubr.bf16.vlgmr.msra.gmra.mxu1 %v17559_v12  ;;  %v10266_v34 = vadd.f32 %v10265_v61, %v17526_v26  ;;  %10576 = vmatpush1.bf16.msra.mxu0 %v15414_v10  ;;  %v15432_v61 = vld [vmem:[#allocation2 + $0x2c80] ss:$16 sps:$4 sm:$0xff]  }
 0x311   :  { %10619 = vmatpush1.bf16.msra.mxu1 %v15417_v54  ;;  %v17576_v11 = vpop.f32.mrf.mxu0  ;;  %10577 = vmatprep.subr.bf16.mxu0 %v15422_v22  ;;  %v15434_v54 = vld [vmem:[#allocation2 + $0x2c84] ss:$16 sps:$4 sm:$0xff]  }
 0x312   :  { %v17578_v42 = vpop.f32.mrf.mxu1  ;;  %10620 = vmatprep.subr.bf16.mxu1 %v15425_v40  ;;  %v17580_v39 = vadd.f32 %v10308_v27, %v10266_v34  ;;  %10607 = vmatprep.mubr.bf16.mxu0 %v17567_v13  ;;  %v15437_v22 = vld [vmem:[#allocation2 + $0x2e84] ss:$16 sps:$4 sm:$0xff]   ;;  %v15435_v27 = vld [vmem:[#allocation2 + $0x2e80] ss:$16 sps:$4 sm:$0xff]  }
 0x313   :  { %18057 = vst [vmem:[#allocation51_spill] sm:$0xff] %v17578_v42  ;;  %10650 = vmatprep.mubr.bf16.mxu1 %v17571_v50  ;;  %v10269_v12 = vpop.f32.mrf.mxu0  ;;  %v15440_v34 = vld [vmem:[#allocation2 + $0x2c64] ss:$16 sps:$4 sm:$0xff]  }
 0x314   :  { %v10270_v26 = vadd.f32 %v10269_v12, %v17531_v19  ;;  %10578 = vmatpush1.bf16.msra.mxu0 %v15420_v59  ;;  %v10312_v10 = vpop.f32.mrf.mxu1  ;;  %v15443_v42 = vld [vmem:[#allocation2 + $0x2e64] ss:$16 sps:$4 sm:$0xff]   ;;  %v15438_v19 = vld [vmem:[#allocation2 + $0x2c60] ss:$16 sps:$4 sm:$0xff]  }
 0x315   :  { %10621 = vmatpush1.bf16.msra.mxu1 %v15423_v5  ;;  %10579 = vmatprep.subr.bf16.mxu0 %v15428_v4  ;;  %v15441_v59 = vld [vmem:[#allocation2 + $0x2e60] ss:$16 sps:$4 sm:$0xff]   ;;  %v15446_v5 = vld [vmem:[#allocation2 + $0x2c44] ss:$16 sps:$4 sm:$0xff]  }
 0x316   :  { %10622 = vmatprep.subr.bf16.mxu1 %v15431_v16  ;;  %v17585_v40 = vadd.f32 %v10312_v10, %v10270_v26  ;;  %v15449_v12 = vld [vmem:[#allocation2 + $0x2e44] ss:$16 sps:$4 sm:$0xff]   ;;  %v15444_v16 = vld [vmem:[#allocation2 + $0x2c40] ss:$16 sps:$4 sm:$0xff]  }
 0x317   :  { %v15447_v4 = vld [vmem:[#allocation2 + $0x2e40] ss:$16 sps:$4 sm:$0xff]  }
 0x318   :  { %10580 = vmatpush1.bf16.msra.mxu0 %v15426_v30  ;;  %v15455_v30 = vld [vmem:[#allocation2 + $0x2e24] ss:$16 sps:$4 sm:$0xff]   ;;  %v15450_v26 = vld [vmem:[#allocation2 + $0x2c20] ss:$16 sps:$4 sm:$0xff]  }
 0x319   :  { %10623 = vmatpush1.bf16.msra.mxu1 %v15429_v52  ;;  %10581 = vmatprep.subr.bf16.mxu0 %v15434_v54  ;;  %v15452_v52 = vld [vmem:[#allocation2 + $0x2c24] ss:$16 sps:$4 sm:$0xff]   ;;  %v15453_v10 = vld [vmem:[#allocation2 + $0x2e20] ss:$16 sps:$4 sm:$0xff]  }
 0x31a   :  { %10624 = vmatprep.subr.bf16.mxu1 %v15437_v22  ;;  %v15458_v54 = vld [vmem:[#allocation2 + $0x2c04] ss:$16 sps:$4 sm:$0xff]  }
 0x31b   :  { %v15461_v22 = vld [vmem:[#allocation2 + $0x2e04] ss:$16 sps:$4 sm:$0xff]  }
 0x31c   :  { %10582 = vmatpush1.bf16.msra.mxu0 %v15432_v61  ;;  %v15459_v61 = vld [vmem:[#allocation2 + $0x2e00] ss:$16 sps:$4 sm:$0xff]  }
 0x31d   :  { %10625 = vmatpush1.bf16.msra.mxu1 %v15435_v27  ;;  %10583 = vmatprep.subr.bf16.mxu0 %v15440_v34  ;;  %v15464_v27 = vld [vmem:[#allocation2 + $0x2de4] ss:$16 sps:$4 sm:$0xff]  }
 0x31e   :  { %10626 = vmatprep.subr.bf16.mxu1 %v15443_v42  ;;  %v15456_v42 = vld [vmem:[#allocation2 + $0x2c00] ss:$16 sps:$4 sm:$0xff]   ;;  %v15467_v34 = vld [vmem:[#allocation2 + $0x2fe4] ss:$16 sps:$4 sm:$0xff]  }
 0x320   :  { %10584 = vmatpush1.bf16.msra.mxu0 %v15438_v19  ;;  %v15462_v19 = vld [vmem:[#allocation2 + $0x2de0] ss:$16 sps:$4 sm:$0xff]  }
 0x321   :  { %10627 = vmatpush1.bf16.msra.mxu1 %v15441_v59  ;;  %10585 = vmatprep.subr.bf16.mxu0 %v15446_v5  ;;  %v15465_v59 = vld [vmem:[#allocation2 + $0x2fe0] ss:$16 sps:$4 sm:$0xff]   ;;  %v15470_v5 = vld [vmem:[#allocation2 + $0x2dc4] ss:$16 sps:$4 sm:$0xff]  }
 0x322   :  { %10628 = vmatprep.subr.bf16.mxu1 %v15449_v12  ;;  %v15473_v12 = vld [vmem:[#allocation2 + $0x2fc4] ss:$16 sps:$4 sm:$0xff]  }
 0x324   :  { %10586 = vmatpush1.bf16.msra.mxu0 %v15444_v16  ;;  %v15468_v16 = vld [vmem:[#allocation2 + $0x2dc0] ss:$16 sps:$4 sm:$0xff]  }
 0x325   :  { %10629 = vmatpush1.bf16.msra.mxu1 %v15447_v4  ;;  %10587 = vmatprep.subr.bf16.mxu0 %v15452_v52  ;;  %v15471_v4 = vld [vmem:[#allocation2 + $0x2fc0] ss:$16 sps:$4 sm:$0xff]   ;;  %v15476_v52 = vld [vmem:[#allocation2 + $0x2da4] ss:$16 sps:$4 sm:$0xff]  }
 0x326   :  { %10630 = vmatprep.subr.bf16.mxu1 %v15455_v30  ;;  %v15479_v30 = vld [vmem:[#allocation2 + $0x2fa4] ss:$16 sps:$4 sm:$0xff]  }
 0x328   :  { %10588 = vmatpush1.bf16.msra.mxu0 %v15450_v26  ;;  %v15474_v26 = vld [vmem:[#allocation2 + $0x2da0] ss:$16 sps:$4 sm:$0xff]  }
 0x329   :  { %10631 = vmatpush1.bf16.msra.mxu1 %v15453_v10  ;;  %10589 = vmatprep.subr.bf16.mxu0 %v15458_v54  ;;  %v15477_v10 = vld [vmem:[#allocation2 + $0x2fa0] ss:$16 sps:$4 sm:$0xff]   ;;  %v15482_v54 = vld [vmem:[#allocation2 + $0x2d84] ss:$16 sps:$4 sm:$0xff]  }
 0x32a   :  { %10632 = vmatprep.subr.bf16.mxu1 %v15461_v22  ;;  %v15485_v22 = vld [vmem:[#allocation2 + $0x2f84] ss:$16 sps:$4 sm:$0xff]  }
 0x32c   :  { %10590 = vmatpush1.bf16.msra.mxu0 %v15456_v42  ;;  %v15480_v42 = vld [vmem:[#allocation2 + $0x2d80] ss:$16 sps:$4 sm:$0xff]  }
 0x32d   :  { %10633 = vmatpush1.bf16.msra.mxu1 %v15459_v61  ;;  %10591 = vmatprep.subr.bf16.mxu0 %v15464_v27  ;;  %v15483_v61 = vld [vmem:[#allocation2 + $0x2f80] ss:$16 sps:$4 sm:$0xff]   ;;  %v15488_v27 = vld [vmem:[#allocation2 + $0x2d64] ss:$16 sps:$4 sm:$0xff]  }
 0x32e   :  { %10634 = vmatprep.subr.bf16.mxu1 %v15467_v34  ;;  %v15491_v34 = vld [vmem:[#allocation2 + $0x2f64] ss:$16 sps:$4 sm:$0xff]  }
 0x330   :  { %10592 = vmatpush2.bf16.msra.mxu0 %v15462_v19  ;;  %v15486_v19 = vld [vmem:[#allocation2 + $0x2d60] ss:$16 sps:$4 sm:$0xff]  }
 0x331   :  { %10635 = vmatpush2.bf16.msra.mxu1 %v15465_v59  ;;  %10593 = vmatprep.subr.bf16.mxu0 %v15470_v5  ;;  %v15489_v59 = vld [vmem:[#allocation2 + $0x2f60] ss:$16 sps:$4 sm:$0xff]   ;;  %v15494_v5 = vld [vmem:[#allocation2 + $0x2d44] ss:$16 sps:$4 sm:$0xff]  }
 0x332   :  { %10636 = vmatprep.subr.bf16.mxu1 %v15473_v12  ;;  %v15497_v12 = vld [vmem:[#allocation2 + $0x2f44] ss:$16 sps:$4 sm:$0xff]  }
 0x334   :  { %10594 = vmatpush2.bf16.msra.mxu0 %v15468_v16  ;;  %v15492_v16 = vld [vmem:[#allocation2 + $0x2d40] ss:$16 sps:$4 sm:$0xff]  }
 0x335   :  { %10637 = vmatpush2.bf16.msra.mxu1 %v15471_v4  ;;  %10595 = vmatprep.subr.bf16.mxu0 %v15476_v52  ;;  %v15495_v4 = vld [vmem:[#allocation2 + $0x2f40] ss:$16 sps:$4 sm:$0xff]   ;;  %v15500_v52 = vld [vmem:[#allocation2 + $0x2d24] ss:$16 sps:$4 sm:$0xff]  }
 0x336   :  { %10638 = vmatprep.subr.bf16.mxu1 %v15479_v30  ;;  %v15503_v30 = vld [vmem:[#allocation2 + $0x2f24] ss:$16 sps:$4 sm:$0xff]  }
 0x338   :  { %10596 = vmatpush2.bf16.msra.mxu0 %v15474_v26  ;;  %v15498_v26 = vld [vmem:[#allocation2 + $0x2d20] ss:$16 sps:$4 sm:$0xff]  }
 0x339   :  { %10639 = vmatpush2.bf16.msra.mxu1 %v15477_v10  ;;  %10597 = vmatprep.subr.bf16.mxu0 %v15482_v54  ;;  %v15501_v10 = vld [vmem:[#allocation2 + $0x2f20] ss:$16 sps:$4 sm:$0xff]   ;;  %v15506_v54 = vld [vmem:[#allocation2 + $0x2d04] ss:$16 sps:$4 sm:$0xff]  }
 0x33a   :  { %10640 = vmatprep.subr.bf16.mxu1 %v15485_v22  ;;  %v15509_v22 = vld [vmem:[#allocation2 + $0x2f04] ss:$16 sps:$4 sm:$0xff]  }
 0x33c   :  { %10598 = vmatpush2.bf16.msra.mxu0 %v15480_v42  ;;  %v15504_v42 = vld [vmem:[#allocation2 + $0x2d00] ss:$16 sps:$4 sm:$0xff]  }
 0x33d   :  { %10641 = vmatpush2.bf16.msra.mxu1 %v15483_v61  ;;  %10599 = vmatprep.subr.bf16.mxu0 %v15488_v27  ;;  %v15507_v61 = vld [vmem:[#allocation2 + $0x2f00] ss:$16 sps:$4 sm:$0xff]   ;;  %v15512_v27 = vld [vmem:[#allocation2 + $0xec] ss:$16 sps:$4 sm:$0xff]  }
 0x33e   :  { %10642 = vmatprep.subr.bf16.mxu1 %v15491_v34  ;;  %v15515_v34 = vld [vmem:[#allocation2 + $0x2ec] ss:$16 sps:$4 sm:$0xff]  }
 0x340   :  { %10600 = vmatpush2.bf16.msra.mxu0 %v15486_v19  ;;  %v15510_v19 = vld [vmem:[#allocation2 + $0xe8] ss:$16 sps:$4 sm:$0xff]  }
 0x341   :  { %10643 = vmatpush2.bf16.msra.mxu1 %v15489_v59  ;;  %10601 = vmatprep.subr.bf16.mxu0 %v15494_v5  ;;  %v15513_v59 = vld [vmem:[#allocation2 + $0x2e8] ss:$16 sps:$4 sm:$0xff]   ;;  %v17589_v5 = vcombine.low %v17536_v60, %v17541_v6 }
 0x342   :  { %10644 = vmatprep.subr.bf16.mxu1 %v15497_v12  ;;  %v17593_v12 = vcombine.low %v17546_v0, %v17551_v24  ;;  %v15524_v24 = vld [vmem:[#allocation2 + $0xac] ss:$16 sps:$4 sm:$0xff]  }
 0x343   :  { %18058 = vst [vmem:[#allocation52_spill] sm:$0xff] %v17589_v5 }
 0x344   :  { %10602 = vmatpush2.bf16.msra.mxu0 %v15492_v16  ;;  %18059 = vst [vmem:[#allocation53_spill] sm:$0xff] %v17593_v12  ;;  %v17595_v16 = vpop.f32.mrf.mxu0 }
 0x345   :  { %10645 = vmatpush2.bf16.msra.mxu1 %v15495_v4  ;;  %10603 = vmatprep.subr.bf16.mxu0 %v15500_v52  ;;  %v17597_v4 = vpop.f32.mrf.mxu1  ;;  %v15518_v52 = vld [vmem:[#allocation2 + $0xcc] ss:$16 sps:$4 sm:$0xff]  }
 0x346   :  { %10646 = vmatprep.subr.bf16.mxu1 %v15503_v30  ;;  %v15521_v30 = vld [vmem:[#allocation2 + $0x2cc] ss:$16 sps:$4 sm:$0xff]  }
 0x348   :  { %10604 = vmatpush2.bf16.msra.mxu0 %v15498_v26  ;;  %v15516_v26 = vld [vmem:[#allocation2 + $0xc8] ss:$16 sps:$4 sm:$0xff]  }
 0x349   :  { %10647 = vmatpush2.bf16.msra.mxu1 %v15501_v10  ;;  %10605 = vmatprep.subr.bf16.mxu0 %v15506_v54  ;;  %v15519_v10 = vld [vmem:[#allocation2 + $0x2c8] ss:$16 sps:$4 sm:$0xff]  }
 0x34a   :  { %10648 = vmatprep.subr.bf16.mxu1 %v15509_v22 }
 0x34c   :  { %10606 = vmatpush2.bf16.msra.mxu0 %v15504_v42  ;;  %v15527_v42 = vld [vmem:[#allocation2 + $0x2ac] ss:$16 sps:$4 sm:$0xff]  }
 0x34d   :  { %10649 = vmatpush2.bf16.msra.mxu1 %v15507_v61  ;;  %10661 = vmatprep.subr.bf16.mxu0 %v15512_v27  ;;  %v15522_v27 = vld [vmem:[#allocation2 + $0xa8] ss:$16 sps:$4 sm:$0xff]  }
 0x34e   :  { %10704 = vmatprep.subr.bf16.mxu1 %v15515_v34  ;;  %v15525_v34 = vld [vmem:[#allocation2 + $0x2a8] ss:$16 sps:$4 sm:$0xff]  }
 0x34f   :  { %v10351_v54 = vpop.f32.mrf.mxu0  ;;  %10608 = vmatmul.mubr.bf16.vlgmr.msra.gmra.mxu0 %v17589_v5  ;;  %v15621_v5 = vld [vmem:[#allocation2 + $0x6a8] ss:$16 sps:$4 sm:$0xff]  }
 0x350   :  { %v10394_v22 = vpop.f32.mrf.mxu1  ;;  %10651 = vmatmul.mubr.bf16.vlgmr.msra.gmra.mxu1 %v17593_v12  ;;  %v10352_v60 = vadd.f32 %v10351_v54, %v17580_v39  ;;  %10662 = vmatpush1.bf16.msra.mxu0 %v15510_v19  ;;  %v15528_v54 = vld [vmem:[#allocation2 + $0x88] ss:$16 sps:$4 sm:$0xff]  }
 0x351   :  { %10705 = vmatpush1.bf16.msra.mxu1 %v15513_v59  ;;  %v17602_v6 = vpop.f32.mrf.mxu0  ;;  %10663 = vmatprep.subr.bf16.mxu0 %v15518_v52  ;;  %v15530_v59 = vld [vmem:[#allocation2 + $0x8c] ss:$16 sps:$4 sm:$0xff]  }
 0x352   :  { %v17604_v0 = vpop.f32.mrf.mxu1  ;;  %10706 = vmatprep.subr.bf16.mxu1 %v15521_v30  ;;  %v17606_v61 = vadd.f32 %v10394_v22, %v10352_v60  ;;  %10693 = vmatprep.mubr.bf16.mxu0 %v17033_v53  ;;  %v15533_v52 = vld [vmem:[#allocation2 + $0x28c] ss:$16 sps:$4 sm:$0xff]   ;;  %v15531_v22 = vld [vmem:[#allocation2 + $0x288] ss:$16 sps:$4 sm:$0xff]  }
 0x353   :  { %10736 = vmatprep.mubr.bf16.mxu1 %v17035_v55  ;;  %v10355_v12 = vpop.f32.mrf.mxu0  ;;  %v15536_v53 = vld [vmem:[#allocation2 + $0x6c] ss:$16 sps:$4 sm:$0xff]   ;;  %v15540_v60 = vld [vmem:[#allocation2 + $0x48] ss:$16 sps:$4 sm:$0xff]  }
 0x354   :  { %v10356_v39 = vadd.f32 %v10355_v12, %v17585_v40  ;;  %10664 = vmatpush1.bf16.msra.mxu0 %v15516_v26  ;;  %v10398_v19 = vpop.f32.mrf.mxu1  ;;  %v15539_v55 = vld [vmem:[#allocation2 + $0x26c] ss:$16 sps:$4 sm:$0xff]   ;;  %v15534_v40 = vld [vmem:[#allocation2 + $0x68] ss:$16 sps:$4 sm:$0xff]  }
 0x355   :  { %10707 = vmatpush1.bf16.msra.mxu1 %v15519_v10  ;;  %10665 = vmatprep.subr.bf16.mxu0 %v15524_v24  ;;  %v15537_v12 = vld [vmem:[#allocation2 + $0x268] ss:$16 sps:$4 sm:$0xff]   ;;  %v15542_v26 = vld [vmem:[#allocation2 + $0x4c] ss:$16 sps:$4 sm:$0xff]  }
 0x356   :  { %10708 = vmatprep.subr.bf16.mxu1 %v15527_v42  ;;  %v17611_v30 = vadd.f32 %v10398_v19, %v10356_v39  ;;  %v15545_v10 = vld [vmem:[#allocation2 + $0x24c] ss:$16 sps:$4 sm:$0xff]   ;;  %v15543_v24 = vld [vmem:[#allocation2 + $0x248] ss:$16 sps:$4 sm:$0xff]  }
 0x357   :  { %v15548_v42 = vld [vmem:[#allocation2 + $0x2c] ss:$16 sps:$4 sm:$0xff]   ;;  %v15549_v39 = vld [vmem:[#allocation2 + $0x228] ss:$16 sps:$4 sm:$0xff]  }
 0x358   :  { %10666 = vmatpush1.bf16.msra.mxu0 %v15522_v27  ;;  %v15551_v27 = vld [vmem:[#allocation2 + $0x22c] ss:$16 sps:$4 sm:$0xff]  }
 0x359   :  { %10709 = vmatpush1.bf16.msra.mxu1 %v15525_v34  ;;  %10667 = vmatprep.subr.bf16.mxu0 %v15530_v59  ;;  %v15546_v34 = vld [vmem:[#allocation2 + $0x28] ss:$16 sps:$4 sm:$0xff]   ;;  %v15554_v19 = vld [vmem:[#allocation2 + $0xc] ss:$16 sps:$4 sm:$0xff]  }
 0x35a   :  { %10710 = vmatprep.subr.bf16.mxu1 %v15533_v52  ;;  %v15557_v59 = vld [vmem:[#allocation2 + $0x20c] ss:$16 sps:$4 sm:$0xff]   ;;  %v15552_v52 = vld [vmem:[#allocation2 + $0x8] ss:$16 sps:$4 sm:$0xff]  }
 0x35c   :  { %10668 = vmatpush1.bf16.msra.mxu0 %v15528_v54  ;;  %v15555_v54 = vld [vmem:[#allocation2 + $0x208] ss:$16 sps:$4 sm:$0xff]  }
 0x35d   :  { %10711 = vmatpush1.bf16.msra.mxu1 %v15531_v22  ;;  %10669 = vmatprep.subr.bf16.mxu0 %v15536_v53  ;;  %v15560_v22 = vld [vmem:[#allocation2 + $0x1ec] ss:$16 sps:$4 sm:$0xff]  }
 0x35e   :  { %10712 = vmatprep.subr.bf16.mxu1 %v15539_v55  ;;  %v15563_v53 = vld [vmem:[#allocation2 + $0x3ec] ss:$16 sps:$4 sm:$0xff]   ;;  %v15558_v55 = vld [vmem:[#allocation2 + $0x1e8] ss:$16 sps:$4 sm:$0xff]  }
 0x360   :  { %10670 = vmatpush1.bf16.msra.mxu0 %v15534_v40  ;;  %v15561_v40 = vld [vmem:[#allocation2 + $0x3e8] ss:$16 sps:$4 sm:$0xff]  }
 0x361   :  { %10713 = vmatpush1.bf16.msra.mxu1 %v15537_v12  ;;  %10671 = vmatprep.subr.bf16.mxu0 %v15542_v26  ;;  %v15566_v12 = vld [vmem:[#allocation2 + $0x1cc] ss:$16 sps:$4 sm:$0xff]  }
 0x362   :  { %10714 = vmatprep.subr.bf16.mxu1 %v15545_v10  ;;  %v15569_v26 = vld [vmem:[#allocation2 + $0x3cc] ss:$16 sps:$4 sm:$0xff]   ;;  %v15564_v10 = vld [vmem:[#allocation2 + $0x1c8] ss:$16 sps:$4 sm:$0xff]  }
 0x364   :  { %10672 = vmatpush1.bf16.msra.mxu0 %v15540_v60  ;;  %v15567_v60 = vld [vmem:[#allocation2 + $0x3c8] ss:$16 sps:$4 sm:$0xff]  }
 0x365   :  { %10715 = vmatpush1.bf16.msra.mxu1 %v15543_v24  ;;  %10673 = vmatprep.subr.bf16.mxu0 %v15548_v42  ;;  %v15572_v24 = vld [vmem:[#allocation2 + $0x1ac] ss:$16 sps:$4 sm:$0xff]  }
 0x366   :  { %10716 = vmatprep.subr.bf16.mxu1 %v15551_v27  ;;  %v15575_v42 = vld [vmem:[#allocation2 + $0x3ac] ss:$16 sps:$4 sm:$0xff]   ;;  %v15570_v27 = vld [vmem:[#allocation2 + $0x1a8] ss:$16 sps:$4 sm:$0xff]  }
 0x368   :  { %10674 = vmatpush1.bf16.msra.mxu0 %v15546_v34  ;;  %v15573_v34 = vld [vmem:[#allocation2 + $0x3a8] ss:$16 sps:$4 sm:$0xff]  }
 0x369   :  { %10717 = vmatpush1.bf16.msra.mxu1 %v15549_v39  ;;  %10675 = vmatprep.subr.bf16.mxu0 %v15554_v19  ;;  %v15578_v39 = vld [vmem:[#allocation2 + $0x18c] ss:$16 sps:$4 sm:$0xff]  }
 0x36a   :  { %10718 = vmatprep.subr.bf16.mxu1 %v15557_v59  ;;  %v15581_v19 = vld [vmem:[#allocation2 + $0x38c] ss:$16 sps:$4 sm:$0xff]   ;;  %v15576_v59 = vld [vmem:[#allocation2 + $0x188] ss:$16 sps:$4 sm:$0xff]  }
 0x36c   :  { %10676 = vmatpush1.bf16.msra.mxu0 %v15552_v52  ;;  %v15579_v52 = vld [vmem:[#allocation2 + $0x388] ss:$16 sps:$4 sm:$0xff]  }
 0x36d   :  { %10719 = vmatpush1.bf16.msra.mxu1 %v15555_v54  ;;  %10677 = vmatprep.subr.bf16.mxu0 %v15560_v22  ;;  %v15584_v54 = vld [vmem:[#allocation2 + $0x16c] ss:$16 sps:$4 sm:$0xff]  }
 0x36e   :  { %10720 = vmatprep.subr.bf16.mxu1 %v15563_v53  ;;  %v15587_v22 = vld [vmem:[#allocation2 + $0x36c] ss:$16 sps:$4 sm:$0xff]   ;;  %v15582_v53 = vld [vmem:[#allocation2 + $0x168] ss:$16 sps:$4 sm:$0xff]  }
 0x370   :  { %10678 = vmatpush2.bf16.msra.mxu0 %v15558_v55  ;;  %v15585_v55 = vld [vmem:[#allocation2 + $0x368] ss:$16 sps:$4 sm:$0xff]  }
 0x371   :  { %10721 = vmatpush2.bf16.msra.mxu1 %v15561_v40  ;;  %10679 = vmatprep.subr.bf16.mxu0 %v15566_v12  ;;  %v15590_v40 = vld [vmem:[#allocation2 + $0x14c] ss:$16 sps:$4 sm:$0xff]  }
 0x372   :  { %10722 = vmatprep.subr.bf16.mxu1 %v15569_v26  ;;  %v15593_v12 = vld [vmem:[#allocation2 + $0x34c] ss:$16 sps:$4 sm:$0xff]   ;;  %v15588_v26 = vld [vmem:[#allocation2 + $0x148] ss:$16 sps:$4 sm:$0xff]  }
 0x374   :  { %10680 = vmatpush2.bf16.msra.mxu0 %v15564_v10  ;;  %v15591_v10 = vld [vmem:[#allocation2 + $0x348] ss:$16 sps:$4 sm:$0xff]  }
 0x375   :  { %10723 = vmatpush2.bf16.msra.mxu1 %v15567_v60  ;;  %10681 = vmatprep.subr.bf16.mxu0 %v15572_v24  ;;  %v15596_v60 = vld [vmem:[#allocation2 + $0x12c] ss:$16 sps:$4 sm:$0xff]  }
 0x376   :  { %10724 = vmatprep.subr.bf16.mxu1 %v15575_v42  ;;  %v15599_v24 = vld [vmem:[#allocation2 + $0x32c] ss:$16 sps:$4 sm:$0xff]   ;;  %v15594_v42 = vld [vmem:[#allocation2 + $0x128] ss:$16 sps:$4 sm:$0xff]  }
 0x378   :  { %10682 = vmatpush2.bf16.msra.mxu0 %v15570_v27  ;;  %v15597_v27 = vld [vmem:[#allocation2 + $0x328] ss:$16 sps:$4 sm:$0xff]  }
 0x379   :  { %10725 = vmatpush2.bf16.msra.mxu1 %v15573_v34  ;;  %10683 = vmatprep.subr.bf16.mxu0 %v15578_v39  ;;  %v15602_v34 = vld [vmem:[#allocation2 + $0x10c] ss:$16 sps:$4 sm:$0xff]  }
 0x37a   :  { %10726 = vmatprep.subr.bf16.mxu1 %v15581_v19  ;;  %v15605_v39 = vld [vmem:[#allocation2 + $0x30c] ss:$16 sps:$4 sm:$0xff]   ;;  %v15600_v19 = vld [vmem:[#allocation2 + $0x108] ss:$16 sps:$4 sm:$0xff]  }
 0x37c   :  { %10684 = vmatpush2.bf16.msra.mxu0 %v15576_v59  ;;  %v15603_v59 = vld [vmem:[#allocation2 + $0x308] ss:$16 sps:$4 sm:$0xff]  }
 0x37d   :  { %10727 = vmatpush2.bf16.msra.mxu1 %v15579_v52  ;;  %10685 = vmatprep.subr.bf16.mxu0 %v15584_v54  ;;  %v15608_v52 = vld [vmem:[#allocation2 + $0x4ec] ss:$16 sps:$4 sm:$0xff]  }
 0x37e   :  { %10728 = vmatprep.subr.bf16.mxu1 %v15587_v22  ;;  %v15611_v54 = vld [vmem:[#allocation2 + $0x6ec] ss:$16 sps:$4 sm:$0xff]   ;;  %v15606_v22 = vld [vmem:[#allocation2 + $0x4e8] ss:$16 sps:$4 sm:$0xff]  }
 0x380   :  { %10686 = vmatpush2.bf16.msra.mxu0 %v15582_v53  ;;  %v15609_v53 = vld [vmem:[#allocation2 + $0x6e8] ss:$16 sps:$4 sm:$0xff]  }
 0x381   :  { %10729 = vmatpush2.bf16.msra.mxu1 %v15585_v55  ;;  %10687 = vmatprep.subr.bf16.mxu0 %v15590_v40  ;;  %v17613_v55 = vpop.f32.mrf.mxu0  ;;  %v17615_v40 = vpop.f32.mrf.mxu1 }
 0x382   :  { %10730 = vmatprep.subr.bf16.mxu1 %v15593_v12  ;;  %v15614_v12 = vld [vmem:[#allocation2 + $0x4cc] ss:$16 sps:$4 sm:$0xff]  }
 0x384   :  { %10688 = vmatpush2.bf16.msra.mxu0 %v15588_v26  ;;  %v15617_v26 = vld [vmem:[#allocation2 + $0x6cc] ss:$16 sps:$4 sm:$0xff]  }
 0x385   :  { %10731 = vmatpush2.bf16.msra.mxu1 %v15591_v10  ;;  %10689 = vmatprep.subr.bf16.mxu0 %v15596_v60  ;;  %v15612_v10 = vld [vmem:[#allocation2 + $0x4c8] ss:$16 sps:$4 sm:$0xff]  }
 0x386   :  { %10732 = vmatprep.subr.bf16.mxu1 %v15599_v24  ;;  %v15615_v60 = vld [vmem:[#allocation2 + $0x6c8] ss:$16 sps:$4 sm:$0xff]  }
 0x388   :  { %10690 = vmatpush2.bf16.msra.mxu0 %v15594_v42 }
 0x389   :  { %10733 = vmatpush2.bf16.msra.mxu1 %v15597_v27  ;;  %10691 = vmatprep.subr.bf16.mxu0 %v15602_v34 }
 0x38a   :  { %10734 = vmatprep.subr.bf16.mxu1 %v15605_v39 }
 0x38c   :  { %10692 = vmatpush2.bf16.msra.mxu0 %v15600_v19  ;;  %v15620_v19 = vld [vmem:[#allocation2 + $0x4ac] ss:$16 sps:$4 sm:$0xff]  }
 0x38d   :  { %10735 = vmatpush2.bf16.msra.mxu1 %v15603_v59  ;;  %10747 = vmatprep.subr.bf16.mxu0 %v15608_v52  ;;  %v15623_v59 = vld [vmem:[#allocation2 + $0x6ac] ss:$16 sps:$4 sm:$0xff]  }
 0x38e   :  { %10790 = vmatprep.subr.bf16.mxu1 %v15611_v54  ;;  %v15618_v54 = vld [vmem:[#allocation2 + $0x4a8] ss:$16 sps:$4 sm:$0xff]  }
 0x38f   :  { %v10437_v24 = vpop.f32.mrf.mxu0  ;;  %10694 = vmatmul.mubr.bf16.vlgmr.msra.gmra.mxu0 %v17039_v8 }
 0x390   :  { %v10480_v42 = vpop.f32.mrf.mxu1  ;;  %10737 = vmatmul.mubr.bf16.vlgmr.msra.gmra.mxu1 %v17041_v9  ;;  %v10438_v27 = vadd.f32 %v10437_v24, %v17606_v61  ;;  %10748 = vmatpush1.bf16.msra.mxu0 %v15606_v22  ;;  %v15626_v22 = vld [vmem:[#allocation2 + $0x48c] ss:$16 sps:$4 sm:$0xff]   ;;  %v15627_v24 = vld [vmem:[#allocation2 + $0x688] ss:$16 sps:$4 sm:$0xff]  }
 0x391   :  { %10791 = vmatpush1.bf16.msra.mxu1 %v15609_v53  ;;  %v17620_v34 = vpop.f32.mrf.mxu0  ;;  %10749 = vmatprep.subr.bf16.mxu0 %v15614_v12  ;;  %v15629_v53 = vld [vmem:[#allocation2 + $0x68c] ss:$16 sps:$4 sm:$0xff]  }
 0x392   :  { %v17622_v39 = vpop.f32.mrf.mxu1  ;;  %10792 = vmatprep.subr.bf16.mxu1 %v15617_v26  ;;  %v17624_v52 = vadd.f32 %v10480_v42, %v10438_v27  ;;  %10779 = vmatprep.mubr.bf16.mxu0 %v17067_v41  ;;  %v15624_v26 = vld [vmem:[#allocation2 + $0x488] ss:$16 sps:$4 sm:$0xff]   ;;  %v15632_v41 = vld [vmem:[#allocation2 + $0x46c] ss:$16 sps:$4 sm:$0xff]  }
 0x393   :  { %10822 = vmatprep.mubr.bf16.mxu1 %v17071_v43  ;;  %v10441_v8 = vpop.f32.mrf.mxu0  ;;  %v15635_v43 = vld [vmem:[#allocation2 + $0x66c] ss:$16 sps:$4 sm:$0xff]   ;;  %v15636_v27 = vld [vmem:[#allocation2 + $0x448] ss:$16 sps:$4 sm:$0xff]  }
 0x394   :  { %v10442_v9 = vadd.f32 %v10441_v8, %v17611_v30  ;;  %10750 = vmatpush1.bf16.msra.mxu0 %v15612_v10  ;;  %v10484_v61 = vpop.f32.mrf.mxu1  ;;  %v15630_v30 = vld [vmem:[#allocation2 + $0x468] ss:$16 sps:$4 sm:$0xff]   ;;  %v15641_v42 = vld [vmem:[#allocation2 + $0x64c] ss:$16 sps:$4 sm:$0xff]  }
 0x395   :  { %10793 = vmatpush1.bf16.msra.mxu1 %v15615_v60  ;;  %10751 = vmatprep.subr.bf16.mxu0 %v15620_v19  ;;  %v15633_v10 = vld [vmem:[#allocation2 + $0x668] ss:$16 sps:$4 sm:$0xff]   ;;  %v15638_v60 = vld [vmem:[#allocation2 + $0x44c] ss:$16 sps:$4 sm:$0xff]  }
 0x396   :  { %10794 = vmatprep.subr.bf16.mxu1 %v15623_v59  ;;  %v17629_v12 = vadd.f32 %v10484_v61, %v10442_v9  ;;  %v15639_v19 = vld [vmem:[#allocation2 + $0x648] ss:$16 sps:$4 sm:$0xff]   ;;  %v15644_v59 = vld [vmem:[#allocation2 + $0x42c] ss:$16 sps:$4 sm:$0xff]  }
 0x397   :  { %v15645_v8 = vld [vmem:[#allocation2 + $0x628] ss:$16 sps:$4 sm:$0xff]   ;;  %v15650_v9 = vld [vmem:[#allocation2 + $0x40c] ss:$16 sps:$4 sm:$0xff]  }
 0x398   :  { %10752 = vmatpush1.bf16.msra.mxu0 %v15618_v54  ;;  %v15642_v54 = vld [vmem:[#allocation2 + $0x428] ss:$16 sps:$4 sm:$0xff]   ;;  %v15653_v61 = vld [vmem:[#allocation2 + $0x60c] ss:$16 sps:$4 sm:$0xff]  }
 0x399   :  { %10795 = vmatpush1.bf16.msra.mxu1 %v15621_v5  ;;  %10753 = vmatprep.subr.bf16.mxu0 %v15626_v22  ;;  %v15647_v5 = vld [vmem:[#allocation2 + $0x62c] ss:$16 sps:$4 sm:$0xff]   ;;  %v15648_v22 = vld [vmem:[#allocation2 + $0x408] ss:$16 sps:$4 sm:$0xff]  }
 0x39a   :  { %10796 = vmatprep.subr.bf16.mxu1 %v15629_v53  ;;  %v15651_v53 = vld [vmem:[#allocation2 + $0x608] ss:$16 sps:$4 sm:$0xff]  }
 0x39c   :  { %10754 = vmatpush1.bf16.msra.mxu0 %v15624_v26  ;;  %v15656_v26 = vld [vmem:[#allocation2 + $0x5ec] ss:$16 sps:$4 sm:$0xff]  }
 0x39d   :  { %10797 = vmatpush1.bf16.msra.mxu1 %v15627_v24  ;;  %10755 = vmatprep.subr.bf16.mxu0 %v15632_v41  ;;  %v15659_v24 = vld [vmem:[#allocation2 + $0x7ec] ss:$16 sps:$4 sm:$0xff]   ;;  %v15654_v41 = vld [vmem:[#allocation2 + $0x5e8] ss:$16 sps:$4 sm:$0xff]  }
 0x39e   :  { %10798 = vmatprep.subr.bf16.mxu1 %v15635_v43  ;;  %v15657_v43 = vld [vmem:[#allocation2 + $0x7e8] ss:$16 sps:$4 sm:$0xff]  }
 0x3a0   :  { %10756 = vmatpush1.bf16.msra.mxu0 %v15630_v30  ;;  %v15662_v30 = vld [vmem:[#allocation2 + $0x5cc] ss:$16 sps:$4 sm:$0xff]  }
 0x3a1   :  { %10799 = vmatpush1.bf16.msra.mxu1 %v15633_v10  ;;  %10757 = vmatprep.subr.bf16.mxu0 %v15638_v60  ;;  %v15665_v10 = vld [vmem:[#allocation2 + $0x7cc] ss:$16 sps:$4 sm:$0xff]   ;;  %v15660_v60 = vld [vmem:[#allocation2 + $0x5c8] ss:$16 sps:$4 sm:$0xff]  }
 0x3a2   :  { %10800 = vmatprep.subr.bf16.mxu1 %v15641_v42  ;;  %v15663_v42 = vld [vmem:[#allocation2 + $0x7c8] ss:$16 sps:$4 sm:$0xff]  }
 0x3a4   :  { %10758 = vmatpush1.bf16.msra.mxu0 %v15636_v27  ;;  %v15668_v27 = vld [vmem:[#allocation2 + $0x5ac] ss:$16 sps:$4 sm:$0xff]  }
 0x3a5   :  { %10801 = vmatpush1.bf16.msra.mxu1 %v15639_v19  ;;  %10759 = vmatprep.subr.bf16.mxu0 %v15644_v59  ;;  %v15671_v19 = vld [vmem:[#allocation2 + $0x7ac] ss:$16 sps:$4 sm:$0xff]   ;;  %v15666_v59 = vld [vmem:[#allocation2 + $0x5a8] ss:$16 sps:$4 sm:$0xff]  }
 0x3a6   :  { %10802 = vmatprep.subr.bf16.mxu1 %v15647_v5  ;;  %v15669_v5 = vld [vmem:[#allocation2 + $0x7a8] ss:$16 sps:$4 sm:$0xff]  }
 0x3a8   :  { %10760 = vmatpush1.bf16.msra.mxu0 %v15642_v54  ;;  %v15674_v54 = vld [vmem:[#allocation2 + $0x58c] ss:$16 sps:$4 sm:$0xff]  }
 0x3a9   :  { %10803 = vmatpush1.bf16.msra.mxu1 %v15645_v8  ;;  %10761 = vmatprep.subr.bf16.mxu0 %v15650_v9  ;;  %v15677_v8 = vld [vmem:[#allocation2 + $0x78c] ss:$16 sps:$4 sm:$0xff]   ;;  %v15672_v9 = vld [vmem:[#allocation2 + $0x588] ss:$16 sps:$4 sm:$0xff]  }
 0x3aa   :  { %10804 = vmatprep.subr.bf16.mxu1 %v15653_v61  ;;  %v15675_v61 = vld [vmem:[#allocation2 + $0x788] ss:$16 sps:$4 sm:$0xff]  }
 0x3ac   :  { %10762 = vmatpush1.bf16.msra.mxu0 %v15648_v22  ;;  %v15680_v22 = vld [vmem:[#allocation2 + $0x56c] ss:$16 sps:$4 sm:$0xff]  }
 0x3ad   :  { %10805 = vmatpush1.bf16.msra.mxu1 %v15651_v53  ;;  %10763 = vmatprep.subr.bf16.mxu0 %v15656_v26  ;;  %v15683_v53 = vld [vmem:[#allocation2 + $0x76c] ss:$16 sps:$4 sm:$0xff]   ;;  %v15678_v26 = vld [vmem:[#allocation2 + $0x568] ss:$16 sps:$4 sm:$0xff]  }
 0x3ae   :  { %10806 = vmatprep.subr.bf16.mxu1 %v15659_v24  ;;  %v15681_v24 = vld [vmem:[#allocation2 + $0x768] ss:$16 sps:$4 sm:$0xff]  }
 0x3b0   :  { %10764 = vmatpush2.bf16.msra.mxu0 %v15654_v41  ;;  %v15686_v41 = vld [vmem:[#allocation2 + $0x54c] ss:$16 sps:$4 sm:$0xff]  }
 0x3b1   :  { %10807 = vmatpush2.bf16.msra.mxu1 %v15657_v43  ;;  %10765 = vmatprep.subr.bf16.mxu0 %v15662_v30  ;;  %v15689_v43 = vld [vmem:[#allocation2 + $0x74c] ss:$16 sps:$4 sm:$0xff]   ;;  %v15684_v30 = vld [vmem:[#allocation2 + $0x548] ss:$16 sps:$4 sm:$0xff]  }
 0x3b2   :  { %10808 = vmatprep.subr.bf16.mxu1 %v15665_v10  ;;  %v15687_v10 = vld [vmem:[#allocation2 + $0x748] ss:$16 sps:$4 sm:$0xff]  }
 0x3b4   :  { %10766 = vmatpush2.bf16.msra.mxu0 %v15660_v60  ;;  %v15692_v60 = vld [vmem:[#allocation2 + $0x52c] ss:$16 sps:$4 sm:$0xff]  }
 0x3b5   :  { %10809 = vmatpush2.bf16.msra.mxu1 %v15663_v42  ;;  %10767 = vmatprep.subr.bf16.mxu0 %v15668_v27  ;;  %v15695_v42 = vld [vmem:[#allocation2 + $0x72c] ss:$16 sps:$4 sm:$0xff]   ;;  %v15690_v27 = vld [vmem:[#allocation2 + $0x528] ss:$16 sps:$4 sm:$0xff]  }
 0x3b6   :  { %10810 = vmatprep.subr.bf16.mxu1 %v15671_v19  ;;  %v15693_v19 = vld [vmem:[#allocation2 + $0x728] ss:$16 sps:$4 sm:$0xff]  }
 0x3b8   :  { %10768 = vmatpush2.bf16.msra.mxu0 %v15666_v59  ;;  %v15698_v59 = vld [vmem:[#allocation2 + $0x50c] ss:$16 sps:$4 sm:$0xff]  }
 0x3b9   :  { %10811 = vmatpush2.bf16.msra.mxu1 %v15669_v5  ;;  %10769 = vmatprep.subr.bf16.mxu0 %v15674_v54  ;;  %v15701_v5 = vld [vmem:[#allocation2 + $0x70c] ss:$16 sps:$4 sm:$0xff]   ;;  %v15696_v54 = vld [vmem:[#allocation2 + $0x508] ss:$16 sps:$4 sm:$0xff]  }
 0x3ba   :  { %10812 = vmatprep.subr.bf16.mxu1 %v15677_v8  ;;  %v15699_v8 = vld [vmem:[#allocation2 + $0x708] ss:$16 sps:$4 sm:$0xff]  }
 0x3bc   :  { %10770 = vmatpush2.bf16.msra.mxu0 %v15672_v9  ;;  %v15704_v9 = vld [vmem:[#allocation2 + $0x8ec] ss:$16 sps:$4 sm:$0xff]  }
 0x3bd   :  { %10813 = vmatpush2.bf16.msra.mxu1 %v15675_v61  ;;  %10771 = vmatprep.subr.bf16.mxu0 %v15680_v22  ;;  %v15707_v61 = vld [vmem:[#allocation2 + $0xaec] ss:$16 sps:$4 sm:$0xff]   ;;  %v15702_v22 = vld [vmem:[#allocation2 + $0x8e8] ss:$16 sps:$4 sm:$0xff]  }
 0x3be   :  { %10814 = vmatprep.subr.bf16.mxu1 %v15683_v53  ;;  %v15705_v53 = vld [vmem:[#allocation2 + $0xae8] ss:$16 sps:$4 sm:$0xff]  }
 0x3c0   :  { %10772 = vmatpush2.bf16.msra.mxu0 %v15678_v26  ;;  %v17631_v26 = vpop.f32.mrf.mxu0 }
 0x3c1   :  { %10815 = vmatpush2.bf16.msra.mxu1 %v15681_v24  ;;  %10773 = vmatprep.subr.bf16.mxu0 %v15686_v41  ;;  %v17633_v24 = vpop.f32.mrf.mxu1  ;;  %v15710_v41 = vld [vmem:[#allocation2 + $0x8cc] ss:$16 sps:$4 sm:$0xff]  }
 0x3c2   :  { %10816 = vmatprep.subr.bf16.mxu1 %v15689_v43  ;;  %v15713_v43 = vld [vmem:[#allocation2 + $0xacc] ss:$16 sps:$4 sm:$0xff]  }
 0x3c4   :  { %10774 = vmatpush2.bf16.msra.mxu0 %v15684_v30  ;;  %v15708_v30 = vld [vmem:[#allocation2 + $0x8c8] ss:$16 sps:$4 sm:$0xff]  }
 0x3c5   :  { %10817 = vmatpush2.bf16.msra.mxu1 %v15687_v10  ;;  %10775 = vmatprep.subr.bf16.mxu0 %v15692_v60  ;;  %v15711_v10 = vld [vmem:[#allocation2 + $0xac8] ss:$16 sps:$4 sm:$0xff]  }
 0x3c6   :  { %10818 = vmatprep.subr.bf16.mxu1 %v15695_v42 }
 0x3c8   :  { %10776 = vmatpush2.bf16.msra.mxu0 %v15690_v27 }
 0x3c9   :  { %10819 = vmatpush2.bf16.msra.mxu1 %v15693_v19  ;;  %10777 = vmatprep.subr.bf16.mxu0 %v15698_v59 }
 0x3ca   :  { %10820 = vmatprep.subr.bf16.mxu1 %v15701_v5  ;;  %v15716_v5 = vld [vmem:[#allocation2 + $0x8ac] ss:$16 sps:$4 sm:$0xff]  }
 0x3cc   :  { %10778 = vmatpush2.bf16.msra.mxu0 %v15696_v54  ;;  %v15719_v54 = vld [vmem:[#allocation2 + $0xaac] ss:$16 sps:$4 sm:$0xff]  }
 0x3cd   :  { %10821 = vmatpush2.bf16.msra.mxu1 %v15699_v8  ;;  %10833 = vmatprep.subr.bf16.mxu0 %v15704_v9  ;;  %v15714_v9 = vld [vmem:[#allocation2 + $0x8a8] ss:$16 sps:$4 sm:$0xff]  }
 0x3ce   :  { %10876 = vmatprep.subr.bf16.mxu1 %v15707_v61  ;;  %v15717_v61 = vld [vmem:[#allocation2 + $0xaa8] ss:$16 sps:$4 sm:$0xff]  }
 0x3cf   :  { %v10523_v60 = vpop.f32.mrf.mxu0  ;;  %10780 = vmatmul.mubr.bf16.vlgmr.msra.gmra.mxu0 %v17077_v20 }
 0x3d0   :  { %v10566_v42 = vpop.f32.mrf.mxu1  ;;  %10823 = vmatmul.mubr.bf16.vlgmr.msra.gmra.mxu1 %v17081_v21  ;;  %v10524_v27 = vadd.f32 %v10523_v60, %v17624_v52  ;;  %10834 = vmatpush1.bf16.msra.mxu0 %v15702_v22  ;;  %v15722_v22 = vld [vmem:[#allocation2 + $0x88c] ss:$16 sps:$4 sm:$0xff]   ;;  %v15723_v60 = vld [vmem:[#allocation2 + $0xa88] ss:$16 sps:$4 sm:$0xff]  }
 0x3d1   :  { %10877 = vmatpush1.bf16.msra.mxu1 %v15705_v53  ;;  %v17638_v19 = vpop.f32.mrf.mxu0  ;;  %10835 = vmatprep.subr.bf16.mxu0 %v15710_v41  ;;  %v15725_v53 = vld [vmem:[#allocation2 + $0xa8c] ss:$16 sps:$4 sm:$0xff]  }
 0x3d2   :  { %v17640_v59 = vpop.f32.mrf.mxu1  ;;  %10878 = vmatprep.subr.bf16.mxu1 %v15713_v43  ;;  %v17642_v8 = vadd.f32 %v10566_v42, %v10524_v27  ;;  %10865 = vmatprep.mubr.bf16.mxu0 %v17107_v33  ;;  %v15720_v43 = vld [vmem:[#allocation2 + $0x888] ss:$16 sps:$4 sm:$0xff]   ;;  %v15728_v33 = vld [vmem:[#allocation2 + $0x86c] ss:$16 sps:$4 sm:$0xff]  }
 0x3d3   :  { %10908 = vmatprep.mubr.bf16.mxu1 %v17111_v35  ;;  %v10527_v20 = vpop.f32.mrf.mxu0  ;;  %v15731_v35 = vld [vmem:[#allocation2 + $0xa6c] ss:$16 sps:$4 sm:$0xff]   ;;  %v15732_v27 = vld [vmem:[#allocation2 + $0x848] ss:$16 sps:$4 sm:$0xff]  }
 0x3d4   :  { %v10528_v21 = vadd.f32 %v10527_v20, %v17629_v12  ;;  %10836 = vmatpush1.bf16.msra.mxu0 %v15708_v30  ;;  %v10570_v52 = vpop.f32.mrf.mxu1  ;;  %v15726_v12 = vld [vmem:[#allocation2 + $0x868] ss:$16 sps:$4 sm:$0xff]   ;;  %v15737_v42 = vld [vmem:[#allocation2 + $0xa4c] ss:$16 sps:$4 sm:$0xff]  }
 0x3d5   :  { %10879 = vmatpush1.bf16.msra.mxu1 %v15711_v10  ;;  %10837 = vmatprep.subr.bf16.mxu0 %v15716_v5  ;;  %v15729_v30 = vld [vmem:[#allocation2 + $0xa68] ss:$16 sps:$4 sm:$0xff]   ;;  %v15734_v10 = vld [vmem:[#allocation2 + $0x84c] ss:$16 sps:$4 sm:$0xff]  }
 0x3d6   :  { %10880 = vmatprep.subr.bf16.mxu1 %v15719_v54  ;;  %v17647_v41 = vadd.f32 %v10570_v52, %v10528_v21  ;;  %v15735_v5 = vld [vmem:[#allocation2 + $0xa48] ss:$16 sps:$4 sm:$0xff]   ;;  %v15740_v54 = vld [vmem:[#allocation2 + $0x82c] ss:$16 sps:$4 sm:$0xff]  }
 0x3d7   :  { %v15741_v20 = vld [vmem:[#allocation2 + $0xa28] ss:$16 sps:$4 sm:$0xff]   ;;  %v15746_v21 = vld [vmem:[#allocation2 + $0x80c] ss:$16 sps:$4 sm:$0xff]  }
 0x3d8   :  { %10838 = vmatpush1.bf16.msra.mxu0 %v15714_v9  ;;  %v15743_v9 = vld [vmem:[#allocation2 + $0xa2c] ss:$16 sps:$4 sm:$0xff]  }
 0x3d9   :  { %10881 = vmatpush1.bf16.msra.mxu1 %v15717_v61  ;;  %10839 = vmatprep.subr.bf16.mxu0 %v15722_v22  ;;  %v15738_v61 = vld [vmem:[#allocation2 + $0x828] ss:$16 sps:$4 sm:$0xff]   ;;  %v15749_v52 = vld [vmem:[#allocation2 + $0xa0c] ss:$16 sps:$4 sm:$0xff]  }
 0x3da   :  { %10882 = vmatprep.subr.bf16.mxu1 %v15725_v53  ;;  %v15744_v22 = vld [vmem:[#allocation2 + $0x808] ss:$16 sps:$4 sm:$0xff]  }
 0x3db   :  { %v15747_v53 = vld [vmem:[#allocation2 + $0xa08] ss:$16 sps:$4 sm:$0xff]  }
 0x3dc   :  { %10840 = vmatpush1.bf16.msra.mxu0 %v15720_v43  ;;  %v15752_v43 = vld [vmem:[#allocation2 + $0x9ec] ss:$16 sps:$4 sm:$0xff]  }
 0x3dd   :  { %10883 = vmatpush1.bf16.msra.mxu1 %v15723_v60  ;;  %10841 = vmatprep.subr.bf16.mxu0 %v15728_v33  ;;  %v15755_v60 = vld [vmem:[#allocation2 + $0xbec] ss:$16 sps:$4 sm:$0xff]   ;;  %v15750_v33 = vld [vmem:[#allocation2 + $0x9e8] ss:$16 sps:$4 sm:$0xff]  }
 0x3de   :  { %10884 = vmatprep.subr.bf16.mxu1 %v15731_v35  ;;  %v15753_v35 = vld [vmem:[#allocation2 + $0xbe8] ss:$16 sps:$4 sm:$0xff]  }
 0x3e0   :  { %10842 = vmatpush1.bf16.msra.mxu0 %v15726_v12  ;;  %v15758_v12 = vld [vmem:[#allocation2 + $0x9cc] ss:$16 sps:$4 sm:$0xff]  }
 0x3e1   :  { %10885 = vmatpush1.bf16.msra.mxu1 %v15729_v30  ;;  %10843 = vmatprep.subr.bf16.mxu0 %v15734_v10  ;;  %v15761_v30 = vld [vmem:[#allocation2 + $0xbcc] ss:$16 sps:$4 sm:$0xff]   ;;  %v15756_v10 = vld [vmem:[#allocation2 + $0x9c8] ss:$16 sps:$4 sm:$0xff]  }
 0x3e2   :  { %10886 = vmatprep.subr.bf16.mxu1 %v15737_v42  ;;  %v15759_v42 = vld [vmem:[#allocation2 + $0xbc8] ss:$16 sps:$4 sm:$0xff]  }
 0x3e4   :  { %10844 = vmatpush1.bf16.msra.mxu0 %v15732_v27  ;;  %v15764_v27 = vld [vmem:[#allocation2 + $0x9ac] ss:$16 sps:$4 sm:$0xff]  }
 0x3e5   :  { %10887 = vmatpush1.bf16.msra.mxu1 %v15735_v5  ;;  %10845 = vmatprep.subr.bf16.mxu0 %v15740_v54  ;;  %v15767_v5 = vld [vmem:[#allocation2 + $0xbac] ss:$16 sps:$4 sm:$0xff]   ;;  %v15762_v54 = vld [vmem:[#allocation2 + $0x9a8] ss:$16 sps:$4 sm:$0xff]  }
 0x3e6   :  { %10888 = vmatprep.subr.bf16.mxu1 %v15743_v9  ;;  %v15765_v9 = vld [vmem:[#allocation2 + $0xba8] ss:$16 sps:$4 sm:$0xff]  }
 0x3e8   :  { %10846 = vmatpush1.bf16.msra.mxu0 %v15738_v61  ;;  %v15770_v61 = vld [vmem:[#allocation2 + $0x98c] ss:$16 sps:$4 sm:$0xff]  }
 0x3e9   :  { %10889 = vmatpush1.bf16.msra.mxu1 %v15741_v20  ;;  %10847 = vmatprep.subr.bf16.mxu0 %v15746_v21  ;;  %v15773_v20 = vld [vmem:[#allocation2 + $0xb8c] ss:$16 sps:$4 sm:$0xff]   ;;  %v15768_v21 = vld [vmem:[#allocation2 + $0x988] ss:$16 sps:$4 sm:$0xff]  }
 0x3ea   :  { %10890 = vmatprep.subr.bf16.mxu1 %v15749_v52  ;;  %v15771_v52 = vld [vmem:[#allocation2 + $0xb88] ss:$16 sps:$4 sm:$0xff]  }
 0x3ec   :  { %10848 = vmatpush1.bf16.msra.mxu0 %v15744_v22  ;;  %v15776_v22 = vld [vmem:[#allocation2 + $0x96c] ss:$16 sps:$4 sm:$0xff]  }
 0x3ed   :  { %10891 = vmatpush1.bf16.msra.mxu1 %v15747_v53  ;;  %10849 = vmatprep.subr.bf16.mxu0 %v15752_v43  ;;  %v15779_v53 = vld [vmem:[#allocation2 + $0xb6c] ss:$16 sps:$4 sm:$0xff]   ;;  %v15774_v43 = vld [vmem:[#allocation2 + $0x968] ss:$16 sps:$4 sm:$0xff]  }
 0x3ee   :  { %10892 = vmatprep.subr.bf16.mxu1 %v15755_v60  ;;  %v15777_v60 = vld [vmem:[#allocation2 + $0xb68] ss:$16 sps:$4 sm:$0xff]  }
 0x3f0   :  { %10850 = vmatpush2.bf16.msra.mxu0 %v15750_v33  ;;  %v15782_v33 = vld [vmem:[#allocation2 + $0x94c] ss:$16 sps:$4 sm:$0xff]  }
 0x3f1   :  { %10893 = vmatpush2.bf16.msra.mxu1 %v15753_v35  ;;  %10851 = vmatprep.subr.bf16.mxu0 %v15758_v12  ;;  %v15785_v35 = vld [vmem:[#allocation2 + $0xb4c] ss:$16 sps:$4 sm:$0xff]   ;;  %v15780_v12 = vld [vmem:[#allocation2 + $0x948] ss:$16 sps:$4 sm:$0xff]  }
 0x3f2   :  { %10894 = vmatprep.subr.bf16.mxu1 %v15761_v30  ;;  %v15783_v30 = vld [vmem:[#allocation2 + $0xb48] ss:$16 sps:$4 sm:$0xff]  }
 0x3f4   :  { %10852 = vmatpush2.bf16.msra.mxu0 %v15756_v10  ;;  %v15788_v10 = vld [vmem:[#allocation2 + $0x92c] ss:$16 sps:$4 sm:$0xff]  }
 0x3f5   :  { %10895 = vmatpush2.bf16.msra.mxu1 %v15759_v42  ;;  %10853 = vmatprep.subr.bf16.mxu0 %v15764_v27  ;;  %v15791_v42 = vld [vmem:[#allocation2 + $0xb2c] ss:$16 sps:$4 sm:$0xff]   ;;  %v15786_v27 = vld [vmem:[#allocation2 + $0x928] ss:$16 sps:$4 sm:$0xff]  }
 0x3f6   :  { %10896 = vmatprep.subr.bf16.mxu1 %v15767_v5  ;;  %v15789_v5 = vld [vmem:[#allocation2 + $0xb28] ss:$16 sps:$4 sm:$0xff]  }
 0x3f8   :  { %10854 = vmatpush2.bf16.msra.mxu0 %v15762_v54  ;;  %v15794_v54 = vld [vmem:[#allocation2 + $0x90c] ss:$16 sps:$4 sm:$0xff]  }
 0x3f9   :  { %10897 = vmatpush2.bf16.msra.mxu1 %v15765_v9  ;;  %10855 = vmatprep.subr.bf16.mxu0 %v15770_v61  ;;  %v15797_v9 = vld [vmem:[#allocation2 + $0xb0c] ss:$16 sps:$4 sm:$0xff]   ;;  %v15792_v61 = vld [vmem:[#allocation2 + $0x908] ss:$16 sps:$4 sm:$0xff]  }
 0x3fa   :  { %10898 = vmatprep.subr.bf16.mxu1 %v15773_v20  ;;  %v15795_v20 = vld [vmem:[#allocation2 + $0xb08] ss:$16 sps:$4 sm:$0xff]  }
 0x3fc   :  { %10856 = vmatpush2.bf16.msra.mxu0 %v15768_v21  ;;  %v15800_v21 = vld [vmem:[#allocation2 + $0xcec] ss:$16 sps:$4 sm:$0xff]  }
 0x3fd   :  { %10899 = vmatpush2.bf16.msra.mxu1 %v15771_v52  ;;  %10857 = vmatprep.subr.bf16.mxu0 %v15776_v22  ;;  %v15803_v52 = vld [vmem:[#allocation2 + $0xeec] ss:$16 sps:$4 sm:$0xff]   ;;  %v15798_v22 = vld [vmem:[#allocation2 + $0xce8] ss:$16 sps:$4 sm:$0xff]  }
 0x3fe   :  { %10900 = vmatprep.subr.bf16.mxu1 %v15779_v53  ;;  %v15801_v53 = vld [vmem:[#allocation2 + $0xee8] ss:$16 sps:$4 sm:$0xff]  }
 0x400   :  { %10858 = vmatpush2.bf16.msra.mxu0 %v15774_v43  ;;  %v17649_v43 = vpop.f32.mrf.mxu0 }
 0x401   :  { %10901 = vmatpush2.bf16.msra.mxu1 %v15777_v60  ;;  %10859 = vmatprep.subr.bf16.mxu0 %v15782_v33  ;;  %v17651_v60 = vpop.f32.mrf.mxu1  ;;  %v15806_v33 = vld [vmem:[#allocation2 + $0xccc] ss:$16 sps:$4 sm:$0xff]  }
 0x402   :  { %10902 = vmatprep.subr.bf16.mxu1 %v15785_v35  ;;  %v15809_v35 = vld [vmem:[#allocation2 + $0xecc] ss:$16 sps:$4 sm:$0xff]  }
 0x404   :  { %10860 = vmatpush2.bf16.msra.mxu0 %v15780_v12 }
 0x405   :  { %10903 = vmatpush2.bf16.msra.mxu1 %v15783_v30  ;;  %10861 = vmatprep.subr.bf16.mxu0 %v15788_v10 }
 0x406   :  { %10904 = vmatprep.subr.bf16.mxu1 %v15791_v42  ;;  %v15804_v42 = vld [vmem:[#allocation2 + $0xcc8] ss:$16 sps:$4 sm:$0xff]  }
 0x408   :  { %10862 = vmatpush2.bf16.msra.mxu0 %v15786_v27  ;;  %v15807_v27 = vld [vmem:[#allocation2 + $0xec8] ss:$16 sps:$4 sm:$0xff]  }
 0x409   :  { %10905 = vmatpush2.bf16.msra.mxu1 %v15789_v5  ;;  %10863 = vmatprep.subr.bf16.mxu0 %v15794_v54 }
 0x40a   :  { %10906 = vmatprep.subr.bf16.mxu1 %v15797_v9  ;;  %v15812_v9 = vld [vmem:[#allocation2 + $0xcac] ss:$16 sps:$4 sm:$0xff]  }
 0x40c   :  { %10864 = vmatpush2.bf16.msra.mxu0 %v15792_v61  ;;  %v15815_v61 = vld [vmem:[#allocation2 + $0xeac] ss:$16 sps:$4 sm:$0xff]  }
 0x40d   :  { %10907 = vmatpush2.bf16.msra.mxu1 %v15795_v20  ;;  %10919 = vmatprep.subr.bf16.mxu0 %v15800_v21  ;;  %v15813_v21 = vld [vmem:[#allocation2 + $0xea8] ss:$16 sps:$4 sm:$0xff]  }
 0x40e   :  { %10962 = vmatprep.subr.bf16.mxu1 %v15803_v52 }
 0x40f   :  { %v10609_v12 = vpop.f32.mrf.mxu0  ;;  %10866 = vmatmul.mubr.bf16.vlgmr.msra.gmra.mxu0 %v17132_v48 }
 0x410   :  { %v10652_v30 = vpop.f32.mrf.mxu1  ;;  %10909 = vmatmul.mubr.bf16.vlgmr.msra.gmra.mxu1 %v17136_v49  ;;  %v10610_v10 = vadd.f32 %v10609_v12, %v17642_v8  ;;  %10920 = vmatpush1.bf16.msra.mxu0 %v15798_v22  ;;  %v15810_v8 = vld [vmem:[#allocation2 + $0xca8] ss:$16 sps:$4 sm:$0xff]   ;;  %v15818_v22 = vld [vmem:[#allocation2 + $0xc8c] ss:$16 sps:$4 sm:$0xff]  }
 0x411   :  { %10963 = vmatpush1.bf16.msra.mxu1 %v15801_v53  ;;  %v17656_v5 = vpop.f32.mrf.mxu0  ;;  %10921 = vmatprep.subr.bf16.mxu0 %v15806_v33  ;;  %v15821_v53 = vld [vmem:[#allocation2 + $0xe8c] ss:$16 sps:$4 sm:$0xff]  }
 0x412   :  { %v17658_v54 = vpop.f32.mrf.mxu1  ;;  %10964 = vmatprep.subr.bf16.mxu1 %v15809_v35  ;;  %v10653_v20 = vadd.f32 %v10652_v30, %v10610_v10  ;;  %10951 = vmatprep.mubr.bf16.mxu0 %v17145_v28  ;;  %v15816_v28 = vld [vmem:[#allocation2 + $0xc88] ss:$16 sps:$4 sm:$0xff]  }
 0x413   :  { %10994 = vmatprep.mubr.bf16.mxu1 %v17149_v29  ;;  %v10613_v48 = vpop.f32.mrf.mxu0  ;;  %v15819_v30 = vld [vmem:[#allocation2 + $0xe88] ss:$16 sps:$4 sm:$0xff]   ;;  %v15824_v29 = vld [vmem:[#allocation2 + $0xc6c] ss:$16 sps:$4 sm:$0xff]  }
 0x414   :  { %v10614_v49 = vadd.f32 %v10613_v48, %v17647_v41  ;;  %10922 = vmatpush1.bf16.msra.mxu0 %v15804_v42  ;;  %v10656_v52 = vpop.f32.mrf.mxu1  ;;  %v11693_v35 = vmax.f32 %v10653_v20, 0.0  ;;  %v15827_v41 = vld [vmem:[#allocation2 + $0xe6c] ss:$16 sps:$4 sm:$0xff]   ;;  %v15822_v42 = vld [vmem:[#allocation2 + $0xc68] ss:$16 sps:$4 sm:$0xff]  }
 0x415   :  { %10965 = vmatpush1.bf16.msra.mxu1 %v15807_v27  ;;  %10923 = vmatprep.subr.bf16.mxu0 %v15812_v9  ;;  %v15825_v27 = vld [vmem:[#allocation2 + $0xe68] ss:$16 sps:$4 sm:$0xff]   ;;  %v15830_v9 = vld [vmem:[#allocation2 + $0xc4c] ss:$16 sps:$4 sm:$0xff]  }
 0x416   :  { %10966 = vmatprep.subr.bf16.mxu1 %v15815_v61  ;;  %v10657_v33 = vadd.f32 %v10656_v52, %v10614_v49  ;;  %v15833_v61 = vld [vmem:[#allocation2 + $0xe4c] ss:$16 sps:$4 sm:$0xff]   ;;  %v15828_v20 = vld [vmem:[#allocation2 + $0xc48] ss:$16 sps:$4 sm:$0xff]  }
 0x417   :  { %v15831_v48 = vld [vmem:[#allocation2 + $0xe48] ss:$16 sps:$4 sm:$0xff]   ;;  %v15836_v49 = vld [vmem:[#allocation2 + $0xc2c] ss:$16 sps:$4 sm:$0xff]  }
 0x418   :  { %v11697_v12 = vmax.f32 %v10657_v33, 0.0  ;;  %10924 = vmatpush1.bf16.msra.mxu0 %v15810_v8  ;;  %v15839_v8 = vld [vmem:[#allocation2 + $0xe2c] ss:$16 sps:$4 sm:$0xff]   ;;  %v15837_v52 = vld [vmem:[#allocation2 + $0xe28] ss:$16 sps:$4 sm:$0xff]  }
 0x419   :  { %10967 = vmatpush1.bf16.msra.mxu1 %v15813_v21  ;;  %10925 = vmatprep.subr.bf16.mxu0 %v15818_v22  ;;  %v15834_v21 = vld [vmem:[#allocation2 + $0xc28] ss:$16 sps:$4 sm:$0xff]   ;;  %v15842_v22 = vld [vmem:[#allocation2 + $0xc0c] ss:$16 sps:$4 sm:$0xff]  }
 0x41a   :  { %10968 = vmatprep.subr.bf16.mxu1 %v15821_v53  ;;  %v17663_v10 = vpack.c.bf16 %v11697_v12, %v11693_v35  ;;  %v15845_v53 = vld [vmem:[#allocation2 + $0xe0c] ss:$16 sps:$4 sm:$0xff]   ;;  %v15840_v33 = vld [vmem:[#allocation2 + $0xc08] ss:$16 sps:$4 sm:$0xff]  }
 0x41b   :  { %v15843_v35 = vld [vmem:[#allocation2 + $0xe08] ss:$16 sps:$4 sm:$0xff]   ;;  %v15848_v12 = vld [vmem:[#allocation2 + $0xdec] ss:$16 sps:$4 sm:$0xff]  }
 0x41c   :  { %10926 = vmatpush1.bf16.msra.mxu0 %v15816_v28  ;;  %v15851_v28 = vld [vmem:[#allocation2 + $0xfec] ss:$16 sps:$4 sm:$0xff]  }
 0x41d   :  { %10969 = vmatpush1.bf16.msra.mxu1 %v15819_v30  ;;  %10927 = vmatprep.subr.bf16.mxu0 %v15824_v29  ;;  %v15846_v30 = vld [vmem:[#allocation2 + $0xde8] ss:$16 sps:$4 sm:$0xff]  }
 0x41e   :  { %10970 = vmatprep.subr.bf16.mxu1 %v15827_v41  ;;  %v15849_v29 = vld [vmem:[#allocation2 + $0xfe8] ss:$16 sps:$4 sm:$0xff]   ;;  %v15854_v41 = vld [vmem:[#allocation2 + $0xdcc] ss:$16 sps:$4 sm:$0xff]  }
 0x420   :  { %10928 = vmatpush1.bf16.msra.mxu0 %v15822_v42  ;;  %v15857_v42 = vld [vmem:[#allocation2 + $0xfcc] ss:$16 sps:$4 sm:$0xff]  }
 0x421   :  { %10971 = vmatpush1.bf16.msra.mxu1 %v15825_v27  ;;  %10929 = vmatprep.subr.bf16.mxu0 %v15830_v9  ;;  %v15852_v27 = vld [vmem:[#allocation2 + $0xdc8] ss:$16 sps:$4 sm:$0xff]  }
 0x422   :  { %10972 = vmatprep.subr.bf16.mxu1 %v15833_v61  ;;  %v15855_v9 = vld [vmem:[#allocation2 + $0xfc8] ss:$16 sps:$4 sm:$0xff]   ;;  %v15860_v61 = vld [vmem:[#allocation2 + $0xdac] ss:$16 sps:$4 sm:$0xff]  }
 0x424   :  { %10930 = vmatpush1.bf16.msra.mxu0 %v15828_v20  ;;  %v15863_v20 = vld [vmem:[#allocation2 + $0xfac] ss:$16 sps:$4 sm:$0xff]  }
 0x425   :  { %10973 = vmatpush1.bf16.msra.mxu1 %v15831_v48  ;;  %10931 = vmatprep.subr.bf16.mxu0 %v15836_v49  ;;  %v15858_v48 = vld [vmem:[#allocation2 + $0xda8] ss:$16 sps:$4 sm:$0xff]  }
 0x426   :  { %10974 = vmatprep.subr.bf16.mxu1 %v15839_v8  ;;  %v15861_v49 = vld [vmem:[#allocation2 + $0xfa8] ss:$16 sps:$4 sm:$0xff]   ;;  %v15866_v8 = vld [vmem:[#allocation2 + $0xd8c] ss:$16 sps:$4 sm:$0xff]  }
 0x428   :  { %10932 = vmatpush1.bf16.msra.mxu0 %v15834_v21  ;;  %v15869_v21 = vld [vmem:[#allocation2 + $0xf8c] ss:$16 sps:$4 sm:$0xff]  }
 0x429   :  { %10975 = vmatpush1.bf16.msra.mxu1 %v15837_v52  ;;  %10933 = vmatprep.subr.bf16.mxu0 %v15842_v22  ;;  %v15864_v52 = vld [vmem:[#allocation2 + $0xd88] ss:$16 sps:$4 sm:$0xff]  }
 0x42a   :  { %10976 = vmatprep.subr.bf16.mxu1 %v15845_v53  ;;  %v15867_v22 = vld [vmem:[#allocation2 + $0xf88] ss:$16 sps:$4 sm:$0xff]   ;;  %v15872_v53 = vld [vmem:[#allocation2 + $0xd6c] ss:$16 sps:$4 sm:$0xff]  }
 0x42c   :  { %10934 = vmatpush1.bf16.msra.mxu0 %v15840_v33  ;;  %v15875_v33 = vld [vmem:[#allocation2 + $0xf6c] ss:$16 sps:$4 sm:$0xff]  }
 0x42d   :  { %10977 = vmatpush1.bf16.msra.mxu1 %v15843_v35  ;;  %10935 = vmatprep.subr.bf16.mxu0 %v15848_v12  ;;  %v15870_v35 = vld [vmem:[#allocation2 + $0xd68] ss:$16 sps:$4 sm:$0xff]  }
 0x42e   :  { %10978 = vmatprep.subr.bf16.mxu1 %v15851_v28  ;;  %v15873_v12 = vld [vmem:[#allocation2 + $0xf68] ss:$16 sps:$4 sm:$0xff]   ;;  %v15878_v28 = vld [vmem:[#allocation2 + $0xd4c] ss:$16 sps:$4 sm:$0xff]  }
 0x430   :  { %10936 = vmatpush2.bf16.msra.mxu0 %v15846_v30  ;;  %v15881_v30 = vld [vmem:[#allocation2 + $0xf4c] ss:$16 sps:$4 sm:$0xff]  }
 0x431   :  { %10979 = vmatpush2.bf16.msra.mxu1 %v15849_v29  ;;  %10937 = vmatprep.subr.bf16.mxu0 %v15854_v41  ;;  %v15876_v29 = vld [vmem:[#allocation2 + $0xd48] ss:$16 sps:$4 sm:$0xff]  }
 0x432   :  { %10980 = vmatprep.subr.bf16.mxu1 %v15857_v42  ;;  %v15879_v41 = vld [vmem:[#allocation2 + $0xf48] ss:$16 sps:$4 sm:$0xff]   ;;  %v15884_v42 = vld [vmem:[#allocation2 + $0xd2c] ss:$16 sps:$4 sm:$0xff]  }
 0x434   :  { %10938 = vmatpush2.bf16.msra.mxu0 %v15852_v27  ;;  %v15887_v27 = vld [vmem:[#allocation2 + $0xf2c] ss:$16 sps:$4 sm:$0xff]  }
 0x435   :  { %10981 = vmatpush2.bf16.msra.mxu1 %v15855_v9  ;;  %10939 = vmatprep.subr.bf16.mxu0 %v15860_v61  ;;  %v15882_v9 = vld [vmem:[#allocation2 + $0xd28] ss:$16 sps:$4 sm:$0xff]  }
 0x436   :  { %10982 = vmatprep.subr.bf16.mxu1 %v15863_v20  ;;  %v15885_v61 = vld [vmem:[#allocation2 + $0xf28] ss:$16 sps:$4 sm:$0xff]   ;;  %v15890_v20 = vld [vmem:[#allocation2 + $0xd0c] ss:$16 sps:$4 sm:$0xff]  }
 0x438   :  { %10940 = vmatpush2.bf16.msra.mxu0 %v15858_v48  ;;  %v15893_v48 = vld [vmem:[#allocation2 + $0xf0c] ss:$16 sps:$4 sm:$0xff]  }
 0x439   :  { %10983 = vmatpush2.bf16.msra.mxu1 %v15861_v49  ;;  %10941 = vmatprep.subr.bf16.mxu0 %v15866_v8  ;;  %v15888_v49 = vld [vmem:[#allocation2 + $0xd08] ss:$16 sps:$4 sm:$0xff]  }
 0x43a   :  { %10984 = vmatprep.subr.bf16.mxu1 %v15869_v21  ;;  %v15891_v8 = vld [vmem:[#allocation2 + $0xf08] ss:$16 sps:$4 sm:$0xff]   ;;  %v15896_v21 = vld [vmem:[#allocation2 + $0x10ec] ss:$16 sps:$4 sm:$0xff]  }
 0x43c   :  { %10942 = vmatpush2.bf16.msra.mxu0 %v15864_v52  ;;  %v15899_v52 = vld [vmem:[#allocation2 + $0x12ec] ss:$16 sps:$4 sm:$0xff]  }
 0x43d   :  { %10985 = vmatpush2.bf16.msra.mxu1 %v15867_v22  ;;  %10943 = vmatprep.subr.bf16.mxu0 %v15872_v53  ;;  %v15894_v22 = vld [vmem:[#allocation2 + $0x10e8] ss:$16 sps:$4 sm:$0xff]  }
 0x43e   :  { %10986 = vmatprep.subr.bf16.mxu1 %v15875_v33  ;;  %v15897_v53 = vld [vmem:[#allocation2 + $0x12e8] ss:$16 sps:$4 sm:$0xff]   ;;  %v15902_v33 = vld [vmem:[#allocation2 + $0x10cc] ss:$16 sps:$4 sm:$0xff]  }
 0x440   :  { %10944 = vmatpush2.bf16.msra.mxu0 %v15870_v35  ;;  %v15905_v35 = vld [vmem:[#allocation2 + $0x12cc] ss:$16 sps:$4 sm:$0xff]  }
 0x441   :  { %10987 = vmatpush2.bf16.msra.mxu1 %v15873_v12  ;;  %10945 = vmatprep.subr.bf16.mxu0 %v15878_v28  ;;  %v15900_v12 = vld [vmem:[#allocation2 + $0x10c8] ss:$16 sps:$4 sm:$0xff]  }
 0x442   :  { %10988 = vmatprep.subr.bf16.mxu1 %v15881_v30  ;;  %v15903_v28 = vld [vmem:[#allocation2 + $0x12c8] ss:$16 sps:$4 sm:$0xff]   ;;  %v15908_v30 = vld [vmem:[#allocation2 + $0x10ac] ss:$16 sps:$4 sm:$0xff]  }
 0x444   :  { %10946 = vmatpush2.bf16.msra.mxu0 %v15876_v29  ;;  %v15911_v29 = vld [vmem:[#allocation2 + $0x12ac] ss:$16 sps:$4 sm:$0xff]  }
 0x445   :  { %10989 = vmatpush2.bf16.msra.mxu1 %v15879_v41  ;;  %10947 = vmatprep.subr.bf16.mxu0 %v15884_v42  ;;  %v15906_v41 = vld [vmem:[#allocation2 + $0x10a8] ss:$16 sps:$4 sm:$0xff]  }
 0x446   :  { %10990 = vmatprep.subr.bf16.mxu1 %v15887_v27  ;;  %v15909_v42 = vld [vmem:[#allocation2 + $0x12a8] ss:$16 sps:$4 sm:$0xff]  }
 0x447   :  { %v15912_v27 = vld [vmem:[#allocation2 + $0x1088] ss:$16 sps:$4 sm:$0xff]  }
 0x448   :  { %10948 = vmatpush2.bf16.msra.mxu0 %v15882_v9  ;;  %v15915_v9 = vld [vmem:[#allocation2 + $0x1288] ss:$16 sps:$4 sm:$0xff]  }
 0x449   :  { %10991 = vmatpush2.bf16.msra.mxu1 %v15885_v61  ;;  %10949 = vmatprep.subr.bf16.mxu0 %v15890_v20  ;;  %v15920_v61 = vld [vmem:[#allocation2 + $0x106c] ss:$16 sps:$4 sm:$0xff]  }
 0x44a   :  { %10992 = vmatprep.subr.bf16.mxu1 %v15893_v48  ;;  %v15923_v20 = vld [vmem:[#allocation2 + $0x126c] ss:$16 sps:$4 sm:$0xff]  }
 0x44b   :  { %v15926_v48 = vld [vmem:[#allocation2 + $0x104c] ss:$16 sps:$4 sm:$0xff]  }
 0x44c   :  { %10950 = vmatpush2.bf16.msra.mxu0 %v15888_v49  ;;  %v15929_v49 = vld [vmem:[#allocation2 + $0x124c] ss:$16 sps:$4 sm:$0xff]  }
 0x44d   :  { %10993 = vmatpush2.bf16.msra.mxu1 %v15891_v8  ;;  %11005 = vmatprep.subr.bf16.mxu0 %v15896_v21  ;;  %v15924_v8 = vld [vmem:[#allocation2 + $0x1048] ss:$16 sps:$4 sm:$0xff]  }
 0x44e   :  { %11048 = vmatprep.subr.bf16.mxu1 %v15899_v52  ;;  %v15927_v21 = vld [vmem:[#allocation2 + $0x1248] ss:$16 sps:$4 sm:$0xff]   ;;  %v15932_v52 = vld [vmem:[#allocation2 + $0x102c] ss:$16 sps:$4 sm:$0xff]  }
 0x44f   :  { %10952 = vmatmul.mubr.bf16.vlgmr.msra.gmra.mxu0 %v17177_v14  ;;  %v15914_v14 = vld [vmem:[#allocation2 + $0x108c] ss:$16 sps:$4 sm:$0xff]  }
 0x450   :  { %10995 = vmatmul.mubr.bf16.vlgmr.msra.gmra.mxu1 %v17181_v15  ;;  %11006 = vmatpush1.bf16.msra.mxu0 %v15894_v22  ;;  %v15917_v15 = vld [vmem:[#allocation2 + $0x128c] ss:$16 sps:$4 sm:$0xff]  }
 0x451   :  { %11049 = vmatpush1.bf16.msra.mxu1 %v15897_v53  ;;  %11007 = vmatprep.subr.bf16.mxu0 %v15902_v33  ;;  %v15935_v22 = vld [vmem:[#allocation2 + $0x122c] ss:$16 sps:$4 sm:$0xff]   ;;  %v15930_v53 = vld [vmem:[#allocation2 + $0x1028] ss:$16 sps:$4 sm:$0xff]  }
 0x452   :  { %11050 = vmatprep.subr.bf16.mxu1 %v15905_v35  ;;  %11037 = vmatprep.mubr.bf16.mxu0 %v17191_v44  ;;  %v15918_v44 = vld [vmem:[#allocation2 + $0x1068] ss:$16 sps:$4 sm:$0xff]   ;;  %v15938_v35 = vld [vmem:[#allocation2 + $0x100c] ss:$16 sps:$4 sm:$0xff]  }
 0x453   :  { %11080 = vmatprep.mubr.bf16.mxu1 %v17195_v46  ;;  %v15921_v46 = vld [vmem:[#allocation2 + $0x1268] ss:$16 sps:$4 sm:$0xff]  }
 0x454   :  { %11008 = vmatpush1.bf16.msra.mxu0 %v15900_v12  ;;  %v15933_v33 = vld [vmem:[#allocation2 + $0x1228] ss:$16 sps:$4 sm:$0xff]   ;;  %v15941_v12 = vld [vmem:[#allocation2 + $0x120c] ss:$16 sps:$4 sm:$0xff]  }
 0x455   :  { %11051 = vmatpush1.bf16.msra.mxu1 %v15903_v28  ;;  %11009 = vmatprep.subr.bf16.mxu0 %v15908_v30  ;;  %v15936_v28 = vld [vmem:[#allocation2 + $0x1008] ss:$16 sps:$4 sm:$0xff]  }
 0x456   :  { %11052 = vmatprep.subr.bf16.mxu1 %v15911_v29  ;;  %v15939_v30 = vld [vmem:[#allocation2 + $0x1208] ss:$16 sps:$4 sm:$0xff]   ;;  %v15944_v29 = vld [vmem:[#allocation2 + $0x11ec] ss:$16 sps:$4 sm:$0xff]  }
 0x458   :  { %11010 = vmatpush1.bf16.msra.mxu0 %v15906_v41  ;;  %v15947_v41 = vld [vmem:[#allocation2 + $0x13ec] ss:$16 sps:$4 sm:$0xff]  }
 0x459   :  { %11053 = vmatpush1.bf16.msra.mxu1 %v15909_v42  ;;  %11011 = vmatprep.subr.bf16.mxu0 %v15914_v14  ;;  %v15942_v42 = vld [vmem:[#allocation2 + $0x11e8] ss:$16 sps:$4 sm:$0xff]  }
 0x45a   :  { %11054 = vmatprep.subr.bf16.mxu1 %v15917_v15  ;;  %v15945_v14 = vld [vmem:[#allocation2 + $0x13e8] ss:$16 sps:$4 sm:$0xff]   ;;  %v15950_v15 = vld [vmem:[#allocation2 + $0x11cc] ss:$16 sps:$4 sm:$0xff]  }
 0x45c   :  { %11012 = vmatpush1.bf16.msra.mxu0 %v15912_v27  ;;  %v15953_v27 = vld [vmem:[#allocation2 + $0x13cc] ss:$16 sps:$4 sm:$0xff]  }
 0x45d   :  { %11055 = vmatpush1.bf16.msra.mxu1 %v15915_v9  ;;  %11013 = vmatprep.subr.bf16.mxu0 %v15920_v61  ;;  %v15948_v9 = vld [vmem:[#allocation2 + $0x11c8] ss:$16 sps:$4 sm:$0xff]  }
 0x45e   :  { %11056 = vmatprep.subr.bf16.mxu1 %v15923_v20  ;;  %v15951_v61 = vld [vmem:[#allocation2 + $0x13c8] ss:$16 sps:$4 sm:$0xff]   ;;  %v15956_v20 = vld [vmem:[#allocation2 + $0x11ac] ss:$16 sps:$4 sm:$0xff]  }
 0x460   :  { %11014 = vmatpush1.bf16.msra.mxu0 %v15918_v44  ;;  %v15959_v44 = vld [vmem:[#allocation2 + $0x13ac] ss:$16 sps:$4 sm:$0xff]  }
 0x461   :  { %11057 = vmatpush1.bf16.msra.mxu1 %v15921_v46  ;;  %11015 = vmatprep.subr.bf16.mxu0 %v15926_v48  ;;  %v15954_v46 = vld [vmem:[#allocation2 + $0x11a8] ss:$16 sps:$4 sm:$0xff]  }
 0x462   :  { %11058 = vmatprep.subr.bf16.mxu1 %v15929_v49  ;;  %v15957_v48 = vld [vmem:[#allocation2 + $0x13a8] ss:$16 sps:$4 sm:$0xff]   ;;  %v15962_v49 = vld [vmem:[#allocation2 + $0x118c] ss:$16 sps:$4 sm:$0xff]  }
 0x464   :  { %11016 = vmatpush1.bf16.msra.mxu0 %v15924_v8  ;;  %v15965_v8 = vld [vmem:[#allocation2 + $0x138c] ss:$16 sps:$4 sm:$0xff]  }
 0x465   :  { %11059 = vmatpush1.bf16.msra.mxu1 %v15927_v21  ;;  %11017 = vmatprep.subr.bf16.mxu0 %v15932_v52  ;;  %v15960_v21 = vld [vmem:[#allocation2 + $0x1188] ss:$16 sps:$4 sm:$0xff]  }
 0x466   :  { %11060 = vmatprep.subr.bf16.mxu1 %v15935_v22  ;;  %v15963_v52 = vld [vmem:[#allocation2 + $0x1388] ss:$16 sps:$4 sm:$0xff]   ;;  %v15968_v22 = vld [vmem:[#allocation2 + $0x116c] ss:$16 sps:$4 sm:$0xff]  }
 0x468   :  { %11018 = vmatpush1.bf16.msra.mxu0 %v15930_v53  ;;  %v15971_v53 = vld [vmem:[#allocation2 + $0x136c] ss:$16 sps:$4 sm:$0xff]  }
 0x469   :  { %11061 = vmatpush1.bf16.msra.mxu1 %v15933_v33  ;;  %11019 = vmatprep.subr.bf16.mxu0 %v15938_v35  ;;  %v15966_v33 = vld [vmem:[#allocation2 + $0x1168] ss:$16 sps:$4 sm:$0xff]  }
 0x46a   :  { %11062 = vmatprep.subr.bf16.mxu1 %v15941_v12  ;;  %v15969_v35 = vld [vmem:[#allocation2 + $0x1368] ss:$16 sps:$4 sm:$0xff]   ;;  %v15974_v12 = vld [vmem:[#allocation2 + $0x114c] ss:$16 sps:$4 sm:$0xff]  }
 0x46c   :  { %11020 = vmatpush1.bf16.msra.mxu0 %v15936_v28  ;;  %v15977_v28 = vld [vmem:[#allocation2 + $0x134c] ss:$16 sps:$4 sm:$0xff]  }
 0x46d   :  { %11063 = vmatpush1.bf16.msra.mxu1 %v15939_v30  ;;  %11021 = vmatprep.subr.bf16.mxu0 %v15944_v29  ;;  %v15972_v30 = vld [vmem:[#allocation2 + $0x1148] ss:$16 sps:$4 sm:$0xff]  }
 0x46e   :  { %11064 = vmatprep.subr.bf16.mxu1 %v15947_v41  ;;  %v15975_v29 = vld [vmem:[#allocation2 + $0x1348] ss:$16 sps:$4 sm:$0xff]   ;;  %v15980_v41 = vld [vmem:[#allocation2 + $0x112c] ss:$16 sps:$4 sm:$0xff]  }
 0x470   :  { %11022 = vmatpush2.bf16.msra.mxu0 %v15942_v42  ;;  %v15983_v42 = vld [vmem:[#allocation2 + $0x132c] ss:$16 sps:$4 sm:$0xff]  }
 0x471   :  { %11065 = vmatpush2.bf16.msra.mxu1 %v15945_v14  ;;  %11023 = vmatprep.subr.bf16.mxu0 %v15950_v15  ;;  %v15978_v14 = vld [vmem:[#allocation2 + $0x1128] ss:$16 sps:$4 sm:$0xff]  }
 0x472   :  { %11066 = vmatprep.subr.bf16.mxu1 %v15953_v27  ;;  %v15981_v15 = vld [vmem:[#allocation2 + $0x1328] ss:$16 sps:$4 sm:$0xff]   ;;  %v15986_v27 = vld [vmem:[#allocation2 + $0x110c] ss:$16 sps:$4 sm:$0xff]  }
 0x474   :  { %11024 = vmatpush2.bf16.msra.mxu0 %v15948_v9  ;;  %v15989_v9 = vld [vmem:[#allocation2 + $0x130c] ss:$16 sps:$4 sm:$0xff]  }
 0x475   :  { %11067 = vmatpush2.bf16.msra.mxu1 %v15951_v61  ;;  %11025 = vmatprep.subr.bf16.mxu0 %v15956_v20  ;;  %v15984_v61 = vld [vmem:[#allocation2 + $0x1108] ss:$16 sps:$4 sm:$0xff]  }
 0x476   :  { %11068 = vmatprep.subr.bf16.mxu1 %v15959_v44  ;;  %v15987_v20 = vld [vmem:[#allocation2 + $0x1308] ss:$16 sps:$4 sm:$0xff]   ;;  %v15992_v44 = vld [vmem:[#allocation2 + $0x14ec] ss:$16 sps:$4 sm:$0xff]  }
 0x478   :  { %11026 = vmatpush2.bf16.msra.mxu0 %v15954_v46  ;;  %v15995_v46 = vld [vmem:[#allocation2 + $0x16ec] ss:$16 sps:$4 sm:$0xff]  }
 0x479   :  { %11069 = vmatpush2.bf16.msra.mxu1 %v15957_v48  ;;  %11027 = vmatprep.subr.bf16.mxu0 %v15962_v49  ;;  %v15990_v48 = vld [vmem:[#allocation2 + $0x14e8] ss:$16 sps:$4 sm:$0xff]  }
 0x47a   :  { %11070 = vmatprep.subr.bf16.mxu1 %v15965_v8  ;;  %v15993_v49 = vld [vmem:[#allocation2 + $0x16e8] ss:$16 sps:$4 sm:$0xff]   ;;  %v15998_v8 = vld [vmem:[#allocation2 + $0x14cc] ss:$16 sps:$4 sm:$0xff]  }
 0x47c   :  { %11028 = vmatpush2.bf16.msra.mxu0 %v15960_v21  ;;  %v16001_v21 = vld [vmem:[#allocation2 + $0x16cc] ss:$16 sps:$4 sm:$0xff]  }
 0x47d   :  { %11071 = vmatpush2.bf16.msra.mxu1 %v15963_v52  ;;  %11029 = vmatprep.subr.bf16.mxu0 %v15968_v22  ;;  %v15996_v52 = vld [vmem:[#allocation2 + $0x14c8] ss:$16 sps:$4 sm:$0xff]  }
 0x47e   :  { %11072 = vmatprep.subr.bf16.mxu1 %v15971_v53  ;;  %v15999_v22 = vld [vmem:[#allocation2 + $0x16c8] ss:$16 sps:$4 sm:$0xff]   ;;  %v16004_v53 = vld [vmem:[#allocation2 + $0x14ac] ss:$16 sps:$4 sm:$0xff]  }
 0x480   :  { %11030 = vmatpush2.bf16.msra.mxu0 %v15966_v33  ;;  %v16007_v33 = vld [vmem:[#allocation2 + $0x16ac] ss:$16 sps:$4 sm:$0xff]  }
 0x481   :  { %11073 = vmatpush2.bf16.msra.mxu1 %v15969_v35  ;;  %11031 = vmatprep.subr.bf16.mxu0 %v15974_v12  ;;  %v16002_v35 = vld [vmem:[#allocation2 + $0x14a8] ss:$16 sps:$4 sm:$0xff]  }
 0x482   :  { %11074 = vmatprep.subr.bf16.mxu1 %v15977_v28  ;;  %v16005_v12 = vld [vmem:[#allocation2 + $0x16a8] ss:$16 sps:$4 sm:$0xff]  }
 0x483   :  { %v16008_v28 = vld [vmem:[#allocation2 + $0x1488] ss:$16 sps:$4 sm:$0xff]  }
 0x484   :  { %11032 = vmatpush2.bf16.msra.mxu0 %v15972_v30  ;;  %v16011_v30 = vld [vmem:[#allocation2 + $0x1688] ss:$16 sps:$4 sm:$0xff]  }
 0x485   :  { %11075 = vmatpush2.bf16.msra.mxu1 %v15975_v29  ;;  %11033 = vmatprep.subr.bf16.mxu0 %v15980_v41  ;;  %v16016_v29 = vld [vmem:[#allocation2 + $0x146c] ss:$16 sps:$4 sm:$0xff]  }
 0x486   :  { %11076 = vmatprep.subr.bf16.mxu1 %v15983_v42  ;;  %v16019_v41 = vld [vmem:[#allocation2 + $0x166c] ss:$16 sps:$4 sm:$0xff]  }
 0x487   :  { %v16022_v42 = vld [vmem:[#allocation2 + $0x144c] ss:$16 sps:$4 sm:$0xff]  }
 0x488   :  { %11034 = vmatpush2.bf16.msra.mxu0 %v15978_v14  ;;  %v16025_v14 = vld [vmem:[#allocation2 + $0x164c] ss:$16 sps:$4 sm:$0xff]  }
 0x489   :  { %11077 = vmatpush2.bf16.msra.mxu1 %v15981_v15  ;;  %11035 = vmatprep.subr.bf16.mxu0 %v15986_v27  ;;  %v16020_v15 = vld [vmem:[#allocation2 + $0x1448] ss:$16 sps:$4 sm:$0xff]  }
 0x48a   :  { %11078 = vmatprep.subr.bf16.mxu1 %v15989_v9  ;;  %v16023_v27 = vld [vmem:[#allocation2 + $0x1648] ss:$16 sps:$4 sm:$0xff]   ;;  %v16028_v9 = vld [vmem:[#allocation2 + $0x142c] ss:$16 sps:$4 sm:$0xff]  }
 0x48c   :  { %11036 = vmatpush2.bf16.msra.mxu0 %v15984_v61  ;;  %v16031_v61 = vld [vmem:[#allocation2 + $0x162c] ss:$16 sps:$4 sm:$0xff]  }
 0x48d   :  { %11079 = vmatpush2.bf16.msra.mxu1 %v15987_v20  ;;  %11091 = vmatprep.subr.bf16.mxu0 %v15992_v44  ;;  %v16026_v20 = vld [vmem:[#allocation2 + $0x1428] ss:$16 sps:$4 sm:$0xff]  }
 0x48e   :  { %11134 = vmatprep.subr.bf16.mxu1 %v15995_v46  ;;  %v16029_v44 = vld [vmem:[#allocation2 + $0x1628] ss:$16 sps:$4 sm:$0xff]   ;;  %v16034_v46 = vld [vmem:[#allocation2 + $0x140c] ss:$16 sps:$4 sm:$0xff]  }
 0x48f   :  { %11038 = vmatmul.mubr.bf16.vlgmr.msra.gmra.mxu0 %v17216_v17  ;;  %v16010_v17 = vld [vmem:[#allocation2 + $0x148c] ss:$16 sps:$4 sm:$0xff]  }
 0x490   :  { %11081 = vmatmul.mubr.bf16.vlgmr.msra.gmra.mxu1 %v17220_v18  ;;  %11092 = vmatpush1.bf16.msra.mxu0 %v15990_v48  ;;  %v16013_v18 = vld [vmem:[#allocation2 + $0x168c] ss:$16 sps:$4 sm:$0xff]  }
 0x491   :  { %11135 = vmatpush1.bf16.msra.mxu1 %v15993_v49  ;;  %11093 = vmatprep.subr.bf16.mxu0 %v15998_v8  ;;  %v16037_v48 = vld [vmem:[#allocation2 + $0x160c] ss:$16 sps:$4 sm:$0xff]   ;;  %v16032_v49 = vld [vmem:[#allocation2 + $0x1408] ss:$16 sps:$4 sm:$0xff]  }
 0x492   :  { %11136 = vmatprep.subr.bf16.mxu1 %v16001_v21  ;;  %11123 = vmatprep.mubr.bf16.mxu0 %v17243_v25  ;;  %v16014_v25 = vld [vmem:[#allocation2 + $0x1468] ss:$16 sps:$4 sm:$0xff]   ;;  %v16040_v21 = vld [vmem:[#allocation2 + $0x15ec] ss:$16 sps:$4 sm:$0xff]  }
 0x493   :  { %11166 = vmatprep.mubr.bf16.mxu1 %v17247_v32  ;;  %v16017_v32 = vld [vmem:[#allocation2 + $0x1668] ss:$16 sps:$4 sm:$0xff]  }
 0x494   :  { %11094 = vmatpush1.bf16.msra.mxu0 %v15996_v52  ;;  %v16035_v8 = vld [vmem:[#allocation2 + $0x1608] ss:$16 sps:$4 sm:$0xff]   ;;  %v16043_v52 = vld [vmem:[#allocation2 + $0x17ec] ss:$16 sps:$4 sm:$0xff]  }
 0x495   :  { %11137 = vmatpush1.bf16.msra.mxu1 %v15999_v22  ;;  %11095 = vmatprep.subr.bf16.mxu0 %v16004_v53  ;;  %v16038_v22 = vld [vmem:[#allocation2 + $0x15e8] ss:$16 sps:$4 sm:$0xff]  }
 0x496   :  { %11138 = vmatprep.subr.bf16.mxu1 %v16007_v33  ;;  %v16041_v53 = vld [vmem:[#allocation2 + $0x17e8] ss:$16 sps:$4 sm:$0xff]   ;;  %v16046_v33 = vld [vmem:[#allocation2 + $0x15cc] ss:$16 sps:$4 sm:$0xff]  }
 0x498   :  { %11096 = vmatpush1.bf16.msra.mxu0 %v16002_v35  ;;  %v16049_v35 = vld [vmem:[#allocation2 + $0x17cc] ss:$16 sps:$4 sm:$0xff]  }
 0x499   :  { %11139 = vmatpush1.bf16.msra.mxu1 %v16005_v12  ;;  %11097 = vmatprep.subr.bf16.mxu0 %v16010_v17  ;;  %v16044_v12 = vld [vmem:[#allocation2 + $0x15c8] ss:$16 sps:$4 sm:$0xff]  }
 0x49a   :  { %11140 = vmatprep.subr.bf16.mxu1 %v16013_v18  ;;  %v16047_v17 = vld [vmem:[#allocation2 + $0x17c8] ss:$16 sps:$4 sm:$0xff]   ;;  %v16052_v18 = vld [vmem:[#allocation2 + $0x15ac] ss:$16 sps:$4 sm:$0xff]  }
 0x49c   :  { %11098 = vmatpush1.bf16.msra.mxu0 %v16008_v28  ;;  %v16055_v28 = vld [vmem:[#allocation2 + $0x17ac] ss:$16 sps:$4 sm:$0xff]  }
 0x49d   :  { %11141 = vmatpush1.bf16.msra.mxu1 %v16011_v30  ;;  %11099 = vmatprep.subr.bf16.mxu0 %v16016_v29  ;;  %v16050_v30 = vld [vmem:[#allocation2 + $0x15a8] ss:$16 sps:$4 sm:$0xff]  }
 0x49e   :  { %11142 = vmatprep.subr.bf16.mxu1 %v16019_v41  ;;  %v16053_v29 = vld [vmem:[#allocation2 + $0x17a8] ss:$16 sps:$4 sm:$0xff]   ;;  %v16058_v41 = vld [vmem:[#allocation2 + $0x158c] ss:$16 sps:$4 sm:$0xff]  }
 0x4a0   :  { %11100 = vmatpush1.bf16.msra.mxu0 %v16014_v25  ;;  %v16061_v25 = vld [vmem:[#allocation2 + $0x178c] ss:$16 sps:$4 sm:$0xff]  }
 0x4a1   :  { %11143 = vmatpush1.bf16.msra.mxu1 %v16017_v32  ;;  %11101 = vmatprep.subr.bf16.mxu0 %v16022_v42  ;;  %v16056_v32 = vld [vmem:[#allocation2 + $0x1588] ss:$16 sps:$4 sm:$0xff]  }
 0x4a2   :  { %11144 = vmatprep.subr.bf16.mxu1 %v16025_v14  ;;  %v16059_v42 = vld [vmem:[#allocation2 + $0x1788] ss:$16 sps:$4 sm:$0xff]   ;;  %v16064_v14 = vld [vmem:[#allocation2 + $0x156c] ss:$16 sps:$4 sm:$0xff]  }
 0x4a4   :  { %11102 = vmatpush1.bf16.msra.mxu0 %v16020_v15  ;;  %v16067_v15 = vld [vmem:[#allocation2 + $0x176c] ss:$16 sps:$4 sm:$0xff]  }
 0x4a5   :  { %11145 = vmatpush1.bf16.msra.mxu1 %v16023_v27  ;;  %11103 = vmatprep.subr.bf16.mxu0 %v16028_v9  ;;  %v16062_v27 = vld [vmem:[#allocation2 + $0x1568] ss:$16 sps:$4 sm:$0xff]  }
 0x4a6   :  { %11146 = vmatprep.subr.bf16.mxu1 %v16031_v61  ;;  %v16065_v9 = vld [vmem:[#allocation2 + $0x1768] ss:$16 sps:$4 sm:$0xff]   ;;  %v16070_v61 = vld [vmem:[#allocation2 + $0x154c] ss:$16 sps:$4 sm:$0xff]  }
 0x4a8   :  { %11104 = vmatpush1.bf16.msra.mxu0 %v16026_v20  ;;  %v16073_v20 = vld [vmem:[#allocation2 + $0x174c] ss:$16 sps:$4 sm:$0xff]  }
 0x4a9   :  { %11147 = vmatpush1.bf16.msra.mxu1 %v16029_v44  ;;  %11105 = vmatprep.subr.bf16.mxu0 %v16034_v46  ;;  %v16068_v44 = vld [vmem:[#allocation2 + $0x1548] ss:$16 sps:$4 sm:$0xff]  }
 0x4aa   :  { %11148 = vmatprep.subr.bf16.mxu1 %v16037_v48  ;;  %v16071_v46 = vld [vmem:[#allocation2 + $0x1748] ss:$16 sps:$4 sm:$0xff]   ;;  %v16076_v48 = vld [vmem:[#allocation2 + $0x152c] ss:$16 sps:$4 sm:$0xff]  }
 0x4ac   :  { %11106 = vmatpush1.bf16.msra.mxu0 %v16032_v49  ;;  %v16079_v49 = vld [vmem:[#allocation2 + $0x172c] ss:$16 sps:$4 sm:$0xff]  }
 0x4ad   :  { %11149 = vmatpush1.bf16.msra.mxu1 %v16035_v8  ;;  %11107 = vmatprep.subr.bf16.mxu0 %v16040_v21  ;;  %v16074_v8 = vld [vmem:[#allocation2 + $0x1528] ss:$16 sps:$4 sm:$0xff]  }
 0x4ae   :  { %11150 = vmatprep.subr.bf16.mxu1 %v16043_v52  ;;  %v16077_v21 = vld [vmem:[#allocation2 + $0x1728] ss:$16 sps:$4 sm:$0xff]   ;;  %v16082_v52 = vld [vmem:[#allocation2 + $0x150c] ss:$16 sps:$4 sm:$0xff]  }
 0x4b0   :  { %11108 = vmatpush2.bf16.msra.mxu0 %v16038_v22  ;;  %v16085_v22 = vld [vmem:[#allocation2 + $0x170c] ss:$16 sps:$4 sm:$0xff]  }
 0x4b1   :  { %11151 = vmatpush2.bf16.msra.mxu1 %v16041_v53  ;;  %11109 = vmatprep.subr.bf16.mxu0 %v16046_v33  ;;  %v16080_v53 = vld [vmem:[#allocation2 + $0x1508] ss:$16 sps:$4 sm:$0xff]  }
 0x4b2   :  { %11152 = vmatprep.subr.bf16.mxu1 %v16049_v35  ;;  %v16083_v33 = vld [vmem:[#allocation2 + $0x1708] ss:$16 sps:$4 sm:$0xff]   ;;  %v16088_v35 = vld [vmem:[#allocation2 + $0x18ec] ss:$16 sps:$4 sm:$0xff]  }
 0x4b4   :  { %11110 = vmatpush2.bf16.msra.mxu0 %v16044_v12  ;;  %v16091_v12 = vld [vmem:[#allocation2 + $0x1aec] ss:$16 sps:$4 sm:$0xff]  }
 0x4b5   :  { %11153 = vmatpush2.bf16.msra.mxu1 %v16047_v17  ;;  %11111 = vmatprep.subr.bf16.mxu0 %v16052_v18  ;;  %v16086_v17 = vld [vmem:[#allocation2 + $0x18e8] ss:$16 sps:$4 sm:$0xff]  }
 0x4b6   :  { %11154 = vmatprep.subr.bf16.mxu1 %v16055_v28  ;;  %v16089_v18 = vld [vmem:[#allocation2 + $0x1ae8] ss:$16 sps:$4 sm:$0xff]   ;;  %v16094_v28 = vld [vmem:[#allocation2 + $0x18cc] ss:$16 sps:$4 sm:$0xff]  }
 0x4b8   :  { %11112 = vmatpush2.bf16.msra.mxu0 %v16050_v30  ;;  %v16097_v30 = vld [vmem:[#allocation2 + $0x1acc] ss:$16 sps:$4 sm:$0xff]  }
 0x4b9   :  { %11155 = vmatpush2.bf16.msra.mxu1 %v16053_v29  ;;  %11113 = vmatprep.subr.bf16.mxu0 %v16058_v41  ;;  %v16092_v29 = vld [vmem:[#allocation2 + $0x18c8] ss:$16 sps:$4 sm:$0xff]  }
 0x4ba   :  { %11156 = vmatprep.subr.bf16.mxu1 %v16061_v25  ;;  %v16095_v41 = vld [vmem:[#allocation2 + $0x1ac8] ss:$16 sps:$4 sm:$0xff]   ;;  %v16100_v25 = vld [vmem:[#allocation2 + $0x18ac] ss:$16 sps:$4 sm:$0xff]  }
 0x4bc   :  { %11114 = vmatpush2.bf16.msra.mxu0 %v16056_v32  ;;  %v16103_v32 = vld [vmem:[#allocation2 + $0x1aac] ss:$16 sps:$4 sm:$0xff]  }
 0x4bd   :  { %11157 = vmatpush2.bf16.msra.mxu1 %v16059_v42  ;;  %11115 = vmatprep.subr.bf16.mxu0 %v16064_v14  ;;  %v16098_v42 = vld [vmem:[#allocation2 + $0x18a8] ss:$16 sps:$4 sm:$0xff]  }
 0x4be   :  { %11158 = vmatprep.subr.bf16.mxu1 %v16067_v15  ;;  %v16101_v14 = vld [vmem:[#allocation2 + $0x1aa8] ss:$16 sps:$4 sm:$0xff]  }
 0x4bf   :  { %v16104_v15 = vld [vmem:[#allocation2 + $0x1888] ss:$16 sps:$4 sm:$0xff]  }
 0x4c0   :  { %11116 = vmatpush2.bf16.msra.mxu0 %v16062_v27  ;;  %v16107_v27 = vld [vmem:[#allocation2 + $0x1a88] ss:$16 sps:$4 sm:$0xff]  }
 0x4c1   :  { %11159 = vmatpush2.bf16.msra.mxu1 %v16065_v9  ;;  %11117 = vmatprep.subr.bf16.mxu0 %v16070_v61  ;;  %v16112_v9 = vld [vmem:[#allocation2 + $0x186c] ss:$16 sps:$4 sm:$0xff]  }
 0x4c2   :  { %11160 = vmatprep.subr.bf16.mxu1 %v16073_v20  ;;  %v16115_v61 = vld [vmem:[#allocation2 + $0x1a6c] ss:$16 sps:$4 sm:$0xff]  }
 0x4c3   :  { %v16118_v20 = vld [vmem:[#allocation2 + $0x184c] ss:$16 sps:$4 sm:$0xff]  }
 0x4c4   :  { %11118 = vmatpush2.bf16.msra.mxu0 %v16068_v44  ;;  %v16121_v44 = vld [vmem:[#allocation2 + $0x1a4c] ss:$16 sps:$4 sm:$0xff]  }
 0x4c5   :  { %11161 = vmatpush2.bf16.msra.mxu1 %v16071_v46  ;;  %11119 = vmatprep.subr.bf16.mxu0 %v16076_v48  ;;  %v16116_v46 = vld [vmem:[#allocation2 + $0x1848] ss:$16 sps:$4 sm:$0xff]  }
 0x4c6   :  { %11162 = vmatprep.subr.bf16.mxu1 %v16079_v49  ;;  %v16119_v48 = vld [vmem:[#allocation2 + $0x1a48] ss:$16 sps:$4 sm:$0xff]   ;;  %v16124_v49 = vld [vmem:[#allocation2 + $0x182c] ss:$16 sps:$4 sm:$0xff]  }
 0x4c8   :  { %11120 = vmatpush2.bf16.msra.mxu0 %v16074_v8  ;;  %v16127_v8 = vld [vmem:[#allocation2 + $0x1a2c] ss:$16 sps:$4 sm:$0xff]  }
 0x4c9   :  { %11163 = vmatpush2.bf16.msra.mxu1 %v16077_v21  ;;  %11121 = vmatprep.subr.bf16.mxu0 %v16082_v52  ;;  %v16122_v21 = vld [vmem:[#allocation2 + $0x1828] ss:$16 sps:$4 sm:$0xff]  }
 0x4ca   :  { %11164 = vmatprep.subr.bf16.mxu1 %v16085_v22  ;;  %v16125_v52 = vld [vmem:[#allocation2 + $0x1a28] ss:$16 sps:$4 sm:$0xff]   ;;  %v16130_v22 = vld [vmem:[#allocation2 + $0x180c] ss:$16 sps:$4 sm:$0xff]  }
 0x4cc   :  { %11122 = vmatpush2.bf16.msra.mxu0 %v16080_v53  ;;  %v16133_v53 = vld [vmem:[#allocation2 + $0x1a0c] ss:$16 sps:$4 sm:$0xff]  }
 0x4cd   :  { %11165 = vmatpush2.bf16.msra.mxu1 %v16083_v33  ;;  %11177 = vmatprep.subr.bf16.mxu0 %v16088_v35  ;;  %v16128_v33 = vld [vmem:[#allocation2 + $0x1808] ss:$16 sps:$4 sm:$0xff]  }
 0x4ce   :  { %11220 = vmatprep.subr.bf16.mxu1 %v16091_v12  ;;  %v16131_v35 = vld [vmem:[#allocation2 + $0x1a08] ss:$16 sps:$4 sm:$0xff]   ;;  %v16136_v12 = vld [vmem:[#allocation2 + $0x19ec] ss:$16 sps:$4 sm:$0xff]  }
 0x4cf   :  { %11124 = vmatmul.mubr.bf16.vlgmr.msra.gmra.mxu0 %v17270_v57  ;;  %v16106_v57 = vld [vmem:[#allocation2 + $0x188c] ss:$16 sps:$4 sm:$0xff]  }
 0x4d0   :  { %11167 = vmatmul.mubr.bf16.vlgmr.msra.gmra.mxu1 %v17274_v58  ;;  %11178 = vmatpush1.bf16.msra.mxu0 %v16086_v17  ;;  %v16109_v58 = vld [vmem:[#allocation2 + $0x1a8c] ss:$16 sps:$4 sm:$0xff]  }
 0x4d1   :  { %11221 = vmatpush1.bf16.msra.mxu1 %v16089_v18  ;;  %11179 = vmatprep.subr.bf16.mxu0 %v16094_v28  ;;  %v16139_v17 = vld [vmem:[#allocation2 + $0x1bec] ss:$16 sps:$4 sm:$0xff]   ;;  %v16134_v18 = vld [vmem:[#allocation2 + $0x19e8] ss:$16 sps:$4 sm:$0xff]  }
 0x4d2   :  { %11222 = vmatprep.subr.bf16.mxu1 %v16097_v30  ;;  %11209 = vmatprep.mubr.bf16.mxu0 %v17297_v2  ;;  %v16110_v2 = vld [vmem:[#allocation2 + $0x1868] ss:$16 sps:$4 sm:$0xff]   ;;  %v16142_v30 = vld [vmem:[#allocation2 + $0x19cc] ss:$16 sps:$4 sm:$0xff]  }
 0x4d3   :  { %11252 = vmatprep.mubr.bf16.mxu1 %v17301_v3  ;;  %v16113_v3 = vld [vmem:[#allocation2 + $0x1a68] ss:$16 sps:$4 sm:$0xff]  }
 0x4d4   :  { %11180 = vmatpush1.bf16.msra.mxu0 %v16092_v29  ;;  %v16137_v28 = vld [vmem:[#allocation2 + $0x1be8] ss:$16 sps:$4 sm:$0xff]   ;;  %v16145_v29 = vld [vmem:[#allocation2 + $0x1bcc] ss:$16 sps:$4 sm:$0xff]  }
 0x4d5   :  { %11223 = vmatpush1.bf16.msra.mxu1 %v16095_v41  ;;  %11181 = vmatprep.subr.bf16.mxu0 %v16100_v25  ;;  %v16140_v41 = vld [vmem:[#allocation2 + $0x19c8] ss:$16 sps:$4 sm:$0xff]  }
 0x4d6   :  { %11224 = vmatprep.subr.bf16.mxu1 %v16103_v32  ;;  %v16143_v25 = vld [vmem:[#allocation2 + $0x1bc8] ss:$16 sps:$4 sm:$0xff]   ;;  %v16148_v32 = vld [vmem:[#allocation2 + $0x19ac] ss:$16 sps:$4 sm:$0xff]  }
 0x4d8   :  { %11182 = vmatpush1.bf16.msra.mxu0 %v16098_v42  ;;  %v16151_v42 = vld [vmem:[#allocation2 + $0x1bac] ss:$16 sps:$4 sm:$0xff]  }
 0x4d9   :  { %11225 = vmatpush1.bf16.msra.mxu1 %v16101_v14  ;;  %11183 = vmatprep.subr.bf16.mxu0 %v16106_v57  ;;  %v16146_v14 = vld [vmem:[#allocation2 + $0x19a8] ss:$16 sps:$4 sm:$0xff]  }
 0x4da   :  { %11226 = vmatprep.subr.bf16.mxu1 %v16109_v58  ;;  %v16149_v57 = vld [vmem:[#allocation2 + $0x1ba8] ss:$16 sps:$4 sm:$0xff]   ;;  %v16154_v58 = vld [vmem:[#allocation2 + $0x198c] ss:$16 sps:$4 sm:$0xff]  }
 0x4dc   :  { %11184 = vmatpush1.bf16.msra.mxu0 %v16104_v15  ;;  %v16157_v15 = vld [vmem:[#allocation2 + $0x1b8c] ss:$16 sps:$4 sm:$0xff]  }
 0x4dd   :  { %11227 = vmatpush1.bf16.msra.mxu1 %v16107_v27  ;;  %11185 = vmatprep.subr.bf16.mxu0 %v16112_v9  ;;  %v16152_v27 = vld [vmem:[#allocation2 + $0x1988] ss:$16 sps:$4 sm:$0xff]  }
 0x4de   :  { %11228 = vmatprep.subr.bf16.mxu1 %v16115_v61  ;;  %v16155_v9 = vld [vmem:[#allocation2 + $0x1b88] ss:$16 sps:$4 sm:$0xff]   ;;  %v16160_v61 = vld [vmem:[#allocation2 + $0x196c] ss:$16 sps:$4 sm:$0xff]  }
 0x4e0   :  { %11186 = vmatpush1.bf16.msra.mxu0 %v16110_v2  ;;  %v16163_v2 = vld [vmem:[#allocation2 + $0x1b6c] ss:$16 sps:$4 sm:$0xff]  }
 0x4e1   :  { %11229 = vmatpush1.bf16.msra.mxu1 %v16113_v3  ;;  %11187 = vmatprep.subr.bf16.mxu0 %v16118_v20  ;;  %v16158_v3 = vld [vmem:[#allocation2 + $0x1968] ss:$16 sps:$4 sm:$0xff]  }
 0x4e2   :  { %11230 = vmatprep.subr.bf16.mxu1 %v16121_v44  ;;  %v16161_v20 = vld [vmem:[#allocation2 + $0x1b68] ss:$16 sps:$4 sm:$0xff]   ;;  %v16166_v44 = vld [vmem:[#allocation2 + $0x194c] ss:$16 sps:$4 sm:$0xff]  }
 0x4e4   :  { %11188 = vmatpush1.bf16.msra.mxu0 %v16116_v46  ;;  %v16169_v46 = vld [vmem:[#allocation2 + $0x1b4c] ss:$16 sps:$4 sm:$0xff]  }
 0x4e5   :  { %11231 = vmatpush1.bf16.msra.mxu1 %v16119_v48  ;;  %11189 = vmatprep.subr.bf16.mxu0 %v16124_v49  ;;  %v16164_v48 = vld [vmem:[#allocation2 + $0x1948] ss:$16 sps:$4 sm:$0xff]  }
 0x4e6   :  { %11232 = vmatprep.subr.bf16.mxu1 %v16127_v8  ;;  %v16167_v49 = vld [vmem:[#allocation2 + $0x1b48] ss:$16 sps:$4 sm:$0xff]   ;;  %v16172_v8 = vld [vmem:[#allocation2 + $0x192c] ss:$16 sps:$4 sm:$0xff]  }
 0x4e8   :  { %11190 = vmatpush1.bf16.msra.mxu0 %v16122_v21  ;;  %v16175_v21 = vld [vmem:[#allocation2 + $0x1b2c] ss:$16 sps:$4 sm:$0xff]  }
 0x4e9   :  { %11233 = vmatpush1.bf16.msra.mxu1 %v16125_v52  ;;  %11191 = vmatprep.subr.bf16.mxu0 %v16130_v22  ;;  %v16170_v52 = vld [vmem:[#allocation2 + $0x1928] ss:$16 sps:$4 sm:$0xff]  }
 0x4ea   :  { %11234 = vmatprep.subr.bf16.mxu1 %v16133_v53  ;;  %v16173_v22 = vld [vmem:[#allocation2 + $0x1b28] ss:$16 sps:$4 sm:$0xff]   ;;  %v16178_v53 = vld [vmem:[#allocation2 + $0x190c] ss:$16 sps:$4 sm:$0xff]  }
 0x4ec   :  { %11192 = vmatpush1.bf16.msra.mxu0 %v16128_v33  ;;  %v16181_v33 = vld [vmem:[#allocation2 + $0x1b0c] ss:$16 sps:$4 sm:$0xff]  }
 0x4ed   :  { %11235 = vmatpush1.bf16.msra.mxu1 %v16131_v35  ;;  %11193 = vmatprep.subr.bf16.mxu0 %v16136_v12  ;;  %v16176_v35 = vld [vmem:[#allocation2 + $0x1908] ss:$16 sps:$4 sm:$0xff]  }
 0x4ee   :  { %11236 = vmatprep.subr.bf16.mxu1 %v16139_v17  ;;  %v16179_v12 = vld [vmem:[#allocation2 + $0x1b08] ss:$16 sps:$4 sm:$0xff]   ;;  %v16184_v17 = vld [vmem:[#allocation2 + $0x1cec] ss:$16 sps:$4 sm:$0xff]  }
 0x4f0   :  { %11194 = vmatpush2.bf16.msra.mxu0 %v16134_v18  ;;  %v16187_v18 = vld [vmem:[#allocation2 + $0x1eec] ss:$16 sps:$4 sm:$0xff]  }
 0x4f1   :  { %11237 = vmatpush2.bf16.msra.mxu1 %v16137_v28  ;;  %11195 = vmatprep.subr.bf16.mxu0 %v16142_v30  ;;  %v16182_v28 = vld [vmem:[#allocation2 + $0x1ce8] ss:$16 sps:$4 sm:$0xff]  }
 0x4f2   :  { %11238 = vmatprep.subr.bf16.mxu1 %v16145_v29  ;;  %v16185_v30 = vld [vmem:[#allocation2 + $0x1ee8] ss:$16 sps:$4 sm:$0xff]   ;;  %v16190_v29 = vld [vmem:[#allocation2 + $0x1ccc] ss:$16 sps:$4 sm:$0xff]  }
 0x4f4   :  { %11196 = vmatpush2.bf16.msra.mxu0 %v16140_v41  ;;  %v16193_v41 = vld [vmem:[#allocation2 + $0x1ecc] ss:$16 sps:$4 sm:$0xff]  }
 0x4f5   :  { %11239 = vmatpush2.bf16.msra.mxu1 %v16143_v25  ;;  %11197 = vmatprep.subr.bf16.mxu0 %v16148_v32  ;;  %v16188_v25 = vld [vmem:[#allocation2 + $0x1cc8] ss:$16 sps:$4 sm:$0xff]  }
 0x4f6   :  { %11240 = vmatprep.subr.bf16.mxu1 %v16151_v42  ;;  %v16191_v32 = vld [vmem:[#allocation2 + $0x1ec8] ss:$16 sps:$4 sm:$0xff]   ;;  %v16196_v42 = vld [vmem:[#allocation2 + $0x1cac] ss:$16 sps:$4 sm:$0xff]  }
 0x4f8   :  { %11198 = vmatpush2.bf16.msra.mxu0 %v16146_v14  ;;  %v16199_v14 = vld [vmem:[#allocation2 + $0x1eac] ss:$16 sps:$4 sm:$0xff]  }
 0x4f9   :  { %11241 = vmatpush2.bf16.msra.mxu1 %v16149_v57  ;;  %11199 = vmatprep.subr.bf16.mxu0 %v16154_v58  ;;  %v16194_v57 = vld [vmem:[#allocation2 + $0x1ca8] ss:$16 sps:$4 sm:$0xff]  }
 0x4fa   :  { %11242 = vmatprep.subr.bf16.mxu1 %v16157_v15  ;;  %v16197_v58 = vld [vmem:[#allocation2 + $0x1ea8] ss:$16 sps:$4 sm:$0xff]  }
 0x4fb   :  { %v16200_v15 = vld [vmem:[#allocation2 + $0x1c88] ss:$16 sps:$4 sm:$0xff]  }
 0x4fc   :  { %11200 = vmatpush2.bf16.msra.mxu0 %v16152_v27  ;;  %v16203_v27 = vld [vmem:[#allocation2 + $0x1e88] ss:$16 sps:$4 sm:$0xff]  }
 0x4fd   :  { %11243 = vmatpush2.bf16.msra.mxu1 %v16155_v9  ;;  %11201 = vmatprep.subr.bf16.mxu0 %v16160_v61  ;;  %v16208_v9 = vld [vmem:[#allocation2 + $0x1c6c] ss:$16 sps:$4 sm:$0xff]  }
 0x4fe   :  { %11244 = vmatprep.subr.bf16.mxu1 %v16163_v2  ;;  %v16211_v61 = vld [vmem:[#allocation2 + $0x1e6c] ss:$16 sps:$4 sm:$0xff]  }
 0x4ff   :  { %v16214_v2 = vld [vmem:[#allocation2 + $0x1c4c] ss:$16 sps:$4 sm:$0xff]  }
 0x500   :  { %11202 = vmatpush2.bf16.msra.mxu0 %v16158_v3  ;;  %v16217_v3 = vld [vmem:[#allocation2 + $0x1e4c] ss:$16 sps:$4 sm:$0xff]  }
 0x501   :  { %11245 = vmatpush2.bf16.msra.mxu1 %v16161_v20  ;;  %11203 = vmatprep.subr.bf16.mxu0 %v16166_v44  ;;  %v16212_v20 = vld [vmem:[#allocation2 + $0x1c48] ss:$16 sps:$4 sm:$0xff]  }
 0x502   :  { %11246 = vmatprep.subr.bf16.mxu1 %v16169_v46  ;;  %v16215_v44 = vld [vmem:[#allocation2 + $0x1e48] ss:$16 sps:$4 sm:$0xff]   ;;  %v16220_v46 = vld [vmem:[#allocation2 + $0x1c2c] ss:$16 sps:$4 sm:$0xff]  }
 0x504   :  { %11204 = vmatpush2.bf16.msra.mxu0 %v16164_v48  ;;  %v16223_v48 = vld [vmem:[#allocation2 + $0x1e2c] ss:$16 sps:$4 sm:$0xff]  }
 0x505   :  { %11247 = vmatpush2.bf16.msra.mxu1 %v16167_v49  ;;  %11205 = vmatprep.subr.bf16.mxu0 %v16172_v8  ;;  %v16218_v49 = vld [vmem:[#allocation2 + $0x1c28] ss:$16 sps:$4 sm:$0xff]  }
 0x506   :  { %11248 = vmatprep.subr.bf16.mxu1 %v16175_v21  ;;  %v16221_v8 = vld [vmem:[#allocation2 + $0x1e28] ss:$16 sps:$4 sm:$0xff]   ;;  %v16226_v21 = vld [vmem:[#allocation2 + $0x1c0c] ss:$16 sps:$4 sm:$0xff]  }
 0x508   :  { %11206 = vmatpush2.bf16.msra.mxu0 %v16170_v52  ;;  %v16229_v52 = vld [vmem:[#allocation2 + $0x1e0c] ss:$16 sps:$4 sm:$0xff]  }
 0x509   :  { %11249 = vmatpush2.bf16.msra.mxu1 %v16173_v22  ;;  %11207 = vmatprep.subr.bf16.mxu0 %v16178_v53  ;;  %v16224_v22 = vld [vmem:[#allocation2 + $0x1c08] ss:$16 sps:$4 sm:$0xff]  }
 0x50a   :  { %11250 = vmatprep.subr.bf16.mxu1 %v16181_v33  ;;  %v16227_v53 = vld [vmem:[#allocation2 + $0x1e08] ss:$16 sps:$4 sm:$0xff]   ;;  %v16232_v33 = vld [vmem:[#allocation2 + $0x1dec] ss:$16 sps:$4 sm:$0xff]  }
 0x50c   :  { %11208 = vmatpush2.bf16.msra.mxu0 %v16176_v35  ;;  %v16235_v35 = vld [vmem:[#allocation2 + $0x1fec] ss:$16 sps:$4 sm:$0xff]  }
 0x50d   :  { %11251 = vmatpush2.bf16.msra.mxu1 %v16179_v12  ;;  %11263 = vmatprep.subr.bf16.mxu0 %v16184_v17  ;;  %v16230_v12 = vld [vmem:[#allocation2 + $0x1de8] ss:$16 sps:$4 sm:$0xff]  }
 0x50e   :  { %11306 = vmatprep.subr.bf16.mxu1 %v16187_v18  ;;  %v16233_v17 = vld [vmem:[#allocation2 + $0x1fe8] ss:$16 sps:$4 sm:$0xff]   ;;  %v16238_v18 = vld [vmem:[#allocation2 + $0x1dcc] ss:$16 sps:$4 sm:$0xff]  }
 0x50f   :  { %11210 = vmatmul.mubr.bf16.vlgmr.msra.gmra.mxu0 %v17324_v37  ;;  %v16202_v37 = vld [vmem:[#allocation2 + $0x1c8c] ss:$16 sps:$4 sm:$0xff]  }
 0x510   :  { %11253 = vmatmul.mubr.bf16.vlgmr.msra.gmra.mxu1 %v17328_v38  ;;  %11264 = vmatpush1.bf16.msra.mxu0 %v16182_v28  ;;  %v16205_v38 = vld [vmem:[#allocation2 + $0x1e8c] ss:$16 sps:$4 sm:$0xff]  }
 0x511   :  { %11307 = vmatpush1.bf16.msra.mxu1 %v16185_v30  ;;  %11265 = vmatprep.subr.bf16.mxu0 %v16190_v29  ;;  %v16241_v28 = vld [vmem:[#allocation2 + $0x1fcc] ss:$16 sps:$4 sm:$0xff]   ;;  %v16236_v30 = vld [vmem:[#allocation2 + $0x1dc8] ss:$16 sps:$4 sm:$0xff]  }
 0x512   :  { %11308 = vmatprep.subr.bf16.mxu1 %v16193_v41  ;;  %11295 = vmatprep.mubr.bf16.mxu0 %v17351_v7  ;;  %v16206_v7 = vld [vmem:[#allocation2 + $0x1c68] ss:$16 sps:$4 sm:$0xff]   ;;  %v16244_v41 = vld [vmem:[#allocation2 + $0x1dac] ss:$16 sps:$4 sm:$0xff]  }
 0x513   :  { %11338 = vmatprep.mubr.bf16.mxu1 %v17355_v47  ;;  %v16209_v47 = vld [vmem:[#allocation2 + $0x1e68] ss:$16 sps:$4 sm:$0xff]  }
 0x514   :  { %11266 = vmatpush1.bf16.msra.mxu0 %v16188_v25  ;;  %v16239_v29 = vld [vmem:[#allocation2 + $0x1fc8] ss:$16 sps:$4 sm:$0xff]   ;;  %v16247_v25 = vld [vmem:[#allocation2 + $0x1fac] ss:$16 sps:$4 sm:$0xff]  }
 0x515   :  { %11309 = vmatpush1.bf16.msra.mxu1 %v16191_v32  ;;  %11267 = vmatprep.subr.bf16.mxu0 %v16196_v42  ;;  %v16242_v32 = vld [vmem:[#allocation2 + $0x1da8] ss:$16 sps:$4 sm:$0xff]  }
 0x516   :  { %11310 = vmatprep.subr.bf16.mxu1 %v16199_v14  ;;  %v16245_v42 = vld [vmem:[#allocation2 + $0x1fa8] ss:$16 sps:$4 sm:$0xff]   ;;  %v16250_v14 = vld [vmem:[#allocation2 + $0x1d8c] ss:$16 sps:$4 sm:$0xff]  }
 0x518   :  { %11268 = vmatpush1.bf16.msra.mxu0 %v16194_v57  ;;  %v16253_v57 = vld [vmem:[#allocation2 + $0x1f8c] ss:$16 sps:$4 sm:$0xff]  }
 0x519   :  { %11311 = vmatpush1.bf16.msra.mxu1 %v16197_v58  ;;  %11269 = vmatprep.subr.bf16.mxu0 %v16202_v37  ;;  %v16248_v58 = vld [vmem:[#allocation2 + $0x1d88] ss:$16 sps:$4 sm:$0xff]  }
 0x51a   :  { %11312 = vmatprep.subr.bf16.mxu1 %v16205_v38  ;;  %v16251_v37 = vld [vmem:[#allocation2 + $0x1f88] ss:$16 sps:$4 sm:$0xff]   ;;  %v16256_v38 = vld [vmem:[#allocation2 + $0x1d6c] ss:$16 sps:$4 sm:$0xff]  }
 0x51c   :  { %11270 = vmatpush1.bf16.msra.mxu0 %v16200_v15  ;;  %v16259_v15 = vld [vmem:[#allocation2 + $0x1f6c] ss:$16 sps:$4 sm:$0xff]  }
 0x51d   :  { %11313 = vmatpush1.bf16.msra.mxu1 %v16203_v27  ;;  %11271 = vmatprep.subr.bf16.mxu0 %v16208_v9  ;;  %v16254_v27 = vld [vmem:[#allocation2 + $0x1d68] ss:$16 sps:$4 sm:$0xff]  }
 0x51e   :  { %11314 = vmatprep.subr.bf16.mxu1 %v16211_v61  ;;  %v16257_v9 = vld [vmem:[#allocation2 + $0x1f68] ss:$16 sps:$4 sm:$0xff]   ;;  %v16262_v61 = vld [vmem:[#allocation2 + $0x1d4c] ss:$16 sps:$4 sm:$0xff]  }
 0x520   :  { %11272 = vmatpush1.bf16.msra.mxu0 %v16206_v7  ;;  %v16265_v7 = vld [vmem:[#allocation2 + $0x1f4c] ss:$16 sps:$4 sm:$0xff]  }
 0x521   :  { %11315 = vmatpush1.bf16.msra.mxu1 %v16209_v47  ;;  %11273 = vmatprep.subr.bf16.mxu0 %v16214_v2  ;;  %v16260_v47 = vld [vmem:[#allocation2 + $0x1d48] ss:$16 sps:$4 sm:$0xff]  }
 0x522   :  { %11316 = vmatprep.subr.bf16.mxu1 %v16217_v3  ;;  %v16263_v2 = vld [vmem:[#allocation2 + $0x1f48] ss:$16 sps:$4 sm:$0xff]   ;;  %v16268_v3 = vld [vmem:[#allocation2 + $0x1d2c] ss:$16 sps:$4 sm:$0xff]  }
 0x524   :  { %11274 = vmatpush1.bf16.msra.mxu0 %v16212_v20  ;;  %v16271_v20 = vld [vmem:[#allocation2 + $0x1f2c] ss:$16 sps:$4 sm:$0xff]  }
 0x525   :  { %11317 = vmatpush1.bf16.msra.mxu1 %v16215_v44  ;;  %11275 = vmatprep.subr.bf16.mxu0 %v16220_v46  ;;  %v16266_v44 = vld [vmem:[#allocation2 + $0x1d28] ss:$16 sps:$4 sm:$0xff]  }
 0x526   :  { %11318 = vmatprep.subr.bf16.mxu1 %v16223_v48  ;;  %v16269_v46 = vld [vmem:[#allocation2 + $0x1f28] ss:$16 sps:$4 sm:$0xff]   ;;  %v16274_v48 = vld [vmem:[#allocation2 + $0x1d0c] ss:$16 sps:$4 sm:$0xff]  }
 0x528   :  { %11276 = vmatpush1.bf16.msra.mxu0 %v16218_v49  ;;  %v16277_v49 = vld [vmem:[#allocation2 + $0x1f0c] ss:$16 sps:$4 sm:$0xff]  }
 0x529   :  { %11319 = vmatpush1.bf16.msra.mxu1 %v16221_v8  ;;  %11277 = vmatprep.subr.bf16.mxu0 %v16226_v21  ;;  %v16272_v8 = vld [vmem:[#allocation2 + $0x1d08] ss:$16 sps:$4 sm:$0xff]  }
 0x52a   :  { %11320 = vmatprep.subr.bf16.mxu1 %v16229_v52  ;;  %v16275_v21 = vld [vmem:[#allocation2 + $0x1f08] ss:$16 sps:$4 sm:$0xff]   ;;  %v16280_v52 = vld [vmem:[#allocation2 + $0x20ec] ss:$16 sps:$4 sm:$0xff]  }
 0x52c   :  { %11278 = vmatpush1.bf16.msra.mxu0 %v16224_v22  ;;  %v16283_v22 = vld [vmem:[#allocation2 + $0x22ec] ss:$16 sps:$4 sm:$0xff]  }
 0x52d   :  { %11321 = vmatpush1.bf16.msra.mxu1 %v16227_v53  ;;  %11279 = vmatprep.subr.bf16.mxu0 %v16232_v33  ;;  %v16278_v53 = vld [vmem:[#allocation2 + $0x20e8] ss:$16 sps:$4 sm:$0xff]  }
 0x52e   :  { %11322 = vmatprep.subr.bf16.mxu1 %v16235_v35  ;;  %v16281_v33 = vld [vmem:[#allocation2 + $0x22e8] ss:$16 sps:$4 sm:$0xff]   ;;  %v16286_v35 = vld [vmem:[#allocation2 + $0x20cc] ss:$16 sps:$4 sm:$0xff]  }
 0x530   :  { %11280 = vmatpush2.bf16.msra.mxu0 %v16230_v12  ;;  %v16289_v12 = vld [vmem:[#allocation2 + $0x22cc] ss:$16 sps:$4 sm:$0xff]  }
 0x531   :  { %11323 = vmatpush2.bf16.msra.mxu1 %v16233_v17  ;;  %11281 = vmatprep.subr.bf16.mxu0 %v16238_v18  ;;  %v16284_v17 = vld [vmem:[#allocation2 + $0x20c8] ss:$16 sps:$4 sm:$0xff]  }
 0x532   :  { %11324 = vmatprep.subr.bf16.mxu1 %v16241_v28  ;;  %v16287_v18 = vld [vmem:[#allocation2 + $0x22c8] ss:$16 sps:$4 sm:$0xff]   ;;  %v16292_v28 = vld [vmem:[#allocation2 + $0x20ac] ss:$16 sps:$4 sm:$0xff]  }
 0x534   :  { %11282 = vmatpush2.bf16.msra.mxu0 %v16236_v30  ;;  %v16295_v30 = vld [vmem:[#allocation2 + $0x22ac] ss:$16 sps:$4 sm:$0xff]  }
 0x535   :  { %11325 = vmatpush2.bf16.msra.mxu1 %v16239_v29  ;;  %11283 = vmatprep.subr.bf16.mxu0 %v16244_v41  ;;  %v16290_v29 = vld [vmem:[#allocation2 + $0x20a8] ss:$16 sps:$4 sm:$0xff]  }
 0x536   :  { %11326 = vmatprep.subr.bf16.mxu1 %v16247_v25  ;;  %v16293_v41 = vld [vmem:[#allocation2 + $0x22a8] ss:$16 sps:$4 sm:$0xff]  }
 0x537   :  { %v16296_v25 = vld [vmem:[#allocation2 + $0x2088] ss:$16 sps:$4 sm:$0xff]  }
 0x538   :  { %11284 = vmatpush2.bf16.msra.mxu0 %v16242_v32  ;;  %v16299_v32 = vld [vmem:[#allocation2 + $0x2288] ss:$16 sps:$4 sm:$0xff]  }
 0x539   :  { %11327 = vmatpush2.bf16.msra.mxu1 %v16245_v42  ;;  %11285 = vmatprep.subr.bf16.mxu0 %v16250_v14  ;;  %v16304_v42 = vld [vmem:[#allocation2 + $0x206c] ss:$16 sps:$4 sm:$0xff]  }
 0x53a   :  { %11328 = vmatprep.subr.bf16.mxu1 %v16253_v57  ;;  %v16307_v14 = vld [vmem:[#allocation2 + $0x226c] ss:$16 sps:$4 sm:$0xff]  }
 0x53b   :  { %v16310_v57 = vld [vmem:[#allocation2 + $0x204c] ss:$16 sps:$4 sm:$0xff]  }
 0x53c   :  { %11286 = vmatpush2.bf16.msra.mxu0 %v16248_v58  ;;  %v16313_v58 = vld [vmem:[#allocation2 + $0x224c] ss:$16 sps:$4 sm:$0xff]  }
 0x53d   :  { %11329 = vmatpush2.bf16.msra.mxu1 %v16251_v37  ;;  %11287 = vmatprep.subr.bf16.mxu0 %v16256_v38  ;;  %v16308_v37 = vld [vmem:[#allocation2 + $0x2048] ss:$16 sps:$4 sm:$0xff]  }
 0x53e   :  { %11330 = vmatprep.subr.bf16.mxu1 %v16259_v15  ;;  %v16311_v38 = vld [vmem:[#allocation2 + $0x2248] ss:$16 sps:$4 sm:$0xff]   ;;  %v16316_v15 = vld [vmem:[#allocation2 + $0x202c] ss:$16 sps:$4 sm:$0xff]  }
 0x540   :  { %11288 = vmatpush2.bf16.msra.mxu0 %v16254_v27  ;;  %v16319_v27 = vld [vmem:[#allocation2 + $0x222c] ss:$16 sps:$4 sm:$0xff]  }
 0x541   :  { %11331 = vmatpush2.bf16.msra.mxu1 %v16257_v9  ;;  %11289 = vmatprep.subr.bf16.mxu0 %v16262_v61  ;;  %v16314_v9 = vld [vmem:[#allocation2 + $0x2028] ss:$16 sps:$4 sm:$0xff]  }
 0x542   :  { %11332 = vmatprep.subr.bf16.mxu1 %v16265_v7  ;;  %v16317_v61 = vld [vmem:[#allocation2 + $0x2228] ss:$16 sps:$4 sm:$0xff]   ;;  %v16322_v7 = vld [vmem:[#allocation2 + $0x200c] ss:$16 sps:$4 sm:$0xff]  }
 0x544   :  { %11290 = vmatpush2.bf16.msra.mxu0 %v16260_v47  ;;  %v16325_v47 = vld [vmem:[#allocation2 + $0x220c] ss:$16 sps:$4 sm:$0xff]  }
 0x545   :  { %11333 = vmatpush2.bf16.msra.mxu1 %v16263_v2  ;;  %11291 = vmatprep.subr.bf16.mxu0 %v16268_v3  ;;  %v16320_v2 = vld [vmem:[#allocation2 + $0x2008] ss:$16 sps:$4 sm:$0xff]  }
 0x546   :  { %11334 = vmatprep.subr.bf16.mxu1 %v16271_v20  ;;  %v16323_v3 = vld [vmem:[#allocation2 + $0x2208] ss:$16 sps:$4 sm:$0xff]   ;;  %v16328_v20 = vld [vmem:[#allocation2 + $0x21ec] ss:$16 sps:$4 sm:$0xff]  }
 0x548   :  { %11292 = vmatpush2.bf16.msra.mxu0 %v16266_v44  ;;  %v16331_v44 = vld [vmem:[#allocation2 + $0x23ec] ss:$16 sps:$4 sm:$0xff]  }
 0x549   :  { %11335 = vmatpush2.bf16.msra.mxu1 %v16269_v46  ;;  %11293 = vmatprep.subr.bf16.mxu0 %v16274_v48  ;;  %v16326_v46 = vld [vmem:[#allocation2 + $0x21e8] ss:$16 sps:$4 sm:$0xff]  }
 0x54a   :  { %11336 = vmatprep.subr.bf16.mxu1 %v16277_v49  ;;  %v16329_v48 = vld [vmem:[#allocation2 + $0x23e8] ss:$16 sps:$4 sm:$0xff]   ;;  %v16334_v49 = vld [vmem:[#allocation2 + $0x21cc] ss:$16 sps:$4 sm:$0xff]  }
 0x54c   :  { %11294 = vmatpush2.bf16.msra.mxu0 %v16272_v8  ;;  %v16337_v8 = vld [vmem:[#allocation2 + $0x23cc] ss:$16 sps:$4 sm:$0xff]  }
 0x54d   :  { %11337 = vmatpush2.bf16.msra.mxu1 %v16275_v21  ;;  %11349 = vmatprep.subr.bf16.mxu0 %v16280_v52  ;;  %v16332_v21 = vld [vmem:[#allocation2 + $0x21c8] ss:$16 sps:$4 sm:$0xff]  }
 0x54e   :  { %11392 = vmatprep.subr.bf16.mxu1 %v16283_v22  ;;  %v16335_v52 = vld [vmem:[#allocation2 + $0x23c8] ss:$16 sps:$4 sm:$0xff]   ;;  %v16340_v22 = vld [vmem:[#allocation2 + $0x21ac] ss:$16 sps:$4 sm:$0xff]  }
 0x54f   :  { %11296 = vmatmul.mubr.bf16.vlgmr.msra.gmra.mxu0 %v17378_v31  ;;  %v16298_v31 = vld [vmem:[#allocation2 + $0x208c] ss:$16 sps:$4 sm:$0xff]  }
 0x550   :  { %11339 = vmatmul.mubr.bf16.vlgmr.msra.gmra.mxu1 %v17382_v56  ;;  %11350 = vmatpush1.bf16.msra.mxu0 %v16278_v53  ;;  %v16301_v56 = vld [vmem:[#allocation2 + $0x228c] ss:$16 sps:$4 sm:$0xff]  }
 0x551   :  { %11393 = vmatpush1.bf16.msra.mxu1 %v16281_v33  ;;  %11351 = vmatprep.subr.bf16.mxu0 %v16286_v35  ;;  %v16343_v53 = vld [vmem:[#allocation2 + $0x23ac] ss:$16 sps:$4 sm:$0xff]   ;;  %v16338_v33 = vld [vmem:[#allocation2 + $0x21a8] ss:$16 sps:$4 sm:$0xff]  }
 0x552   :  { %11394 = vmatprep.subr.bf16.mxu1 %v16289_v12  ;;  %11381 = vmatprep.mubr.bf16.mxu0 %v17405_v36  ;;  %v16302_v36 = vld [vmem:[#allocation2 + $0x2068] ss:$16 sps:$4 sm:$0xff]   ;;  %v16346_v12 = vld [vmem:[#allocation2 + $0x218c] ss:$16 sps:$4 sm:$0xff]  }
 0x553   :  { %11424 = vmatprep.mubr.bf16.mxu1 %v17409_v62  ;;  %v16305_v62 = vld [vmem:[#allocation2 + $0x2268] ss:$16 sps:$4 sm:$0xff]  }
 0x554   :  { %11352 = vmatpush1.bf16.msra.mxu0 %v16284_v17  ;;  %v16341_v35 = vld [vmem:[#allocation2 + $0x23a8] ss:$16 sps:$4 sm:$0xff]   ;;  %v16349_v17 = vld [vmem:[#allocation2 + $0x238c] ss:$16 sps:$4 sm:$0xff]  }
 0x555   :  { %11395 = vmatpush1.bf16.msra.mxu1 %v16287_v18  ;;  %11353 = vmatprep.subr.bf16.mxu0 %v16292_v28  ;;  %v16344_v18 = vld [vmem:[#allocation2 + $0x2188] ss:$16 sps:$4 sm:$0xff]  }
 0x556   :  { %11396 = vmatprep.subr.bf16.mxu1 %v16295_v30  ;;  %v16347_v28 = vld [vmem:[#allocation2 + $0x2388] ss:$16 sps:$4 sm:$0xff]   ;;  %v16352_v30 = vld [vmem:[#allocation2 + $0x216c] ss:$16 sps:$4 sm:$0xff]  }
 0x558   :  { %11354 = vmatpush1.bf16.msra.mxu0 %v16290_v29  ;;  %v16355_v29 = vld [vmem:[#allocation2 + $0x236c] ss:$16 sps:$4 sm:$0xff]  }
 0x559   :  { %11397 = vmatpush1.bf16.msra.mxu1 %v16293_v41  ;;  %11355 = vmatprep.subr.bf16.mxu0 %v16298_v31  ;;  %v16350_v41 = vld [vmem:[#allocation2 + $0x2168] ss:$16 sps:$4 sm:$0xff]  }
 0x55a   :  { %11398 = vmatprep.subr.bf16.mxu1 %v16301_v56  ;;  %v16353_v31 = vld [vmem:[#allocation2 + $0x2368] ss:$16 sps:$4 sm:$0xff]   ;;  %v16358_v56 = vld [vmem:[#allocation2 + $0x214c] ss:$16 sps:$4 sm:$0xff]  }
 0x55c   :  { %11356 = vmatpush1.bf16.msra.mxu0 %v16296_v25  ;;  %v16361_v25 = vld [vmem:[#allocation2 + $0x234c] ss:$16 sps:$4 sm:$0xff]  }
 0x55d   :  { %11399 = vmatpush1.bf16.msra.mxu1 %v16299_v32  ;;  %11357 = vmatprep.subr.bf16.mxu0 %v16304_v42  ;;  %v16356_v32 = vld [vmem:[#allocation2 + $0x2148] ss:$16 sps:$4 sm:$0xff]  }
 0x55e   :  { %11400 = vmatprep.subr.bf16.mxu1 %v16307_v14  ;;  %v16359_v42 = vld [vmem:[#allocation2 + $0x2348] ss:$16 sps:$4 sm:$0xff]   ;;  %v16364_v14 = vld [vmem:[#allocation2 + $0x212c] ss:$16 sps:$4 sm:$0xff]  }
 0x560   :  { %11358 = vmatpush1.bf16.msra.mxu0 %v16302_v36  ;;  %v16367_v36 = vld [vmem:[#allocation2 + $0x232c] ss:$16 sps:$4 sm:$0xff]  }
 0x561   :  { %11401 = vmatpush1.bf16.msra.mxu1 %v16305_v62  ;;  %11359 = vmatprep.subr.bf16.mxu0 %v16310_v57  ;;  %v16362_v62 = vld [vmem:[#allocation2 + $0x2128] ss:$16 sps:$4 sm:$0xff]  }
 0x562   :  { %11402 = vmatprep.subr.bf16.mxu1 %v16313_v58  ;;  %v16365_v57 = vld [vmem:[#allocation2 + $0x2328] ss:$16 sps:$4 sm:$0xff]   ;;  %v16370_v58 = vld [vmem:[#allocation2 + $0x210c] ss:$16 sps:$4 sm:$0xff]  }
 0x564   :  { %11360 = vmatpush1.bf16.msra.mxu0 %v16308_v37  ;;  %v16373_v37 = vld [vmem:[#allocation2 + $0x230c] ss:$16 sps:$4 sm:$0xff]  }
 0x565   :  { %11403 = vmatpush1.bf16.msra.mxu1 %v16311_v38  ;;  %11361 = vmatprep.subr.bf16.mxu0 %v16316_v15  ;;  %v16368_v38 = vld [vmem:[#allocation2 + $0x2108] ss:$16 sps:$4 sm:$0xff]  }
 0x566   :  { %11404 = vmatprep.subr.bf16.mxu1 %v16319_v27  ;;  %v16371_v15 = vld [vmem:[#allocation2 + $0x2308] ss:$16 sps:$4 sm:$0xff]   ;;  %v16376_v27 = vld [vmem:[#allocation2 + $0x24ec] ss:$16 sps:$4 sm:$0xff]  }
 0x568   :  { %11362 = vmatpush1.bf16.msra.mxu0 %v16314_v9  ;;  %v16379_v9 = vld [vmem:[#allocation2 + $0x26ec] ss:$16 sps:$4 sm:$0xff]  }
 0x569   :  { %11405 = vmatpush1.bf16.msra.mxu1 %v16317_v61  ;;  %11363 = vmatprep.subr.bf16.mxu0 %v16322_v7  ;;  %v16374_v61 = vld [vmem:[#allocation2 + $0x24e8] ss:$16 sps:$4 sm:$0xff]  }
 0x56a   :  { %11406 = vmatprep.subr.bf16.mxu1 %v16325_v47  ;;  %v16377_v7 = vld [vmem:[#allocation2 + $0x26e8] ss:$16 sps:$4 sm:$0xff]   ;;  %v16382_v47 = vld [vmem:[#allocation2 + $0x24cc] ss:$16 sps:$4 sm:$0xff]  }
 0x56c   :  { %11364 = vmatpush1.bf16.msra.mxu0 %v16320_v2  ;;  %v16385_v2 = vld [vmem:[#allocation2 + $0x26cc] ss:$16 sps:$4 sm:$0xff]  }
 0x56d   :  { %11407 = vmatpush1.bf16.msra.mxu1 %v16323_v3  ;;  %11365 = vmatprep.subr.bf16.mxu0 %v16328_v20  ;;  %v16380_v3 = vld [vmem:[#allocation2 + $0x24c8] ss:$16 sps:$4 sm:$0xff]  }
 0x56e   :  { %11408 = vmatprep.subr.bf16.mxu1 %v16331_v44  ;;  %v16383_v20 = vld [vmem:[#allocation2 + $0x26c8] ss:$16 sps:$4 sm:$0xff]   ;;  %v16388_v44 = vld [vmem:[#allocation2 + $0x24ac] ss:$16 sps:$4 sm:$0xff]  }
 0x570   :  { %11366 = vmatpush2.bf16.msra.mxu0 %v16326_v46  ;;  %v16391_v46 = vld [vmem:[#allocation2 + $0x26ac] ss:$16 sps:$4 sm:$0xff]  }
 0x571   :  { %11409 = vmatpush2.bf16.msra.mxu1 %v16329_v48  ;;  %11367 = vmatprep.subr.bf16.mxu0 %v16334_v49  ;;  %v16386_v48 = vld [vmem:[#allocation2 + $0x24a8] ss:$16 sps:$4 sm:$0xff]  }
 0x572   :  { %11410 = vmatprep.subr.bf16.mxu1 %v16337_v8  ;;  %v16389_v49 = vld [vmem:[#allocation2 + $0x26a8] ss:$16 sps:$4 sm:$0xff]  }
 0x573   :  { %v16392_v8 = vld [vmem:[#allocation2 + $0x2488] ss:$16 sps:$4 sm:$0xff]  }
 0x574   :  { %11368 = vmatpush2.bf16.msra.mxu0 %v16332_v21  ;;  %v16395_v21 = vld [vmem:[#allocation2 + $0x2688] ss:$16 sps:$4 sm:$0xff]  }
 0x575   :  { %11411 = vmatpush2.bf16.msra.mxu1 %v16335_v52  ;;  %11369 = vmatprep.subr.bf16.mxu0 %v16340_v22  ;;  %v16400_v52 = vld [vmem:[#allocation2 + $0x246c] ss:$16 sps:$4 sm:$0xff]  }
 0x576   :  { %11412 = vmatprep.subr.bf16.mxu1 %v16343_v53  ;;  %v16403_v22 = vld [vmem:[#allocation2 + $0x266c] ss:$16 sps:$4 sm:$0xff]  }
 0x577   :  { %v16406_v53 = vld [vmem:[#allocation2 + $0x244c] ss:$16 sps:$4 sm:$0xff]  }
 0x578   :  { %11370 = vmatpush2.bf16.msra.mxu0 %v16338_v33  ;;  %v16409_v33 = vld [vmem:[#allocation2 + $0x264c] ss:$16 sps:$4 sm:$0xff]  }
 0x579   :  { %11413 = vmatpush2.bf16.msra.mxu1 %v16341_v35  ;;  %11371 = vmatprep.subr.bf16.mxu0 %v16346_v12  ;;  %v16404_v35 = vld [vmem:[#allocation2 + $0x2448] ss:$16 sps:$4 sm:$0xff]  }
 0x57a   :  { %11414 = vmatprep.subr.bf16.mxu1 %v16349_v17  ;;  %v16407_v12 = vld [vmem:[#allocation2 + $0x2648] ss:$16 sps:$4 sm:$0xff]   ;;  %v16412_v17 = vld [vmem:[#allocation2 + $0x242c] ss:$16 sps:$4 sm:$0xff]  }
 0x57c   :  { %11372 = vmatpush2.bf16.msra.mxu0 %v16344_v18  ;;  %v16415_v18 = vld [vmem:[#allocation2 + $0x262c] ss:$16 sps:$4 sm:$0xff]  }
 0x57d   :  { %11415 = vmatpush2.bf16.msra.mxu1 %v16347_v28  ;;  %11373 = vmatprep.subr.bf16.mxu0 %v16352_v30  ;;  %v16410_v28 = vld [vmem:[#allocation2 + $0x2428] ss:$16 sps:$4 sm:$0xff]  }
 0x57e   :  { %11416 = vmatprep.subr.bf16.mxu1 %v16355_v29  ;;  %v16413_v30 = vld [vmem:[#allocation2 + $0x2628] ss:$16 sps:$4 sm:$0xff]   ;;  %v16418_v29 = vld [vmem:[#allocation2 + $0x240c] ss:$16 sps:$4 sm:$0xff]  }
 0x580   :  { %11374 = vmatpush2.bf16.msra.mxu0 %v16350_v41  ;;  %v16421_v41 = vld [vmem:[#allocation2 + $0x260c] ss:$16 sps:$4 sm:$0xff]  }
 0x581   :  { %11417 = vmatpush2.bf16.msra.mxu1 %v16353_v31  ;;  %11375 = vmatprep.subr.bf16.mxu0 %v16358_v56  ;;  %v16416_v31 = vld [vmem:[#allocation2 + $0x2408] ss:$16 sps:$4 sm:$0xff]  }
 0x582   :  { %11418 = vmatprep.subr.bf16.mxu1 %v16361_v25  ;;  %v16419_v56 = vld [vmem:[#allocation2 + $0x2608] ss:$16 sps:$4 sm:$0xff]   ;;  %v16424_v25 = vld [vmem:[#allocation2 + $0x25ec] ss:$16 sps:$4 sm:$0xff]  }
 0x584   :  { %11376 = vmatpush2.bf16.msra.mxu0 %v16356_v32  ;;  %v16427_v32 = vld [vmem:[#allocation2 + $0x27ec] ss:$16 sps:$4 sm:$0xff]  }
 0x585   :  { %11419 = vmatpush2.bf16.msra.mxu1 %v16359_v42  ;;  %11377 = vmatprep.subr.bf16.mxu0 %v16364_v14  ;;  %v16422_v42 = vld [vmem:[#allocation2 + $0x25e8] ss:$16 sps:$4 sm:$0xff]  }
 0x586   :  { %11420 = vmatprep.subr.bf16.mxu1 %v16367_v36  ;;  %v16425_v14 = vld [vmem:[#allocation2 + $0x27e8] ss:$16 sps:$4 sm:$0xff]   ;;  %v16430_v36 = vld [vmem:[#allocation2 + $0x25cc] ss:$16 sps:$4 sm:$0xff]  }
 0x588   :  { %11378 = vmatpush2.bf16.msra.mxu0 %v16362_v62  ;;  %v16433_v62 = vld [vmem:[#allocation2 + $0x27cc] ss:$16 sps:$4 sm:$0xff]  }
 0x589   :  { %11421 = vmatpush2.bf16.msra.mxu1 %v16365_v57  ;;  %11379 = vmatprep.subr.bf16.mxu0 %v16370_v58  ;;  %v16428_v57 = vld [vmem:[#allocation2 + $0x25c8] ss:$16 sps:$4 sm:$0xff]  }
 0x58a   :  { %11422 = vmatprep.subr.bf16.mxu1 %v16373_v37  ;;  %v16431_v58 = vld [vmem:[#allocation2 + $0x27c8] ss:$16 sps:$4 sm:$0xff]   ;;  %v16436_v37 = vld [vmem:[#allocation2 + $0x25ac] ss:$16 sps:$4 sm:$0xff]  }
 0x58c   :  { %11380 = vmatpush2.bf16.msra.mxu0 %v16368_v38  ;;  %v16439_v38 = vld [vmem:[#allocation2 + $0x27ac] ss:$16 sps:$4 sm:$0xff]  }
 0x58d   :  { %11423 = vmatpush2.bf16.msra.mxu1 %v16371_v15  ;;  %11435 = vmatprep.subr.bf16.mxu0 %v16376_v27  ;;  %v16434_v15 = vld [vmem:[#allocation2 + $0x25a8] ss:$16 sps:$4 sm:$0xff]  }
 0x58e   :  { %11478 = vmatprep.subr.bf16.mxu1 %v16379_v9  ;;  %v16437_v27 = vld [vmem:[#allocation2 + $0x27a8] ss:$16 sps:$4 sm:$0xff]   ;;  %v16442_v9 = vld [vmem:[#allocation2 + $0x258c] ss:$16 sps:$4 sm:$0xff]  }
 0x58f   :  { %11382 = vmatmul.mubr.bf16.vlgmr.msra.gmra.mxu0 %v17432_v1  ;;  %v16394_v1 = vld [vmem:[#allocation2 + $0x248c] ss:$16 sps:$4 sm:$0xff]  }
 0x590   :  { %11425 = vmatmul.mubr.bf16.vlgmr.msra.gmra.mxu1 %v17436_v51  ;;  %11436 = vmatpush1.bf16.msra.mxu0 %v16374_v61  ;;  %v16397_v51 = vld [vmem:[#allocation2 + $0x268c] ss:$16 sps:$4 sm:$0xff]  }
 0x591   :  { %11479 = vmatpush1.bf16.msra.mxu1 %v16377_v7  ;;  %11437 = vmatprep.subr.bf16.mxu0 %v16382_v47  ;;  %v16445_v61 = vld [vmem:[#allocation2 + $0x278c] ss:$16 sps:$4 sm:$0xff]   ;;  %v16440_v7 = vld [vmem:[#allocation2 + $0x2588] ss:$16 sps:$4 sm:$0xff]  }
 0x592   :  { %11480 = vmatprep.subr.bf16.mxu1 %v16385_v2  ;;  %11467 = vmatprep.mubr.bf16.mxu0 %v17459_v23  ;;  %v16398_v23 = vld [vmem:[#allocation2 + $0x2468] ss:$16 sps:$4 sm:$0xff]   ;;  %v16448_v2 = vld [vmem:[#allocation2 + $0x256c] ss:$16 sps:$4 sm:$0xff]  }
 0x593   :  { %11510 = vmatprep.mubr.bf16.mxu1 %v17463_v45  ;;  %v16401_v45 = vld [vmem:[#allocation2 + $0x2668] ss:$16 sps:$4 sm:$0xff]  }
 0x594   :  { %11438 = vmatpush1.bf16.msra.mxu0 %v16380_v3  ;;  %v16443_v47 = vld [vmem:[#allocation2 + $0x2788] ss:$16 sps:$4 sm:$0xff]   ;;  %v16451_v3 = vld [vmem:[#allocation2 + $0x276c] ss:$16 sps:$4 sm:$0xff]  }
 0x595   :  { %11481 = vmatpush1.bf16.msra.mxu1 %v16383_v20  ;;  %11439 = vmatprep.subr.bf16.mxu0 %v16388_v44  ;;  %v16446_v20 = vld [vmem:[#allocation2 + $0x2568] ss:$16 sps:$4 sm:$0xff]  }
 0x596   :  { %11482 = vmatprep.subr.bf16.mxu1 %v16391_v46  ;;  %v16449_v44 = vld [vmem:[#allocation2 + $0x2768] ss:$16 sps:$4 sm:$0xff]   ;;  %v16454_v46 = vld [vmem:[#allocation2 + $0x254c] ss:$16 sps:$4 sm:$0xff]  }
 0x598   :  { %11440 = vmatpush1.bf16.msra.mxu0 %v16386_v48  ;;  %v16457_v48 = vld [vmem:[#allocation2 + $0x274c] ss:$16 sps:$4 sm:$0xff]  }
 0x599   :  { %11483 = vmatpush1.bf16.msra.mxu1 %v16389_v49  ;;  %11441 = vmatprep.subr.bf16.mxu0 %v16394_v1  ;;  %v16452_v49 = vld [vmem:[#allocation2 + $0x2548] ss:$16 sps:$4 sm:$0xff]  }
 0x59a   :  { %11484 = vmatprep.subr.bf16.mxu1 %v16397_v51  ;;  %v16455_v1 = vld [vmem:[#allocation2 + $0x2748] ss:$16 sps:$4 sm:$0xff]   ;;  %v16460_v51 = vld [vmem:[#allocation2 + $0x252c] ss:$16 sps:$4 sm:$0xff]  }
 0x59c   :  { %11442 = vmatpush1.bf16.msra.mxu0 %v16392_v8  ;;  %v16463_v8 = vld [vmem:[#allocation2 + $0x272c] ss:$16 sps:$4 sm:$0xff]  }
 0x59d   :  { %11485 = vmatpush1.bf16.msra.mxu1 %v16395_v21  ;;  %11443 = vmatprep.subr.bf16.mxu0 %v16400_v52  ;;  %v16458_v21 = vld [vmem:[#allocation2 + $0x2528] ss:$16 sps:$4 sm:$0xff]  }
 0x59e   :  { %11486 = vmatprep.subr.bf16.mxu1 %v16403_v22  ;;  %v16461_v52 = vld [vmem:[#allocation2 + $0x2728] ss:$16 sps:$4 sm:$0xff]   ;;  %v16466_v22 = vld [vmem:[#allocation2 + $0x250c] ss:$16 sps:$4 sm:$0xff]  }
 0x5a0   :  { %11444 = vmatpush1.bf16.msra.mxu0 %v16398_v23  ;;  %v16469_v23 = vld [vmem:[#allocation2 + $0x270c] ss:$16 sps:$4 sm:$0xff]  }
 0x5a1   :  { %11487 = vmatpush1.bf16.msra.mxu1 %v16401_v45  ;;  %11445 = vmatprep.subr.bf16.mxu0 %v16406_v53  ;;  %v16464_v45 = vld [vmem:[#allocation2 + $0x2508] ss:$16 sps:$4 sm:$0xff]  }
 0x5a2   :  { %11488 = vmatprep.subr.bf16.mxu1 %v16409_v33  ;;  %v16467_v53 = vld [vmem:[#allocation2 + $0x2708] ss:$16 sps:$4 sm:$0xff]   ;;  %v16472_v33 = vld [vmem:[#allocation2 + $0x28ec] ss:$16 sps:$4 sm:$0xff]  }
 0x5a4   :  { %11446 = vmatpush1.bf16.msra.mxu0 %v16404_v35  ;;  %v16475_v35 = vld [vmem:[#allocation2 + $0x2aec] ss:$16 sps:$4 sm:$0xff]  }
 0x5a5   :  { %11489 = vmatpush1.bf16.msra.mxu1 %v16407_v12  ;;  %11447 = vmatprep.subr.bf16.mxu0 %v16412_v17  ;;  %v16470_v12 = vld [vmem:[#allocation2 + $0x28e8] ss:$16 sps:$4 sm:$0xff]  }
 0x5a6   :  { %11490 = vmatprep.subr.bf16.mxu1 %v16415_v18  ;;  %v16473_v17 = vld [vmem:[#allocation2 + $0x2ae8] ss:$16 sps:$4 sm:$0xff]   ;;  %v16478_v18 = vld [vmem:[#allocation2 + $0x28cc] ss:$16 sps:$4 sm:$0xff]  }
 0x5a8   :  { %11448 = vmatpush1.bf16.msra.mxu0 %v16410_v28  ;;  %v16481_v28 = vld [vmem:[#allocation2 + $0x2acc] ss:$16 sps:$4 sm:$0xff]  }
 0x5a9   :  { %11491 = vmatpush1.bf16.msra.mxu1 %v16413_v30  ;;  %11449 = vmatprep.subr.bf16.mxu0 %v16418_v29  ;;  %v18060_v30 = vld [vmem:[#allocation40_spill] sm:$0xff]  ;;  %v18061_v29 = vld [vmem:[#allocation41_spill] sm:$0xff] }
 0x5aa   :  { %11492 = vmatprep.subr.bf16.mxu1 %v16421_v41  ;;  %v16476_v41 = vld [vmem:[#allocation2 + $0x28c8] ss:$16 sps:$4 sm:$0xff]  }
 0x5ac   :  { %11450 = vmatpush1.bf16.msra.mxu0 %v16416_v31  ;;  %v16479_v31 = vld [vmem:[#allocation2 + $0x2ac8] ss:$16 sps:$4 sm:$0xff]  }
 0x5ad   :  { %11493 = vmatpush1.bf16.msra.mxu1 %v16419_v56  ;;  %11451 = vmatprep.subr.bf16.mxu0 %v16424_v25  ;;  %v16484_v56 = vld [vmem:[#allocation2 + $0x28ac] ss:$16 sps:$4 sm:$0xff]  }
 0x5ae   :  { %11494 = vmatprep.subr.bf16.mxu1 %v16427_v32  ;;  %v16487_v25 = vld [vmem:[#allocation2 + $0x2aac] ss:$16 sps:$4 sm:$0xff]  }
 0x5af   :  { %v18062_v32 = vld [vmem:[#allocation44_spill] sm:$0xff] }
 0x5b0   :  { %11452 = vmatpush2.bf16.msra.mxu0 %v16422_v42  ;;  %v18063_v42 = vld [vmem:[#allocation45_spill] sm:$0xff] }
 0x5b1   :  { %11495 = vmatpush2.bf16.msra.mxu1 %v16425_v14  ;;  %11453 = vmatprep.subr.bf16.mxu0 %v16430_v36  ;;  %v16482_v14 = vld [vmem:[#allocation2 + $0x28a8] ss:$16 sps:$4 sm:$0xff]  }
 0x5b2   :  { %11496 = vmatprep.subr.bf16.mxu1 %v16433_v62  ;;  %v16485_v36 = vld [vmem:[#allocation2 + $0x2aa8] ss:$16 sps:$4 sm:$0xff]   ;;  %v16490_v62 = vld [vmem:[#allocation2 + $0x288c] ss:$16 sps:$4 sm:$0xff]  }
 0x5b4   :  { %11454 = vmatpush2.bf16.msra.mxu0 %v16428_v57  ;;  %v16493_v57 = vld [vmem:[#allocation2 + $0x2a8c] ss:$16 sps:$4 sm:$0xff]  }
 0x5b5   :  { %11497 = vmatpush2.bf16.msra.mxu1 %v16431_v58  ;;  %11455 = vmatprep.subr.bf16.mxu0 %v16436_v37  ;;  %v16488_v58 = vld [vmem:[#allocation2 + $0x2888] ss:$16 sps:$4 sm:$0xff]  }
 0x5b6   :  { %11498 = vmatprep.subr.bf16.mxu1 %v16439_v38  ;;  %v16491_v37 = vld [vmem:[#allocation2 + $0x2a88] ss:$16 sps:$4 sm:$0xff]   ;;  %v16496_v38 = vld [vmem:[#allocation2 + $0x286c] ss:$16 sps:$4 sm:$0xff]  }
 0x5b8   :  { %11456 = vmatpush2.bf16.msra.mxu0 %v16434_v15  ;;  %v16499_v15 = vld [vmem:[#allocation2 + $0x2a6c] ss:$16 sps:$4 sm:$0xff]  }
 0x5b9   :  { %11499 = vmatpush2.bf16.msra.mxu1 %v16437_v27  ;;  %11457 = vmatprep.subr.bf16.mxu0 %v16442_v9  ;;  %v16494_v27 = vld [vmem:[#allocation2 + $0x2868] ss:$16 sps:$4 sm:$0xff]  }
 0x5ba   :  { %11500 = vmatprep.subr.bf16.mxu1 %v16445_v61  ;;  %v16497_v9 = vld [vmem:[#allocation2 + $0x2a68] ss:$16 sps:$4 sm:$0xff]   ;;  %v16502_v61 = vld [vmem:[#allocation2 + $0x284c] ss:$16 sps:$4 sm:$0xff]  }
 0x5bc   :  { %11458 = vmatpush2.bf16.msra.mxu0 %v16440_v7  ;;  %v16505_v7 = vld [vmem:[#allocation2 + $0x2a4c] ss:$16 sps:$4 sm:$0xff]  }
 0x5bd   :  { %11501 = vmatpush2.bf16.msra.mxu1 %v16443_v47  ;;  %11459 = vmatprep.subr.bf16.mxu0 %v16448_v2  ;;  %v16500_v47 = vld [vmem:[#allocation2 + $0x2848] ss:$16 sps:$4 sm:$0xff]  }
 0x5be   :  { %11502 = vmatprep.subr.bf16.mxu1 %v16451_v3  ;;  %v16503_v2 = vld [vmem:[#allocation2 + $0x2a48] ss:$16 sps:$4 sm:$0xff]   ;;  %v16508_v3 = vld [vmem:[#allocation2 + $0x282c] ss:$16 sps:$4 sm:$0xff]  }
 0x5c0   :  { %11460 = vmatpush2.bf16.msra.mxu0 %v16446_v20  ;;  %v16511_v20 = vld [vmem:[#allocation2 + $0x2a2c] ss:$16 sps:$4 sm:$0xff]  }
 0x5c1   :  { %11503 = vmatpush2.bf16.msra.mxu1 %v16449_v44  ;;  %11461 = vmatprep.subr.bf16.mxu0 %v16454_v46  ;;  %v16506_v44 = vld [vmem:[#allocation2 + $0x2828] ss:$16 sps:$4 sm:$0xff]  }
 0x5c2   :  { %11504 = vmatprep.subr.bf16.mxu1 %v16457_v48  ;;  %v16509_v46 = vld [vmem:[#allocation2 + $0x2a28] ss:$16 sps:$4 sm:$0xff]   ;;  %v16514_v48 = vld [vmem:[#allocation2 + $0x280c] ss:$16 sps:$4 sm:$0xff]  }
 0x5c4   :  { %11462 = vmatpush2.bf16.msra.mxu0 %v16452_v49  ;;  %v16517_v49 = vld [vmem:[#allocation2 + $0x2a0c] ss:$16 sps:$4 sm:$0xff]  }
 0x5c5   :  { %11505 = vmatpush2.bf16.msra.mxu1 %v16455_v1  ;;  %11463 = vmatprep.subr.bf16.mxu0 %v16460_v51  ;;  %v16512_v1 = vld [vmem:[#allocation2 + $0x2808] ss:$16 sps:$4 sm:$0xff]  }
 0x5c6   :  { %11506 = vmatprep.subr.bf16.mxu1 %v16463_v8  ;;  %v16515_v51 = vld [vmem:[#allocation2 + $0x2a08] ss:$16 sps:$4 sm:$0xff]   ;;  %v16520_v8 = vld [vmem:[#allocation2 + $0x29ec] ss:$16 sps:$4 sm:$0xff]  }
 0x5c8   :  { %11464 = vmatpush2.bf16.msra.mxu0 %v16458_v21  ;;  %v16523_v21 = vld [vmem:[#allocation2 + $0x2bec] ss:$16 sps:$4 sm:$0xff]  }
 0x5c9   :  { %11507 = vmatpush2.bf16.msra.mxu1 %v16461_v52  ;;  %11465 = vmatprep.subr.bf16.mxu0 %v16466_v22  ;;  %v16518_v52 = vld [vmem:[#allocation2 + $0x29e8] ss:$16 sps:$4 sm:$0xff]  }
 0x5ca   :  { %11508 = vmatprep.subr.bf16.mxu1 %v16469_v23  ;;  %v16521_v22 = vld [vmem:[#allocation2 + $0x2be8] ss:$16 sps:$4 sm:$0xff]   ;;  %v16526_v23 = vld [vmem:[#allocation2 + $0x29cc] ss:$16 sps:$4 sm:$0xff]  }
 0x5cc   :  { %11466 = vmatpush2.bf16.msra.mxu0 %v16464_v45  ;;  %v16529_v45 = vld [vmem:[#allocation2 + $0x2bcc] ss:$16 sps:$4 sm:$0xff]  }
 0x5cd   :  { %11509 = vmatpush2.bf16.msra.mxu1 %v16467_v53  ;;  %11521 = vmatprep.subr.bf16.mxu0 %v16472_v33  ;;  %v16524_v53 = vld [vmem:[#allocation2 + $0x29c8] ss:$16 sps:$4 sm:$0xff]  }
 0x5ce   :  { %11564 = vmatprep.subr.bf16.mxu1 %v16475_v35  ;;  %v16527_v33 = vld [vmem:[#allocation2 + $0x2bc8] ss:$16 sps:$4 sm:$0xff]   ;;  %v16532_v35 = vld [vmem:[#allocation2 + $0x29ac] ss:$16 sps:$4 sm:$0xff]  }
 0x5cf   :  { %11468 = vmatmul.mubr.bf16.vlgmr.msra.gmra.mxu0 %v18060_v30  ;;  %v16541_v30 = vld [vmem:[#allocation2 + $0x2b8c] ss:$16 sps:$4 sm:$0xff]  }
 0x5d0   :  { %11511 = vmatmul.mubr.bf16.vlgmr.msra.gmra.mxu1 %v18061_v29  ;;  %11522 = vmatpush1.bf16.msra.mxu0 %v16470_v12  ;;  %v16535_v12 = vld [vmem:[#allocation2 + $0x2bac] ss:$16 sps:$4 sm:$0xff]   ;;  %v16536_v29 = vld [vmem:[#allocation2 + $0x2988] ss:$16 sps:$4 sm:$0xff]  }
 0x5d1   :  { %11565 = vmatpush1.bf16.msra.mxu1 %v16473_v17  ;;  %11523 = vmatprep.subr.bf16.mxu0 %v16478_v18  ;;  %v16530_v17 = vld [vmem:[#allocation2 + $0x29a8] ss:$16 sps:$4 sm:$0xff]  }
 0x5d2   :  { %11566 = vmatprep.subr.bf16.mxu1 %v16481_v28  ;;  %11553 = vmatprep.mubr.bf16.mxu0 %v18062_v32  ;;  %v16533_v18 = vld [vmem:[#allocation2 + $0x2ba8] ss:$16 sps:$4 sm:$0xff]   ;;  %v16538_v28 = vld [vmem:[#allocation2 + $0x298c] ss:$16 sps:$4 sm:$0xff]  }
 0x5d3   :  { %11596 = vmatprep.mubr.bf16.mxu1 %v18063_v42  ;;  %v16542_v42 = vld [vmem:[#allocation2 + $0x2968] ss:$16 sps:$4 sm:$0xff]  }
 0x5d4   :  { %11524 = vmatpush1.bf16.msra.mxu0 %v16476_v41  ;;  %v16539_v41 = vld [vmem:[#allocation2 + $0x2b88] ss:$16 sps:$4 sm:$0xff]  }
 0x5d5   :  { %11567 = vmatpush1.bf16.msra.mxu1 %v16479_v31  ;;  %11525 = vmatprep.subr.bf16.mxu0 %v16484_v56  ;;  %v16544_v31 = vld [vmem:[#allocation2 + $0x296c] ss:$16 sps:$4 sm:$0xff]  }
 0x5d6   :  { %11568 = vmatprep.subr.bf16.mxu1 %v16487_v25  ;;  %v16547_v56 = vld [vmem:[#allocation2 + $0x2b6c] ss:$16 sps:$4 sm:$0xff]  }
 0x5d7   :  { %v18064_v25 = vld [vmem:[#allocation16_spill] sm:$0xff] }
 0x5d8   :  { %11526 = vmatpush1.bf16.msra.mxu0 %v16482_v14  ;;  %v17694_v32 = vsub.s32 1, %v18064_v25  ;;  %v16545_v14 = vld [vmem:[#allocation2 + $0x2b68] ss:$16 sps:$4 sm:$0xff]  }
 0x5d9   :  { %11569 = vmatpush1.bf16.msra.mxu1 %v16485_v36  ;;  %11527 = vmatprep.subr.bf16.mxu0 %v16490_v62  ;;  %v16550_v36 = vld [vmem:[#allocation2 + $0x294c] ss:$16 sps:$4 sm:$0xff]  }
 0x5da   :  { %11570 = vmatprep.subr.bf16.mxu1 %v16493_v57  ;;  %18065 = vst [vmem:[#allocation40_spill] sm:$0xff] %v17694_v32  ;;  %v16553_v62 = vld [vmem:[#allocation2 + $0x2b4c] ss:$16 sps:$4 sm:$0xff]   ;;  %v17696_v57 = vld [vmem:[#allocation4] sm:$0xf] }
 0x5dc   :  { %11528 = vmatpush1.bf16.msra.mxu0 %v16488_v58  ;;  %v1696_v58 = vrot.slane %v17696_v57, %v17694_v32 }
 0x5dd   :  { %11571 = vmatpush1.bf16.msra.mxu1 %v16491_v37  ;;  %11529 = vmatprep.subr.bf16.mxu0 %v16496_v38  ;;  %v18066_v37 = vld [vmem:[#allocation20_spill] sm:$0xff] }
 0x5de   :  { %11572 = vmatprep.subr.bf16.mxu1 %v16499_v15  ;;  %v9670_v38 = vadd.f32 %v18066_v37, %v1696_v58  ;;  %v16548_v15 = vld [vmem:[#allocation2 + $0x2948] ss:$16 sps:$4 sm:$0xff]  }
 0x5df   :  { %v16575_v37 = vld [vmem:[#allocation2 + $0x2ec8] ss:$16 sps:$4 sm:$0xff]  }
 0x5e0   :  { %11530 = vmatpush1.bf16.msra.mxu0 %v16494_v27  ;;  %v16551_v27 = vld [vmem:[#allocation2 + $0x2b48] ss:$16 sps:$4 sm:$0xff]  }
 0x5e1   :  { %11573 = vmatpush1.bf16.msra.mxu1 %v16497_v9  ;;  %11531 = vmatprep.subr.bf16.mxu0 %v16502_v61  ;;  %v16556_v9 = vld [vmem:[#allocation2 + $0x292c] ss:$16 sps:$4 sm:$0xff]  }
 0x5e2   :  { %11574 = vmatprep.subr.bf16.mxu1 %v16505_v7  ;;  %v16559_v61 = vld [vmem:[#allocation2 + $0x2b2c] ss:$16 sps:$4 sm:$0xff]  }
 0x5e3   :  { %v18067_v7 = vld [vmem:[#allocation18_spill] sm:$0xff] }
 0x5e4   :  { %11532 = vmatpush1.bf16.msra.mxu0 %v16500_v47  ;;  %v9666_v47 = vadd.f32 %v18067_v7, %v1696_v58  ;;  %v16572_v58 = vld [vmem:[#allocation2 + $0x2cc8] ss:$16 sps:$4 sm:$0xff]  }
 0x5e5   :  { %11575 = vmatpush1.bf16.msra.mxu1 %v16503_v2  ;;  %11533 = vmatprep.subr.bf16.mxu0 %v16508_v3  ;;  %v18068_v2 = vld [vmem:[#allocation21_spill] sm:$0xff] }
 0x5e6   :  { %11576 = vmatprep.subr.bf16.mxu1 %v16511_v20  ;;  %v9713_v3 = vadd.f32 %v18068_v2, %v9670_v38  ;;  %v16554_v20 = vld [vmem:[#allocation2 + $0x2928] ss:$16 sps:$4 sm:$0xff]   ;;  %v16580_v38 = vld [vmem:[#allocation2 + $0x2cac] ss:$16 sps:$4 sm:$0xff]  }
 0x5e7   :  { %v16578_v2 = vld [vmem:[#allocation2 + $0x2ca8] ss:$16 sps:$4 sm:$0xff]  }
 0x5e8   :  { %11534 = vmatpush1.bf16.msra.mxu0 %v16506_v44  ;;  %v16557_v44 = vld [vmem:[#allocation2 + $0x2b28] ss:$16 sps:$4 sm:$0xff]  }
 0x5e9   :  { %11577 = vmatpush1.bf16.msra.mxu1 %v16509_v46  ;;  %11535 = vmatprep.subr.bf16.mxu0 %v16514_v48  ;;  %v16562_v46 = vld [vmem:[#allocation2 + $0x290c] ss:$16 sps:$4 sm:$0xff]  }
 0x5ea   :  { %11578 = vmatprep.subr.bf16.mxu1 %v16517_v49  ;;  %v16565_v48 = vld [vmem:[#allocation2 + $0x2b0c] ss:$16 sps:$4 sm:$0xff]   ;;  %v18069_v49 = vld [vmem:[#allocation19_spill] sm:$0xff] }
 0x5ec   :  { %11536 = vmatpush1.bf16.msra.mxu0 %v16512_v1  ;;  %v9709_v1 = vadd.f32 %v18069_v49, %v9666_v47  ;;  %v18082_v49 = vld [vmem:[#allocation31_spill] sm:$0xff] }
 0x5ed   :  { %11579 = vmatpush1.bf16.msra.mxu1 %v16515_v51  ;;  %11537 = vmatprep.subr.bf16.mxu0 %v16520_v8  ;;  %v18070_v51 = vld [vmem:[#allocation24_spill] sm:$0xff] }
 0x5ee   :  { %11580 = vmatprep.subr.bf16.mxu1 %v16523_v21  ;;  %v9756_v8 = vadd.f32 %v18070_v51, %v9713_v3  ;;  %v18071_v21 = vld [vmem:[#allocation22_spill] sm:$0xff]  ;;  %v18083_v51 = vld [vmem:[#allocation36_spill] sm:$0xff] }
 0x5ef   :  { %v16581_v3 = vld [vmem:[#allocation2 + $0x2ea8] ss:$16 sps:$4 sm:$0xff]  }
 0x5f0   :  { %11538 = vmatpush2.bf16.msra.mxu0 %v16518_v52  ;;  %v9752_v52 = vadd.f32 %v18071_v21, %v9709_v1  ;;  %v16592_v21 = vld [vmem:[#allocation2 + $0x2c6c] ss:$16 sps:$4 sm:$0xff]  }
 0x5f1   :  { %11581 = vmatpush2.bf16.msra.mxu1 %v16521_v22  ;;  %11539 = vmatprep.subr.bf16.mxu0 %v16526_v23  ;;  %v16560_v22 = vld [vmem:[#allocation2 + $0x2908] ss:$16 sps:$4 sm:$0xff]  }
 0x5f2   :  { %11582 = vmatprep.subr.bf16.mxu1 %v16529_v45  ;;  %v16563_v23 = vld [vmem:[#allocation2 + $0x2b08] ss:$16 sps:$4 sm:$0xff]   ;;  %v16568_v45 = vld [vmem:[#allocation2 + $0x2cec] ss:$16 sps:$4 sm:$0xff]  }
 0x5f4   :  { %11540 = vmatpush2.bf16.msra.mxu0 %v16524_v53  ;;  %v16571_v53 = vld [vmem:[#allocation2 + $0x2eec] ss:$16 sps:$4 sm:$0xff]  }
 0x5f5   :  { %11583 = vmatpush2.bf16.msra.mxu1 %v16527_v33  ;;  %11541 = vmatprep.subr.bf16.mxu0 %v16532_v35  ;;  %v18072_v33 = vld [vmem:[#allocation25_spill] sm:$0xff] }
 0x5f6   :  { %11584 = vmatprep.subr.bf16.mxu1 %v16535_v12  ;;  %v9799_v35 = vadd.f32 %v18072_v33, %v9756_v8  ;;  %v18073_v12 = vld [vmem:[#allocation23_spill] sm:$0xff] }
 0x5f7   :  { %v16590_v33 = vld [vmem:[#allocation2 + $0x2c68] ss:$16 sps:$4 sm:$0xff]  }
 0x5f8   :  { %11542 = vmatpush2.bf16.msra.mxu0 %v16530_v17  ;;  %v9795_v17 = vadd.f32 %v18073_v12, %v9752_v52  ;;  %v16595_v52 = vld [vmem:[#allocation2 + $0x2e6c] ss:$16 sps:$4 sm:$0xff]  }
 0x5f9   :  { %11585 = vmatpush2.bf16.msra.mxu1 %v16533_v18  ;;  %11543 = vmatprep.subr.bf16.mxu0 %v16538_v28  ;;  %v18074_v18 = vld [vmem:[#allocation28_spill] sm:$0xff] }
 0x5fa   :  { %11586 = vmatprep.subr.bf16.mxu1 %v16541_v30  ;;  %v9842_v28 = vadd.f32 %v18074_v18, %v9799_v35  ;;  %v16566_v30 = vld [vmem:[#allocation2 + $0x2ce8] ss:$16 sps:$4 sm:$0xff]   ;;  %v16598_v12 = vld [vmem:[#allocation2 + $0x2c4c] ss:$16 sps:$4 sm:$0xff]  }
 0x5fb   :  { %v16593_v35 = vld [vmem:[#allocation2 + $0x2e68] ss:$16 sps:$4 sm:$0xff]  }
 0x5fc   :  { %11544 = vmatpush2.bf16.msra.mxu0 %v16536_v29  ;;  %v16569_v29 = vld [vmem:[#allocation2 + $0x2ee8] ss:$16 sps:$4 sm:$0xff]  }
 0x5fd   :  { %11587 = vmatpush2.bf16.msra.mxu1 %v16539_v41  ;;  %11545 = vmatprep.subr.bf16.mxu0 %v16544_v31  ;;  %v16574_v41 = vld [vmem:[#allocation2 + $0x2ccc] ss:$16 sps:$4 sm:$0xff]   ;;  %v18086_v18 = vld [vmem:[#allocation35_spill] sm:$0xff] }
 0x5fe   :  { %11588 = vmatprep.subr.bf16.mxu1 %v16547_v56  ;;  %v16577_v31 = vld [vmem:[#allocation2 + $0x2ecc] ss:$16 sps:$4 sm:$0xff]  }
 0x5ff   :  { %v18075_v56 = vld [vmem:[#allocation26_spill] sm:$0xff] }
 0x600   :  { %11546 = vmatpush2.bf16.msra.mxu0 %v16542_v42  ;;  %v9838_v42 = vadd.f32 %v18075_v56, %v9795_v17  ;;  %v16601_v17 = vld [vmem:[#allocation2 + $0x2e4c] ss:$16 sps:$4 sm:$0xff]   ;;  %v16596_v56 = vld [vmem:[#allocation2 + $0x2c48] ss:$16 sps:$4 sm:$0xff]  }
 0x601   :  { %11589 = vmatpush2.bf16.msra.mxu1 %v16545_v14  ;;  %11547 = vmatprep.subr.bf16.mxu0 %v16550_v36  ;;  %v18076_v14 = vld [vmem:[#allocation48_spill] sm:$0xff]  ;;  %v18077_v36 = vld [vmem:[#allocation29_spill] sm:$0xff] }
 0x602   :  { %11590 = vmatprep.subr.bf16.mxu1 %v16553_v62  ;;  %v9885_v62 = vadd.f32 %v18077_v36, %v9842_v28  ;;  %v16607_v36 = vld [vmem:[#allocation2 + $0x2e2c] ss:$16 sps:$4 sm:$0xff]  }
 0x604   :  { %11548 = vmatpush2.bf16.msra.mxu0 %v16548_v15  ;;  %v16583_v15 = vld [vmem:[#allocation2 + $0x2eac] ss:$16 sps:$4 sm:$0xff]  }
 0x605   :  { %11591 = vmatpush2.bf16.msra.mxu1 %v16551_v27  ;;  %11549 = vmatprep.subr.bf16.mxu0 %v16556_v9  ;;  %v18078_v27 = vld [vmem:[#allocation27_spill] sm:$0xff] }
 0x606   :  { %11592 = vmatprep.subr.bf16.mxu1 %v16559_v61  ;;  %v9881_v9 = vadd.f32 %v18078_v27, %v9838_v42  ;;  %v18079_v61 = vld [vmem:[#allocation32_spill] sm:$0xff] }
 0x607   :  { %v9928_v7 = vadd.f32 %v18079_v61, %v9885_v62  ;;  %v16599_v42 = vld [vmem:[#allocation2 + $0x2e48] ss:$16 sps:$4 sm:$0xff]  }
 0x608   :  { %11550 = vmatpush2.bf16.msra.mxu0 %v16554_v20  ;;  %v16586_v20 = vld [vmem:[#allocation2 + $0x2c8c] ss:$16 sps:$4 sm:$0xff]   ;;  %v18089_v62 = vld [vmem:[#allocation43_spill] sm:$0xff] }
 0x609   :  { %11593 = vmatpush2.bf16.msra.mxu1 %v16557_v44  ;;  %11551 = vmatprep.subr.bf16.mxu0 %v16562_v46  ;;  %v16589_v44 = vld [vmem:[#allocation2 + $0x2e8c] ss:$16 sps:$4 sm:$0xff]   ;;  %v18081_v46 = vld [vmem:[#allocation33_spill] sm:$0xff] }
 0x60a   :  { %11594 = vmatprep.subr.bf16.mxu1 %v16565_v48  ;;  %v9971_v48 = vadd.f32 %v18081_v46, %v9928_v7  ;;  %v16605_v61 = vld [vmem:[#allocation2 + $0x2e28] ss:$16 sps:$4 sm:$0xff]   ;;  %v16610_v7 = vld [vmem:[#allocation2 + $0x2c0c] ss:$16 sps:$4 sm:$0xff]  }
 0x60b   :  { %v16611_v46 = vld [vmem:[#allocation2 + $0x2e08] ss:$16 sps:$4 sm:$0xff]  }
 0x60c   :  { %11552 = vmatpush2.bf16.msra.mxu0 %v16560_v22  ;;  %v10014_v8 = vadd.f32 %v18083_v51, %v9971_v48  ;;  %v18084_v22 = vld [vmem:[#allocation34_spill] sm:$0xff] }
 0x60d   :  { %11595 = vmatpush2.bf16.msra.mxu1 %v16563_v23  ;;  %11607 = vmatprep.subr.bf16.mxu0 %v16568_v45  ;;  %v18085_v45 = vld [vmem:[#allocation37_spill] sm:$0xff]  ;;  %v16616_v48 = vld [vmem:[#allocation2 + $0x2dec] ss:$16 sps:$4 sm:$0xff]  }
 0x60e   :  { %11650 = vmatprep.subr.bf16.mxu1 %v16571_v53  ;;  %v10057_v53 = vadd.f32 %v18085_v45, %v10014_v8  ;;  %v18095_v45 = vld [vmem:[#allocation51_spill] sm:$0xff] }
 0x60f   :  { %11554 = vmatmul.mubr.bf16.vlgmr.msra.gmra.mxu0 %v17555_v63  ;;  %v18080_v63 = vld [vmem:[#allocation30_spill] sm:$0xff] }
 0x610   :  { %11597 = vmatmul.mubr.bf16.vlgmr.msra.gmra.mxu1 %v18076_v14  ;;  %11608 = vmatpush1.bf16.msra.mxu0 %v16566_v30  ;;  %v9924_v47 = vadd.f32 %v18080_v63, %v9881_v9  ;;  %v18087_v30 = vld [vmem:[#allocation42_spill] sm:$0xff] }
 0x611   :  { %11651 = vmatpush1.bf16.msra.mxu1 %v16569_v29  ;;  %11609 = vmatprep.subr.bf16.mxu0 %v16574_v41  ;;  %v10100_v29 = vadd.f32 %v18087_v30, %v10057_v53  ;;  %v18088_v41 = vld [vmem:[#allocation38_spill] sm:$0xff] }
 0x612   :  { %11652 = vmatprep.subr.bf16.mxu1 %v16577_v31  ;;  %11639 = vmatprep.mubr.bf16.mxu0 %v17567_v13  ;;  %v9967_v1 = vadd.f32 %v18082_v49, %v9924_v47  ;;  %v16584_v13 = vld [vmem:[#allocation2 + $0x2c88] ss:$16 sps:$4 sm:$0xff]   ;;  %v16604_v14 = vld [vmem:[#allocation2 + $0x2c2c] ss:$16 sps:$4 sm:$0xff]  }
 0x613   :  { %11682 = vmatprep.mubr.bf16.mxu1 %v17571_v50  ;;  %v16587_v50 = vld [vmem:[#allocation2 + $0x2e88] ss:$16 sps:$4 sm:$0xff]   ;;  %v16613_v63 = vld [vmem:[#allocation2 + $0x2e0c] ss:$16 sps:$4 sm:$0xff]  }
 0x614   :  { %11610 = vmatpush1.bf16.msra.mxu0 %v16572_v58  ;;  %v10010_v23 = vadd.f32 %v18084_v22, %v9967_v1  ;;  %v10143_v58 = vadd.f32 %v18089_v62, %v10100_v29  ;;  %v16602_v9 = vld [vmem:[#allocation2 + $0x2c28] ss:$16 sps:$4 sm:$0xff]   ;;  %v16619_v49 = vld [vmem:[#allocation2 + $0x2fec] ss:$16 sps:$4 sm:$0xff]  }
 0x615   :  { %11653 = vmatpush1.bf16.msra.mxu1 %v16575_v37  ;;  %11611 = vmatprep.subr.bf16.mxu0 %v16580_v38  ;;  %v18090_v37 = vld [vmem:[#allocation39_spill] sm:$0xff]  ;;  %v18092_v47 = vld [vmem:[#allocation46_spill] sm:$0xff] }
 0x616   :  { %11654 = vmatprep.subr.bf16.mxu1 %v16583_v15  ;;  %v10053_v28 = vadd.f32 %v18086_v18, %v10010_v23  ;;  %v18091_v15 = vld [vmem:[#allocation49_spill] sm:$0xff]  ;;  %v18094_v1 = vld [vmem:[#allocation47_spill] sm:$0xff]  ;;  %v16625_v22 = vld [vmem:[#allocation2 + $0x2fcc] ss:$16 sps:$4 sm:$0xff]  }
 0x617   :  { %v10186_v27 = vadd.f32 %v18091_v15, %v10143_v58  ;;  %v16634_v30 = vld [vmem:[#allocation2 + $0x2d8c] ss:$16 sps:$4 sm:$0xff]  }
 0x618   :  { %11612 = vmatpush1.bf16.msra.mxu0 %v16578_v2  ;;  %v10096_v31 = vadd.f32 %v18088_v41, %v10053_v28  ;;  %v16626_v28 = vld [vmem:[#allocation2 + $0x2da8] ss:$16 sps:$4 sm:$0xff]   ;;  %v16649_v58 = vld [vmem:[#allocation2 + $0x2f4c] ss:$16 sps:$4 sm:$0xff]  }
 0x619   :  { %11655 = vmatpush1.bf16.msra.mxu1 %v16581_v3  ;;  %11613 = vmatprep.subr.bf16.mxu0 %v16586_v20  ;;  %v18093_v3 = vld [vmem:[#allocation50_spill] sm:$0xff] }
 0x61a   :  { %11656 = vmatprep.subr.bf16.mxu1 %v16589_v44  ;;  %v10139_v38 = vadd.f32 %v18090_v37, %v10096_v31  ;;  %v10229_v20 = vadd.f32 %v18093_v3, %v10186_v27  ;;  %v16608_v44 = vld [vmem:[#allocation2 + $0x2c08] ss:$16 sps:$4 sm:$0xff]  }
 0x61b   :  { %v16647_v27 = vld [vmem:[#allocation2 + $0x2f48] ss:$16 sps:$4 sm:$0xff]  }
 0x61c   :  { %11614 = vmatpush1.bf16.msra.mxu0 %v16584_v13  ;;  %v10182_v2 = vadd.f32 %v18092_v47, %v10139_v38  ;;  %v10272_v8 = vadd.f32 %v17595_v16, %v10229_v20  ;;  %v16623_v16 = vld [vmem:[#allocation2 + $0x2fc8] ss:$16 sps:$4 sm:$0xff]   ;;  %v10615_v38 = vpop.f32.mrf.mxu0  ;;  %v10658_v47 = vpop.f32.mrf.mxu1 }
 0x61d   :  { %11657 = vmatpush1.bf16.msra.mxu1 %v16587_v50  ;;  %11615 = vmatprep.subr.bf16.mxu0 %v16592_v21  ;;  %v16614_v50 = vld [vmem:[#allocation2 + $0x2de8] ss:$16 sps:$4 sm:$0xff]  }
 0x61e   :  { %11658 = vmatprep.subr.bf16.mxu1 %v16595_v52  ;;  %v10225_v51 = vadd.f32 %v18094_v1, %v10182_v2  ;;  %v16617_v21 = vld [vmem:[#allocation2 + $0x2fe8] ss:$16 sps:$4 sm:$0xff]   ;;  %v16622_v52 = vld [vmem:[#allocation2 + $0x2dcc] ss:$16 sps:$4 sm:$0xff]   ;;  %v10315_v23 = vadd.f32 %v17597_v4, %v10272_v8 }
 0x61f   :  { %v16629_v4 = vld [vmem:[#allocation2 + $0x2fa8] ss:$16 sps:$4 sm:$0xff]   ;;  %v16661_v2 = vld [vmem:[#allocation2 + $0x2f0c] ss:$16 sps:$4 sm:$0xff]  }
 0x620   :  { %11616 = vmatpush1.bf16.msra.mxu0 %v16590_v33  ;;  %v10268_v13 = vadd.f32 %v17576_v11, %v10225_v51  ;;  %v10358_v33 = vadd.f32 %v17613_v55, %v10315_v23  ;;  %v16628_v11 = vld [vmem:[#allocation2 + $0x2dac] ss:$16 sps:$4 sm:$0xff]   ;;  %v16667_v1 = vld [vmem:[#allocation6 + $0x64] ss:$8 sps:$4 sm:$0xff]  }
 0x621   :  { %11659 = vmatpush1.bf16.msra.mxu1 %v16593_v35  ;;  %11617 = vmatprep.subr.bf16.mxu0 %v16598_v12  ;;  %v16620_v35 = vld [vmem:[#allocation2 + $0x2dc8] ss:$16 sps:$4 sm:$0xff]   ;;  %v16631_v12 = vld [vmem:[#allocation2 + $0x2fac] ss:$16 sps:$4 sm:$0xff]  }
 0x622   :  { %11660 = vmatprep.subr.bf16.mxu1 %v16601_v17  ;;  %v10311_v53 = vadd.f32 %v18095_v45, %v10268_v13  ;;  %v10401_v18 = vadd.f32 %v17615_v40, %v10358_v33  ;;  %v16637_v55 = vld [vmem:[#allocation2 + $0x2f8c] ss:$16 sps:$4 sm:$0xff]   ;;  %v18097_v13 = vld [vmem:[#allocation53_spill] sm:$0xff] }
 0x623   :  { %v16640_v40 = vld [vmem:[#allocation2 + $0x2d6c] ss:$16 sps:$4 sm:$0xff]   ;;  %v16712_v45 = vld [vmem:[#allocation6 + $0x174] ss:$8 sps:$4 sm:$0xff]   ;;  %v16715_v33 = vld [vmem:[#allocation6 + $0x164] ss:$8 sps:$4 sm:$0xff]  }
 0x624   :  { %11618 = vmatpush1.bf16.msra.mxu0 %v16596_v56  ;;  %v10354_v17 = vadd.f32 %v17602_v6, %v10311_v53  ;;  %v10444_v41 = vadd.f32 %v17631_v26, %v10401_v18  ;;  %v16632_v56 = vld [vmem:[#allocation2 + $0x2d88] ss:$16 sps:$4 sm:$0xff]   ;;  %v16710_v23 = vld [vmem:[#allocation6 + $0x170] ss:$8 sps:$4 sm:$0xff]   ;;  %v16677_v18 = vld [vmem:[#allocation6 + $0x20] ss:$8 sps:$4 sm:$0xff]  }
 0x625   :  { %11661 = vmatpush1.bf16.msra.mxu1 %v16599_v42  ;;  %11619 = vmatprep.subr.bf16.mxu0 %v16604_v14  ;;  %v16635_v6 = vld [vmem:[#allocation2 + $0x2f88] ss:$16 sps:$4 sm:$0xff]   ;;  %v16643_v42 = vld [vmem:[#allocation2 + $0x2f6c] ss:$16 sps:$4 sm:$0xff]  }
 0x626   :  { %11662 = vmatprep.subr.bf16.mxu1 %v16607_v36  ;;  %v10397_v29 = vadd.f32 %v17604_v0, %v10354_v17  ;;  %v10487_v14 = vadd.f32 %v17633_v24, %v10444_v41  ;;  %v16638_v0 = vld [vmem:[#allocation2 + $0x2d68] ss:$16 sps:$4 sm:$0xff]   ;;  %v16716_v17 = vld [vmem:[#allocation6 + $0x150] ss:$8 sps:$4 sm:$0xff]  }
 0x627   :  { %v16641_v26 = vld [vmem:[#allocation2 + $0x2f68] ss:$16 sps:$4 sm:$0xff]  }
 0x628   :  { %11620 = vmatpush1.bf16.msra.mxu0 %v16602_v9  ;;  %v10440_v31 = vadd.f32 %v17620_v34, %v10397_v29  ;;  %v10530_v62 = vadd.f32 %v17649_v43, %v10487_v14  ;;  %v16646_v34 = vld [vmem:[#allocation2 + $0x2d4c] ss:$16 sps:$4 sm:$0xff]   ;;  %v16644_v24 = vld [vmem:[#allocation2 + $0x2d48] ss:$16 sps:$4 sm:$0xff]  }
 0x629   :  { %11663 = vmatpush1.bf16.msra.mxu1 %v16605_v61  ;;  %11621 = vmatprep.subr.bf16.mxu0 %v16610_v7  ;;  %v16655_v43 = vld [vmem:[#allocation2 + $0x2f2c] ss:$16 sps:$4 sm:$0xff]   ;;  %v16676_v53 = vld [vmem:[#allocation6 + $0x34] ss:$8 sps:$4 sm:$0xff]   ;;  %v16685_v41 = vld [vmem:[#allocation6 + $0x4] ss:$8 sps:$4 sm:$0xff]  }
 0x62a   :  { %11664 = vmatprep.subr.bf16.mxu1 %v16613_v63  ;;  %v10483_v36 = vadd.f32 %v17622_v39, %v10440_v31  ;;  %v10573_v15 = vadd.f32 %v17651_v60, %v10530_v62  ;;  %v16652_v39 = vld [vmem:[#allocation2 + $0x2d2c] ss:$16 sps:$4 sm:$0xff]   ;;  %v16650_v63 = vld [vmem:[#allocation2 + $0x2d28] ss:$16 sps:$4 sm:$0xff]  }
 0x62b   :  { %v16658_v60 = vld [vmem:[#allocation2 + $0x2d0c] ss:$16 sps:$4 sm:$0xff]   ;;  %v16724_v29 = vld [vmem:[#allocation6 + $0x134] ss:$8 sps:$4 sm:$0xff]   ;;  %v16691_v62 = vld [vmem:[#allocation6 + $0xe4] ss:$8 sps:$4 sm:$0xff]  }
 0x62c   :  { %11622 = vmatpush1.bf16.msra.mxu0 %v16608_v44  ;;  %v10526_v37 = vadd.f32 %v17638_v19, %v10483_v36  ;;  %v10616_v61 = vadd.f32 %v10615_v38, %v10573_v15  ;;  %v16653_v19 = vld [vmem:[#allocation2 + $0x2f28] ss:$16 sps:$4 sm:$0xff]   ;;  %v16722_v31 = vld [vmem:[#allocation6 + $0x130] ss:$8 sps:$4 sm:$0xff]  }
 0x62d   :  { %11665 = vmatpush1.bf16.msra.mxu1 %v16611_v46  ;;  %11623 = vmatprep.subr.bf16.mxu0 %v16616_v48  ;;  %v16656_v44 = vld [vmem:[#allocation2 + $0x2d08] ss:$16 sps:$4 sm:$0xff]   ;;  %v16686_v14 = vld [vmem:[#allocation6 + $0xf0] ss:$8 sps:$4 sm:$0xff]  }
 0x62e   :  { %11666 = vmatprep.subr.bf16.mxu1 %v16619_v49  ;;  %v10569_v9 = vadd.f32 %v17640_v59, %v10526_v37  ;;  %v10659_v3 = vadd.f32 %v10658_v47, %v10616_v61  ;;  %v16659_v46 = vld [vmem:[#allocation2 + $0x2f08] ss:$16 sps:$4 sm:$0xff]   ;;  %v16662_v49 = vld [vmem:[#allocation6 + $0x70] ss:$8 sps:$4 sm:$0xff]   ;;  %v16731_v37 = vld [vmem:[#allocation6 + $0x100] ss:$8 sps:$4 sm:$0xff]  }
 0x62f   :  { %v16664_v59 = vld [vmem:[#allocation6 + $0x74] ss:$8 sps:$4 sm:$0xff]   ;;  %v18096_v8 = vld [vmem:[#allocation52_spill] sm:$0xff]  ;;  %v16692_v38 = vld [vmem:[#allocation6 + $0xd0] ss:$8 sps:$4 sm:$0xff]  }
 0x630   :  { %11624 = vmatpush2.bf16.msra.mxu0 %v16614_v50  ;;  %v10612_v7 = vadd.f32 %v17656_v5, %v10569_v9  ;;  %v11698_v5 = vmax.f32 %v10659_v3, 0.0  ;;  %v16670_v50 = vld [vmem:[#allocation6 + $0x54] ss:$8 sps:$4 sm:$0xff]   ;;  %v16695_v9 = vld [vmem:[#allocation6 + $0xc0] ss:$8 sps:$4 sm:$0xff]  }
 0x631   :  { %11667 = vmatpush2.bf16.msra.mxu1 %v16617_v21  ;;  %11625 = vmatprep.subr.bf16.mxu0 %v16622_v52  ;;  %v16668_v21 = vld [vmem:[#allocation6 + $0x50] ss:$8 sps:$4 sm:$0xff]   ;;  %v16673_v52 = vld [vmem:[#allocation6 + $0x44] ss:$8 sps:$4 sm:$0xff]   ;;  %v16730_v36 = vld [vmem:[#allocation6 + $0x114] ss:$8 sps:$4 sm:$0xff]  }
 0x632   :  { %11668 = vmatprep.subr.bf16.mxu1 %v16625_v22  ;;  %v10655_v20 = vadd.f32 %v17658_v54, %v10612_v7  ;;  %v16665_v54 = vld [vmem:[#allocation6 + $0x60] ss:$8 sps:$4 sm:$0xff]   ;;  %v16736_v15 = vld [vmem:[#allocation6 + $0x1f4] ss:$8 sps:$4 sm:$0xff]   ;;  %v16739_v61 = vld [vmem:[#allocation6 + $0x1e4] ss:$8 sps:$4 sm:$0xff]  }
 0x633   :  { %v16671_v22 = vld [vmem:[#allocation6 + $0x40] ss:$8 sps:$4 sm:$0xff]  }
 0x634   :  { %11626 = vmatpush2.bf16.msra.mxu0 %v16620_v35  ;;  %v11694_v48 = vmax.f32 %v10655_v20, 0.0  ;;  %v16713_v35 = vld [vmem:[#allocation6 + $0x160] ss:$8 sps:$4 sm:$0xff]  }
 0x635   :  { %11669 = vmatpush2.bf16.msra.mxu1 %v16623_v16  ;;  %11627 = vmatprep.subr.bf16.mxu0 %v16628_v11  ;;  %v16674_v16 = vld [vmem:[#allocation6 + $0x30] ss:$8 sps:$4 sm:$0xff]   ;;  %v16718_v11 = vld [vmem:[#allocation6 + $0x154] ss:$8 sps:$4 sm:$0xff]   ;;  %v16737_v47 = vld [vmem:[#allocation6 + $0x1e0] ss:$8 sps:$4 sm:$0xff]  }
 0x636   :  { %11670 = vmatprep.subr.bf16.mxu1 %v16631_v12  ;;  %v11702_v51 = vpack.c.bf16 %v11698_v5, %v11694_v48  ;;  %v16679_v12 = vld [vmem:[#allocation6 + $0x24] ss:$8 sps:$4 sm:$0xff]  }
 0x637   :  { %v16745_v5 = vld [vmem:[#allocation6 + $0x1c4] ss:$8 sps:$4 sm:$0xff]  }
 0x638   :  { %11628 = vmatpush2.bf16.msra.mxu0 %v16626_v28  ;;  %v16721_v28 = vld [vmem:[#allocation6 + $0x144] ss:$8 sps:$4 sm:$0xff]  }
 0x639   :  { %11671 = vmatpush2.bf16.msra.mxu1 %v16629_v4  ;;  %11629 = vmatprep.subr.bf16.mxu0 %v16634_v30  ;;  %v16682_v4 = vld [vmem:[#allocation6 + $0x14] ss:$8 sps:$4 sm:$0xff]   ;;  %v16719_v30 = vld [vmem:[#allocation6 + $0x140] ss:$8 sps:$4 sm:$0xff]  }
 0x63a   :  { %11672 = vmatprep.subr.bf16.mxu1 %v16637_v55  ;;  %v16680_v55 = vld [vmem:[#allocation6 + $0x10] ss:$8 sps:$4 sm:$0xff]  }
 0x63c   :  { %11630 = vmatpush2.bf16.msra.mxu0 %v16632_v56  ;;  %v16683_v56 = vld [vmem:[#allocation6] ss:$8 sps:$4 sm:$0xff]  }
 0x63d   :  { %11673 = vmatpush2.bf16.msra.mxu1 %v16635_v6  ;;  %11631 = vmatprep.subr.bf16.mxu0 %v16640_v40  ;;  %v16727_v6 = vld [vmem:[#allocation6 + $0x124] ss:$8 sps:$4 sm:$0xff]   ;;  %v16688_v40 = vld [vmem:[#allocation6 + $0xf4] ss:$8 sps:$4 sm:$0xff]  }
 0x63e   :  { %11674 = vmatprep.subr.bf16.mxu1 %v16643_v42  ;;  %v16725_v42 = vld [vmem:[#allocation6 + $0x120] ss:$8 sps:$4 sm:$0xff]  }
 0x640   :  { %11632 = vmatpush2.bf16.msra.mxu0 %v16638_v0  ;;  %v16728_v0 = vld [vmem:[#allocation6 + $0x110] ss:$8 sps:$4 sm:$0xff]  }
 0x641   :  { %11675 = vmatpush2.bf16.msra.mxu1 %v16641_v26  ;;  %11633 = vmatprep.subr.bf16.mxu0 %v16646_v34  ;;  %v16689_v26 = vld [vmem:[#allocation6 + $0xe0] ss:$8 sps:$4 sm:$0xff]   ;;  %v16733_v34 = vld [vmem:[#allocation6 + $0x104] ss:$8 sps:$4 sm:$0xff]  }
 0x642   :  { %11676 = vmatprep.subr.bf16.mxu1 %v16649_v58  ;;  %v16694_v58 = vld [vmem:[#allocation6 + $0xd4] ss:$8 sps:$4 sm:$0xff]  }
 0x644   :  { %11634 = vmatpush2.bf16.msra.mxu0 %v16644_v24  ;;  %v17752_v24 = vpop.f32.mrf.mxu0 }
 0x645   :  { %11677 = vmatpush2.bf16.msra.mxu1 %v16647_v27  ;;  %11635 = vmatprep.subr.bf16.mxu0 %v16652_v39  ;;  %v17754_v27 = vpop.f32.mrf.mxu1  ;;  %v16697_v39 = vld [vmem:[#allocation6 + $0xc4] ss:$8 sps:$4 sm:$0xff]  }
 0x646   :  { %11678 = vmatprep.subr.bf16.mxu1 %v16655_v43  ;;  %v16734_v43 = vld [vmem:[#allocation6 + $0x1f0] ss:$8 sps:$4 sm:$0xff]   ;;  %v17756_v7 = vpop.f32.mrf.mxu0 }
 0x648   :  { %11636 = vmatpush2.bf16.msra.mxu0 %v16650_v63  ;;  %v17758_v63 = vpop.f32.mrf.mxu1  ;;  %v17760_v3 = vpop.f32.mrf.mxu0 }
 0x649   :  { %11679 = vmatpush2.bf16.msra.mxu1 %v16653_v19  ;;  %11637 = vmatprep.subr.bf16.mxu0 %v16658_v60  ;;  %v16700_v19 = vld [vmem:[#allocation6 + $0xb4] ss:$8 sps:$4 sm:$0xff]   ;;  %v16698_v60 = vld [vmem:[#allocation6 + $0xb0] ss:$8 sps:$4 sm:$0xff]  }
 0x64a   :  { %11680 = vmatprep.subr.bf16.mxu1 %v16661_v2  ;;  %v16742_v2 = vld [vmem:[#allocation6 + $0x1d4] ss:$8 sps:$4 sm:$0xff]   ;;  %v17762_v20 = vpop.f32.mrf.mxu1  ;;  %v17764_v48 = vpop.f32.mrf.mxu0 }
 0x64c   :  { %11638 = vmatpush2.bf16.msra.mxu0 %v16656_v44  ;;  %v16703_v44 = vld [vmem:[#allocation6 + $0xa4] ss:$8 sps:$4 sm:$0xff]  }
 0x64d   :  { %11681 = vmatpush2.bf16.msra.mxu1 %v16659_v46  ;;  %12101 = vmatprep.subr.bf16.mxu0 %v16664_v59  ;;  %v16740_v46 = vld [vmem:[#allocation6 + $0x1d0] ss:$8 sps:$4 sm:$0xff]   ;;  %v16701_v59 = vld [vmem:[#allocation6 + $0xa0] ss:$8 sps:$4 sm:$0xff]  }
 0x64e   :  { %12144 = vmatprep.subr.bf16.mxu1 %v16712_v45 }
 0x64f   :  { %11640 = vmatmul.mubr.bf16.vlgmr.msra.gmra.mxu0 %v18096_v8 }
 0x650   :  { %11683 = vmatmul.mubr.bf16.vlgmr.msra.gmra.mxu1 %v18097_v13  ;;  %12102 = vmatpush1.bf16.msra.mxu0 %v16662_v49  ;;  %v17766_v49 = vpop.f32.mrf.mxu1  ;;  %v16743_v13 = vld [vmem:[#allocation6 + $0x1c0] ss:$8 sps:$4 sm:$0xff]  }
 0x651   :  { %12133 = vmatprep.mubr.bf16.mxu0 %v11702_v51  ;;  %12103 = vmatprep.subr.bf16.mxu0 %v16667_v1  ;;  %v16706_v1 = vld [vmem:[#allocation6 + $0x94] ss:$8 sps:$4 sm:$0xff]   ;;  %v17768_v51 = vpop.f32.mrf.mxu0 }
 0x652   :  { %12145 = vmatpush1.bf16.msra.mxu1 %v16710_v23  ;;  %v17770_v8 = vpop.f32.mrf.mxu1 }
 0x653   :  { %12146 = vmatprep.subr.bf16.mxu1 %v16715_v33  ;;  %v16746_v33 = vld [vmem:[#allocation6 + $0x1b0] ss:$8 sps:$4 sm:$0xff]  }
 0x654   :  { %12104 = vmatpush1.bf16.msra.mxu0 %v16665_v54  ;;  %v16704_v54 = vld [vmem:[#allocation6 + $0x90] ss:$8 sps:$4 sm:$0xff]  }
 0x655   :  { %12105 = vmatprep.subr.bf16.mxu0 %v16670_v50  ;;  %v16709_v50 = vld [vmem:[#allocation6 + $0x84] ss:$8 sps:$4 sm:$0xff]  }
 0x656   :  { %12147 = vmatpush1.bf16.msra.mxu1 %v16713_v35 }
 0x657   :  { %12148 = vmatprep.subr.bf16.mxu1 %v16718_v11 }
 0x658   :  { %12106 = vmatpush1.bf16.msra.mxu0 %v16668_v21  ;;  %v17772_v21 = vpop.f32.mrf.mxu0 }
 0x659   :  { %12107 = vmatprep.subr.bf16.mxu0 %v16673_v52  ;;  %v17774_v52 = vpop.f32.mrf.mxu1 }
 0x65a   :  { %12149 = vmatpush1.bf16.msra.mxu1 %v16716_v17  ;;  %v17776_v23 = vpop.f32.mrf.mxu0  ;;  %v16751_v17 = vld [vmem:[#allocation6 + $0x1a4] ss:$8 sps:$4 sm:$0xff]  }
 0x65b   :  { %12150 = vmatprep.subr.bf16.mxu1 %v16721_v28  ;;  %v17778_v45 = vpop.f32.mrf.mxu1 }
 0x65c   :  { %12108 = vmatpush1.bf16.msra.mxu0 %v16671_v22  ;;  %v16707_v22 = vld [vmem:[#allocation6 + $0x80] ss:$8 sps:$4 sm:$0xff]   ;;  %v17780_v35 = vpop.f32.mrf.mxu0 }
 0x65d   :  { %12109 = vmatprep.subr.bf16.mxu0 %v16676_v53  ;;  %v16748_v53 = vld [vmem:[#allocation6 + $0x1b4] ss:$8 sps:$4 sm:$0xff]  }
 0x65e   :  { %12151 = vmatpush1.bf16.msra.mxu1 %v16719_v30  ;;  %v17785_v11 = vpop.f32.mrf.mxu0  ;;  %v16754_v30 = vld [vmem:[#allocation6 + $0x194] ss:$8 sps:$4 sm:$0xff]  }
 0x65f   :  { %12152 = vmatprep.subr.bf16.mxu1 %v16724_v29 }
 0x660   :  { %12110 = vmatpush1.bf16.msra.mxu0 %v16674_v16  ;;  %v17782_v16 = vpop.f32.mrf.mxu1  ;;  %v17789_v28 = vpop.f32.mrf.mxu0 }
 0x661   :  { %12111 = vmatprep.subr.bf16.mxu0 %v16679_v12 }
 0x662   :  { %12153 = vmatpush1.bf16.msra.mxu1 %v16722_v31  ;;  %v17787_v12 = vpop.f32.mrf.mxu1  ;;  %v17793_v29 = vpop.f32.mrf.mxu0  ;;  %v16755_v31 = vld [vmem:[#allocation6 + $0x180] ss:$8 sps:$4 sm:$0xff]  }
 0x663   :  { %12154 = vmatprep.subr.bf16.mxu1 %v16727_v6 }
 0x664   :  { %12112 = vmatpush1.bf16.msra.mxu0 %v16677_v18  ;;  %v16749_v18 = vld [vmem:[#allocation6 + $0x1a0] ss:$8 sps:$4 sm:$0xff]  }
 0x665   :  { %12113 = vmatprep.subr.bf16.mxu0 %v16682_v4  ;;  %v17791_v4 = vpop.f32.mrf.mxu1 }
 0x666   :  { %12155 = vmatpush1.bf16.msra.mxu1 %v16725_v42 }
 0x667   :  { %12156 = vmatprep.subr.bf16.mxu1 %v16730_v36 }
 0x668   :  { %12114 = vmatpush1.bf16.msra.mxu0 %v16680_v55  ;;  %v16752_v55 = vld [vmem:[#allocation6 + $0x190] ss:$8 sps:$4 sm:$0xff]  }
 0x669   :  { %12115 = vmatprep.subr.bf16.mxu0 %v16685_v41  ;;  %v16757_v41 = vld [vmem:[#allocation6 + $0x184] ss:$8 sps:$4 sm:$0xff]  }
 0x66a   :  { %12157 = vmatpush1.bf16.msra.mxu1 %v16728_v0 }
 0x66b   :  { %12158 = vmatprep.subr.bf16.mxu1 %v16733_v34 }
 0x66c   :  { %12116 = vmatpush1.bf16.msra.mxu0 %v16683_v56  ;;  %v17797_v56 = vpop.f32.mrf.mxu0 }
 0x66d   :  { %12117 = vmatprep.subr.bf16.mxu0 %v16688_v40 }
 0x66e   :  { %12159 = vmatpush1.bf16.msra.mxu1 %v16731_v37  ;;  %v17801_v40 = vpop.f32.mrf.mxu0 }
 0x66f   :  { %12160 = vmatprep.subr.bf16.mxu1 %v16736_v15 }
 0x670   :  { %12118 = vmatpush2.bf16.msra.mxu0 %v16686_v14  ;;  %v17805_v14 = vpop.f32.mrf.mxu0 }
 0x671   :  { %12119 = vmatprep.subr.bf16.mxu0 %v16691_v62 }
 0x672   :  { %12161 = vmatpush2.bf16.msra.mxu1 %v16734_v43  ;;  %v17809_v62 = vpop.f32.mrf.mxu0 }
 0x673   :  { %12162 = vmatprep.subr.bf16.mxu1 %v16739_v61 }
 0x674   :  { %12120 = vmatpush2.bf16.msra.mxu0 %v16689_v26  ;;  %v17813_v26 = vpop.f32.mrf.mxu0 }
 0x675   :  { %12121 = vmatprep.subr.bf16.mxu0 %v16694_v58 }
 0x676   :  { %12163 = vmatpush2.bf16.msra.mxu1 %v16737_v47  ;;  %v17817_v58 = vpop.f32.mrf.mxu0 }
 0x677   :  { %12164 = vmatprep.subr.bf16.mxu1 %v16742_v2 }
 0x678   :  { %12122 = vmatpush2.bf16.msra.mxu0 %v16692_v38  ;;  %v17821_v38 = vpop.f32.mrf.mxu0 }
 0x679   :  { %12123 = vmatprep.subr.bf16.mxu0 %v16697_v39 }
 0x67a   :  { %12165 = vmatpush2.bf16.msra.mxu1 %v16740_v46  ;;  %v17825_v39 = vpop.f32.mrf.mxu0 }
 0x67b   :  { %12166 = vmatprep.subr.bf16.mxu1 %v16745_v5 }
 0x67c   :  { %12124 = vmatpush2.bf16.msra.mxu0 %v16695_v9  ;;  %v17829_v9 = vpop.f32.mrf.mxu0 }
 0x67d   :  { %12125 = vmatprep.subr.bf16.mxu0 %v16700_v19 }
 0x67e   :  { %12167 = vmatpush2.bf16.msra.mxu1 %v16743_v13  ;;  %v17833_v19 = vpop.f32.mrf.mxu0  ;;  %v18019_v13 = vsub.s32 2, %v18064_v25 }
 0x67f   :  { %12168 = vmatprep.subr.bf16.mxu1 %v16748_v53 }
 0x680   :  { %12126 = vmatpush2.bf16.msra.mxu0 %v16698_v60  ;;  %v17837_v60 = vpop.f32.mrf.mxu0  ;;  %v1700_v53 = vrot.slane %v17696_v57, %v18019_v13 }
 0x681   :  { %12127 = vmatprep.subr.bf16.mxu0 %v16703_v44 }
 0x682   :  { %12169 = vmatpush2.bf16.msra.mxu1 %v16746_v33  ;;  %v17841_v44 = vpop.f32.mrf.mxu0 }
 0x683   :  { %12170 = vmatprep.subr.bf16.mxu1 %v16751_v17 }
 0x684   :  { %12128 = vmatpush2.bf16.msra.mxu0 %v16701_v59  ;;  %v17845_v59 = vpop.f32.mrf.mxu0 }
 0x685   :  { %12129 = vmatprep.subr.bf16.mxu0 %v16706_v1  ;;  %v1703_v1 = vsub.s32 3, %v18064_v25 }
 0x686   :  { %12171 = vmatpush2.bf16.msra.mxu1 %v16749_v18 }
 0x687   :  { %12172 = vmatprep.subr.bf16.mxu1 %v16754_v30  ;;  %v10696_v30 = vadd.f32 %v17752_v24, %v1700_v53 }
 0x688   :  { %12130 = vmatpush2.bf16.msra.mxu0 %v16704_v54  ;;  %v17851_v54 = vpop.f32.mrf.mxu0 }
 0x689   :  { %12131 = vmatprep.subr.bf16.mxu0 %v16709_v50 }
 0x68a   :  { %12173 = vmatpush2.bf16.msra.mxu1 %v16752_v55  ;;  %v17859_v33 = vpop.f32.mrf.mxu0 }
 0x68b   :  { %12174 = vmatprep.subr.bf16.mxu1 %v16757_v41 }
 0x68c   :  { %12132 = vmatpush2.bf16.msra.mxu0 %v16707_v22  ;;  %v1704_v22 = vrot.slane %v17696_v57, %v1703_v1  ;;  %v17865_v55 = vpop.f32.mrf.mxu0  ;;  %v10739_v57 = vadd.f32 %v17754_v27, %v10696_v30 }
 0x68d   :  { %18100 = vst [vmem:[#allocation45_spill] sm:$0xff] %v17865_v55 }
 0x68e   :  { %12175 = vmatpush2.bf16.msra.mxu1 %v16755_v31  ;;  %v10698_v18 = vadd.f32 %v17756_v7, %v1704_v22  ;;  %v10700_v31 = vadd.f32 %v17760_v3, %v1700_v53  ;;  %v10702_v25 = vadd.f32 %v17764_v48, %v1704_v22  ;;  %v17873_v13 = vpop.f32.mrf.mxu0  ;;  %v16761_v22 = vld [vmem:[#allocation9 + $0x90] ss:$12 sps:$4 sm:$0xff]  }
 0x68f   :  { %12134 = vmatmul.mubr.bf16.vlgmr.msra.gmra.mxu0 %v17663_v10  ;;  %v17795_v10 = vpop.f32.mrf.mxu1  ;;  %v16766_v53 = vld [vmem:[#allocation9 + $0x7c] ss:$12 sps:$4 sm:$0xff]  }
 0x690   :  { %v10741_v1 = vadd.f32 %v17758_v63, %v10698_v18  ;;  %v10743_v7 = vadd.f32 %v17762_v20, %v10700_v31  ;;  %v17880_v55 = vpop.f32.mrf.mxu0  ;;  %v16763_v63 = vld [vmem:[#allocation9 + $0x94] ss:$12 sps:$4 sm:$0xff]   ;;  %v10745_v48 = vadd.f32 %v17766_v49, %v10702_v25  ;;  %v16785_v49 = vld [vmem:[#allocation9 + $0x170] ss:$12 sps:$4 sm:$0xff]  }
 0x691   :  { %v17799_v6 = vpop.f32.mrf.mxu1  ;;  %14324 = vmatprep.subr.bf16.mxu1 %v16785_v49  ;;  %v16776_v49 = vld [vmem:[#allocation9 + $0x18] ss:$12 sps:$4 sm:$0xff]  }
 0x692   :  { %v10784_v24 = vadd.f32 %v17772_v21, %v10741_v1  ;;  %v10786_v27 = vadd.f32 %v17776_v23, %v10743_v7  ;;  %v10788_v21 = vadd.f32 %v17780_v35, %v10745_v48  ;;  %v17889_v18 = vpop.f32.mrf.mxu0 }
 0x693   :  { %v17803_v42 = vpop.f32.mrf.mxu1 }
 0x694   :  { %v10827_v20 = vadd.f32 %v17774_v52, %v10784_v24  ;;  %v10829_v31 = vadd.f32 %v17778_v45, %v10786_v27  ;;  %v10831_v52 = vadd.f32 %v17782_v16, %v10788_v21 }
 0x695   :  { %v17807_v36 = vpop.f32.mrf.mxu1 }
 0x696   :  { %v10870_v25 = vadd.f32 %v17789_v28, %v10827_v20  ;;  %v10872_v35 = vadd.f32 %v17793_v29, %v10829_v31  ;;  %v10874_v28 = vadd.f32 %v17797_v56, %v10831_v52  ;;  %v16772_v29 = vld [vmem:[#allocation9 + $0x4c] ss:$12 sps:$4 sm:$0xff]   ;;  %v16778_v31 = vld [vmem:[#allocation9 + $0x1c] ss:$12 sps:$4 sm:$0xff]  }
 0x697   :  { %v17811_v0 = vpop.f32.mrf.mxu1 }
 0x698   :  { %v10913_v45 = vadd.f32 %v17791_v4, %v10870_v25  ;;  %v10917_v4 = vadd.f32 %v17799_v6, %v10874_v28 }
 0x699   :  { %v17815_v34 = vpop.f32.mrf.mxu1 }
 0x69a   :  { %v10956_v16 = vadd.f32 %v17805_v14, %v10913_v45  ;;  %v10960_v27 = vadd.f32 %v17813_v26, %v10917_v4 }
 0x69b   :  { %v17819_v37 = vpop.f32.mrf.mxu1 }
 0x69c   :  { %v10999_v14 = vadd.f32 %v17807_v36, %v10956_v16  ;;  %v11003_v36 = vadd.f32 %v17815_v34, %v10960_v27 }
 0x69d   :  { %v17823_v15 = vpop.f32.mrf.mxu1 }
 0x69e   :  { %v11042_v6 = vadd.f32 %v17821_v38, %v10999_v14 }
 0x69f   :  { %v17827_v43 = vpop.f32.mrf.mxu1 }
 0x6a1   :  { %v17831_v61 = vpop.f32.mrf.mxu1 }
 0x6a3   :  { %v17835_v47 = vpop.f32.mrf.mxu1 }
 0x6a5   :  { %v17839_v2 = vpop.f32.mrf.mxu1 }
 0x6a7   :  { %v17843_v46 = vpop.f32.mrf.mxu1 }
 0x6a9   :  { %v17847_v5 = vpop.f32.mrf.mxu1 }
 0x6ab   :  { %v17853_v50 = vpop.f32.mrf.mxu1 }
 0x6ac   :  { %18098 = vst [vmem:[#allocation41_spill] sm:$0xff] %v17853_v50  ;;  %v16758_v50 = vld [vmem:[#allocation9 + $0xa8] ss:$12 sps:$4 sm:$0xff]  }
 0x6ad   :  { %v17861_v17 = vpop.f32.mrf.mxu1 }
 0x6ae   :  { %18099 = vst [vmem:[#allocation44_spill] sm:$0xff] %v17861_v17  ;;  %v16760_v17 = vld [vmem:[#allocation9 + $0xac] ss:$12 sps:$4 sm:$0xff]  }
 0x6af   :  { %v17867_v41 = vpop.f32.mrf.mxu1  ;;  %12530 = vmatprep.subr.bf16.mxu0 %v16760_v17  ;;  %v16769_v17 = vld [vmem:[#allocation9 + $0x64] ss:$12 sps:$4 sm:$0xff]  }
 0x6b0   :  { %18101 = vst [vmem:[#allocation20_spill] sm:$0xff] %v17867_v41  ;;  %v10782_v41 = vadd.f32 %v17768_v51, %v10739_v57  ;;  %12531 = vmatpush1.bf16.msra.mxu0 %v16758_v50  ;;  %v16764_v50 = vld [vmem:[#allocation9 + $0x78] ss:$12 sps:$4 sm:$0xff]   ;;  %v10915_v57 = vadd.f32 %v17795_v10, %v10872_v35  ;;  %v16770_v10 = vld [vmem:[#allocation9 + $0x48] ss:$12 sps:$4 sm:$0xff]  }
 0x6b1   :  { %v17875_v32 = vpop.f32.mrf.mxu1  ;;  %12532 = vmatprep.subr.bf16.mxu0 %v16763_v63  ;;  %v16779_v35 = vld [vmem:[#allocation9] ss:$12 sps:$4 sm:$0xff]  }
 0x6b2   :  { %v10825_v51 = vadd.f32 %v17770_v8, %v10782_v41  ;;  %v17898_v8 = vpop.f32.mrf.mxu0  ;;  %v10958_v56 = vadd.f32 %v17809_v62, %v10915_v57 }
 0x6b3   :  { %v17882_v3 = vpop.f32.mrf.mxu1 }
 0x6b4   :  { %v10868_v23 = vadd.f32 %v17785_v11, %v10825_v51  ;;  %12533 = vmatpush1.bf16.msra.mxu0 %v16761_v22  ;;  %v16767_v11 = vld [vmem:[#allocation9 + $0x60] ss:$12 sps:$4 sm:$0xff]   ;;  %v17908_v24 = vpop.f32.mrf.mxu0  ;;  %v11001_v20 = vadd.f32 %v17811_v0, %v10958_v56  ;;  %v16773_v51 = vld [vmem:[#allocation9 + $0x30] ss:$12 sps:$4 sm:$0xff]   ;;  %v11046_v0 = vadd.f32 %v17829_v9, %v11003_v36 }
 0x6b5   :  { %v17891_v30 = vpop.f32.mrf.mxu1  ;;  %12534 = vmatprep.subr.bf16.mxu0 %v16766_v53 }
 0x6b6   :  { %v10911_v1 = vadd.f32 %v17787_v12, %v10868_v23  ;;  %v17914_v48 = vpop.f32.mrf.mxu0  ;;  %v11044_v26 = vadd.f32 %v17825_v39, %v11001_v20  ;;  %v16781_v39 = vld [vmem:[#allocation9 + $0x4] ss:$12 sps:$4 sm:$0xff]  }
 0x6b7   :  { %v17900_v41 = vpop.f32.mrf.mxu1  ;;  %v18105_v14 = vld [vmem:[#allocation20_spill] sm:$0xff] }
 0x6b8   :  { %12535 = vmatpush1.bf16.msra.mxu0 %v16764_v50  ;;  %v10954_v7 = vadd.f32 %v17801_v40, %v10911_v1  ;;  %v16775_v40 = vld [vmem:[#allocation9 + $0x34] ss:$12 sps:$4 sm:$0xff]   ;;  %v17924_v21 = vpop.f32.mrf.mxu0  ;;  %v11087_v23 = vadd.f32 %v17827_v43, %v11044_v26  ;;  %v16784_v43 = vld [vmem:[#allocation9 + $0x16c] ss:$12 sps:$4 sm:$0xff]   ;;  %v16799_v26 = vld [vmem:[#allocation9 + $0x124] ss:$12 sps:$4 sm:$0xff]  }
 0x6b9   :  { %12536 = vmatprep.subr.bf16.mxu0 %v16769_v17  ;;  %v17910_v63 = vpop.f32.mrf.mxu1 }
 0x6ba   :  { %v10997_v22 = vadd.f32 %v17803_v42, %v10954_v7  ;;  %v11085_v42 = vadd.f32 %v17823_v15, %v11042_v6  ;;  %v17933_v25 = vpop.f32.mrf.mxu0  ;;  %v11089_v15 = vadd.f32 %v17831_v61, %v11046_v0  ;;  %v11130_v9 = vadd.f32 %v17841_v44, %v11087_v23  ;;  %v16804_v23 = vld [vmem:[#allocation9 + $0x10c] ss:$12 sps:$4 sm:$0xff]  }
 0x6bb   :  { %v17916_v12 = vpop.f32.mrf.mxu1 }
 0x6bc   :  { %12537 = vmatpush1.bf16.msra.mxu0 %v16767_v11  ;;  %v11040_v62 = vadd.f32 %v17817_v58, %v10997_v22  ;;  %v11128_v34 = vadd.f32 %v17837_v60, %v11085_v42  ;;  %v11389_v52 = vpop.f32.mrf.mxu0  ;;  %v11132_v45 = vadd.f32 %v17845_v59, %v11089_v15  ;;  %v11173_v61 = vadd.f32 %v17843_v46, %v11130_v9  ;;  %v16782_v11 = vld [vmem:[#allocation9 + $0x168] ss:$12 sps:$4 sm:$0xff]  }
 0x6bd   :  { %12538 = vmatprep.subr.bf16.mxu0 %v16772_v29  ;;  %v17926_v53 = vpop.f32.mrf.mxu1  ;;  %v16789_v59 = vld [vmem:[#allocation9 + $0x154] ss:$12 sps:$4 sm:$0xff]  }
 0x6be   :  { %v11083_v38 = vadd.f32 %v17819_v37, %v11040_v62  ;;  %v11171_v17 = vadd.f32 %v17839_v2, %v11128_v34  ;;  %v11469_v28 = vpop.f32.mrf.mxu0  ;;  %v11175_v57 = vadd.f32 %v17847_v5, %v11132_v45  ;;  %v18102_v2 = vld [vmem:[#allocation45_spill] sm:$0xff]  ;;  %v16794_v5 = vld [vmem:[#allocation9 + $0x13c] ss:$12 sps:$4 sm:$0xff]  }
 0x6bf   :  { %v17935_v58 = vpop.f32.mrf.mxu1  ;;  %v11216_v16 = vadd.f32 %v18102_v2, %v11173_v61 }
 0x6c0   :  { %12539 = vmatpush1.bf16.msra.mxu0 %v16770_v10  ;;  %v11126_v50 = vadd.f32 %v17833_v19, %v11083_v38  ;;  %v11214_v19 = vadd.f32 %v17859_v33, %v11171_v17  ;;  %v11471_v29 = vpop.f32.mrf.mxu0  ;;  %v11218_v56 = vadd.f32 %v17873_v13, %v11175_v57  ;;  %v18104_v10 = vld [vmem:[#allocation41_spill] sm:$0xff]  ;;  %v16792_v13 = vld [vmem:[#allocation9 + $0x138] ss:$12 sps:$4 sm:$0xff]  }
 0x6c1   :  { %12540 = vmatprep.subr.bf16.mxu0 %v16775_v40  ;;  %v17942_v37 = vpop.f32.mrf.mxu1  ;;  %v16787_v33 = vld [vmem:[#allocation9 + $0x150] ss:$12 sps:$4 sm:$0xff]  }
 0x6c2   :  { %v11169_v60 = vadd.f32 %v17835_v47, %v11126_v50  ;;  %v18103_v47 = vld [vmem:[#allocation44_spill] sm:$0xff]  ;;  %v11473_v22 = vpop.f32.mrf.mxu0  ;;  %v11261_v6 = vadd.f32 %v17875_v32, %v11218_v56 }
 0x6c3   :  { %v17947_v1 = vpop.f32.mrf.mxu1  ;;  %v11257_v4 = vadd.f32 %v18103_v47, %v11214_v19 }
 0x6c4   :  { %12541 = vmatpush1.bf16.msra.mxu0 %v16773_v51  ;;  %v11212_v44 = vadd.f32 %v17851_v54, %v11169_v60  ;;  %v11259_v54 = vadd.f32 %v18105_v14, %v11216_v16  ;;  %v11304_v36 = vadd.f32 %v17908_v24, %v11261_v6 }
 0x6c5   :  { %12542 = vmatprep.subr.bf16.mxu0 %v16778_v31  ;;  %v11514_v7 = vpop.f32.mrf.mxu1  ;;  %v11300_v27 = vadd.f32 %v17889_v18, %v11257_v4  ;;  %v11475_v31 = vpop.f32.mrf.mxu0 }
 0x6c6   :  { %v11255_v46 = vadd.f32 %v18104_v10, %v11212_v44  ;;  %v11302_v62 = vadd.f32 %v17898_v8, %v11259_v54 }
 0x6c7   :  { %v11516_v20 = vpop.f32.mrf.mxu1  ;;  %v11343_v51 = vadd.f32 %v17891_v30, %v11300_v27  ;;  %v11347_v30 = vadd.f32 %v17910_v63, %v11304_v36 }
 0x6c8   :  { %12543 = vmatpush1.bf16.msra.mxu0 %v16776_v49  ;;  %v11298_v40 = vadd.f32 %v17880_v55, %v11255_v46  ;;  %v11345_v55 = vadd.f32 %v17900_v41, %v11302_v62  ;;  %v16797_v49 = vld [vmem:[#allocation9 + $0x120] ss:$12 sps:$4 sm:$0xff]  }
 0x6c9   :  { %12544 = vmatprep.subr.bf16.mxu0 %v16781_v39  ;;  %v11518_v42 = vpop.f32.mrf.mxu1  ;;  %v11386_v0 = vadd.f32 %v17924_v21, %v11343_v51  ;;  %v11390_v34 = vadd.f32 %v11389_v52, %v11347_v30  ;;  %v16802_v21 = vld [vmem:[#allocation9 + $0x108] ss:$12 sps:$4 sm:$0xff]   ;;  %v16786_v51 = vld [vmem:[#allocation9 + $0xb0] ss:$12 sps:$4 sm:$0xff]  }
 0x6ca   :  { %v11341_v18 = vadd.f32 %v17882_v3, %v11298_v40  ;;  %v11388_v24 = vadd.f32 %v17933_v25, %v11345_v55  ;;  %v16800_v55 = vld [vmem:[#allocation9 + $0x128] ss:$12 sps:$4 sm:$0xff]   ;;  %v16807_v30 = vld [vmem:[#allocation9 + $0xf0] ss:$12 sps:$4 sm:$0xff]  }
 0x6cb   :  { %v11429_v3 = vadd.f32 %v17926_v53, %v11386_v0  ;;  %v11433_v63 = vadd.f32 %v17942_v37, %v11390_v34  ;;  %v16801_v0 = vld [vmem:[#allocation9 + $0x68] ss:$12 sps:$4 sm:$0xff]   ;;  %v16812_v34 = vld [vmem:[#allocation9 + $0xd8] ss:$12 sps:$4 sm:$0xff]  }
 0x6cc   :  { %12545 = vmatpush1.bf16.msra.mxu0 %v16779_v35  ;;  %v11384_v32 = vadd.f32 %v17914_v48, %v11341_v18  ;;  %v11431_v48 = vadd.f32 %v17935_v58, %v11388_v24  ;;  %v16791_v18 = vld [vmem:[#allocation9 + $0x98] ss:$12 sps:$4 sm:$0xff]  }
 0x6cd   :  { %12546 = vmatprep.subr.bf16.mxu0 %v16784_v43  ;;  %v11472_v15 = vadd.f32 %v11471_v29, %v11429_v3  ;;  %v11476_v53 = vadd.f32 %v11475_v31, %v11433_v63  ;;  %v16795_v31 = vld [vmem:[#allocation9 + $0x140] ss:$12 sps:$4 sm:$0xff]   ;;  %v16811_v24 = vld [vmem:[#allocation9 + $0x38] ss:$12 sps:$4 sm:$0xff]   ;;  %v11769_v63 = vld [vmem:[#allocation7] sm:$0x3] }
 0x6ce   :  { %v11427_v39 = vadd.f32 %v17916_v12, %v11384_v32  ;;  %v11474_v35 = vadd.f32 %v11473_v22, %v11431_v48  ;;  %v16805_v32 = vld [vmem:[#allocation9 + $0x110] ss:$12 sps:$4 sm:$0xff]   ;;  %v16815_v3 = vld [vmem:[#allocation9 + $0xe0] ss:$12 sps:$4 sm:$0xff]   ;;  %v16821_v48 = vld [vmem:[#allocation9 + $0x8] ss:$12 sps:$4 sm:$0xff]  }
 0x6cf   :  { %v11555_v38 = vpop.f32.mrf.mxu0  ;;  %v11515_v45 = vadd.f32 %v11514_v7, %v11472_v15  ;;  %v11519_v44 = vadd.f32 %v11518_v42, %v11476_v53  ;;  %v16796_v42 = vld [vmem:[#allocation9 + $0x80] ss:$12 sps:$4 sm:$0xff]  }
 0x6d0   :  { %12547 = vmatpush2.bf16.msra.mxu0 %v16782_v11  ;;  %v11598_v8 = vpop.f32.mrf.mxu1  ;;  %v11470_v9 = vadd.f32 %v11469_v28, %v11427_v39  ;;  %v11517_v12 = vadd.f32 %v11516_v20, %v11474_v35  ;;  %v16816_v39 = vld [vmem:[#allocation9 + $0x20] ss:$12 sps:$4 sm:$0xff]  }
 0x6d1   :  { %12548 = vmatprep.subr.bf16.mxu0 %v16789_v59  ;;  %v11557_v41 = vpop.f32.mrf.mxu0 }
 0x6d2   :  { %v11600_v50 = vpop.f32.mrf.mxu1  ;;  %v11513_v52 = vadd.f32 %v17947_v1, %v11470_v9  ;;  %v11558_v43 = vadd.f32 %v11557_v41, %v11515_v45  ;;  %v16819_v41 = vld [vmem:[#allocation9 + $0xc4] ss:$12 sps:$4 sm:$0xff]  }
 0x6d3   :  { %v11559_v25 = vpop.f32.mrf.mxu0  ;;  %v18107_v45 = vld [vmem:[#allocation17_spill] sm:$0xff] }
 0x6d4   :  { %12549 = vmatpush2.bf16.msra.mxu0 %v16787_v33  ;;  %v11602_v17 = vpop.f32.mrf.mxu1  ;;  %v11556_v60 = vadd.f32 %v11555_v38, %v11513_v52  ;;  %v11560_v58 = vadd.f32 %v11559_v25, %v11517_v12  ;;  %v11601_v28 = vadd.f32 %v11600_v50, %v11558_v43  ;;  %v16806_v38 = vld [vmem:[#allocation9 + $0x50] ss:$12 sps:$4 sm:$0xff]   ;;  %v16820_v50 = vld [vmem:[#allocation9 + $0xc8] ss:$12 sps:$4 sm:$0xff]   ;;  %v11774_v53 = vrot.slane %v11769_v63, %v18107_v45 }
 0x6d5   :  { %12550 = vmatprep.subr.bf16.mxu0 %v16794_v5  ;;  %v11561_v61 = vpop.f32.mrf.mxu0  ;;  %v18106_v25 = vld [vmem:[#allocation40_spill] sm:$0xff] }
 0x6d6   :  { %v11604_v19 = vpop.f32.mrf.mxu1  ;;  %v11562_v2 = vadd.f32 %v11561_v61, %v11519_v44  ;;  %v11599_v37 = vadd.f32 %v11598_v8, %v11556_v60  ;;  %v11603_v29 = vadd.f32 %v11602_v17, %v11560_v58  ;;  %v16809_v8 = vld [vmem:[#allocation9 + $0xf4] ss:$12 sps:$4 sm:$0xff]   ;;  %v11778_v17 = vrot.slane %v11769_v63, %v18106_v25 }
 0x6d8   :  { %12551 = vmatpush2.bf16.msra.mxu0 %v16792_v13  ;;  %v11605_v1 = vadd.f32 %v11604_v19, %v11562_v2 }
 0x6d9   :  { %12552 = vmatprep.subr.bf16.mxu0 %v16799_v26  ;;  %v16790_v26 = vld [vmem:[#allocation9 + $0x158] ss:$12 sps:$4 sm:$0xff]  }
 0x6dc   :  { %12553 = vmatpush2.bf16.msra.mxu0 %v16797_v49  ;;  %v16810_v49 = vld [vmem:[#allocation9 + $0xf8] ss:$12 sps:$4 sm:$0xff]  }
 0x6dd   :  { %12554 = vmatprep.subr.bf16.mxu0 %v16804_v23  ;;  %v16814_v23 = vld [vmem:[#allocation9 + $0xdc] ss:$12 sps:$4 sm:$0xff]  }
 0x6e0   :  { %12555 = vmatpush2.bf16.msra.mxu0 %v16802_v21  ;;  %v16817_v21 = vld [vmem:[#allocation9 + $0xc0] ss:$12 sps:$4 sm:$0xff]  }
 0x6e1   :  { %12556 = vmatprep.subr.bf16.mxu0 %v16809_v8 }
 0x6e4   :  { %12557 = vmatpush2.bf16.msra.mxu0 %v16807_v30 }
 0x6e5   :  { %12558 = vmatprep.subr.bf16.mxu0 %v16814_v23 }
 0x6e8   :  { %12559 = vmatpush2.bf16.msra.mxu0 %v16812_v34 }
 0x6e9   :  { %12560 = vmatprep.subr.bf16.mxu0 %v16819_v41 }
 0x6ec   :  { %12561 = vmatpush2.bf16.msra.mxu0 %v16817_v21 }
 0x70f   :  { %v11641_v11 = vpop.f32.mrf.mxu0 }
 0x710   :  { %v11684_v57 = vpop.f32.mrf.mxu1  ;;  %v11642_v7 = vadd.f32 %v11641_v11, %v11599_v37 }
 0x711   :  { %v11643_v16 = vpop.f32.mrf.mxu0 }
 0x712   :  { %v11686_v59 = vpop.f32.mrf.mxu1  ;;  %v11644_v47 = vadd.f32 %v11643_v16, %v11601_v28  ;;  %v11685_v27 = vadd.f32 %v11684_v57, %v11642_v7 }
 0x713   :  { %v11645_v4 = vpop.f32.mrf.mxu0 }
 0x714   :  { %v11688_v56 = vpop.f32.mrf.mxu1  ;;  %v11646_v10 = vadd.f32 %v11645_v4, %v11603_v29  ;;  %v11687_v33 = vadd.f32 %v11686_v59, %v11644_v47  ;;  %v11695_v62 = vmax.f32 %v11685_v27, 0.0 }
 0x715   :  { %v11647_v46 = vpop.f32.mrf.mxu0 }
 0x716   :  { %v11689_v14 = vadd.f32 %v11688_v56, %v11646_v10  ;;  %v11648_v54 = vadd.f32 %v11647_v46, %v11605_v1  ;;  %v11690_v5 = vpop.f32.mrf.mxu1  ;;  %v11696_v20 = vmax.f32 %v11687_v33, 0.0  ;;  %v12257_v56 = vld [vmem:[#allocation10] sm:$0x7] }
 0x717   :  { %v12262_v1 = vrot.slane %v12257_v56, %v18107_v45  ;;  %v12266_v10 = vrot.slane %v12257_v56, %v18106_v25 }
 0x718   :  { %v11691_v40 = vadd.f32 %v11690_v5, %v11648_v54  ;;  %v11699_v22 = vmax.f32 %v11689_v14, 0.0  ;;  %v18108_v54 = vld [vmem:[#allocation16_spill] sm:$0xff] }
 0x719   :  { %v18109_v27 = vsub.s32 2, %v18108_v54 }
 0x71a   :  { %v11700_v6 = vmax.f32 %v11691_v40, 0.0  ;;  %v11703_v36 = vpack.c.bf16 %v11699_v22, %v11695_v62 }
 0x71b   :  { %v12270_v5 = vrot.slane %v12257_v56, %v18109_v27 }
 0x71c   :  { %v11704_v13 = vpack.c.bf16 %v11700_v6, %v11696_v20 }
 0x71e   :  { %12176 = vmatprep.mubr.bf16.mxu1 %v11704_v13 }
 0x71f   :  { %12177 = vmatmul.mubr.bf16.vlgmr.msra.gmra.mxu1 %v11703_v36 }
 0x720   :  { %14325 = vmatpush3.bf16.msra.mxu1 %v16786_v51 }
 0x721   :  { %14326 = vmatprep.subr.bf16.mxu1 %v16790_v26 }
 0x724   :  { %14327 = vmatpush3.bf16.msra.mxu1 %v16791_v18 }
 0x725   :  { %14328 = vmatprep.subr.bf16.mxu1 %v16795_v31 }
 0x728   :  { %14329 = vmatpush3.bf16.msra.mxu1 %v16796_v42 }
 0x729   :  { %14330 = vmatprep.subr.bf16.mxu1 %v16800_v55 }
 0x72c   :  { %14331 = vmatpush3.bf16.msra.mxu1 %v16801_v0 }
 0x72d   :  { %14332 = vmatprep.subr.bf16.mxu1 %v16805_v32 }
 0x730   :  { %14333 = vmatpush3.bf16.msra.mxu1 %v16806_v38 }
 0x731   :  { %14334 = vmatprep.subr.bf16.mxu1 %v16810_v49 }
 0x734   :  { %14335 = vmatpush3.bf16.msra.mxu1 %v16811_v24 }
 0x735   :  { %14336 = vmatprep.subr.bf16.mxu1 %v16815_v3 }
 0x738   :  { %14337 = vmatpush3.bf16.msra.mxu1 %v16816_v39 }
 0x739   :  { %14338 = vmatprep.subr.bf16.mxu1 %v16820_v50 }
 0x73c   :  { %14339 = vmatpush3.bf16.msra.mxu1 %v16821_v48 }
 0x74f   :  { %v12135_v15 = vpop.f32.mrf.mxu0 }
 0x750   :  { %v12136_v19 = vadd.f32 %v12135_v15, %v11774_v53 }
 0x751   :  { %v12137_v9 = vpop.f32.mrf.mxu0 }
 0x752   :  { %v12138_v60 = vadd.f32 %v12137_v9, %v11778_v17 }
 0x753   :  { %v12139_v35 = vpop.f32.mrf.mxu0 }
 0x754   :  { %v12140_v61 = vadd.f32 %v12139_v35, %v11774_v53 }
 0x755   :  { %v12141_v12 = vpop.f32.mrf.mxu0 }
 0x756   :  { %v12142_v58 = vadd.f32 %v12141_v12, %v11778_v17 }
 0x7df   :  { %v12178_v52 = vpop.f32.mrf.mxu1 }
 0x7e0   :  { %v12179_v28 = vadd.f32 %v12178_v52, %v12136_v19 }
 0x7e1   :  { %v12180_v43 = vpop.f32.mrf.mxu1 }
 0x7e2   :  { %v12181_v11 = vadd.f32 %v12180_v43, %v12138_v60  ;;  %v12187_v47 = vmax.f32 %v12179_v28, 0.0 }
 0x7e3   :  { %v12182_v44 = vpop.f32.mrf.mxu1 }
 0x7e4   :  { %v12183_v57 = vadd.f32 %v12182_v44, %v12140_v61  ;;  %v12188_v59 = vmax.f32 %v12181_v11, 0.0 }
 0x7e5   :  { %v12184_v2 = vpop.f32.mrf.mxu1 }
 0x7e6   :  { %v12185_v37 = vadd.f32 %v12184_v2, %v12142_v58  ;;  %v12189_v16 = vmax.f32 %v12183_v57, 0.0 }
 0x7e8   :  { %v12190_v29 = vmax.f32 %v12185_v37, 0.0  ;;  %v12191_v4 = vpack.c.bf16 %v12189_v16, %v12187_v47 }
 0x7ea   :  { %v12192_v7 = vpack.c.bf16 %v12190_v29, %v12188_v59 }
 0x7ec   :  { %12562 = vmatprep.mubr.bf16.mxu0 %v12192_v7  ;;  %12605 = vmatprep.mubr.bf16.mxu1 %v12192_v7 }
 0x7ed   :  { %12563 = vmatmul.mubr.bf16.vlgmr.msra.gmra.mxu0 %v12191_v4  ;;  %12606 = vmatmul.mubr.bf16.vlgmr.msra.gmra.mxu1 %v12191_v4 }
 0x8ad   :  { %v12564_v46 = vpop.f32.mrf.mxu0  ;;  %v14340_v33 = vpop.f32.mrf.mxu1 }
 0x8ae   :  { %v12565_v14 = vadd.f32 %v12564_v46, %v12262_v1 }
 0x8af   :  { %v12566_v40 = vpop.f32.mrf.mxu0  ;;  %v14341_v22 = vpop.f32.mrf.mxu1 }
 0x8b0   :  { %12614 = vst [vmem:[%s18006_s7] sm:$0xff] %v12565_v14  ;;  %v12567_v20 = vadd.f32 %v12566_v40, %v12266_v10  ;;  %v14342_v6 = vadd.f32 %v14341_v22, %v14340_v33 }
 0x8b1   :  { %v12568_v62 = vpop.f32.mrf.mxu0  ;;  %v14343_v13 = vpop.f32.mrf.mxu1 }
 0x8b2   :  { %12615 = vst [vmem:[%s18006_s7 + $0x8] sm:$0xff] %v12567_v20  ;;  %v12608_v51 = vadd.f32 %v14342_v6, %v12270_v5  ;;  %v12569_v36 = vadd.f32 %v12568_v62, %v12262_v1 }
 0x8b3   :  { %v12570_v26 = vpop.f32.mrf.mxu0  ;;  %v14344_v18 = vpop.f32.mrf.mxu1 }
 0x8b4   :  { %12616 = vst [vmem:[%s18006_s7 + $0x10] sm:$0xff] %v12608_v51  ;;  %12617 = vst [vmem:[%s18006_s7 + $0x18] sm:$0xff] %v12569_v36  ;;  %v12571_v31 = vadd.f32 %v12570_v26, %v12266_v10  ;;  %v14345_v42 = vadd.f32 %v14344_v18, %v14343_v13 }
 0x8b6   :  { %12618 = vst [vmem:[%s18006_s7 + $0x20] sm:$0xff] %v12571_v31  ;;  %v12611_v55 = vadd.f32 %v14345_v42, %v12270_v5 }
 0x8b8   :  { %12619 = vst [vmem:[%s18006_s7 + $0x28] sm:$0xff] %v12611_v55 }
 0x8b9   :  { %12624 = vsyncpa [#allocation3], 1 }
 0x8ba   :  { %12625 = vsyncpa [#allocation5], 1 }
 0x8bb   :  { %12626 = vsyncpa [#allocation8], 1 }
 0x8bc   :  { %12627 = vsyncpa [#allocation11], 1 }

</bundles_post_ra>
